<compile_context>
chip_gen: v6e
topology: v6e:2x2x1
jax: 0.10.0
libtpu: 0.0.40
codegen_flags: <defaults>
</compile_context>

<pallas_src>
import functools

import jax
import jax.numpy as jnp
import numpy as np
from jax.experimental import pallas as pl
from jax.experimental.pallas import tpu as pltpu


def _round_up(x, m):
    return (x + m - 1) // m * m


# ---------------------------------------------------------------------------
# Pallas kernel: fused TimeEncode + GRUCell (fused gates) + node-feature Linear
# ---------------------------------------------------------------------------
def _gru_memory_kernel(
    x_ref,        # (TM, D_in)      bf16  mem_input
    dt_ref,       # (TM, 1)         f32   ts - mem_ts
    mem_ref,      # (TM, H)         f32   previous memory (GRU hidden state)
    hfeat_ref,    # (TM, D_node)    bf16  node features b.srcdata['h']
    time_w_ref,   # (1, D_time)     f32
    time_b_ref,   # (1, D_time)     f32
    w_ihx_ref,    # (D_in,   3H)    bf16  rows of fused W_ih for mem_input
    w_iht_ref,    # (D_time, 3H)    bf16  rows of fused W_ih for time_feat
    w_hh_ref,     # (H, 3H)         bf16  fused W_hh
    b_ih_ref,     # (1, 3H)         f32   fused input bias  [r|z|n]
    b_hh_ref,     # (1, 3H)         f32   fused hidden bias [r|z|n]
    nmap_w_ref,   # (D_node, H)     bf16
    nmap_b_ref,   # (1, H)          f32
    upd_ref,      # out: (TM, H) f32  updated_memory
    hout_ref,     # out: (TM, H) f32  combined node feature
):
    H = upd_ref.shape[1]

    def dot16(a, w_ref):
        # bf16 MXU matmul, f32 accumulation.
        return jnp.dot(a.astype(jnp.bfloat16), w_ref[...],
                       preferred_element_type=jnp.float32)

    # TimeEncode: cos(dt * w + b) in f32 (cos goes to the EUP).
    time_feat = jnp.cos(dt_ref[...] * time_w_ref[...] + time_b_ref[...])

    h = mem_ref[...]  # f32

    # Fused gate pre-activations. Column order is [r | z | n].
    # Concatenation of [mem_input, time_feat] is avoided by splitting W_ih by rows.
    gi = dot16(x_ref[...], w_ihx_ref) + dot16(time_feat, w_iht_ref) + b_ih_ref[...]
    gh = dot16(h, w_hh_ref) + b_hh_ref[...]

    # PyTorch GRUCell:
    #   r  = sigmoid(gi_r + gh_r)
    #   z  = sigmoid(gi_z + gh_z)
    #   n  = tanh   (gi_n + r * gh_n)        (b_hn stays inside r*(.): gh_n includes it)
    #   h' = (1 - z) * n + z * h
    r = jax.nn.sigmoid(gi[:, :H] + gh[:, :H])
    z = jax.nn.sigmoid(gi[:, H:2 * H] + gh[:, H:2 * H])
    n = jnp.tanh(gi[:, 2 * H:] + r * gh[:, 2 * H:])
    new_h = (1.0 - z) * n + z * h

    upd_ref[...] = new_h
    # combine_node_feature with dim_node_feat != dim_hid:
    #   h_out = updated_memory + node_feat_map(h_feat)
    hout_ref[...] = new_h + dot16(hfeat_ref[...], nmap_w_ref) + nmap_b_ref[...]


# ---------------------------------------------------------------------------
# Wrapper
# ---------------------------------------------------------------------------
@functools.partial(jax.jit, static_argnames=("tile_m",))
def gru_memory_updater(mem_input, ts, mem_ts, mem, h_feat, params, *, tile_m=256):
    """Returns (updated_memory, h_out, last_updated_ts)."""
    N, D_in = mem_input.shape
    H = mem.shape[1]
    D_node = h_feat.shape[1]
    D_time = params["time_w"].shape[1]

    dt = (ts - mem_ts).reshape(N, 1).astype(jnp.float32)

    # bf16 for matmul-only operands (MXU-native, halves their HBM traffic).
    x_bf = mem_input.astype(jnp.bfloat16)
    hf_bf = h_feat.astype(jnp.bfloat16)
    mem_f = mem.astype(jnp.float32)

    # Pick row tile; pad N up so arbitrary batch sizes work with large tiles.
    tm = min(tile_m, _round_up(max(N, 1), 8))
    n_pad = _round_up(N, tm)
    if n_pad != N:
        pad = ((0, n_pad - N), (0, 0))
        x_bf = jnp.pad(x_bf, pad)
        dt = jnp.pad(dt, pad)
        mem_f = jnp.pad(mem_f, pad)
        hf_bf = jnp.pad(hf_bf, pad)
    grid = n_pad // tm

    weights = [
        params["time_w"].astype(jnp.float32),
        params["time_b"].astype(jnp.float32),
        params["w_ih_x"].astype(jnp.bfloat16),
        params["w_ih_t"].astype(jnp.bfloat16),
        params["w_hh"].astype(jnp.bfloat16),
        params["b_ih"].astype(jnp.float32),
        params["b_hh"].astype(jnp.float32),
        params["nmap_w"].astype(jnp.bfloat16),
        params["nmap_b"].astype(jnp.float32),
    ]

    def row_spec(width):
        return pl.BlockSpec((tm, width), lambda i: (i, 0))

    def full_spec(arr):
        return pl.BlockSpec(arr.shape, lambda i: (0, 0))

    in_specs = [
        row_spec(D_in),    # mem_input (bf16)
        row_spec(1),       # dt
        row_spec(H),       # mem
        row_spec(D_node),  # node feats (bf16)
    ] + [full_spec(w) for w in weights]
    out_specs = [row_spec(H), row_spec(H)]

    # Advisory cost estimate for the XLA scheduler.
    flops = 2 * n_pad * ((D_in + D_time) * 3 * H + H * 3 * H + D_node * H)
    transcendentals = n_pad * (D_time + 3 * H)
    bytes_accessed = (
        sum(int(a.size) * a.dtype.itemsize for a in [x_bf, dt, mem_f, hf_bf] + weights)
        + 2 * n_pad * H * 4
    )

    upd, h_out = pl.pallas_call(
        _gru_memory_kernel,
        out_shape=(
            jax.ShapeDtypeStruct((n_pad, H), jnp.float32),
            jax.ShapeDtypeStruct((n_pad, H), jnp.float32),
        ),
        grid_spec=pltpu.PrefetchScalarGridSpec(
            num_scalar_prefetch=0,
            grid=(grid,),
            in_specs=in_specs,
            out_specs=out_specs,
        ),
        compiler_params=pltpu.CompilerParams(
            dimension_semantics=("parallel",)),
        cost_estimate=pl.CostEstimate(
            flops=flops,
            transcendentals=transcendentals,
            bytes_accessed=bytes_accessed),
    )(x_bf, dt, mem_f, hf_bf, *weights)

    if n_pad != N:
        upd = upd[:N]
        h_out = h_out[:N]

    # last_updated_ts / last_updated_nid are pure copies of inputs (no compute).
    return upd, h_out, ts


# ---------------------------------------------------------------------------
# Deterministic parameter init (fused-gate layout, mirrors torch shapes)
# ---------------------------------------------------------------------------
def init_params(key, dim_in, dim_hid, dim_time, dim_node_feat):
    ks = jax.random.split(key, 6)
    bound_g = 1.0 / np.sqrt(dim_hid)
    bound_n = 1.0 / np.sqrt(dim_node_feat)

    def u(k, shape, bound):
        return jax.random.uniform(k, shape, jnp.float32, -bound, bound)

    # TimeEncode: weight = 1 / 10 ** linspace(0, 9, dim_time), bias = 0 (TGL init).
    time_w = (1.0 / 10 ** np.linspace(0, 9, dim_time, dtype=np.float32)).reshape(1, dim_time)

    # GRUCell weights stored pre-transposed and gate-fused: columns ordered [r | z | n].
    w_ih = u(ks[0], (dim_in + dim_time, 3 * dim_hid), bound_g)

    return {
        "time_w": jnp.asarray(time_w),
        "time_b": jnp.zeros((1, dim_time), jnp.float32),
        "w_ih_x": w_ih[:dim_in],                 # (D_in,   3H)
        "w_ih_t": w_ih[dim_in:],                 # (D_time, 3H)
        "w_hh": u(ks[1], (dim_hid, 3 * dim_hid), bound_g),
        "b_ih": u(ks[2], (1, 3 * dim_hid), bound_g),
        "b_hh": u(ks[3], (1, 3 * dim_hid), bound_g),
        "nmap_w": u(ks[4], (dim_node_feat, dim_hid), bound_n),
        "nmap_b": u(ks[5], (1, dim_hid), bound_n),
    }


# ---------------------------------------------------------------------------
# Pure-JAX f32 reference (same math, no Pallas / no bf16) for correctness check
# ---------------------------------------------------------------------------
def reference(mem_input, ts, mem_ts, mem, h_feat, p):
    H = mem.shape[1]
    dt = (ts - mem_ts).reshape(-1, 1)
    time_feat = jnp.cos(dt * p["time_w"] + p["time_b"])
    gi = mem_input @ p["w_ih_x"] + time_feat @ p["w_ih_t"] + p["b_ih"]
    gh = mem @ p["w_hh"] + p["b_hh"]
    r = jax.nn.sigmoid(gi[:, :H] + gh[:, :H])
    z = jax.nn.sigmoid(gi[:, H:2 * H] + gh[:, H:2 * H])
    n = jnp.tanh(gi[:, 2 * H:] + r * gh[:, 2 * H:])
    upd = (1.0 - z) * n + z * mem
    h_out = upd + h_feat @ p["nmap_w"] + p["nmap_b"]
    return upd, h_out


if __name__ == "__main__":
    # Small, lane-friendly shapes: hidden=128 keeps gate slices and output stores
    # 128-lane dense; dim_node_feat != dim_hid exercises the Linear branch.
    N, dim_in, dim_hid, dim_time, dim_node_feat = 512, 32, 128, 32, 16

    key = jax.random.PRNGKey(0)
    k_in, k_mem, k_h, k_ts, k_mts, k_p = jax.random.split(key, 6)

    mem_input = jax.random.normal(k_in, (N, dim_in), jnp.float32)
    mem = jax.random.normal(k_mem, (N, dim_hid), jnp.float32)
    h_feat = jax.random.normal(k_h, (N, dim_node_feat), jnp.float32)
    ts = jax.random.uniform(k_ts, (N,), jnp.float32, 10.0, 100.0)
    mem_ts = ts - jax.random.uniform(k_mts, (N,), jnp.float32, 0.0, 10.0)

    params = init_params(k_p, dim_in, dim_hid, dim_time, dim_node_feat)

    # tile_m=256 -> grid of 2 parallel steps (keeps v7x's second TensorCore busy).
    upd, h_out, last_ts = gru_memory_updater(
        mem_input, ts, mem_ts, mem, h_feat, params, tile_m=256)
    jax.block_until_ready((upd, h_out, last_ts))

    upd_ref, h_out_ref = reference(mem_input, ts, mem_ts, mem, h_feat, params)
    # bf16 matmul inputs with f32 accumulation -> loosened tolerance vs f32 reference.
    np.testing.assert_allclose(np.asarray(upd), np.asarray(upd_ref), rtol=5e-2, atol=5e-2)
    np.testing.assert_allclose(np.asarray(h_out), np.asarray(h_out_ref), rtol=5e-2, atol=5e-2)

    # Ragged batch (N not a multiple of the tile): exercises the padding path.
    Nr = 300
    upd_r, hout_r, _ = gru_memory_updater(
        mem_input[:Nr], ts[:Nr], mem_ts[:Nr], mem[:Nr], h_feat[:Nr], params, tile_m=256)
    jax.block_until_ready((upd_r, hout_r))
    np.testing.assert_allclose(np.asarray(upd_r), np.asarray(upd_ref)[:Nr], rtol=5e-2, atol=5e-2)
    np.testing.assert_allclose(np.asarray(hout_r), np.asarray(h_out_ref)[:Nr], rtol=5e-2, atol=5e-2)

    print("KERNEL_OK")
</pallas_src>

<mosaic_0001>
module attributes {stable_mosaic.version = 11 : i64} {
  func.func @_gru_memory_kernel(%arg0: i32, %arg1: memref<256x32xbf16, #tpu.memory_space<vmem>>, %arg2: memref<256x1xf32, #tpu.memory_space<vmem>>, %arg3: memref<256x128xf32, #tpu.memory_space<vmem>>, %arg4: memref<256x16xbf16, #tpu.memory_space<vmem>>, %arg5: memref<1x32xf32, #tpu.memory_space<vmem>>, %arg6: memref<1x32xf32, #tpu.memory_space<vmem>>, %arg7: memref<32x384xbf16, #tpu.memory_space<vmem>>, %arg8: memref<32x384xbf16, #tpu.memory_space<vmem>>, %arg9: memref<128x384xbf16, #tpu.memory_space<vmem>>, %arg10: memref<1x384xf32, #tpu.memory_space<vmem>>, %arg11: memref<1x384xf32, #tpu.memory_space<vmem>>, %arg12: memref<16x128xbf16, #tpu.memory_space<vmem>>, %arg13: memref<1x128xf32, #tpu.memory_space<vmem>>, %arg14: memref<256x128xf32, #tpu.memory_space<vmem>>, %arg15: memref<256x128xf32, #tpu.memory_space<vmem>>) attributes {dimension_semantics = [#tpu.dimension_semantics<parallel>], iteration_bounds = array<i64: 2>, scalar_prefetch = 0 : i64, scratch_operands = 0 : i64, tpu.core_type = #tpu.core_type<tc>, window_params = [{transform_indices = @transform_0, window_bounds = array<i64: 256, 32>}, {transform_indices = @transform_1, window_bounds = array<i64: 256, 1>}, {transform_indices = @transform_2, window_bounds = array<i64: 256, 128>}, {transform_indices = @transform_3, window_bounds = array<i64: 256, 16>}, {pipeline_mode = #tpu.pipeline_mode<synchronous>, transform_indices = @transform_4, window_bounds = array<i64: 1, 32>}, {pipeline_mode = #tpu.pipeline_mode<synchronous>, transform_indices = @transform_5, window_bounds = array<i64: 1, 32>}, {pipeline_mode = #tpu.pipeline_mode<synchronous>, transform_indices = @transform_6, window_bounds = array<i64: 32, 384>}, {pipeline_mode = #tpu.pipeline_mode<synchronous>, transform_indices = @transform_7, window_bounds = array<i64: 32, 384>}, {pipeline_mode = #tpu.pipeline_mode<synchronous>, transform_indices = @transform_8, window_bounds = array<i64: 128, 384>}, {pipeline_mode = #tpu.pipeline_mode<synchronous>, transform_indices = @transform_9, window_bounds = array<i64: 1, 384>}, {pipeline_mode = #tpu.pipeline_mode<synchronous>, transform_indices = @transform_10, window_bounds = array<i64: 1, 384>}, {pipeline_mode = #tpu.pipeline_mode<synchronous>, transform_indices = @transform_11, window_bounds = array<i64: 16, 128>}, {pipeline_mode = #tpu.pipeline_mode<synchronous>, transform_indices = @transform_12, window_bounds = array<i64: 1, 128>}, {transform_indices = @transform_13, window_bounds = array<i64: 256, 128>}, {transform_indices = @transform_14, window_bounds = array<i64: 256, 128>}]} {
    %c0 = arith.constant 0 : index
    %c0_0 = arith.constant 0 : index
    %0 = vector.load %arg2[%c0, %c0_0] : memref<256x1xf32, #tpu.memory_space<vmem>>, vector<256x1xf32>
    %c0_1 = arith.constant 0 : index
    %c0_2 = arith.constant 0 : index
    %1 = vector.load %arg5[%c0_1, %c0_2] : memref<1x32xf32, #tpu.memory_space<vmem>>, vector<1x32xf32>
    %2 = vector.broadcast %0 : vector<256x1xf32> to vector<256x32xf32>
    %3 = vector.broadcast %1 : vector<1x32xf32> to vector<256x32xf32>
    %4 = arith.mulf %2, %3 : vector<256x32xf32>
    %c0_3 = arith.constant 0 : index
    %c0_4 = arith.constant 0 : index
    %5 = vector.load %arg6[%c0_3, %c0_4] : memref<1x32xf32, #tpu.memory_space<vmem>>, vector<1x32xf32>
    %6 = vector.broadcast %5 : vector<1x32xf32> to vector<256x32xf32>
    %7 = arith.addf %4, %6 : vector<256x32xf32>
    %8 = math.cos %7 : vector<256x32xf32>
    %c0_5 = arith.constant 0 : index
    %c0_6 = arith.constant 0 : index
    %9 = vector.load %arg3[%c0_5, %c0_6] : memref<256x128xf32, #tpu.memory_space<vmem>>, vector<256x128xf32>
    %c0_7 = arith.constant 0 : index
    %c0_8 = arith.constant 0 : index
    %10 = vector.load %arg1[%c0_7, %c0_8] : memref<256x32xbf16, #tpu.memory_space<vmem>>, vector<256x32xbf16>
    %c0_9 = arith.constant 0 : index
    %c0_10 = arith.constant 0 : index
    %11 = vector.load %arg7[%c0_9, %c0_10] : memref<32x384xbf16, #tpu.memory_space<vmem>>, vector<32x384xbf16>
    %cst = arith.constant dense<0.000000e+00> : vector<256x384xf32>
    %12 = tpu.matmul %10, %11, %cst {dimension_numbers = #tpu.dot_dimension_numbers<[1], [0], [0], [1], [0, 0, 1, 1], [], []>} : vector<256x32xbf16>, vector<32x384xbf16>, vector<256x384xf32> -> vector<256x384xf32>
    %13 = arith.truncf %8 : vector<256x32xf32> to vector<256x32xbf16>
    %c0_11 = arith.constant 0 : index
    %c0_12 = arith.constant 0 : index
    %14 = vector.load %arg8[%c0_11, %c0_12] : memref<32x384xbf16, #tpu.memory_space<vmem>>, vector<32x384xbf16>
    %cst_13 = arith.constant dense<0.000000e+00> : vector<256x384xf32>
    %15 = tpu.matmul %13, %14, %cst_13 {dimension_numbers = #tpu.dot_dimension_numbers<[1], [0], [0], [1], [0, 0, 1, 1], [], []>} : vector<256x32xbf16>, vector<32x384xbf16>, vector<256x384xf32> -> vector<256x384xf32>
    %16 = arith.addf %12, %15 : vector<256x384xf32>
    %c0_14 = arith.constant 0 : index
    %c0_15 = arith.constant 0 : index
    %17 = vector.load %arg10[%c0_14, %c0_15] : memref<1x384xf32, #tpu.memory_space<vmem>>, vector<1x384xf32>
    %18 = vector.broadcast %17 : vector<1x384xf32> to vector<256x384xf32>
    %19 = arith.addf %16, %18 : vector<256x384xf32>
    %20 = arith.truncf %9 : vector<256x128xf32> to vector<256x128xbf16>
    %c0_16 = arith.constant 0 : index
    %c0_17 = arith.constant 0 : index
    %21 = vector.load %arg9[%c0_16, %c0_17] : memref<128x384xbf16, #tpu.memory_space<vmem>>, vector<128x384xbf16>
    %cst_18 = arith.constant dense<0.000000e+00> : vector<256x384xf32>
    %22 = tpu.matmul %20, %21, %cst_18 {dimension_numbers = #tpu.dot_dimension_numbers<[1], [0], [0], [1], [0, 0, 1, 1], [], []>} : vector<256x128xbf16>, vector<128x384xbf16>, vector<256x384xf32> -> vector<256x384xf32>
    %c0_19 = arith.constant 0 : index
    %c0_20 = arith.constant 0 : index
    %23 = vector.load %arg11[%c0_19, %c0_20] : memref<1x384xf32, #tpu.memory_space<vmem>>, vector<1x384xf32>
    %24 = vector.broadcast %23 : vector<1x384xf32> to vector<256x384xf32>
    %25 = arith.addf %22, %24 : vector<256x384xf32>
    %26 = vector.extract_strided_slice %19 {offsets = [0, 0], sizes = [256, 128], strides = [1, 1]} : vector<256x384xf32> to vector<256x128xf32>
    %27 = vector.extract_strided_slice %25 {offsets = [0, 0], sizes = [256, 128], strides = [1, 1]} : vector<256x384xf32> to vector<256x128xf32>
    %28 = arith.addf %26, %27 : vector<256x128xf32>
    %29 = arith.negf %28 : vector<256x128xf32>
    %30 = math.exp %29 : vector<256x128xf32>
    %cst_21 = arith.constant 1.000000e+00 : f32
    %31 = vector.broadcast %cst_21 : f32 to vector<256x128xf32>
    %32 = arith.addf %31, %30 : vector<256x128xf32>
    %33 = arith.divf %31, %32 : vector<256x128xf32>
    %34 = vector.extract_strided_slice %19 {offsets = [0, 128], sizes = [256, 128], strides = [1, 1]} : vector<256x384xf32> to vector<256x128xf32>
    %35 = vector.extract_strided_slice %25 {offsets = [0, 128], sizes = [256, 128], strides = [1, 1]} : vector<256x384xf32> to vector<256x128xf32>
    %36 = arith.addf %34, %35 : vector<256x128xf32>
    %37 = arith.negf %36 : vector<256x128xf32>
    %38 = math.exp %37 : vector<256x128xf32>
    %cst_22 = arith.constant 1.000000e+00 : f32
    %39 = vector.broadcast %cst_22 : f32 to vector<256x128xf32>
    %40 = arith.addf %39, %38 : vector<256x128xf32>
    %41 = arith.divf %39, %40 : vector<256x128xf32>
    %42 = vector.extract_strided_slice %19 {offsets = [0, 256], sizes = [256, 128], strides = [1, 1]} : vector<256x384xf32> to vector<256x128xf32>
    %43 = vector.extract_strided_slice %25 {offsets = [0, 256], sizes = [256, 128], strides = [1, 1]} : vector<256x384xf32> to vector<256x128xf32>
    %44 = arith.mulf %33, %43 : vector<256x128xf32>
    %45 = arith.addf %42, %44 : vector<256x128xf32>
    %46 = math.tanh %45 : vector<256x128xf32>
    %cst_23 = arith.constant 1.000000e+00 : f32
    %47 = vector.broadcast %cst_23 : f32 to vector<256x128xf32>
    %48 = arith.subf %47, %41 : vector<256x128xf32>
    %49 = arith.mulf %48, %46 : vector<256x128xf32>
    %50 = arith.mulf %41, %9 : vector<256x128xf32>
    %51 = arith.addf %49, %50 : vector<256x128xf32>
    %c0_24 = arith.constant 0 : index
    %c0_25 = arith.constant 0 : index
    %52 = vector.load %arg14[%c0_24, %c0_25] : memref<256x128xf32, #tpu.memory_space<vmem>>, vector<256x128xf32>
    tpu.vector_store %arg14[%c0_24, %c0_25], %51 {strides = array<i32>} : memref<256x128xf32, #tpu.memory_space<vmem>>, vector<256x128xf32>,
    %c0_26 = arith.constant 0 : index
    %c0_27 = arith.constant 0 : index
    %53 = vector.load %arg4[%c0_26, %c0_27] : memref<256x16xbf16, #tpu.memory_space<vmem>>, vector<256x16xbf16>
    %c0_28 = arith.constant 0 : index
    %c0_29 = arith.constant 0 : index
    %54 = vector.load %arg12[%c0_28, %c0_29] : memref<16x128xbf16, #tpu.memory_space<vmem>>, vector<16x128xbf16>
    %cst_30 = arith.constant dense<0.000000e+00> : vector<256x128xf32>
    %55 = tpu.matmul %53, %54, %cst_30 {dimension_numbers = #tpu.dot_dimension_numbers<[1], [0], [0], [1], [0, 0, 1, 1], [], []>} : vector<256x16xbf16>, vector<16x128xbf16>, vector<256x128xf32> -> vector<256x128xf32>
    %56 = arith.addf %51, %55 : vector<256x128xf32>
    %c0_31 = arith.constant 0 : index
    %c0_32 = arith.constant 0 : index
    %57 = vector.load %arg13[%c0_31, %c0_32] : memref<1x128xf32, #tpu.memory_space<vmem>>, vector<1x128xf32>
    %58 = vector.broadcast %57 : vector<1x128xf32> to vector<256x128xf32>
    %59 = arith.addf %56, %58 : vector<256x128xf32>
    %c0_33 = arith.constant 0 : index
    %c0_34 = arith.constant 0 : index
    %60 = vector.load %arg15[%c0_33, %c0_34] : memref<256x128xf32, #tpu.memory_space<vmem>>, vector<256x128xf32>
    tpu.vector_store %arg15[%c0_33, %c0_34], %59 {strides = array<i32>} : memref<256x128xf32, #tpu.memory_space<vmem>>, vector<256x128xf32>,
    return
  }
  func.func @transform_0(%arg0: i32) -> (i32, i32) {
    %c0_i32 = arith.constant 0 : i32
    %c0_i32_0 = arith.constant 0 : i32
    return %arg0, %c0_i32 : i32, i32
  }
  func.func @transform_1(%arg0: i32) -> (i32, i32) {
    %c0_i32 = arith.constant 0 : i32
    %c0_i32_0 = arith.constant 0 : i32
    return %arg0, %c0_i32 : i32, i32
  }
  func.func @transform_2(%arg0: i32) -> (i32, i32) {
    %c0_i32 = arith.constant 0 : i32
    %c0_i32_0 = arith.constant 0 : i32
    return %arg0, %c0_i32 : i32, i32
  }
  func.func @transform_3(%arg0: i32) -> (i32, i32) {
    %c0_i32 = arith.constant 0 : i32
    %c0_i32_0 = arith.constant 0 : i32
    return %arg0, %c0_i32 : i32, i32
  }
  func.func @transform_4(%arg0: i32) -> (i32, i32) {
    %c0_i32 = arith.constant 0 : i32
    %c0_i32_0 = arith.constant 0 : i32
    %c0_i32_1 = arith.constant 0 : i32
    return %c0_i32, %c0_i32_0 : i32, i32
  }
  func.func @transform_5(%arg0: i32) -> (i32, i32) {
    %c0_i32 = arith.constant 0 : i32
    %c0_i32_0 = arith.constant 0 : i32
    %c0_i32_1 = arith.constant 0 : i32
    return %c0_i32, %c0_i32_0 : i32, i32
  }
  func.func @transform_6(%arg0: i32) -> (i32, i32) {
    %c0_i32 = arith.constant 0 : i32
    %c0_i32_0 = arith.constant 0 : i32
    %c0_i32_1 = arith.constant 0 : i32
    return %c0_i32, %c0_i32_0 : i32, i32
  }
  func.func @transform_7(%arg0: i32) -> (i32, i32) {
    %c0_i32 = arith.constant 0 : i32
    %c0_i32_0 = arith.constant 0 : i32
    %c0_i32_1 = arith.constant 0 : i32
    return %c0_i32, %c0_i32_0 : i32, i32
  }
  func.func @transform_8(%arg0: i32) -> (i32, i32) {
    %c0_i32 = arith.constant 0 : i32
    %c0_i32_0 = arith.constant 0 : i32
    %c0_i32_1 = arith.constant 0 : i32
    return %c0_i32, %c0_i32_0 : i32, i32
  }
  func.func @transform_9(%arg0: i32) -> (i32, i32) {
    %c0_i32 = arith.constant 0 : i32
    %c0_i32_0 = arith.constant 0 : i32
    %c0_i32_1 = arith.constant 0 : i32
    return %c0_i32, %c0_i32_0 : i32, i32
  }
  func.func @transform_10(%arg0: i32) -> (i32, i32) {
    %c0_i32 = arith.constant 0 : i32
    %c0_i32_0 = arith.constant 0 : i32
    %c0_i32_1 = arith.constant 0 : i32
    return %c0_i32, %c0_i32_0 : i32, i32
  }
  func.func @transform_11(%arg0: i32) -> (i32, i32) {
    %c0_i32 = arith.constant 0 : i32
    %c0_i32_0 = arith.constant 0 : i32
    %c0_i32_1 = arith.constant 0 : i32
    return %c0_i32, %c0_i32_0 : i32, i32
  }
  func.func @transform_12(%arg0: i32) -> (i32, i32) {
    %c0_i32 = arith.constant 0 : i32
    %c0_i32_0 = arith.constant 0 : i32
    %c0_i32_1 = arith.constant 0 : i32
    return %c0_i32, %c0_i32_0 : i32, i32
  }
  func.func @transform_13(%arg0: i32) -> (i32, i32) {
    %c0_i32 = arith.constant 0 : i32
    %c0_i32_0 = arith.constant 0 : i32
    return %arg0, %c0_i32 : i32, i32
  }
  func.func @transform_14(%arg0: i32) -> (i32, i32) {
    %c0_i32 = arith.constant 0 : i32
    %c0_i32_0 = arith.constant 0 : i32
    return %arg0, %c0_i32 : i32, i32
  }
}

</mosaic_0001>

<bundles_post_ra>
// kernel: sub.1
= control target key start
LH: loop header
LB: loop body
LE: loop exit
PB: predicated region body
PF: predicated region fallthrough
CT: control target
= control target key end

     0   :  { %s34_s0 = inlined_call_operand.vmem [shape: f32[512], index: 0, kind: input, shape index: {}]   ;;  %s35_s1 = inlined_call_operand.vmem [shape: f32[512], index: 1, kind: input, shape index: {}]   ;;  %s36_s2 = inlined_call_operand.vmem [shape: f32[512], index: 2, kind: output, shape index: {}]  }
   0x1   :  { %v3_v0 = vld [vmem:[%s34_s0] sm:$0xf] }
   0x2   :  { %v4_v1 = vld [vmem:[%s35_s1] sm:$0xf] }
   0x3   :  { %v7_v2 = vsub.f32 %v3_v0, %v4_v1 }
   0x5   :  { %9 = vst [vmem:[%s36_s2] sm:$0xf] %v7_v2 }

// kernel: gru_memory_updater.1
= control target key start
LH: loop header
LB: loop body
LE: loop exit
PB: predicated region body
PF: predicated region fallthrough
CT: control target
= control target key end

     0   :  { %s13931_s0 = inlined_call_operand.vmem [shape: bf16[512,32], index: 0, kind: input, shape index: {}]   ;;  %s13932_s1 = inlined_call_operand.vmem [shape: f32[512,1], index: 1, kind: input, shape index: {}]   ;;  %s13933_s2 = inlined_call_operand.vmem [shape: f32[512,128], index: 2, kind: input, shape index: {}]   ;;  %s13934_s3 = inlined_call_operand.vmem [shape: bf16[512,16], index: 3, kind: input, shape index: {}]   ;;  %s13935_s4 = inlined_call_operand.vmem [shape: f32[1,32], index: 4, kind: input, shape index: {}]   ;;  %s13936_s5 = inlined_call_operand.vmem [shape: f32[1,32], index: 5, kind: input, shape index: {}]   ;;  %s13937_s6 = inlined_call_operand.vmem [shape: bf16[32,384], index: 6, kind: input, shape index: {}]   ;;  %s13938_s7 = inlined_call_operand.vmem [shape: bf16[32,384], index: 7, kind: input, shape index: {}]   ;;  %s13939_s8 = inlined_call_operand.vmem [shape: bf16[128,384], index: 8, kind: input, shape index: {}]   ;;  %s13940_s9 = inlined_call_operand.vmem [shape: f32[1,384], index: 9, kind: input, shape index: {}]   ;;  %s13941_s10 = inlined_call_operand.vmem [shape: f32[1,384], index: 10, kind: input, shape index: {}]   ;;  %s13942_s11 = inlined_call_operand.vmem [shape: bf16[16,128], index: 11, kind: input, shape index: {}]   ;;  %s13943_s12 = inlined_call_operand.vmem [shape: f32[1,128], index: 12, kind: input, shape index: {}]   ;;  %s13944_s13 = inlined_call_operand.hbm [shape: f32[512,128], index: 13, kind: output, shape index: {0}]   ;;  %s13945_s14 = inlined_call_operand.hbm [shape: f32[512,128], index: 14, kind: output, shape index: {1}]  }
   0x1   :  { %14131 = sst [smem:[#allocation127_spill]] %s13931_s0 }
   0x2   :  { %14132 = sst [smem:[#allocation128_spill]] %s13932_s1 }
   0x3   :  { %14133 = sst [smem:[#allocation129_spill]] %s13933_s2 }
   0x4   :  { %14134 = sst [smem:[#allocation130_spill]] %s13934_s3 }
   0x5   :  { %14135 = sst [smem:[#allocation131_spill]] %s13935_s4 }
   0x6   :  { %14136 = sst [smem:[#allocation132_spill]] %s13936_s5 }
   0x7   :  { %14137 = sst [smem:[#allocation133_spill]] %s13937_s6 }
   0x8   :  { %20 = vsyncpa [#allocation3], 0 }
   0x9   :  { %22 = vsyncpa [#allocation3 + $0x1], 0 }
   0xa   :  { %23 = vsyncpa [#allocation5], 0 }
   0xb   :  { %25 = vsyncpa [#allocation5 + $0x1], 0  ;;  %s8651_s29 = smov 0   ;;  %s8653_s30 = smov 0  }
   0xc   :  { %s8655_s15 = smov 0   ;;  %s8657_s16 = smov 0  }
   0xd LB: > { %s8672_s17 = sadd.s32 4294967295, %s8563_s16   ;;  %s7121_s18 = sadd.s32 4294967294, %s8563_s16   ;;  %s8563_s16 = sphi %s8657_s16, %s14944_s16   ;;  %s8559_s15 = sphi %s8655_s15, %s14943_s15   ;;  %s8555_s30 = sphi %s8653_s30, %s14942_s30   ;;  %s8551_s29 = sphi %s8651_s29, %s14941_s29  }
   0xe   : > { %s8676_s19 = sadd.s32 1, %s8563_s16   ;;  %s331_s20 = sadd.s32 1, %s8559_s15 }
   0xf   : > { %s328_s21 = ssub.s32 %s8563_s16, %s8676_s19  ;;  %p341_p0 = scmp.ne.s32.totalorder %s8559_s15, %s8555_s30 }
  0x10   : > { %p329_p1 = scmp.eq.s32.totalorder %s328_s21, 0  ;;  %p342_p2 = scmp.eq.s32.totalorder %s8672_s17, 1 }
  0x11   : > { %p347_p3 = scmp.ne.s32.totalorder %s8555_s30, %s8551_s29  ;;  %p348_p4 = scmp.eq.s32.totalorder %s7121_s18, 1 }
  0x12   : > { %s8687_s22 = scalar_select %p329_p1, %s8559_s15, %s331_s20  }
  0x13   : > { %p8689_p5 = por %p342_p2, %p341_p0  ;;  %p8693_p6 = por %p348_p4, %p347_p3 }
  0x14   : > { %p7124_p7 = scmp.ge.s32.totalorder %s8563_s16, 1  ;;  %p455_p8 = scmp.lt.s32.totalorder %s8563_s16, 3 }
  0x16   : > { %p456_p9 = pnand %p7124_p7, %p455_p8 }
  0x18   : > { %459 = sbr.rel (%p456_p9) target bundleno = 1533 (0x5fd), region = 72 }
  0x1d   : > { %s7127_s25 = sshll.u32 %s8672_s17, 5  ;;  %v13947_v0 = vmov 0   ;;  %s14140_s1 = sld [smem:[#allocation128_spill]] }
  0x1e   : > { %7902 = vset.pattern.permute.xlu1 %v13947_v0  ;;  %7901 = vset.pattern.permute.xlu0 %v13947_v0  ;;  %p522_p10 = scmp.lt.s32.totalorder %s7127_s25, 63  ;;  %s14141_s0 = sld [smem:[#allocation127_spill]] }
  0x1f   : > { %4323 = vmatprep.mubr.bf16.mxu0 %v13947_v0  ;;  %s14142_s3 = sld [smem:[#allocation130_spill]]  ;;  %s13151_s27 = sand.u32 1, %s8555_s30  }
  0x20   : > { %s14946_s25 = smov (!%p522_p10, %s7127_s25), 63  ;;  %s14143_s4 = sld [smem:[#allocation131_spill]] }
  0x21   : > { %s13946_s26 = sshll.u32 %s14946_s25, 3  ;;  %s7128_s20 = sshll.u32 %s14946_s25, 2 }
  0x22   : > { %s14144_s5 = sld [smem:[#allocation132_spill]] }
  0x23   : > { %s8711_s18 = scalar_lea.vmem %s14140_s1, %s13946_s26  ;;  %s14389_s6 = sld [smem:[#allocation133_spill]] }
  0x24   : > { %v550_v1 = vld [vmem:[%s8711_s18 + $0x10] sm:$0xff]  ;;  %v548_v2 = vld [vmem:[%s8711_s18] sm:$0xff]  ;;  %v551_v3 = vld [vmem:[%s8711_s18 + $0x18] sm:$0xff]  ;;  %s8725_s28 = scalar_lea.vmem %s14141_s0, %s7128_s20  ;;  %s14624_s0 = sshll.u32 %s14946_s25, 3 }
  0x25   : > { %593 = vperm.xlu1 %7902, %v550_v1   ;;  %583 = vperm.xlu0 %7901, %v548_v2   ;;  %v549_v4 = vld [vmem:[%s8711_s18 + $0x8] sm:$0xff]  ;;  %v552_v6 = vld [vmem:[%s8711_s18 + $0x20] sm:$0xff]  ;;  %v555_v7 = vld [vmem:[%s8711_s18 + $0x38] sm:$0xff]  ;;  %s8742_s26 = scalar_lea.vmem %s14142_s3, %s7128_s20  ;;  %s14625_s2 = sld [smem:[#allocation129_spill]] }
  0x26   : > { %v553_v5 = vld [vmem:[%s8711_s18 + $0x28] sm:$0xff]  ;;  %v554_v8 = vld [vmem:[%s8711_s18 + $0x30] sm:$0xff]  ;;  %v556_v10 = vld [vmem:[%s8711_s18 + $0x40] sm:$0xff]  ;;  %s7125_s3 = sshll.u32 %s13151_s27, 8 }
  0x27   : > { %v557_v9 = vld [vmem:[%s8711_s18 + $0x48] sm:$0xff]  ;;  %v559_v11 = vld [vmem:[%s8711_s18 + $0x58] sm:$0xff]  ;;  %v558_v12 = vld [vmem:[%s8711_s18 + $0x50] sm:$0xff]  ;;  %s13479_s1 = scalar_lea.vmem [#allocation4], %s7125_s3 }
  0x28   : > { %v561_v13 = vld [vmem:[%s8711_s18 + $0x68] sm:$0xff]  ;;  %v560_v14 = vld [vmem:[%s8711_s18 + $0x60] sm:$0xff]  ;;  %v563_v15 = vld [vmem:[%s8711_s18 + $0x78] sm:$0xff] }
  0x29   : > { %598 = vperm.xlu1 %7902, %v551_v3   ;;  %588 = vperm.xlu0 %7901, %v549_v4   ;;  %v562_v16 = vld [vmem:[%s8711_s18 + $0x70] sm:$0xff]  ;;  %v565_v17 = vld [vmem:[%s8711_s18 + $0x88] sm:$0xff]  ;;  %v564_v18 = vld [vmem:[%s8711_s18 + $0x80] sm:$0xff] }
  0x2a   : > { %v567_v19 = vld [vmem:[%s8711_s18 + $0x98] sm:$0xff]  ;;  %v566_v20 = vld [vmem:[%s8711_s18 + $0x90] sm:$0xff]  ;;  %v569_v21 = vld [vmem:[%s8711_s18 + $0xa8] sm:$0xff] }
  0x2b   : > { %v568_v22 = vld [vmem:[%s8711_s18 + $0xa0] sm:$0xff]  ;;  %v571_v23 = vld [vmem:[%s8711_s18 + $0xb8] sm:$0xff]  ;;  %v570_v24 = vld [vmem:[%s8711_s18 + $0xb0] sm:$0xff]  ;;  %s12175_s20 = scalar_lea.vmem %s14625_s2, %s14624_s0 }
  0x2c   : > { %v573_v25 = vld [vmem:[%s8711_s18 + $0xc8] sm:$0xff]  ;;  %v572_v26 = vld [vmem:[%s8711_s18 + $0xc0] sm:$0xff]  ;;  %v575_v27 = vld [vmem:[%s8711_s18 + $0xd8] sm:$0xff] }
  0x2d   : > { %608 = vperm.xlu1 %7902, %v553_v5   ;;  %603 = vperm.xlu0 %7901, %v552_v6   ;;  %v574_v28 = vld [vmem:[%s8711_s18 + $0xd0] sm:$0xff]  ;;  %v577_v29 = vld [vmem:[%s8711_s18 + $0xe8] sm:$0xff]  ;;  %v576_v30 = vld [vmem:[%s8711_s18 + $0xe0] sm:$0xff] }
  0x2e   : > { %v579_v31 = vld [vmem:[%s8711_s18 + $0xf8] sm:$0xff]  ;;  %v578_v32 = vld [vmem:[%s8711_s18 + $0xf0] sm:$0xff]  ;;  %v8759_v33 = vld [vmem:[%s14143_s4] ss:$0 sm:$0xff] }
  0x2f   : > { %v8764_v34 = vld [vmem:[%s14144_s5] ss:$0 sm:$0xff] }
  0x31   : > { %618 = vperm.xlu1 %7902, %v555_v7   ;;  %613 = vperm.xlu0 %7901, %v554_v8   ;;  %v13965_v7 = vmov 683565275  }
  0x35   : > { %628 = vperm.xlu1 %7902, %v557_v9   ;;  %623 = vperm.xlu0 %7901, %v556_v10   ;;  %v13963_v9 = vmov 2475754826  }
  0x39   : > { %638 = vperm.xlu1 %7902, %v559_v11   ;;  %633 = vperm.xlu0 %7901, %v558_v12   ;;  %v13960_v11 = vmov 2131351028  }
  0x3d   : > { %648 = vperm.xlu1 %7902, %v561_v13   ;;  %643 = vperm.xlu0 %7901, %v560_v14   ;;  %v13954_v13 = vmov 2102212464  }
  0x41   : > { %658 = vperm.xlu1 %7902, %v563_v15   ;;  %653 = vperm.xlu0 %7901, %v562_v16   ;;  %v13958_v15 = vmov 920167782  }
  0x45   : > { %668 = vperm.xlu1 %7902, %v565_v17   ;;  %663 = vperm.xlu0 %7901, %v564_v18  }
  0x49   : > { %678 = vperm.xlu1 %7902, %v567_v19   ;;  %673 = vperm.xlu0 %7901, %v566_v20  }
  0x4d   : > { %688 = vperm.xlu1 %7902, %v569_v21   ;;  %683 = vperm.xlu0 %7901, %v568_v22  }
  0x51   : > { %698 = vperm.xlu1 %7902, %v571_v23   ;;  %693 = vperm.xlu0 %7901, %v570_v24   ;;  %v13956_v23 = vmov 1326507024  }
  0x55   : > { %708 = vperm.xlu1 %7902, %v573_v25   ;;  %703 = vperm.xlu0 %7901, %v572_v26  }
  0x59   : > { %718 = vperm.xlu1 %7902, %v575_v27   ;;  %713 = vperm.xlu0 %7901, %v574_v28  }
  0x5d   : > { %728 = vperm.xlu1 %7902, %v577_v29   ;;  %723 = vperm.xlu0 %7901, %v576_v30  }
  0x61   : > { %738 = vperm.xlu1 %7902, %v579_v31   ;;  %733 = vperm.xlu0 %7901, %v578_v32  }
  0xa0   : > { %v594_v35 = vpop.permute.xlu1 %593  ;;  %v584_v36 = vpop.permute.xlu0 %583 }
  0xa1   : > { %v749_v37 = vmul.f32 %v8759_v33, %v594_v35  ;;  %v747_v38 = vmul.f32 %v8759_v33, %v584_v36 }
  0xa3   : > { %v8769_v39 = vadd.f32 %v8764_v34, %v749_v37  ;;  %v8772_v40 = vadd.f32 %v8764_v34, %v747_v38 }
  0xa4   : > { %v599_v41 = vpop.permute.xlu1 %598  ;;  %v589_v59 = vpop.permute.xlu0 %588 }
  0xa5   : > { %14145 = vst [vmem:[#allocation8_spill] sm:$0xff] %v8769_v39  ;;  %14146 = vst [vmem:[#allocation9_spill] sm:$0xff] %v8772_v40  ;;  %v1024_v42 = vand.u32 2147483647, %v8769_v39  ;;  %v1027_v43 = vand.u32 2139095040, %v8769_v39  ;;  %v821_v45 = vand.u32 2139095040, %v8772_v40  ;;  %v750_v46 = vmul.f32 %v8759_v33, %v599_v41 }
  0xa6   : > { %v818_v44 = vand.u32 2147483647, %v8772_v40  ;;  %v8794_v5 = vmul.f32 %v8759_v33, %v589_v59 }
  0xa7   : > { %v1028_v47 = vshrl.u32 %v1027_v43, 23  ;;  %v1031_v48 = vand.u32 8388607, %v1024_v42  ;;  %v822_v49 = vshrl.u32 %v821_v45, 23  ;;  %v8784_v51 = vadd.f32 %v8764_v34, %v750_v46 }
  0xa8   : > { %v825_v50 = vand.u32 8388607, %v818_v44 }
  0xa9   : > { %14147 = vst [vmem:[#allocation10_spill] sm:$0xff] %v8784_v51  ;;  %v7145_v52 = vadd.s32 4294967169, %v1028_v47  ;;  %v7137_v53 = vadd.s32 4294967169, %v822_v49  ;;  %v1130_v55 = vand.u32 2139095040, %v8784_v51  ;;  %v1032_v56 = vor.u32 8388608, %v1031_v48 }
  0xaa   : > { %v826_v57 = vor.u32 8388608, %v825_v50 }
  0xab   : > { %v1034_v54 = vadd.s32 1, %v7145_v52  ;;  %v828_v58 = vadd.s32 1, %v7137_v53  ;;  %v1131_v61 = vshrl.u32 %v1130_v55, 23  ;;  %v8787_v2 = vshll.u32 %v1032_v56, 8 }
  0xac   : > { %v8791_v4 = vshll.u32 %v826_v57, 8 }
  0xad   : > { %vm1035_vm0 = vcmp.gt.s32.totalorder %v1034_v54, 0  ;;  %vm829_vm1 = vcmp.gt.s32.totalorder %v828_v58, 0  ;;  %v8801_v17 = vadd.s32 4294967169, %v1131_v61 }
  0xae   : > { %v1036_v60 = vsel %vm1035_vm0, %v1034_v54, 0  ;;  %v830_v1 = vsel %vm829_vm1, %v828_v58, 0 }
  0xaf   : > { %v1037_v62 = vshrl.u32 %v1036_v60, 5  ;;  %v1038_v63 = vand.u32 31, %v1036_v60  ;;  %v8789_v3 = vand.u32 31, %v830_v1  ;;  %v831_v31 = vshrl.u32 %v830_v1, 5 }
  0xb1   : > { %v1039_v6 = vsub.s32 32, %v1038_v63  ;;  %v1041_v8 = vshll.u32 %v13965_v7, %v1038_v63  ;;  %v1044_v10 = vshll.u32 %v13963_v9, %v1038_v63  ;;  %v1047_v12 = vshll.u32 %v13960_v11, %v1038_v63 }
  0xb2   : > { %v1050_v14 = vshll.u32 %v13954_v13, %v1038_v63  ;;  %v1053_v16 = vshll.u32 %v13958_v15, %v1038_v63  ;;  %vm1056_vm2 = vcmp.lt.s32.totalorder %v1037_v62, 1  ;;  %vm1058_vm3 = vcmp.lt.s32.totalorder %v1037_v62, 3 }
  0xb3   : > { %v1040_v18 = vshrl.u32 %v13965_v7, %v1039_v6  ;;  %v1042_v19 = vshrl.u32 %v13963_v9, %v1039_v6  ;;  %v1045_v20 = vshrl.u32 %v13960_v11, %v1039_v6  ;;  %v1048_v21 = vshrl.u32 %v13954_v13, %v1039_v6 }
  0xb4   : > { %v1051_v22 = vshrl.u32 %v13958_v15, %v1039_v6  ;;  %v1054_v24 = vshrl.u32 %v13956_v23, %v1039_v6  ;;  %vm1059_vm4 = vcmp.lt.s32.totalorder %v1037_v62, 4  ;;  %v833_v28 = vsub.s32 32, %v8789_v3 }
  0xb5   : > { %v1043_v25 = vor.u32 %v1042_v19, %v1041_v8  ;;  %v1046_v26 = vor.u32 %v1045_v20, %v1044_v10  ;;  %v1049_v27 = vor.u32 %v1048_v21, %v1047_v12  ;;  %vm1057_vm5 = vcmp.lt.s32.totalorder %v1037_v62, 2 }
  0xb6   : > { %v1052_v29 = vor.u32 %v1051_v22, %v1050_v14  ;;  %v1055_v30 = vor.u32 %v1054_v24, %v1053_v16  ;;  %v835_v45 = vshll.u32 %v13965_v7, %v8789_v3  ;;  %v836_v48 = vshrl.u32 %v13963_v9, %v833_v28 }
  0xb7   : > { %v1060_v32 = vsel %vm1056_vm2, %v1040_v18, %v1043_v25  ;;  %v1061_v35 = vsel %vm1059_vm4, %v1049_v27, 2102212464  ;;  %v1064_v36 = vsel %vm1056_vm2, %v1043_v25, %v1046_v26  ;;  %v1068_v37 = vsel %vm1056_vm2, %v1046_v26, %v1049_v27 }
  0xb8   : > { %v1062_v38 = vsel %vm1058_vm3, %v1046_v26, %v1061_v35  ;;  %v1065_v41 = vsel %vm1059_vm4, %v1052_v29, 920167782  ;;  %v1069_v43 = vsel %vm1059_vm4, %v1055_v30, 1326507024  ;;  %v838_v49 = vshll.u32 %v13963_v9, %v8789_v3 }
  0xb9   : > { %v1066_v46 = vsel %vm1058_vm3, %v1049_v27, %v1065_v41  ;;  %v1070_v47 = vsel %vm1058_vm3, %v1052_v29, %v1069_v43  ;;  %v1063_v50 = vsel %vm1057_vm5, %v1060_v32, %v1062_v38  ;;  %v839_v54 = vshrl.u32 %v13960_v11, %v833_v28 }
  0xba   : > { %v1067_v52 = vsel %vm1057_vm5, %v1064_v36, %v1066_v46  ;;  %v1071_v53 = vsel %vm1057_vm5, %v1068_v37, %v1070_v47  ;;  %v837_v59 = vor.u32 %v836_v48, %v835_v45  ;;  %v841_v61 = vshll.u32 %v13960_v11, %v8789_v3 }
  0xbb   : > { %v8826_v55 = vmul.u32.u64.low %v8787_v2, %v1071_v53  ;;  %v8827_v56 = vmul.u32.u64.high %v8787_v2, %v1071_v53, %v8826_v55  ;;  %v8830_v57 = vmul.u32.u64.low %v8787_v2, %v1067_v52  ;;  %v8831_v58 = vmul.u32.u64.high %v8787_v2, %v1067_v52, %v8830_v57 }
  0xbc   : > { %v840_v60 = vor.u32 %v839_v54, %v838_v49  ;;  %v842_v63 = vshrl.u32 %v13954_v13, %v833_v28  ;;  %v834_v62 = vshrl.u32 %v13965_v7, %v833_v28  ;;  %v844_v1 = vshll.u32 %v13954_v13, %v8789_v3 }
  0xbd   : > { %v845_v6 = vshrl.u32 %v13958_v15, %v833_v28  ;;  %v848_v8 = vshrl.u32 %v13956_v23, %v833_v28  ;;  %v1079_v10 = vmul.u32 %v8787_v2, %v1063_v50  ;;  %v847_v14 = vshll.u32 %v13958_v15, %v8789_v3 }
  0xbe   : > { %v843_v12 = vor.u32 %v842_v63, %v841_v61  ;;  %vm850_vm6 = vcmp.lt.s32.totalorder %v831_v31, 1  ;;  %vm1081_vm7 = vc.u32 %v8827_v56, %v8830_v57  ;;  %v1082_v16 = vadd.s32 1, %v8831_v58 }
  0xbf   : > { %v846_v18 = vor.u32 %v845_v6, %v844_v1  ;;  %vm851_vm8 = vcmp.lt.s32.totalorder %v831_v31, 2  ;;  %v849_v19 = vor.u32 %v848_v8, %v847_v14  ;;  %vm852_vm9 = vcmp.lt.s32.totalorder %v831_v31, 3 }
  0xc0   : > { %vm853_vm10 = vcmp.lt.s32.totalorder %v831_v31, 4  ;;  %v858_v20 = vsel %vm850_vm6, %v837_v59, %v840_v60  ;;  %v1083_v21 = vsel %vm1081_vm7, %v1082_v16, %v8831_v58  ;;  %v862_v24 = vsel %vm850_vm6, %v840_v60, %v843_v12 }
  0xc1   : > { %v855_v22 = vsel %vm853_vm10, %v843_v12, 2102212464  ;;  %v859_v2 = vsel %vm853_vm10, %v846_v18, 920167782  ;;  %v1084_v25 = vadd.s32 %v1083_v21, %v1079_v10  ;;  %v854_v26 = vsel %vm850_vm6, %v834_v62, %v837_v59 }
  0xc2   : > { %v860_v3 = vsel %vm852_vm9, %v843_v12, %v859_v2  ;;  %v863_v27 = vsel %vm853_vm10, %v849_v19, 1326507024  ;;  %v856_v28 = vsel %vm852_vm9, %v840_v60, %v855_v22  ;;  %v1137_v32 = vadd.s32 1, %v8801_v17 }
  0xc3   : > { %v861_v29 = vsel %vm851_vm8, %v858_v20, %v860_v3  ;;  %v864_v30 = vsel %vm852_vm9, %v846_v18, %v863_v27  ;;  %v1085_v35 = vadd.s32 536870912, %v1084_v25  ;;  %v857_v46 = vsel %vm851_vm8, %v854_v26, %v856_v28 }
  0xc4   : > { %v865_v36 = vsel %vm851_vm8, %v862_v24, %v864_v30  ;;  %v8853_v37 = vmul.u32.u64.low %v8791_v4, %v861_v29  ;;  %v8854_v38 = vmul.u32.u64.high %v8791_v4, %v861_v29, %v8853_v37  ;;  %vm1138_vm11 = vcmp.gt.s32.totalorder %v1137_v32, 0 }
  0xc5   : > { %v8858_v41 = vmul.u32.u64.low %v8791_v4, %v865_v36  ;;  %v8859_v43 = vmul.u32.u64.high %v8791_v4, %v865_v36, %v8858_v41  ;;  %v8861_v45 = vshrl.u32 %v1085_v35, 30  ;;  %v1139_v47 = vsel %vm1138_vm11, %v1137_v32, 0 }
  0xc6   : > { %v8866_v17 = vadd.f32 %v8764_v34, %v8794_v5  ;;  %v1141_v48 = vand.u32 31, %v1139_v47  ;;  %v876_v50 = vadd.s32 1, %v8854_v38  ;;  %v873_v52 = vmul.u32 %v8791_v4, %v857_v46 }
  0xc7   : > { %v1087_v49 = vshll.u32 %v8861_v45, 30  ;;  %vm875_vm12 = vc.u32 %v8859_v43, %v8853_v37  ;;  %v13953_v53 = vand.u32 2147483647, %v8784_v51  ;;  %v1140_v10 = vshrl.u32 %v1139_v47, 5 }
  0xc8   : > { %14148 = vst [vmem:[#allocation11_spill] sm:$0xff] %v8866_v17  ;;  %v1142_v54 = vsub.s32 32, %v1141_v48  ;;  %v877_v31 = vsel %vm875_vm12, %v876_v50, %v8854_v38  ;;  %v1144_v55 = vshll.u32 %v13965_v7, %v1141_v48  ;;  %v1147_v5 = vshll.u32 %v13963_v9, %v1141_v48 }
  0xc9   : > { %v924_v58 = vand.u32 2139095040, %v8866_v17  ;;  %v8878_v59 = vsub.s32 %v1084_v25, %v1087_v49  ;;  %v878_v60 = vadd.s32 %v877_v31, %v873_v52  ;;  %v1150_v63 = vshll.u32 %v13960_v11, %v1141_v48 }
  0xca   : > { %v1145_v61 = vshrl.u32 %v13963_v9, %v1142_v54  ;;  %v1148_v4 = vshrl.u32 %v13960_v11, %v1142_v54  ;;  %v1151_v62 = vshrl.u32 %v13954_v13, %v1142_v54  ;;  %v1153_v1 = vshll.u32 %v13954_v13, %v1141_v48 }
  0xcb   : > { %v879_v6 = vadd.s32 536870912, %v878_v60  ;;  %v1134_v8 = vand.u32 8388607, %v13953_v53  ;;  %v1154_v12 = vshrl.u32 %v13958_v15, %v1142_v54  ;;  %v1156_v18 = vshll.u32 %v13958_v15, %v1141_v48 }
  0xcc   : > { %v1146_v14 = vor.u32 %v1145_v61, %v1144_v55  ;;  %v1149_v16 = vor.u32 %v1148_v4, %v1147_v5  ;;  %v1157_v19 = vshrl.u32 %v13956_v23, %v1142_v54  ;;  %v1090_v20 = vsub.s32 0, %v8878_v59 }
  0xcd   : > { %v1152_v21 = vor.u32 %v1151_v62, %v1150_v63  ;;  %v1155_v22 = vor.u32 %v1154_v12, %v1153_v1  ;;  %v925_v2 = vshrl.u32 %v924_v58, 23  ;;  %v8891_v24 = vshrl.u32 %v879_v6, 30 }
  0xce   : > { %v1158_v25 = vor.u32 %v1157_v19, %v1156_v18  ;;  %v1135_v26 = vor.u32 8388608, %v1134_v8  ;;  %vm1159_vm13 = vcmp.lt.s32.totalorder %v1140_v10, 1  ;;  %vm1162_vm14 = vcmp.lt.s32.totalorder %v1140_v10, 4  ;;  %v609_v19 = vpop.permute.xlu1 %608 }
  0xcf   : > { %vm1161_vm15 = vcmp.lt.s32.totalorder %v1140_v10, 3  ;;  %v1167_v3 = vsel %vm1159_vm13, %v1146_v14, %v1149_v16  ;;  %v1168_v27 = vsel %vm1162_vm14, %v1155_v22, 920167782  ;;  %v7146_v28 = vmin.u32 %v1090_v20, %v8878_v59 }
  0xd0   : > { %v1169_v29 = vsel %vm1161_vm15, %v1152_v21, %v1168_v27  ;;  %v7141_v30 = vadd.s32 4294967169, %v925_v2  ;;  %v881_v32 = vshll.u32 %v8891_v24, 30  ;;  %vm1160_vm0 = vcmp.lt.s32.totalorder %v1140_v10, 2 }
  0xd1   : > { %v1171_v35 = vsel %vm1159_vm13, %v1149_v16, %v1152_v21  ;;  %v1172_v36 = vsel %vm1162_vm14, %v1158_v25, 1326507024  ;;  %v1170_v38 = vsel %vm1160_vm0, %v1167_v3, %v1169_v29  ;;  %v1175_v46 = vshll.u32 %v1135_v26, 8 }
  0xd2   : > { %v1173_v41 = vsel %vm1161_vm15, %v1155_v22, %v1172_v36  ;;  %v1143_v47 = vshrl.u32 %v13965_v7, %v1142_v54  ;;  %v1092_v49 = vclz %v7146_v28  ;;  %v931_v31 = vadd.s32 1, %v7141_v30 }
  0xd3   : > { %v1174_v48 = vsel %vm1160_vm0, %v1171_v35, %v1173_v41  ;;  %v8907_v55 = vsub.s32 %v878_v60, %v881_v32  ;;  %v1164_v5 = vsel %vm1162_vm14, %v1152_v21, 2102212464  ;;  %v13952_v12 = vand.u32 2147483647, %v8866_v17 }
  0xd4   : > { %v8904_v50 = vmul.u32.u64.low %v1175_v46, %v1174_v48  ;;  %v8905_v52 = vmul.u32.u64.high %v1175_v46, %v1174_v48, %v8904_v50  ;;  %v8910_v58 = vmul.u32.u64.low %v1175_v46, %v1170_v38  ;;  %v8911_v61 = vmul.u32.u64.high %v1175_v46, %v1170_v38, %v8910_v58 }
  0xd5   : > { %vm932_vm1 = vcmp.gt.s32.totalorder %v931_v31, 0  ;;  %v7147_v63 = vadd.s32 4294967294, %v1092_v49  ;;  %v1163_v54 = vsel %vm1159_vm13, %v1143_v47, %v1146_v14  ;;  %v1165_v62 = vsel %vm1161_vm15, %v1149_v16, %v1164_v5 }
  0xd6   : > { %v933_v4 = vsel %vm932_vm1, %v931_v31, 0  ;;  %v884_v1 = vsub.s32 0, %v8907_v55  ;;  %v1185_v6 = vadd.s32 1, %v8911_v61  ;;  %vm1184_vm2 = vc.u32 %v8905_v52, %v8910_v58 }
  0xd7   : > { %v935_v8 = vand.u32 31, %v933_v4  ;;  %v1166_v60 = vsel %vm1160_vm0, %v1163_v54, %v1165_v62  ;;  %vm7148_vm3 = vcmp.lt.s32.totalorder %v7147_v63, 0  ;;  %v928_v2 = vand.u32 8388607, %v13952_v12 }
  0xd8   : > { %v7138_v20 = vmin.u32 %v884_v1, %v8907_v55  ;;  %v1186_v14 = vsel %vm1184_vm2, %v1185_v6, %v8911_v61  ;;  %v1182_v16 = vmul.u32 %v1175_v46, %v1166_v60  ;;  %v8925_v22 = vsel %vm7148_vm3, 0, %v7147_v63 }
  0xd9   : > { %v936_v18 = vsub.s32 32, %v935_v8  ;;  %v752_v25 = vmul.f32 %v8759_v33, %v609_v19  ;;  %v938_v3 = vshll.u32 %v13965_v7, %v935_v8  ;;  %v941_v27 = vshll.u32 %v13963_v9, %v935_v8 }
  0xda   : > { %v1187_v26 = vadd.s32 %v1186_v14, %v1182_v16  ;;  %v886_v29 = vclz %v7138_v20  ;;  %v934_v30 = vshrl.u32 %v933_v4, 5  ;;  %v947_v32 = vshll.u32 %v13954_v13, %v935_v8 }
  0xdb   : > { %v939_v21 = vshrl.u32 %v13963_v9, %v936_v18  ;;  %v942_v10 = vshrl.u32 %v13960_v11, %v936_v18  ;;  %v945_v28 = vshrl.u32 %v13954_v13, %v936_v18  ;;  %v948_v35 = vshrl.u32 %v13958_v15, %v936_v18 }
  0xdc   : > { %v1100_v36 = vsub.s32 4294967266, %v8925_v22  ;;  %v944_v46 = vshll.u32 %v13960_v11, %v935_v8  ;;  %v1080_v47 = vadd.s32 %v8830_v57, %v8827_v56  ;;  %v8941_v49 = vadd.f32 %v8764_v34, %v752_v25 }
  0xdd   : > { %v940_v38 = vor.u32 %v939_v21, %v938_v3  ;;  %v943_v41 = vor.u32 %v942_v10, %v941_v27  ;;  %v949_v48 = vor.u32 %v948_v35, %v947_v32  ;;  %v1096_v50 = vsub.s32 32, %v8925_v22 }
  0xde   : > { %14149 = vst [vmem:[#allocation12_spill] sm:$0xff] %v8941_v49  ;;  %v1188_v31 = vadd.s32 536870912, %v1187_v26  ;;  %v929_v5 = vor.u32 8388608, %v928_v2  ;;  %v946_v61 = vor.u32 %v945_v28, %v944_v46  ;;  %v7139_v4 = vadd.s32 4294967294, %v886_v29 }
  0xdf   : > { %v950_v63 = vshll.u32 %v13958_v15, %v935_v8  ;;  %v951_v54 = vshrl.u32 %v13956_v23, %v936_v18  ;;  %vm953_vm4 = vcmp.lt.s32.totalorder %v934_v30, 1  ;;  %v1101_v62 = vadd.s32 127, %v1100_v36 }
  0xe0   : > { %vm954_vm5 = vcmp.lt.s32.totalorder %v934_v30, 2  ;;  %vm956_vm6 = vcmp.lt.s32.totalorder %v934_v30, 4  ;;  %v961_v56 = vsel %vm953_vm4, %v940_v38, %v943_v41  ;;  %v937_v57 = vshrl.u32 %v13965_v7, %v936_v18 }
  0xe1   : > { %v952_v1 = vor.u32 %v951_v54, %v950_v63  ;;  %vm955_vm7 = vcmp.lt.s32.totalorder %v934_v30, 3  ;;  %v962_v6 = vsel %vm956_vm6, %v949_v48, 920167782  ;;  %v8948_v60 = vshrl.u32 %v1188_v31, 30 }
  0xe2   : > { %v958_v19 = vsel %vm956_vm6, %v946_v61, 2102212464  ;;  %v963_v20 = vsel %vm955_vm7, %v946_v61, %v962_v6  ;;  %v965_v14 = vsel %vm953_vm4, %v943_v41, %v946_v61  ;;  %vm7140_vm8 = vcmp.lt.s32.totalorder %v7139_v4, 0 }
  0xe3   : > { %v964_v8 = vsel %vm954_vm5, %v961_v56, %v963_v20  ;;  %v966_v16 = vsel %vm956_vm6, %v952_v1, 1326507024  ;;  %v969_v21 = vshll.u32 %v929_v5, 8  ;;  %v1102_v2 = vshll.u32 %v1101_v62, 23 }
  0xe4   : > { %v957_v10 = vsel %vm953_vm4, %v937_v57, %v940_v38  ;;  %v967_v25 = vsel %vm955_vm7, %v949_v48, %v966_v16  ;;  %v1336_v18 = vand.u32 2139095040, %v8941_v49  ;;  %v959_v3 = vsel %vm955_vm7, %v943_v41, %v958_v19  ;;  %v604_v38 = vpop.permute.xlu0 %603 }
  0xe5   : > { %v968_v27 = vsel %vm954_vm5, %v965_v14, %v967_v25  ;;  %v8955_v28 = vmul.u32.u64.low %v969_v21, %v964_v8  ;;  %v8956_v29 = vmul.u32.u64.high %v969_v21, %v964_v8, %v8955_v28  ;;  %v8959_v32 = vsel %vm7140_vm8, 0, %v7139_v4 }
  0xe6   : > { %v1190_v35 = vshll.u32 %v8948_v60, 30  ;;  %v8962_v36 = vmul.u32.u64.low %v969_v21, %v968_v27  ;;  %v8963_v46 = vmul.u32.u64.high %v969_v21, %v968_v27, %v8962_v36  ;;  %v1098_v31 = vshrl.u32 %v1080_v47, %v1096_v50 }
  0xe7   : > { %v1337_v5 = vshrl.u32 %v1336_v18, 23  ;;  %v1097_v48 = vshll.u32 %v8878_v59, %v8925_v22  ;;  %v960_v41 = vsel %vm954_vm5, %v957_v10, %v959_v3  ;;  %v1103_v61 = vor.u32 4788187, %v1102_v2 }
  0xe8   : > { %v894_v63 = vsub.s32 4294967266, %v8959_v32  ;;  %v979_v54 = vadd.s32 1, %v8956_v29  ;;  %v8970_v62 = vsub.s32 %v1187_v26, %v1190_v35  ;;  %v751_v56 = vmul.f32 %v8759_v33, %v604_v38 }
  0xe9   : > { %v7157_v4 = vadd.s32 4294967169, %v1337_v5  ;;  %v1099_v57 = vor.u32 %v1098_v31, %v1097_v48  ;;  %v976_v1 = vmul.u32 %v969_v21, %v960_v41  ;;  %vm978_vm9 = vc.u32 %v8963_v46, %v8955_v28 }
  0xea   : > { %v980_v59 = vsel %vm978_vm9, %v979_v54, %v8956_v29  ;;  %v13950_v22 = vand.u32 2147483647, %v8941_v49  ;;  %v1104_v30 = vand.u32 2147483647, %v1103_v61  ;;  %v895_v50 = vadd.s32 127, %v894_v63 }
  0xeb   : > { %v1343_v47 = vadd.s32 1, %v7157_v4  ;;  %v981_v6 = vadd.s32 %v980_v59, %v976_v1  ;;  %v1193_v19 = vsub.s32 0, %v8970_v62  ;;  %v8979_v20 = vadd.f32 %v8764_v34, %v751_v56 }
  0xec   : > { %v1106_v14 = vcvt.s32.f32 %v1099_v57  ;;  %v874_v21 = vadd.s32 %v8853_v37, %v8859_v43  ;;  %v890_v2 = vsub.s32 32, %v8959_v32  ;;  %v896_v25 = vshll.u32 %v895_v50, 23 }
  0xed   : > { %vm1344_vm10 = vcmp.gt.s32.totalorder %v1343_v47, 0  ;;  %14150 = vst [vmem:[#allocation13_spill] sm:$0xff] %v8979_v20  ;;  %v982_v8 = vadd.s32 536870912, %v981_v6  ;;  %v1340_v18 = vand.u32 8388607, %v13950_v22  ;;  %v7150_v27 = vmin.u32 %v1193_v19, %v8970_v62 }
  0xee   : > { %v1345_v26 = vsel %vm1344_vm10, %v1343_v47, 0  ;;  %v8984_v10 = vmul.f32 %v1106_v14, %v1104_v30  ;;  %v1233_v36 = vand.u32 2139095040, %v8979_v20  ;;  %v891_v63 = vshll.u32 %v8907_v55, %v8959_v32  ;;  %v619_v30 = vpop.permute.xlu1 %618 }
  0xef   : > { %v1347_v16 = vand.u32 31, %v1345_v26  ;;  %v8989_v29 = vshrl.u32 %v982_v8, 30  ;;  %v1346_v35 = vshrl.u32 %v1345_v26, 5  ;;  %v1341_v54 = vor.u32 8388608, %v1340_v18 }
  0xf0   : > { %v1108_v50 = vxor.u32 2147483648, %v8984_v10  ;;  %v892_v19 = vshrl.u32 %v874_v21, %v890_v2  ;;  %v897_v26 = vor.u32 4788187, %v896_v25  ;;  %v1195_v8 = vclz %v7150_v27 }
  0xf1   : > { %v1348_v3 = vsub.s32 32, %v1347_v16  ;;  %v1350_v31 = vshll.u32 %v13965_v7, %v1347_v16  ;;  %v1353_v43 = vshll.u32 %v13963_v9, %v1347_v16  ;;  %v1356_v5 = vshll.u32 %v13960_v11, %v1347_v16 }
  0xf2   : > { %v1359_v41 = vshll.u32 %v13954_v13, %v1347_v16  ;;  %v1362_v59 = vshll.u32 %v13958_v15, %v1347_v16  ;;  %v984_v14 = vshll.u32 %v8989_v29, 30  ;;  %vm1365_vm11 = vcmp.lt.s32.totalorder %v1346_v35, 1 }
  0xf3   : > { %v1351_v37 = vshrl.u32 %v13963_v9, %v1348_v3  ;;  %v1354_v38 = vshrl.u32 %v13960_v11, %v1348_v3  ;;  %v1357_v48 = vshrl.u32 %v13954_v13, %v1348_v3  ;;  %v1360_v61 = vshrl.u32 %v13958_v15, %v1348_v3 }
  0xf4   : > { %v1363_v56 = vshrl.u32 %v13956_v23, %v1348_v3  ;;  %v1234_v55 = vshrl.u32 %v1233_v36, 23  ;;  %vm1368_vm12 = vcmp.lt.s32.totalorder %v1346_v35, 4  ;;  %v1381_v18 = vshll.u32 %v1341_v54, 8 }
  0xf5   : > { %v1352_v4 = vor.u32 %v1351_v37, %v1350_v31  ;;  %v1355_v57 = vor.u32 %v1354_v38, %v1353_v43  ;;  %v1358_v1 = vor.u32 %v1357_v48, %v1356_v5  ;;  %v1361_v47 = vor.u32 %v1360_v61, %v1359_v41 }
  0xf6   : > { %v1364_v0 = vor.u32 %v1363_v56, %v1362_v59  ;;  %v754_v31 = vmul.f32 %v8759_v33, %v619_v30  ;;  %v1349_v37 = vshrl.u32 %v13965_v7, %v1348_v3  ;;  %vm1367_vm13 = vcmp.lt.s32.totalorder %v1346_v35, 3 }
  0xf7   : > { %v1373_v32 = vsel %vm1365_vm11, %v1352_v4, %v1355_v57  ;;  %v1370_v16 = vsel %vm1368_vm12, %v1358_v1, 2102212464  ;;  %v1374_v43 = vsel %vm1368_vm12, %v1361_v47, 920167782  ;;  %v9008_v5 = vsub.s32 %v981_v6, %v984_v14 }
  0xf8   : > { %vm1366_vm14 = vcmp.lt.s32.totalorder %v1346_v35, 2  ;;  %v1375_v21 = vsel %vm1367_vm13, %v1358_v1, %v1374_v43  ;;  %v1377_v2 = vsel %vm1365_vm11, %v1355_v57, %v1358_v1  ;;  %v1369_v25 = vsel %vm1365_vm11, %v1349_v37, %v1352_v4 }
  0xf9   : > { %v1376_v27 = vsel %vm1366_vm14, %v1373_v32, %v1375_v21  ;;  %v1378_v38 = vsel %vm1368_vm12, %v1364_v0, 1326507024  ;;  %v7153_v36 = vadd.s32 4294967169, %v1234_v55  ;;  %v1371_v48 = vsel %vm1367_vm13, %v1355_v57, %v1370_v16  ;;  %v614_v16 = vpop.permute.xlu0 %613 }
  0xfa   : > { %v1379_v41 = vsel %vm1367_vm13, %v1361_v47, %v1378_v38  ;;  %v9011_v61 = vmul.u32.u64.low %v1381_v18, %v1376_v27  ;;  %v9012_v54 = vmul.u32.u64.high %v1381_v18, %v1376_v27, %v9011_v61  ;;  %v893_v3 = vor.u32 %v892_v19, %v891_v63 }
  0xfb   : > { %v7151_v56 = vadd.s32 4294967294, %v1195_v8  ;;  %v1380_v59 = vsel %vm1366_vm14, %v1377_v2, %v1379_v41  ;;  %v1240_v6 = vadd.s32 1, %v7153_v36  ;;  %v987_v30 = vsub.s32 0, %v9008_v5 }
  0xfc   : > { %v9017_v14 = vmul.u32.u64.low %v1381_v18, %v1380_v59  ;;  %v9018_v1 = vmul.u32.u64.high %v1381_v18, %v1380_v59, %v9017_v14  ;;  %v9021_v4 = vadd.f32 %v8764_v34, %v754_v31  ;;  %vm1026_vm15 = vcmp.lt.s32.totalorder %v8769_v39, 0 }
  0xfd   : > { %v1110_v0 = vsub.s32 4, %v8861_v45  ;;  %v1372_v57 = vsel %vm1366_vm14, %v1369_v25, %v1371_v48  ;;  %vm1241_vm0 = vcmp.gt.s32.totalorder %v1240_v6, 0  ;;  %vm9028_vm1 = vcmp.le.f32.partialorder %v1024_v42, 0.7853982 }
  0xfe   : > { %14151 = vst [vmem:[#allocation14_spill] sm:$0xff] %v9021_v4  ;;  %v14152_v63 = vmov 0  ;;  %v1109_v47 = vsel %vm1026_vm15, %v1108_v50, %v8984_v10  ;;  %v898_v19 = vand.u32 2147483647, %v897_v26  ;;  %v1391_v8 = vadd.s32 1, %v9012_v54 }
  0xff   : > { %v14153_v63 = vsel %vm9028_vm1, 4294967295, %v14152_v63  ;;  %v900_v55 = vcvt.s32.f32 %v893_v3  ;;  %vm7152_vm2 = vcmp.lt.s32.totalorder %v7151_v56, 0  ;;  %v13949_v32 = vand.u32 2147483647, %v8979_v20 }
 0x100   : > { %14154 = vst [vmem:[#allocation15_spill] sm:$0xff] %v14153_v63  ;;  %v1242_v35 = vsel %vm1241_vm0, %v1240_v6, 0  ;;  %v7142_v31 = vmin.u32 %v987_v30, %v9008_v5  ;;  %v1388_v37 = vmul.u32 %v1381_v18, %v1372_v57  ;;  %vm1390_vm3 = vc.u32 %v9018_v1, %v9011_v61 }
 0x101   : > { %v1542_v42 = vand.u32 2139095040, %v9021_v4  ;;  %v9044_v10 = vsel %vm1026_vm15, %v1110_v0, %v8861_v45  ;;  %v904_v50 = vsub.s32 4, %v8891_v24  ;;  %v1392_v26 = vsel %vm1390_vm3, %v1391_v8, %v9012_v54 }
 0x102   : > { %14155 = vst [vmem:[#allocation16_spill] sm:$0xff] %v9044_v10  ;;  %v1244_v43 = vand.u32 31, %v1242_v35  ;;  %v9051_v18 = vsel %vm9028_vm1, %v8769_v39, %v1109_v47  ;;  %v9053_v21 = vmul.f32 %v900_v55, %v898_v19  ;;  %v1183_v2 = vadd.s32 %v8910_v58, %v8905_v52 }
 0x103   : > { %v1393_v25 = vadd.s32 %v1392_v26, %v1388_v37  ;;  %v1198_v27 = vsel %vm7152_vm2, 0, %v7151_v56  ;;  %v1237_v45 = vand.u32 8388607, %v13949_v32  ;;  %v9061_v36 = vmul.f32 %v8759_v33, %v614_v16 }
 0x104   : > { %v1245_v38 = vsub.s32 32, %v1244_v43  ;;  %v989_v48 = vclz %v7142_v31  ;;  %v1247_v54 = vshll.u32 %v13965_v7, %v1244_v43  ;;  %v1543_v3 = vshrl.u32 %v1542_v42, 23 }
 0x105   : > { %v1394_v41 = vadd.s32 536870912, %v1393_v25  ;;  %v1250_v6 = vshll.u32 %v13963_v9, %v1244_v43  ;;  %v1243_v56 = vshrl.u32 %v1242_v35, 5  ;;  %v1253_v30 = vshll.u32 %v13960_v11, %v1244_v43 }
 0x106   : > { %v1248_v59 = vshrl.u32 %v13963_v9, %v1245_v38  ;;  %v1251_v52 = vshrl.u32 %v13960_v11, %v1245_v38  ;;  %v1254_v58 = vshrl.u32 %v13954_v13, %v1245_v38  ;;  %v1256_v14 = vshll.u32 %v13954_v13, %v1244_v43 }
 0x107   : > { %v1257_v33 = vshrl.u32 %v13958_v15, %v1245_v38  ;;  %v1199_v0 = vsub.s32 32, %v1198_v27  ;;  %v1260_v19 = vshrl.u32 %v13956_v23, %v1245_v38  ;;  %vm820_vm4 = vcmp.lt.s32.totalorder %v8772_v40, 0 }
 0x108   : > { %v1249_v57 = vor.u32 %v1248_v59, %v1247_v54  ;;  %v1252_v47 = vor.u32 %v1251_v52, %v1250_v6  ;;  %v9073_v8 = vshrl.u32 %v1394_v41, 30  ;;  %v1255_v55 = vor.u32 %v1254_v58, %v1253_v30 }
 0x109   : > { %v1258_v31 = vor.u32 %v1257_v33, %v1256_v14  ;;  %v1259_v37 = vshll.u32 %v13958_v15, %v1244_v43  ;;  %v1200_v35 = vshll.u32 %v8970_v62, %v1198_v27  ;;  %v1203_v42 = vsub.s32 4294967266, %v1198_v27 }
 0x10a   : > { %v7143_v16 = vadd.s32 4294967294, %v989_v48  ;;  %v1238_v26 = vor.u32 8388608, %v1237_v45  ;;  %vm1262_vm5 = vcmp.lt.s32.totalorder %v1243_v56, 1  ;;  %vm1265_vm6 = vcmp.lt.s32.totalorder %v1243_v56, 4 }
 0x10b   : > { %v1261_v32 = vor.u32 %v1260_v19, %v1259_v37  ;;  %v7165_v54 = vadd.s32 4294967169, %v1543_v3  ;;  %v1246_v59 = vshrl.u32 %v13965_v7, %v1245_v38  ;;  %vm1264_vm7 = vcmp.lt.s32.totalorder %v1243_v56, 3 }
 0x10c   : > { %v1270_v6 = vsel %vm1262_vm5, %v1249_v57, %v1252_v47  ;;  %v1271_v41 = vsel %vm1265_vm6, %v1258_v31, 920167782  ;;  %v1396_v52 = vshll.u32 %v9073_v8, 30  ;;  %vm1263_vm8 = vcmp.lt.s32.totalorder %v1243_v56, 2 }
 0x10d   : > { %v1267_v43 = vsel %vm1265_vm6, %v1255_v55, 2102212464  ;;  %v1272_v62 = vsel %vm1264_vm7, %v1255_v55, %v1271_v41  ;;  %v1201_v27 = vshrl.u32 %v1183_v2, %v1199_v0  ;;  %v1274_v48 = vsel %vm1262_vm5, %v1252_v47, %v1255_v55 }
 0x10e   : > { %v1273_v45 = vsel %vm1263_vm8, %v1270_v6, %v1272_v62  ;;  %v1278_v3 = vshll.u32 %v1238_v26, 8  ;;  %v1204_v58 = vadd.s32 127, %v1203_v42  ;;  %v1266_v38 = vsel %vm1262_vm5, %v1246_v59, %v1249_v57 }
 0x10f   : > { %v1275_v30 = vsel %vm1265_vm6, %v1261_v32, 1326507024  ;;  %v13951_v14 = vand.u32 2147483647, %v9021_v4  ;;  %v1268_v33 = vsel %vm1264_vm7, %v1252_v47, %v1267_v43  ;;  %vm7144_vm9 = vcmp.lt.s32.totalorder %v7143_v16, 0 }
 0x110   : > { %v1276_v19 = vsel %vm1264_vm7, %v1258_v31, %v1275_v30  ;;  %v9090_v37 = vmul.u32.u64.low %v1278_v3, %v1273_v45  ;;  %v9091_v22 = vmul.u32.u64.high %v1278_v3, %v1273_v45, %v9090_v37  ;;  %v9094_v2 = vsub.s32 %v1393_v25, %v1396_v52 }
 0x111   : > { %v1277_v0 = vsel %vm1263_vm8, %v1274_v48, %v1276_v19  ;;  %v1549_v55 = vadd.s32 1, %v7165_v54  ;;  %v902_v57 = vxor.u32 2147483648, %v9053_v21  ;;  %v9103_v32 = vsel %vm820_vm4, %v904_v50, %v8891_v24 }
 0x112   : > { %v9105_v47 = vmul.u32.u64.low %v1278_v3, %v1277_v0  ;;  %v9106_v31 = vmul.u32.u64.high %v1278_v3, %v1277_v0, %v9105_v47  ;;  %v9108_v42 = vor.u32 %v1201_v27, %v1200_v35  ;;  %v1205_v26 = vshll.u32 %v1204_v58, 23 }
 0x113   : > { %v1269_v25 = vsel %vm1263_vm8, %v1266_v38, %v1268_v33  ;;  %vm1550_vm10 = vcmp.gt.s32.totalorder %v1549_v55, 0  ;;  %7984 = vcosq.f32 %v9051_v18  ;;  %v9112_v54 = vsel %vm7144_vm9, 0, %v7143_v16 }
 0x114   : > { %v1288_v59 = vadd.s32 1, %v9091_v22  ;;  %v1551_v6 = vsel %vm1550_vm10, %v1549_v55, 0  ;;  %v1399_v41 = vsub.s32 0, %v9094_v2  ;;  %v1546_v24 = vand.u32 8388607, %v13951_v14 }
 0x115   : > { %v1553_v50 = vand.u32 31, %v1551_v6  ;;  %v9120_v35 = vadd.f32 %v8764_v34, %v9061_v36  ;;  %v9125_v56 = vsel %vm820_vm4, %v902_v57, %v9053_v21  ;;  %v1213_v16 = vsub.s32 4, %v8948_v60 }
 0x116   : > { %v1285_v52 = vmul.u32 %v1278_v3, %v1269_v25  ;;  %vm1287_vm11 = vc.u32 %v9106_v31, %v9090_v37  ;;  %v9130_v43 = vor.u32 4788187, %v1205_v26  ;;  %v1209_v62 = vcvt.s32.f32 %v9108_v42 }
 0x117   : > { %14156 = vst [vmem:[#allocation17_spill] sm:$0xff] %v9120_v35  ;;  %v977_v27 = vadd.s32 %v8955_v28, %v8963_v46  ;;  %v1289_v34 = vsel %vm1287_vm11, %v1288_v59, %v9091_v22  ;;  %v993_v36 = vsub.s32 32, %v9112_v54  ;;  %v997_v21 = vsub.s32 4294967266, %v9112_v54 }
 0x118   : > { %v1290_v45 = vadd.s32 %v1289_v34, %v1285_v52  ;;  %v1554_v48 = vsub.s32 32, %v1553_v50  ;;  %v7158_v3 = vmin.u32 %v1399_v41, %v9094_v2  ;;  %v1547_v58 = vor.u32 8388608, %v1546_v24 }
 0x119   : > { %v1556_v38 = vshll.u32 %v13965_v7, %v1553_v50  ;;  %v1439_v30 = vand.u32 2139095040, %v9120_v35  ;;  %v1559_v28 = vshll.u32 %v13963_v9, %v1553_v50  ;;  %v1562_v22 = vshll.u32 %v13960_v11, %v1553_v50 }
 0x11a   : > { %v1291_v33 = vadd.s32 536870912, %v1290_v45  ;;  %v1557_v19 = vshrl.u32 %v13963_v9, %v1554_v48  ;;  %v1560_v46 = vshrl.u32 %v13960_v11, %v1554_v48  ;;  %v1563_v0 = vshrl.u32 %v13954_v13, %v1554_v48  ;;  %v629_v11 = vpop.permute.xlu1 %628 }
 0x11b   : > { %v1565_v55 = vshll.u32 %v13954_v13, %v1553_v50  ;;  %v1566_v57 = vshrl.u32 %v13958_v15, %v1554_v48  ;;  %v1207_v47 = vand.u32 2147483647, %v9130_v43  ;;  %v995_v26 = vshrl.u32 %v977_v27, %v993_v36 }
 0x11c   : > { %v9149_v25 = vshrl.u32 %v1291_v33, 30  ;;  %v1552_v59 = vshrl.u32 %v1551_v6, 5  ;;  %v1558_v41 = vor.u32 %v1557_v19, %v1556_v38  ;;  %v1561_v24 = vor.u32 %v1560_v46, %v1559_v28 }
 0x11d   : > { %v1564_v52 = vor.u32 %v1563_v0, %v1562_v22  ;;  %v1567_v34 = vor.u32 %v1566_v57, %v1565_v55  ;;  %vm9153_vm12 = vcmp.le.f32.partialorder %v818_v44, 0.7853982  ;;  %v998_v12 = vadd.s32 127, %v997_v21 }
 0x11e   : > { %v1293_v53 = vshll.u32 %v9149_v25, 30  ;;  %v1568_v13 = vshll.u32 %v13958_v15, %v1553_v50  ;;  %v1569_v43 = vshrl.u32 %v13956_v23, %v1554_v48  ;;  %v1401_v27 = vclz %v7158_v3 }
 0x11f   : > { %v1555_v6 = vshrl.u32 %v13965_v7, %v1554_v48  ;;  %v1587_v36 = vshll.u32 %v1547_v58, 8  ;;  %v1440_v38 = vshrl.u32 %v1439_v30, 23  ;;  %vm1571_vm13 = vcmp.lt.s32.totalorder %v1552_v59, 1 }
 0x120   : > { %v9161_v33 = vsub.s32 %v1290_v45, %v1293_v53  ;;  %v1570_v19 = vor.u32 %v1569_v43, %v1568_v13  ;;  %vm1574_vm14 = vcmp.lt.s32.totalorder %v1552_v59, 4  ;;  %v9163_v44 = vpop.eup %7984  ;;  %vm1573_vm15 = vcmp.lt.s32.totalorder %v1552_v59, 3 }
 0x121   : > { %14159 = vst [vmem:[#allocation18_spill] sm:$0xff] %v9163_v44  ;;  %v1576_v21 = vsel %vm1574_vm14, %v1564_v52, 2102212464  ;;  %v1579_v28 = vsel %vm1571_vm13, %v1558_v41, %v1561_v24  ;;  %v1580_v46 = vsel %vm1574_vm14, %v1567_v34, 920167782  ;;  %vm1129_vm0 = vcmp.lt.s32.totalorder %v8784_v51, 0 }
 0x122   : > { %v1296_v50 = vsub.s32 0, %v9161_v33  ;;  %vm1572_vm2 = vcmp.lt.s32.totalorder %v1552_v59, 2  ;;  %v1581_v3 = vsel %vm1573_vm15, %v1564_v52, %v1580_v46  ;;  %v1583_v48 = vsel %vm1571_vm13, %v1561_v24, %v1564_v52 }
 0x123   : > { %v999_v58 = vshll.u32 %v998_v12, 23  ;;  %v1575_v30 = vsel %vm1571_vm13, %v1555_v6, %v1558_v41  ;;  %v1582_v53 = vsel %vm1572_vm2, %v1579_v28, %v1581_v3  ;;  %v1584_v13 = vsel %vm1574_vm14, %v1570_v19, 1326507024  ;;  %v9194_v19 = vld [vmem:[%s14143_s4] ss:$0 sm:$0xff] }
 0x124   : > { %v1577_v45 = vsel %vm1573_vm15, %v1561_v24, %v1576_v21  ;;  %v1585_v22 = vsel %vm1573_vm15, %v1567_v34, %v1584_v13  ;;  %v9168_v0 = vmul.u32.u64.low %v1587_v36, %v1582_v53  ;;  %v9169_v55 = vmul.u32.u64.high %v1587_v36, %v1582_v53, %v9168_v0 }
 0x125   : > { %v7159_v57 = vadd.s32 4294967294, %v1401_v27  ;;  %v1586_v43 = vsel %vm1572_vm2, %v1583_v48, %v1585_v22  ;;  %v13962_v23 = vand.u32 2147483647, %v9120_v35  ;;  %v7161_v15 = vadd.s32 4294967169, %v1440_v38 }
 0x126   : > { %v994_v12 = vshll.u32 %v9008_v5, %v9112_v54  ;;  %v7154_v41 = vmin.u32 %v1296_v50, %v9161_v33  ;;  %v9177_v52 = vmul.u32.u64.low %v1587_v36, %v1586_v43  ;;  %v9178_v6 = vmul.u32.u64.high %v1587_v36, %v1586_v43, %v9177_v52 }
 0x127   : > { %7986 = vsinq.f32 %v9051_v18  ;;  %v9185_v24 = vsel %vm9153_vm12, %v8772_v40, %v9125_v56  ;;  %v1578_v34 = vsel %vm1572_vm2, %v1575_v30, %v1577_v45  ;;  %v1446_v27 = vadd.s32 1, %v7161_v15 }
 0x128   : > { %v1210_v38 = vmul.f32 %v1209_v62, %v1207_v47  ;;  %v996_v5 = vor.u32 %v995_v26, %v994_v12  ;;  %v1597_v54 = vadd.s32 1, %v9169_v55  ;;  %v756_v18 = vmul.f32 %v9194_v19, %v629_v11 }
 0x129   : > { %v1000_v21 = vor.u32 4788187, %v999_v58  ;;  %vm7160_vm3 = vcmp.lt.s32.totalorder %v7159_v57, 0  ;;  %v1443_v56 = vand.u32 8388607, %v13962_v23  ;;  %vm1447_vm4 = vcmp.gt.s32.totalorder %v1446_v27, 0 }
 0x12a   : > { %v1298_v15 = vclz %v7154_v41  ;;  %v1594_v59 = vmul.u32 %v1587_v36, %v1578_v34  ;;  %vm1596_vm5 = vc.u32 %v9178_v6, %v9168_v0  ;;  %v1448_v42 = vsel %vm1447_vm4, %v1446_v27, 0  ;;  %v9217_v58 = vld [vmem:[%s14144_s5] ss:$0 sm:$0xff] }
 0x12b   : > { %7988 = vcosq.f32 %v9185_v24  ;;  %v9207_v11 = vsel %vm1129_vm0, %v1213_v16, %v8948_v60  ;;  %v1598_v62 = vsel %vm1596_vm5, %v1597_v54, %v9169_v55  ;;  %v1450_v47 = vand.u32 31, %v1448_v42 }
 0x12c   : > { %14160 = vst [vmem:[#allocation19_spill] sm:$0xff] %v9207_v11  ;;  %v1211_v26 = vxor.u32 2147483648, %v1210_v38  ;;  %v1003_v28 = vcvt.s32.f32 %v996_v5  ;;  %v1599_v46 = vadd.s32 %v1598_v62, %v1594_v59  ;;  %v1001_v50 = vand.u32 2147483647, %v1000_v21 }
 0x12d   : > { %v9212_v3 = vsel %vm7160_vm3, 0, %v7159_v57  ;;  %v1451_v48 = vsub.s32 32, %v1450_v47  ;;  %v9220_v60 = vadd.f32 %v9217_v58, %v756_v18  ;;  %v7155_v16 = vadd.s32 4294967294, %v1298_v15 }
 0x12e   : > { %v1600_v30 = vadd.s32 536870912, %v1599_v46  ;;  %v1444_v53 = vor.u32 8388608, %v1443_v56  ;;  %v1453_v13 = vshll.u32 %v13965_v7, %v1450_v47  ;;  %v1456_v22 = vshll.u32 %v13963_v9, %v1450_v47 }
 0x12f   : > { %14161 = vst [vmem:[#allocation20_spill] sm:$0xff] %v9220_v60  ;;  %v1454_v45 = vshrl.u32 %v13963_v9, %v1451_v48  ;;  %v14162_v55 = vmov 2131351028   ;;  %v14163_v43 = vmov 2102212464   ;;  %v1449_v52 = vshrl.u32 %v1448_v42, 5 }
 0x130   : > { %v1457_v57 = vshrl.u32 %v14162_v55, %v1451_v48  ;;  %v1460_v12 = vshrl.u32 %v14163_v43, %v1451_v48  ;;  %v9227_v41 = vshrl.u32 %v1600_v30, 30  ;;  %v1459_v34 = vshll.u32 %v14162_v55, %v1450_v47 }
 0x131   : > { %v14164_v27 = vmov 920167782   ;;  %v14165_v54 = vand.u32 2147483647, %v8784_v51  ;;  %v14166_v18 = vmov 0  ;;  %v1212_v21 = vsel %vm1129_vm0, %v1211_v26, %v1210_v38 }
 0x132   : > { %v1463_v5 = vshrl.u32 %v14164_v27, %v1451_v48  ;;  %v1455_v56 = vor.u32 %v1454_v45, %v1453_v13  ;;  %v1458_v15 = vor.u32 %v1457_v57, %v1456_v22  ;;  %v1462_v59 = vshll.u32 %v14163_v43, %v1450_v47 }
 0x133   : > { %vm9233_vm6 = vcmp.le.f32.partialorder %v14165_v54, 0.7853982  ;;  %v1004_v62 = vmul.f32 %v1003_v28, %v1001_v50  ;;  %vm7156_vm7 = vcmp.lt.s32.totalorder %v7155_v16, 0  ;;  %v1602_v42 = vshll.u32 %v9227_v41, 30 }
 0x134   : > { %v14167_v18 = vsel %vm9233_vm6, 4294967295, %v14166_v18  ;;  %v1461_v30 = vor.u32 %v1460_v12, %v1459_v34  ;;  %v1409_v23 = vsub.s32 4294967266, %v9212_v3  ;;  %v1464_v9 = vor.u32 %v1463_v5, %v1462_v59  ;;  %v9244_v11 = vpop.eup %7986 }
 0x135   : > { %14168 = vst [vmem:[#allocation21_spill] sm:$0xff] %v14167_v18  ;;  %v1465_v54 = vshll.u32 %v14164_v27, %v1450_v47  ;;  %v14169_v36 = vmov 1326507024   ;;  %14170 = vst [vmem:[#allocation22_spill] sm:$0xff] %v9244_v11  ;;  %vm923_vm8 = vcmp.lt.s32.totalorder %v8866_v17, 0  ;;  %v9247_v38 = vsub.s32 %v1599_v46, %v1602_v42 }
 0x136   : > { %v1466_v7 = vshrl.u32 %v14169_v36, %v1451_v48  ;;  %vm1468_vm9 = vcmp.lt.s32.totalorder %v1449_v52, 1  ;;  %v1484_v26 = vshll.u32 %v1444_v53, 8  ;;  %v1748_v28 = vand.u32 2139095040, %v9220_v60 }
 0x137   : > { %v9250_v50 = vsel %vm7156_vm7, 0, %v7155_v16  ;;  %vm1471_vm10 = vcmp.lt.s32.totalorder %v1449_v52, 4  ;;  %v1476_v45 = vsel %vm1468_vm9, %v1455_v56, %v1458_v15  ;;  %v14171_v22 = vmov 683565275  }
 0x138   : > { %v1467_v13 = vor.u32 %v1466_v7, %v1465_v54  ;;  %v1452_v47 = vshrl.u32 %v14171_v22, %v1451_v48  ;;  %vm1470_vm11 = vcmp.lt.s32.totalorder %v1449_v52, 3  ;;  %v1473_v57 = vsel %vm1471_vm10, %v1461_v30, 2102212464  ;;  %v9255_v59 = vpop.eup %7988 }
 0x139   : > { %v1477_v12 = vsel %vm1471_vm10, %v1464_v9, 920167782  ;;  %vm1469_vm13 = vcmp.lt.s32.totalorder %v1449_v52, 2  ;;  %v1480_v46 = vsel %vm1468_vm9, %v1458_v15, %v1461_v30  ;;  %v1410_v53 = vadd.s32 127, %v1409_v23 }
 0x13a   : > { %v1478_v34 = vsel %vm1470_vm11, %v1461_v30, %v1477_v12  ;;  %v1481_v5 = vsel %vm1471_vm10, %v1467_v13, 1326507024  ;;  %v1605_v16 = vsub.s32 0, %v9247_v38  ;;  %v1472_v7 = vsel %vm1468_vm9, %v1452_v47, %v1455_v56 }
 0x13b   : > { %v1479_v42 = vsel %vm1469_vm13, %v1476_v45, %v1478_v34  ;;  %v1474_v54 = vsel %vm1470_vm11, %v1458_v15, %v1473_v57  ;;  %v1482_v44 = vsel %vm1470_vm11, %v1464_v9, %v1481_v5  ;;  %v9267_v30 = vsel %vm9233_vm6, %v8784_v51, %v1212_v21 }
 0x13c   : > { %v9260_v48 = vmul.u32.u64.low %v1484_v26, %v1479_v42  ;;  %v9261_v11 = vmul.u32.u64.high %v1484_v26, %v1479_v42, %v9260_v48  ;;  %v14172_v13 = vand.u32 2147483647, %v8866_v17  ;;  %v14173_v23 = vmov 0 }
 0x13d   : > { %v1306_v56 = vsub.s32 4294967266, %v9250_v50  ;;  %v1483_v15 = vsel %vm1469_vm13, %v1480_v46, %v1482_v44  ;;  %v1749_v9 = vshrl.u32 %v1748_v28, 23  ;;  %7990 = vsinq.f32 %v9185_v24 }
 0x13e   : > { %vm9271_vm14 = vcmp.le.f32.partialorder %v14172_v13, 0.7853982  ;;  %v1005_v45 = vxor.u32 2147483648, %v1004_v62  ;;  %v9278_v47 = vmul.u32.u64.low %v1484_v26, %v1483_v15  ;;  %v9279_v57 = vmul.u32.u64.high %v1484_v26, %v1483_v15, %v9278_v47 }
 0x13f   : > { %v14174_v23 = vsel %vm9271_vm14, 4294967295, %v14173_v23  ;;  %v1405_v21 = vsub.s32 32, %v9212_v3  ;;  %v1411_v12 = vshll.u32 %v1410_v53, 23  ;;  %v1475_v34 = vsel %vm1469_vm13, %v1472_v7, %v1474_v54  ;;  %v624_v54 = vpop.permute.xlu0 %623 }
 0x140   : > { %14175 = vst [vmem:[#allocation23_spill] sm:$0xff] %v14174_v23  ;;  %v7173_v5 = vadd.s32 4294967169, %v1749_v9  ;;  %7992 = vcosq.f32 %v9267_v30  ;;  %v14176_v42 = vsub.s32 4, %v8989_v29  ;;  %v7166_v24 = vmin.u32 %v1605_v16, %v9247_v38 }
 0x141   : > { %v1494_v28 = vadd.s32 1, %v9261_v11  ;;  %v1389_v46 = vadd.s32 %v9011_v61, %v9018_v1  ;;  %v1302_v52 = vsub.s32 32, %v9250_v50  ;;  %v1307_v53 = vadd.s32 127, %v1306_v56 }
 0x142   : > { %v9289_v44 = vsel %vm923_vm8, %v14176_v42, %v8989_v29  ;;  %v1755_v7 = vadd.s32 1, %v7173_v5  ;;  %v1006_v13 = vsel %vm923_vm8, %v1005_v45, %v1004_v62  ;;  %v1286_v15 = vadd.s32 %v9090_v37, %v9106_v31 }
 0x143   : > { %v1491_v29 = vmul.u32 %v1484_v26, %v1475_v34  ;;  %vm1493_vm15 = vc.u32 %v9279_v57, %v9260_v48  ;;  %v1407_v16 = vshrl.u32 %v1389_v46, %v1405_v21  ;;  %v1412_v9 = vor.u32 4788187, %v1411_v12 }
 0x144   : > { %v1495_v47 = vsel %vm1493_vm15, %v1494_v28, %v9261_v11  ;;  %v13969_v61 = vand.u32 2147483647, %v9220_v60  ;;  %v1607_v1 = vclz %v7166_v24  ;;  %vm1756_vm0 = vcmp.gt.s32.totalorder %v1755_v7, 0 }
 0x145   : > { %v1496_v56 = vadd.s32 %v1495_v47, %v1491_v29  ;;  %v755_v5 = vmul.f32 %v9194_v19, %v624_v54  ;;  %v1406_v62 = vshll.u32 %v9094_v2, %v9212_v3  ;;  %v1304_v45 = vshrl.u32 %v1286_v15, %v1302_v52 }
 0x146   : > { %v1308_v37 = vshll.u32 %v1307_v53, 23  ;;  %v1757_v31 = vsel %vm1756_vm0, %v1755_v7, 0  ;;  %v9310_v26 = vsel %vm9271_vm14, %v8866_v17, %v1006_v13  ;;  %v1413_v42 = vand.u32 2147483647, %v1412_v9 }
 0x147   : > { %v1497_v21 = vadd.s32 536870912, %v1496_v56  ;;  %v1759_v12 = vand.u32 31, %v1757_v31  ;;  %v1408_v34 = vor.u32 %v1407_v16, %v1406_v62  ;;  %v1303_v24 = vshll.u32 %v9161_v33, %v9250_v50 }
 0x148   : > { %v1752_v2 = vand.u32 8388607, %v13969_v61  ;;  %v7167_v3 = vadd.s32 4294967294, %v1607_v1  ;;  %v9320_v52 = vadd.f32 %v9217_v58, %v755_v5  ;;  %v9324_v7 = vor.u32 4788187, %v1308_v37 }
 0x149   : > { %v9317_v28 = vshrl.u32 %v1497_v21, 30  ;;  %v1760_v46 = vsub.s32 32, %v1759_v12  ;;  %v9322_v53 = vor.u32 %v1304_v45, %v1303_v24  ;;  %v1758_v54 = vshrl.u32 %v1757_v31, 5 }
 0x14a   : > { %14177 = vst [vmem:[#allocation24_spill] sm:$0xff] %v9320_v52  ;;  %v1762_v13 = vshll.u32 %v14171_v22, %v1759_v12  ;;  %v14178_v33 = vmov 2475754826   ;;  %v1768_v16 = vshll.u32 %v14162_v55, %v1759_v12  ;;  %v9331_v9 = vpop.eup %7990  ;;  %v1771_v5 = vshll.u32 %v14163_v43, %v1759_v12 }
 0x14b   : > { %v1499_v15 = vshll.u32 %v9317_v28, 30  ;;  %v1763_v50 = vshrl.u32 %v14178_v33, %v1760_v46  ;;  %v1765_v29 = vshll.u32 %v14178_v33, %v1759_v12  ;;  %v1766_v47 = vshrl.u32 %v14162_v55, %v1760_v46 }
 0x14c   : > { %v1769_v1 = vshrl.u32 %v14163_v43, %v1760_v46  ;;  %v1772_v62 = vshrl.u32 %v14164_v27, %v1760_v46  ;;  %v1415_v45 = vcvt.s32.f32 %v1408_v34  ;;  %vm7168_vm2 = vcmp.lt.s32.totalorder %v7167_v3, 0 }
 0x14d   : > { %v1764_v37 = vor.u32 %v1763_v50, %v1762_v13  ;;  %v1645_v31 = vand.u32 2139095040, %v9320_v52  ;;  %v9338_v21 = vpop.eup %7992  ;;  %v9340_v24 = vsub.s32 %v1496_v56, %v1499_v15  ;;  %v1767_v61 = vor.u32 %v1766_v47, %v1765_v29 }
 0x14e   : > { %14179 = vst [vmem:[#allocation25_spill] sm:$0xff] %v9338_v21  ;;  %v1770_v11 = vor.u32 %v1769_v1, %v1768_v16  ;;  %v1773_v51 = vor.u32 %v1772_v62, %v1771_v5  ;;  %vm1335_vm3 = vcmp.lt.s32.totalorder %v8941_v49, 0  ;;  %v1416_v18 = vmul.f32 %v1415_v45, %v1413_v42  ;;  %v639_v5 = vpop.permute.xlu1 %638 }
 0x14f   : > { %v1312_v39 = vcvt.s32.f32 %v9322_v53  ;;  %v1774_v63 = vshll.u32 %v14164_v27, %v1759_v12  ;;  %v1775_v34 = vshrl.u32 %v14169_v36, %v1760_v46  ;;  %v1310_v13 = vand.u32 2147483647, %v9324_v7 }
 0x150   : > { %v9347_v50 = vsel %vm7168_vm2, 0, %v7167_v3  ;;  %v1753_v10 = vor.u32 8388608, %v1752_v2  ;;  %vm1777_vm4 = vcmp.lt.s32.totalorder %v1758_v54, 1  ;;  %vm1780_vm5 = vcmp.lt.s32.totalorder %v1758_v54, 4 }
 0x151   : > { %v1776_v56 = vor.u32 %v1775_v34, %v1774_v63  ;;  %v1785_v15 = vsel %vm1777_vm4, %v1764_v37, %v1767_v61  ;;  %v1646_v29 = vshrl.u32 %v1645_v31, 23  ;;  %v1502_v16 = vsub.s32 0, %v9340_v24 }
 0x152   : > { %vm1779_vm7 = vcmp.lt.s32.totalorder %v1758_v54, 3  ;;  %v1782_v42 = vsel %vm1780_vm5, %v1770_v11, 2102212464  ;;  %v1786_v53 = vsel %vm1780_vm5, %v1773_v51, 920167782  ;;  %v1761_v12 = vshrl.u32 %v14171_v22, %v1760_v46 }
 0x153   : > { %vm1778_vm8 = vcmp.lt.s32.totalorder %v1758_v54, 2  ;;  %v1787_v47 = vsel %vm1779_vm7, %v1770_v11, %v1786_v53  ;;  %v1789_v7 = vsel %vm1777_vm4, %v1767_v61, %v1770_v11  ;;  %v1615_v3 = vsub.s32 4294967266, %v9347_v50 }
 0x154   : > { %v1788_v2 = vsel %vm1778_vm8, %v1785_v15, %v1787_v47  ;;  %v1790_v63 = vsel %vm1780_vm5, %v1776_v56, 1326507024  ;;  %v1793_v1 = vshll.u32 %v1753_v10, 8  ;;  %v1781_v62 = vsel %vm1777_vm4, %v1761_v12, %v1764_v37 }
 0x155   : > { %v1783_v45 = vsel %vm1779_vm7, %v1767_v61, %v1782_v42  ;;  %v1791_v31 = vsel %vm1779_vm7, %v1773_v51, %v1790_v63  ;;  %v7169_v34 = vadd.s32 4294967169, %v1646_v29  ;;  %v7162_v21 = vmin.u32 %v1502_v16, %v9340_v24 }
 0x156   : > { %v1792_v46 = vsel %vm1778_vm8, %v1789_v7, %v1791_v31  ;;  %v9358_v17 = vmul.u32.u64.low %v1793_v1, %v1788_v2  ;;  %v9359_v53 = vmul.u32.u64.high %v1793_v1, %v1788_v2, %v9358_v17  ;;  %v758_v10 = vmul.f32 %v9194_v19, %v639_v5 }
 0x157   : > { %v9362_v11 = vmul.u32.u64.low %v1793_v1, %v1792_v46  ;;  %v9363_v40 = vmul.u32.u64.high %v1793_v1, %v1792_v46, %v9362_v11  ;;  %v1652_v15 = vadd.s32 1, %v7169_v34  ;;  %7994 = vsinq.f32 %v9267_v30 }
 0x158   : > { %v1417_v37 = vxor.u32 2147483648, %v1416_v18  ;;  %v14180_v51 = vsub.s32 4, %v9073_v8  ;;  %v1784_v56 = vsel %vm1778_vm8, %v1781_v62, %v1783_v45  ;;  %7996 = vcosq.f32 %v9310_v26 }
 0x159   : > { %v9376_v29 = vmul.f32 %v1312_v39, %v1310_v13  ;;  %v13981_v16 = vand.u32 2147483647, %v9320_v52  ;;  %vm1653_vm9 = vcmp.gt.s32.totalorder %v1652_v15, 0  ;;  %v1616_v42 = vadd.s32 127, %v1615_v3 }
 0x15a   : > { %v9372_v61 = vsel %vm1335_vm3, %v14180_v51, %v9073_v8  ;;  %v1504_v12 = vclz %v7162_v21  ;;  %v1803_v30 = vadd.s32 1, %v9359_v53  ;;  %v1654_v47 = vsel %vm1653_vm9, %v1652_v15, 0 }
 0x15b   : > { %14181 = vst [vmem:[#allocation26_spill] sm:$0xff] %v9372_v61  ;;  %7998 = vsinq.f32 %v9310_v26  ;;  %v1800_v7 = vmul.u32 %v1793_v1, %v1784_v56  ;;  %vm1802_vm10 = vc.u32 %v9363_v40, %v9358_v17  ;;  %v9384_v8 = vadd.f32 %v9217_v58, %v758_v10 }
 0x15c   : > { %v9388_v39 = vsel %vm1335_vm3, %v1417_v37, %v1416_v18  ;;  %v1595_v54 = vadd.s32 %v9168_v0, %v9178_v6  ;;  %v1804_v21 = vsel %vm1802_vm10, %v1803_v30, %v9359_v53  ;;  %v1656_v13 = vand.u32 31, %v1654_v47 }
 0x15d   : > { %14182 = vst [vmem:[#allocation27_spill] sm:$0xff] %v9384_v8  ;;  %v1611_v26 = vsub.s32 32, %v9347_v50  ;;  %v1612_v2 = vshll.u32 %v9247_v38, %v9347_v50  ;;  %v1805_v63 = vadd.s32 %v1804_v21, %v1800_v7  ;;  %v1617_v1 = vshll.u32 %v1616_v42, 23 }
 0x15e   : > { %v7163_v5 = vadd.s32 4294967294, %v1504_v12  ;;  %v1649_v18 = vand.u32 8388607, %v13981_v16  ;;  %v1657_v62 = vsub.s32 32, %v1656_v13  ;;  %v9399_v31 = vshrl.u32 %v1654_v47, 5 }
 0x15f   : > { %v1806_v45 = vadd.s32 536870912, %v1805_v63  ;;  %v1659_v0 = vshll.u32 %v14171_v22, %v1656_v13  ;;  %v1954_v6 = vand.u32 2139095040, %v9384_v8  ;;  %v1662_v46 = vshll.u32 %v14178_v33, %v1656_v13 }
 0x160   : > { %v1660_v34 = vshrl.u32 %v14178_v33, %v1657_v62  ;;  %v1663_v38 = vshrl.u32 %v14162_v55, %v1657_v62  ;;  %v1666_v50 = vshrl.u32 %v14163_v43, %v1657_v62  ;;  %v1665_v11 = vshll.u32 %v14162_v55, %v1656_v13 }
 0x161   : > { %v9407_v53 = vshrl.u32 %v1806_v45, 30  ;;  %v1668_v15 = vshll.u32 %v14163_v43, %v1656_v13  ;;  %v1669_v10 = vshrl.u32 %v14164_v27, %v1657_v62  ;;  %v1613_v37 = vshrl.u32 %v1595_v54, %v1611_v26 }
 0x162   : > { %v1661_v51 = vor.u32 %v1660_v34, %v1659_v0  ;;  %v1664_v56 = vor.u32 %v1663_v38, %v1662_v46  ;;  %v1672_v42 = vshrl.u32 %v14169_v36, %v1657_v62  ;;  %v1667_v30 = vor.u32 %v1666_v50, %v1665_v11 }
 0x163   : > { %v1808_v12 = vshll.u32 %v9407_v53, 30  ;;  %v1670_v47 = vor.u32 %v1669_v10, %v1668_v15  ;;  %v1671_v7 = vshll.u32 %v14164_v27, %v1656_v13  ;;  %v1618_v21 = vor.u32 4788187, %v1617_v1  ;;  %v634_v15 = vpop.permute.xlu0 %633 }
 0x164   : > { %vm7164_vm11 = vcmp.lt.s32.totalorder %v7163_v5, 0  ;;  %v1650_v45 = vor.u32 8388608, %v1649_v18  ;;  %v1955_v16 = vshrl.u32 %v1954_v6, 23  ;;  %v9415_v3 = vpop.eup %7994  ;;  %v14184_v61 = vand.u32 2147483647, %v8941_v49 }
 0x165   : > { %14183 = vst [vmem:[#allocation28_spill] sm:$0xff] %v9415_v3  ;;  %v14185_v54 = vmov 0  ;;  %v9423_v26 = vsub.s32 %v1805_v63, %v1808_v12  ;;  %v1673_v0 = vor.u32 %v1672_v42, %v1671_v7  ;;  %vm1674_vm15 = vcmp.lt.s32.totalorder %v9399_v31, 1  ;;  %v9427_v13 = vpop.eup %7996 }
 0x166   : > { %vm9419_vm13 = vcmp.le.f32.partialorder %v14184_v61, 0.7853982  ;;  %vm1677_vm0 = vcmp.lt.s32.totalorder %v9399_v31, 4  ;;  %14188 = vst [vmem:[#allocation30_spill] sm:$0xff] %v9427_v13  ;;  %vm1232_vm2 = vcmp.lt.s32.totalorder %v8979_v20, 0  ;;  %v1658_v1 = vshrl.u32 %v14171_v22, %v1657_v62 }
 0x167   : > { %v14186_v54 = vsel %vm9419_vm13, 4294967295, %v14185_v54  ;;  %vm1676_vm3 = vcmp.lt.s32.totalorder %v9399_v31, 3  ;;  %v1682_v61 = vsel %vm1674_vm15, %v1661_v51, %v1664_v56  ;;  %v1683_v63 = vsel %vm1677_vm0, %v1670_v47, 920167782 }
 0x168   : > { %14187 = vst [vmem:[#allocation29_spill] sm:$0xff] %v14186_v54  ;;  %v1811_v18 = vsub.s32 0, %v9423_v26  ;;  %vm1675_vm4 = vcmp.lt.s32.totalorder %v9399_v31, 2  ;;  %v1679_v6 = vsel %vm1677_vm0, %v1667_v30, 2102212464  ;;  %v1684_v34 = vsel %vm1676_vm3, %v1667_v30, %v1683_v63  ;;  %v9442_v46 = vpop.eup %7998 }
 0x169   : > { %14189 = vst [vmem:[#allocation31_spill] sm:$0xff] %v9442_v46  ;;  %v1614_v62 = vor.u32 %v1613_v37, %v1612_v2  ;;  %v1685_v38 = vsel %vm1675_vm4, %v1682_v61, %v1684_v34  ;;  %v1686_v50 = vsel %vm1674_vm15, %v1664_v56, %v1667_v30  ;;  %v1690_v11 = vshll.u32 %v1650_v45, 8 }
 0x16a   : > { %v1507_v10 = vsel %vm7164_vm11, 0, %v7163_v5  ;;  %v7174_v42 = vmin.u32 %v1811_v18, %v9423_v26  ;;  %v1678_v12 = vsel %vm1674_vm15, %v1658_v1, %v1661_v51  ;;  %v1687_v7 = vsel %vm1677_vm0, %v1673_v0, 1326507024 }
 0x16b   : > { %v14190_v2 = vand.u32 2147483647, %v8979_v20  ;;  %v14191_v37 = vmov 0  ;;  %v1680_v30 = vsel %vm1676_vm3, %v1664_v56, %v1679_v6  ;;  %v1688_v5 = vsel %vm1676_vm3, %v1670_v47, %v1687_v7 }
 0x16c   : > { %v9464_v45 = vmul.u32.u64.low %v1690_v11, %v1685_v38  ;;  %v9465_v61 = vmul.u32.u64.high %v1690_v11, %v1685_v38, %v9464_v45  ;;  %v1619_v51 = vand.u32 2147483647, %v1618_v21  ;;  %v1689_v0 = vsel %vm1675_vm4, %v1686_v50, %v1688_v5 }
 0x16d   : > { %vm9456_vm5 = vcmp.le.f32.partialorder %v14190_v2, 0.7853982  ;;  %v7181_v1 = vadd.s32 4294967169, %v1955_v16  ;;  %v757_v63 = vmul.f32 %v9194_v19, %v634_v15  ;;  %v1621_v18 = vcvt.s32.f32 %v1614_v62 }
 0x16e   : > { %v14192_v37 = vsel %vm9456_vm5, 4294967295, %v14191_v37  ;;  %v1508_v34 = vsub.s32 32, %v1507_v10  ;;  %v9471_v2 = vmul.u32.u64.low %v1690_v11, %v1689_v0  ;;  %v9472_v3 = vmul.u32.u64.high %v1690_v11, %v1689_v0, %v9471_v2 }
 0x16f   : > { %14193 = vst [vmem:[#allocation32_spill] sm:$0xff] %v14192_v37  ;;  %v1512_v56 = vsub.s32 4294967266, %v1507_v10  ;;  %v1813_v6 = vclz %v7174_v42  ;;  %v1681_v47 = vsel %vm1675_vm4, %v1678_v12, %v1680_v30  ;;  %v1961_v38 = vadd.s32 1, %v7181_v1 }
 0x170   : > { %v1421_v21 = vsel %vm9419_vm13, %v8941_v49, %v9388_v39  ;;  %v1316_v16 = vsub.s32 4, %v9149_v25  ;;  %v1492_v62 = vadd.s32 %v9260_v48, %v9279_v57  ;;  %v1700_v50 = vadd.s32 1, %v9465_v61 }
 0x171   : > { %v14194_v15 = vxor.u32 2147483648, %v9376_v29  ;;  %v9489_v42 = vmul.f32 %v1621_v18, %v1619_v51  ;;  %v13983_v12 = vand.u32 2147483647, %v9384_v8  ;;  %vm1962_vm7 = vcmp.gt.s32.totalorder %v1961_v38, 0 }
 0x172   : > { %v1510_v7 = vshrl.u32 %v1492_v62, %v1508_v34  ;;  %v1697_v39 = vmul.u32 %v1690_v11, %v1681_v47  ;;  %vm1699_vm8 = vc.u32 %v9472_v3, %v9464_v45  ;;  %v1963_v30 = vsel %vm1962_vm7, %v1961_v38, 0 }
 0x173   : > { %v1315_v31 = vsel %vm1232_vm2, %v14194_v15, %v9376_v29  ;;  %v1513_v48 = vadd.s32 127, %v1512_v56  ;;  %v7175_v57 = vadd.s32 4294967294, %v1813_v6  ;;  %v1701_v5 = vsel %vm1699_vm8, %v1700_v50, %v9465_v61 }
 0x174   : > { %v9496_v0 = vadd.f32 %v9217_v58, %v757_v63  ;;  %8000 = vcosq.f32 %v1421_v21  ;;  %v1509_v29 = vshll.u32 %v9340_v24, %v1507_v10  ;;  %v1702_v51 = vadd.s32 %v1701_v5, %v1697_v39 }
 0x175   : > { %v1965_v1 = vand.u32 31, %v1963_v30  ;;  %8002 = vsinq.f32 %v1421_v21  ;;  %v9502_v11 = vsel %vm1232_vm2, %v1316_v16, %v9149_v25  ;;  %v9507_v18 = vsel %vm9456_vm5, %v8979_v20, %v1315_v31 }
 0x176   : > { %14195 = vst [vmem:[#allocation33_spill] sm:$0xff] %v9496_v0  ;;  %14196 = vst [vmem:[#allocation34_spill] sm:$0xff] %v9502_v11  ;;  %v9511_v34 = vor.u32 %v1510_v7, %v1509_v29  ;;  %v1703_v24 = vadd.s32 536870912, %v1702_v51  ;;  %v1514_v2 = vshll.u32 %v1513_v48, 23  ;;  %vm7176_vm9 = vcmp.lt.s32.totalorder %v7175_v57, 0  ;;  %v649_v11 = vpop.permute.xlu1 %648 }
 0x177   : > { %v1966_v10 = vsub.s32 32, %v1965_v1  ;;  %v1958_v56 = vand.u32 8388607, %v13983_v12  ;;  %v1851_v25 = vand.u32 2139095040, %v9496_v0  ;;  %v1968_v47 = vshll.u32 %v14171_v22, %v1965_v1 }
 0x178   : > { %v9516_v6 = vshrl.u32 %v1703_v24, 30  ;;  %v1971_v16 = vshll.u32 %v14178_v33, %v1965_v1  ;;  %v1977_v50 = vshll.u32 %v14163_v43, %v1965_v1  ;;  %v9525_v31 = vsel %vm7176_vm9, 0, %v7175_v57 }
 0x179   : > { %v1969_v38 = vshrl.u32 %v14178_v33, %v1966_v10  ;;  %v1972_v21 = vshrl.u32 %v14162_v55, %v1966_v10  ;;  %v1975_v62 = vshrl.u32 %v14163_v43, %v1966_v10  ;;  %v1978_v15 = vshrl.u32 %v14164_v27, %v1966_v10 }
 0x17a   : > { %v1705_v7 = vshll.u32 %v9516_v6, 30  ;;  %v1964_v39 = vshrl.u32 %v1963_v30, 5  ;;  %v1974_v48 = vshll.u32 %v14162_v55, %v1965_v1  ;;  %v9529_v5 = vor.u32 4788187, %v1514_v2 }
 0x17b   : > { %v1970_v29 = vor.u32 %v1969_v38, %v1968_v47  ;;  %v1973_v24 = vor.u32 %v1972_v21, %v1971_v16  ;;  %v1979_v12 = vor.u32 %v1978_v15, %v1977_v50  ;;  %vm1541_vm10 = vcmp.lt.s32.totalorder %v9021_v4, 0 }
 0x17c   : > { %v9532_v63 = vsub.s32 %v1702_v51, %v1705_v7  ;;  %v1976_v61 = vor.u32 %v1975_v62, %v1974_v48  ;;  %v1980_v49 = vshll.u32 %v14164_v27, %v1965_v1  ;;  %v1981_v57 = vshrl.u32 %v14169_v36, %v1966_v10 }
 0x17d   : > { %v1821_v54 = vsub.s32 4294967266, %v9525_v31  ;;  %v1959_v20 = vor.u32 8388608, %v1958_v56  ;;  %v1967_v30 = vshrl.u32 %v14171_v22, %v1966_v10  ;;  %v1852_v37 = vshrl.u32 %v1851_v25, 23 }
 0x17e   : > { %v1708_v2 = vsub.s32 0, %v9532_v63  ;;  %v1982_v47 = vor.u32 %v1981_v57, %v1980_v49  ;;  %vm1983_vm11 = vcmp.lt.s32.totalorder %v1964_v39, 1  ;;  %vm1986_vm15 = vcmp.lt.s32.totalorder %v1964_v39, 4 }
 0x17f   : > { %vm1984_vm0 = vcmp.lt.s32.totalorder %v1964_v39, 2  ;;  %vm1985_vm2 = vcmp.lt.s32.totalorder %v1964_v39, 3  ;;  %v1991_v51 = vsel %vm1983_vm11, %v1970_v29, %v1973_v24  ;;  %v1992_v38 = vsel %vm1986_vm15, %v1979_v12, 920167782 }
 0x180   : > { %v7170_v1 = vmin.u32 %v1708_v2, %v9532_v63  ;;  %v1988_v21 = vsel %vm1986_vm15, %v1976_v61, 2102212464  ;;  %v1993_v16 = vsel %vm1985_vm2, %v1976_v61, %v1992_v38  ;;  %v1995_v56 = vsel %vm1983_vm11, %v1973_v24, %v1976_v61 }
 0x181   : > { %v9543_v62 = vpop.eup %8000  ;;  %v1994_v10 = vsel %vm1984_vm0, %v1991_v51, %v1993_v16  ;;  %v1996_v25 = vsel %vm1986_vm15, %v1982_v47, 1326507024  ;;  %v1999_v49 = vshll.u32 %v1959_v20, 8  ;;  %v13992_v50 = vand.u32 2147483647, %v9496_v0 }
 0x182   : > { %14197 = vst [vmem:[#allocation35_spill] sm:$0xff] %v9543_v62  ;;  %v9547_v15 = vpop.eup %8002  ;;  %v1710_v7 = vclz %v7170_v1  ;;  %v1987_v48 = vsel %vm1983_vm11, %v1967_v30, %v1970_v29  ;;  %v1997_v57 = vsel %vm1985_vm2, %v1979_v12, %v1996_v25  ;;  %v7177_v2 = vadd.s32 4294967169, %v1852_v37 }
 0x183   : > { %14198 = vst [vmem:[#allocation36_spill] sm:$0xff] %v9547_v15  ;;  %v1989_v38 = vsel %vm1985_vm2, %v1973_v24, %v1988_v21  ;;  %v1998_v61 = vsel %vm1984_vm0, %v1995_v56, %v1997_v57  ;;  %v9553_v62 = vmul.u32.u64.low %v1999_v49, %v1994_v10  ;;  %v9554_v13 = vmul.u32.u64.high %v1999_v49, %v1994_v10, %v9553_v62  ;;  %v644_v10 = vpop.permute.xlu0 %643 }
 0x184   : > { %v1822_v20 = vadd.s32 127, %v1821_v54  ;;  %v7171_v47 = vadd.s32 4294967294, %v1710_v7  ;;  %v9557_v51 = vmul.u32.u64.low %v1999_v49, %v1998_v61  ;;  %v9558_v16 = vmul.u32.u64.high %v1999_v49, %v1998_v61, %v9557_v51 }
 0x185   : > { %8004 = vcosq.f32 %v9507_v18  ;;  %v14199_v12 = vsub.s32 4, %v9227_v41  ;;  %v1858_v29 = vadd.s32 1, %v7177_v2  ;;  %v760_v24 = vmul.f32 %v9194_v19, %v649_v11 }
 0x186   : > { %8006 = vsinq.f32 %v9507_v18  ;;  %v1516_v54 = vand.u32 2147483647, %v9529_v5  ;;  %v1990_v30 = vsel %vm1984_vm0, %v1987_v48, %v1989_v38  ;;  %v1855_v1 = vand.u32 8388607, %v13992_v50 }
 0x187   : > { %v9566_v37 = vsel %vm1541_vm10, %v14199_v12, %v9227_v41  ;;  %v14201_v21 = vxor.u32 2147483648, %v9489_v42  ;;  %v2009_v11 = vadd.s32 1, %v9554_v13  ;;  %vm1859_vm3 = vcmp.gt.s32.totalorder %v1858_v29, 0 }
 0x188   : > { %14200 = vst [vmem:[#allocation37_spill] sm:$0xff] %v9566_v37  ;;  %v1518_v18 = vcvt.s32.f32 %v9511_v34  ;;  %v1817_v39 = vsub.s32 32, %v9525_v31  ;;  %v1823_v5 = vshll.u32 %v1822_v20, 23  ;;  %vm7172_vm4 = vcmp.lt.s32.totalorder %v7171_v47, 0 }
 0x189   : > { %v9579_v56 = vsel %vm1541_vm10, %v14201_v21, %v9489_v42  ;;  %v2006_v25 = vmul.u32 %v1999_v49, %v1990_v30  ;;  %vm2008_vm7 = vc.u32 %v9558_v16, %v9553_v62  ;;  %v1860_v7 = vsel %vm1859_vm3, %v1858_v29, 0 }
 0x18a   : > { %v9588_v42 = vadd.f32 %v9217_v58, %v760_v24  ;;  %v9590_v48 = vmul.f32 %v1518_v18, %v1516_v54  ;;  %v1801_v57 = vadd.s32 %v9358_v17, %v9363_v40  ;;  %v2010_v34 = vsel %vm2008_vm7, %v2009_v11, %v9554_v13 }
 0x18b   : > { %v1856_v2 = vor.u32 8388608, %v1855_v1  ;;  %v9595_v38 = vsel %vm7172_vm4, 0, %v7171_v47  ;;  %v2011_v61 = vadd.s32 %v2010_v34, %v2006_v25  ;;  %v1862_v20 = vand.u32 31, %v1860_v7 }
 0x18c   : > { %14202 = vst [vmem:[#allocation38_spill] sm:$0xff] %v9588_v42  ;;  %v9598_v49 = vmul.f32 %v9194_v19, %v644_v10  ;;  %v1819_v12 = vshrl.u32 %v1801_v57, %v1817_v39  ;;  %v9602_v29 = vor.u32 4788187, %v1823_v5  ;;  %v1698_v24 = vadd.s32 %v9464_v45, %v9472_v3 }
 0x18d   : > { %v2012_v40 = vadd.s32 536870912, %v2011_v61  ;;  %v1863_v17 = vsub.s32 32, %v1862_v20  ;;  %v2160_v47 = vand.u32 2139095040, %v9588_v42  ;;  %v1718_v54 = vsub.s32 4294967266, %v9595_v38 }
 0x18e   : > { %v1861_v30 = vshrl.u32 %v1860_v7, 5  ;;  %v1865_v19 = vshll.u32 %v14171_v22, %v1862_v20  ;;  %v9610_v1 = vshll.u32 %v1856_v2, 8  ;;  %v1868_v18 = vshll.u32 %v14178_v33, %v1862_v20 }
 0x18f   : > { %v9612_v21 = vshrl.u32 %v2012_v40, 30  ;;  %v1866_v11 = vshrl.u32 %v14178_v33, %v1863_v17  ;;  %v1869_v3 = vshrl.u32 %v14162_v55, %v1863_v17  ;;  %v1871_v45 = vshll.u32 %v14162_v55, %v1862_v20 }
 0x190   : > { %v1872_v39 = vshrl.u32 %v14163_v43, %v1863_v17  ;;  %v1874_v5 = vshll.u32 %v14163_v43, %v1862_v20  ;;  %v1875_v10 = vshrl.u32 %v14164_v27, %v1863_v17  ;;  %v2161_v34 = vshrl.u32 %v2160_v47, 23 }
 0x191   : > { %v2014_v25 = vshll.u32 %v9612_v21, 30  ;;  %v1867_v7 = vor.u32 %v1866_v11, %v1865_v19  ;;  %v1870_v57 = vor.u32 %v1869_v3, %v1868_v18  ;;  %v1877_v41 = vshll.u32 %v14164_v27, %v1862_v20 }
 0x192   : > { %v9622_v2 = vpop.eup %8004  ;;  %v1873_v40 = vor.u32 %v1872_v39, %v1871_v45  ;;  %v1876_v50 = vor.u32 %v1875_v10, %v1874_v5  ;;  %v1878_v51 = vshrl.u32 %v14169_v36, %v1863_v17  ;;  %v1714_v37 = vsub.s32 32, %v9595_v38 }
 0x193   : > { %14203 = vst [vmem:[#allocation39_spill] sm:$0xff] %v9622_v2  ;;  %v9626_v13 = vpop.eup %8006  ;;  %v1719_v15 = vadd.s32 127, %v1718_v54  ;;  %v9629_v46 = vsub.s32 %v2011_v61, %v2014_v25  ;;  %vm1880_vm8 = vcmp.lt.s32.totalorder %v1861_v30, 1  ;;  %vm1438_vm9 = vcmp.lt.s32.totalorder %v9120_v35, 0 }
 0x194   : > { %14204 = vst [vmem:[#allocation40_spill] sm:$0xff] %v9626_v13  ;;  %v1864_v47 = vshrl.u32 %v14171_v22, %v1863_v17  ;;  %v1879_v19 = vor.u32 %v1878_v51, %v1877_v41  ;;  %vm1882_vm10 = vcmp.lt.s32.totalorder %v1861_v30, 3  ;;  %vm1883_vm11 = vcmp.lt.s32.totalorder %v1861_v30, 4 }
 0x195   : > { %v2017_v11 = vsub.s32 0, %v9629_v46  ;;  %v1885_v20 = vsel %vm1883_vm11, %v1873_v40, 2102212464  ;;  %v1888_v18 = vsel %vm1880_vm8, %v1867_v7, %v1870_v57  ;;  %v1889_v3 = vsel %vm1883_vm11, %v1876_v50, 920167782 }
 0x196   : > { %v14205_v45 = vand.u32 2147483647, %v9021_v4  ;;  %v14206_v54 = vmov 0  ;;  %vm1881_vm0 = vcmp.lt.s32.totalorder %v1861_v30, 2  ;;  %v1890_v61 = vsel %vm1882_vm10, %v1873_v40, %v1889_v3 }
 0x197   : > { %v1892_v17 = vsel %vm1880_vm8, %v1870_v57, %v1873_v40  ;;  %v7189_v41 = vadd.s32 4294967169, %v2161_v34  ;;  %v7182_v51 = vmin.u32 %v2017_v11, %v9629_v46  ;;  %v1884_v39 = vsel %vm1880_vm8, %v1864_v47, %v1867_v7 }
 0x198   : > { %vm9637_vm15 = vcmp.le.f32.partialorder %v14205_v45, 0.7853982  ;;  %v1891_v5 = vsel %vm1881_vm0, %v1888_v18, %v1890_v61  ;;  %v1893_v10 = vsel %vm1883_vm11, %v1879_v19, 1326507024  ;;  %v1886_v25 = vsel %vm1882_vm10, %v1870_v57, %v1885_v20 }
 0x199   : > { %v14207_v54 = vsel %vm9637_vm15, 4294967295, %v14206_v54  ;;  %v1894_v45 = vsel %vm1882_vm10, %v1876_v50, %v1893_v10  ;;  %v9649_v2 = vmul.u32.u64.low %v9610_v1, %v1891_v5  ;;  %v9650_v13 = vmul.u32.u64.high %v9610_v1, %v1891_v5, %v9649_v2 }
 0x19a   : > { %14208 = vst [vmem:[#allocation41_spill] sm:$0xff] %v14207_v54  ;;  %v1716_v3 = vshrl.u32 %v1698_v24, %v1714_v37  ;;  %v2019_v23 = vclz %v7182_v51  ;;  %v1895_v34 = vsel %vm1881_vm0, %v1892_v17, %v1894_v45  ;;  %v14209_v40 = vand.u32 2147483647, %v9588_v42 }
 0x19b   : > { %v1720_v7 = vshll.u32 %v1719_v15, 23  ;;  %v9657_v47 = vmul.u32.u64.low %v9610_v1, %v1895_v34  ;;  %v9658_v19 = vmul.u32.u64.high %v9610_v1, %v1895_v34, %v9657_v47  ;;  %v2167_v57 = vadd.s32 1, %v7189_v41 }
 0x19c   : > { %v2164_v11 = vand.u32 8388607, %v14209_v40  ;;  %v14210_v50 = vshll.u32 %v9423_v26, %v9525_v31  ;;  %v1715_v18 = vshll.u32 %v9532_v63, %v9595_v38  ;;  %v1887_v37 = vsel %vm1881_vm0, %v1884_v39, %v1886_v25 }
 0x19d   : > { %v9668_v24 = vadd.f32 %v9217_v58, %v9598_v49  ;;  %v1520_v15 = vxor.u32 2147483648, %v9590_v48  ;;  %v7183_v61 = vadd.s32 4294967294, %v2019_v23  ;;  %v1906_v17 = vadd.s32 1, %v9650_v13 }
 0x19e   : > { %v1820_v20 = vor.u32 %v1819_v12, %v14210_v50  ;;  %vm2168_vm2 = vcmp.gt.s32.totalorder %v2167_v57, 0  ;;  %v14212_v41 = vsub.s32 4, %v9317_v28  ;;  %v1825_v63 = vand.u32 2147483647, %v9602_v29 }
 0x19f   : > { %14211 = vst [vmem:[#allocation42_spill] sm:$0xff] %v9668_v24  ;;  %v9680_v31 = vor.u32 %v1716_v3, %v1715_v18  ;;  %v2169_v38 = vsel %vm2168_vm2, %v2167_v57, 0  ;;  %v9682_v58 = vor.u32 4788187, %v1720_v7  ;;  %v1903_v49 = vmul.u32 %v9610_v1, %v1887_v37 }
 0x1a0   : > { %v9677_v26 = vsel %vm1438_vm9, %v14212_v41, %v9317_v28  ;;  %vm1905_vm3 = vc.u32 %v9658_v19, %v9649_v2  ;;  %v2165_v23 = vor.u32 8388608, %v2164_v11  ;;  %v9691_v12 = vsel %vm9637_vm15, %v9021_v4, %v9579_v56 }
 0x1a1   : > { %v1827_v28 = vcvt.s32.f32 %v1820_v20  ;;  %v1907_v29 = vsel %vm1905_vm3, %v1906_v17, %v9650_v13  ;;  %v2057_v30 = vand.u32 2139095040, %v9668_v24  ;;  %v9698_v51 = vsel %vm1438_vm9, %v1520_v15, %v9590_v48 }
 0x1a2   : > { %vm7184_vm4 = vcmp.lt.s32.totalorder %v7183_v61, 0  ;;  %v1908_v1 = vadd.s32 %v1907_v29, %v1903_v49  ;;  %v2171_v39 = vand.u32 31, %v2169_v38  ;;  %v1724_v10 = vcvt.s32.f32 %v9680_v31 }
 0x1a3   : > { %v9700_v5 = vmul.f32 %v1827_v28, %v1825_v63  ;;  %v2007_v56 = vadd.s32 %v9553_v62, %v9558_v16  ;;  %v1722_v13 = vand.u32 2147483647, %v9682_v58  ;;  %v9707_v34 = vshll.u32 %v2165_v23, 8 }
 0x1a4   : > { %v1909_v45 = vadd.s32 536870912, %v1908_v1  ;;  %v2172_v3 = vsub.s32 32, %v2171_v39  ;;  %v9709_v48 = vsel %vm7184_vm4, 0, %v7183_v61  ;;  %v2170_v40 = vshrl.u32 %v2169_v38, 5 }
 0x1a5   : > { %v2174_v11 = vshll.u32 %v14171_v22, %v2171_v39  ;;  %v2058_v7 = vshrl.u32 %v2057_v30, 23  ;;  %v2177_v62 = vshll.u32 %v14178_v33, %v2171_v39  ;;  %v2180_v50 = vshll.u32 %v14162_v55, %v2171_v39 }
 0x1a6   : > { %v9712_v47 = vshrl.u32 %v1909_v45, 30  ;;  %v2175_v57 = vshrl.u32 %v14178_v33, %v2172_v3  ;;  %v2178_v16 = vshrl.u32 %v14162_v55, %v2172_v3  ;;  %v2181_v20 = vshrl.u32 %v14163_v43, %v2172_v3 }
 0x1a7   : > { %v2183_v18 = vshll.u32 %v14163_v43, %v2171_v39  ;;  %v2184_v37 = vshrl.u32 %v14164_v27, %v2172_v3  ;;  %v2023_v15 = vsub.s32 32, %v9709_v48  ;;  %v2027_v63 = vsub.s32 4294967266, %v9709_v48 }
 0x1a8   : > { %v1911_v61 = vshll.u32 %v9712_v47, 30  ;;  %v2176_v17 = vor.u32 %v2175_v57, %v2174_v11  ;;  %v2179_v41 = vor.u32 %v2178_v16, %v2177_v62  ;;  %v2182_v31 = vor.u32 %v2181_v20, %v2180_v50 }
 0x1a9   : > { %v2185_v38 = vor.u32 %v2184_v37, %v2183_v18  ;;  %vm2189_vm7 = vcmp.lt.s32.totalorder %v2170_v40, 1  ;;  %v14213_v58 = vand.u32 2147483647, %v9120_v35  ;;  %v2186_v28 = vshll.u32 %v14164_v27, %v2171_v39 }
 0x1aa   : > { %v9730_v23 = vsub.s32 %v1908_v1, %v1911_v61  ;;  %v2187_v29 = vshrl.u32 %v14169_v36, %v2172_v3  ;;  %vm2192_vm9 = vcmp.lt.s32.totalorder %v2170_v40, 4  ;;  %vm1747_vm10 = vcmp.lt.s32.totalorder %v9220_v60, 0 }
 0x1ab   : > { %vm9726_vm8 = vcmp.le.f32.partialorder %v14213_v58, 0.7853982  ;;  %vm2190_vm11 = vcmp.lt.s32.totalorder %v2170_v40, 2  ;;  %vm2191_vm0 = vcmp.lt.s32.totalorder %v2170_v40, 3  ;;  %v2197_v30 = vsel %vm2189_vm7, %v2176_v17, %v2179_v41 }
 0x1ac   : > { %v2198_v45 = vsel %vm2192_vm9, %v2185_v38, 920167782  ;;  %v1914_v11 = vsub.s32 0, %v9730_v23  ;;  %v2188_v57 = vor.u32 %v2187_v29, %v2186_v28  ;;  %v2194_v62 = vsel %vm2192_vm9, %v2182_v31, 2102212464 }
 0x1ad   : > { %v2199_v16 = vsel %vm2191_vm0, %v2182_v31, %v2198_v45  ;;  %v2028_v1 = vadd.s32 127, %v2027_v63  ;;  %v2173_v50 = vshrl.u32 %v14171_v22, %v2172_v3  ;;  %v2201_v20 = vsel %vm2189_vm7, %v2179_v41, %v2182_v31 }
 0x1ae   : > { %v2200_v39 = vsel %vm2190_vm11, %v2197_v30, %v2199_v16  ;;  %v7178_v18 = vmin.u32 %v1914_v11, %v9730_v23  ;;  %v2202_v37 = vsel %vm2192_vm9, %v2188_v57, 1326507024  ;;  %v14216_v28 = vand.u32 2147483647, %v9220_v60 }
 0x1af   : > { %v9743_v61 = vmul.u32.u64.low %v9707_v34, %v2200_v39  ;;  %v9744_v58 = vmul.u32.u64.high %v9707_v34, %v2200_v39, %v9743_v61  ;;  %v14217_v29 = vmov 0  ;;  %vm14003_vm3 = vcmp.lt.s32.totalorder %v9320_v52, 0 }
 0x1b0   : > { %vm9749_vm2 = vcmp.le.f32.partialorder %v14216_v28, 0.7853982  ;;  %v2193_v3 = vsel %vm2189_vm7, %v2173_v50, %v2176_v17  ;;  %v2195_v63 = vsel %vm2191_vm0, %v2179_v41, %v2194_v62  ;;  %v2203_v31 = vsel %vm2191_vm0, %v2185_v38, %v2202_v37 }
 0x1b1   : > { %v14218_v29 = vsel %vm9749_vm2, 4294967295, %v14217_v29  ;;  %v7185_v30 = vadd.s32 4294967169, %v2058_v7  ;;  %v1829_v45 = vxor.u32 2147483648, %v9700_v5  ;;  %v1725_v11 = vmul.f32 %v1724_v10, %v1722_v13 }
 0x1b2   : > { %14219 = vst [vmem:[#allocation43_spill] sm:$0xff] %v14218_v29  ;;  %v2025_v57 = vshrl.u32 %v2007_v56, %v2023_v15  ;;  %v2204_v16 = vsel %vm2190_vm11, %v2201_v20, %v2203_v31  ;;  %v2029_v39 = vshll.u32 %v2028_v1, 23  ;;  %v1916_v54 = vclz %v7178_v18 }
 0x1b3   : > { %v9760_v28 = vmul.u32.u64.low %v9707_v34, %v2204_v16  ;;  %v9761_v25 = vmul.u32.u64.high %v9707_v34, %v2204_v16, %v9760_v28  ;;  %v2064_v4 = vadd.s32 1, %v7185_v30  ;;  %v2196_v17 = vsel %vm2190_vm11, %v2193_v3, %v2195_v63 }
 0x1b4   : > { %v2215_v41 = vadd.s32 1, %v9744_v58  ;;  %v14220_v38 = vand.u32 2147483647, %v9668_v24  ;;  %8008 = vcosq.f32 %v9691_v12  ;;  %v1524_v10 = vsel %vm9726_vm8, %v9120_v35, %v9698_v51  ;;  %v659_v51 = vpop.permute.xlu1 %658 }
 0x1b5   : > { %v2024_v56 = vshll.u32 %v9629_v46, %v9709_v48  ;;  %vm2065_vm4 = vcmp.gt.s32.totalorder %v2064_v4, 0  ;;  %8010 = vsinq.f32 %v9691_v12  ;;  %v1830_v13 = vsel %vm1747_vm10, %v1829_v45, %v9700_v5 }
 0x1b6   : > { %v2061_v7 = vand.u32 8388607, %v14220_v38  ;;  %v1726_v40 = vxor.u32 2147483648, %v1725_v11  ;;  %v2066_v15 = vsel %vm2065_vm4, %v2064_v4, 0  ;;  %v9780_v1 = vor.u32 4788187, %v2029_v39 }
 0x1b7   : > { %v9778_v62 = vor.u32 %v2025_v57, %v2024_v56  ;;  %v2212_v50 = vmul.u32 %v9707_v34, %v2196_v17  ;;  %vm2214_vm7 = vc.u32 %v9761_v25, %v9743_v61  ;;  %8012 = vcosq.f32 %v1524_v10 }
 0x1b8   : > { %v7179_v46 = vadd.s32 4294967294, %v1916_v54  ;;  %v2216_v12 = vsel %vm2214_vm7, %v2215_v41, %v9744_v58  ;;  %v2062_v48 = vor.u32 8388608, %v2061_v7  ;;  %8014 = vsinq.f32 %v1524_v10  ;;  %v9800_v54 = vld [vmem:[%s14143_s4] ss:$0 sm:$0xff] }
 0x1b9   : > { %v2217_v20 = vadd.s32 %v2216_v12, %v2212_v50  ;;  %v2068_v4 = vand.u32 31, %v2066_v15  ;;  %v9790_v18 = vsel %vm9749_vm2, %v9220_v60, %v1830_v13  ;;  %v9794_v34 = vsel %vm14003_vm3, %v1726_v40, %v1725_v11 }
 0x1ba   : > { %v762_v58 = vmul.f32 %v9800_v54, %v659_v51  ;;  %v2031_v3 = vand.u32 2147483647, %v9780_v1  ;;  %v2033_v63 = vcvt.s32.f32 %v9778_v62  ;;  %vm7180_vm9 = vcmp.lt.s32.totalorder %v7179_v46, 0 }
 0x1bb   : > { %v2218_v31 = vadd.s32 536870912, %v2217_v20  ;;  %v2069_v30 = vsub.s32 32, %v2068_v4  ;;  %v2067_v45 = vshrl.u32 %v2066_v15, 5  ;;  %v2071_v11 = vshll.u32 %v14171_v22, %v2068_v4  ;;  %v9821_v15 = vld [vmem:[%s14144_s5] ss:$0 sm:$0xff] }
 0x1bc   : > { %v9806_v57 = vshll.u32 %v2062_v48, 8  ;;  %v2074_v28 = vshll.u32 %v14178_v33, %v2068_v4  ;;  %v2077_v41 = vshll.u32 %v14162_v55, %v2068_v4  ;;  %v2080_v7 = vshll.u32 %v14163_v43, %v2068_v4 }
 0x1bd   : > { %v9808_v16 = vshrl.u32 %v2218_v31, 30  ;;  %v2072_v39 = vshrl.u32 %v14178_v33, %v2069_v30  ;;  %v2075_v17 = vshrl.u32 %v14162_v55, %v2069_v30  ;;  %v2078_v38 = vshrl.u32 %v14163_v43, %v2069_v30 }
 0x1be   : > { %v2081_v10 = vshrl.u32 %v14164_v27, %v2069_v30  ;;  %v9824_v62 = vadd.f32 %v9821_v15, %v762_v58  ;;  %v9827_v1 = vsel %vm7180_vm9, 0, %v7179_v46  ;;  %vm2086_vm11 = vcmp.lt.s32.totalorder %v2067_v45, 1 }
 0x1bf   : > { %v2220_v56 = vshll.u32 %v9808_v16, 30  ;;  %v2073_v13 = vor.u32 %v2072_v39, %v2071_v11  ;;  %v2076_v40 = vor.u32 %v2075_v17, %v2074_v28  ;;  %v2079_v50 = vor.u32 %v2078_v38, %v2077_v41 }
 0x1c0   : > { %14221 = vst [vmem:[#allocation44_spill] sm:$0xff] %v9824_v62  ;;  %v2082_v51 = vor.u32 %v2081_v10, %v2080_v7  ;;  %v2083_v48 = vshll.u32 %v14164_v27, %v2068_v4  ;;  %v2084_v31 = vshrl.u32 %v14169_v36, %v2069_v30  ;;  %vm2089_vm0 = vcmp.lt.s32.totalorder %v2067_v45, 4 }
 0x1c1   : > { %v9829_v12 = vsub.s32 %v2217_v20, %v2220_v56  ;;  %v9833_v11 = vpop.eup %8008  ;;  %vm2087_vm4 = vcmp.lt.s32.totalorder %v2067_v45, 2  ;;  %vm2088_vm7 = vcmp.lt.s32.totalorder %v2067_v45, 3  ;;  %v2094_v58 = vsel %vm2086_vm11, %v2073_v13, %v2076_v40 }
 0x1c2   : > { %14222 = vst [vmem:[#allocation45_spill] sm:$0xff] %v9833_v11  ;;  %v2095_v39 = vsel %vm2089_vm0, %v2082_v51, 920167782  ;;  %v9837_v46 = vpop.eup %8010  ;;  %v14224_v28 = vand.u32 2147483647, %v9320_v52  ;;  %v14225_v20 = vmov 0  ;;  %v2085_v17 = vor.u32 %v2084_v31, %v2083_v48  ;;  %v654_v11 = vpop.permute.xlu0 %653 }
 0x1c3   : > { %14223 = vst [vmem:[#allocation46_spill] sm:$0xff] %v9837_v46  ;;  %v2223_v4 = vsub.s32 0, %v9829_v12  ;;  %v2091_v41 = vsel %vm2089_vm0, %v2079_v50, 2102212464  ;;  %v2096_v38 = vsel %vm2088_vm7, %v2079_v50, %v2095_v39  ;;  %v1924_v7 = vsub.s32 4294967266, %v9827_v1 }
 0x1c4   : > { %vm9841_vm9 = vcmp.le.f32.partialorder %v14224_v28, 0.7853982  ;;  %v2070_v10 = vshrl.u32 %v14171_v22, %v2069_v30  ;;  %v2097_v56 = vsel %vm2087_vm4, %v2094_v58, %v2096_v38  ;;  %v2098_v37 = vsel %vm2086_vm11, %v2076_v40, %v2079_v50  ;;  %v9852_v5 = vpop.eup %8012 }
 0x1c5   : > { %v14226_v20 = vsel %vm9841_vm9, 4294967295, %v14225_v20  ;;  %14228 = vst [vmem:[#allocation48_spill] sm:$0xff] %v9852_v5  ;;  %v7190_v28 = vmin.u32 %v2223_v4, %v9829_v12  ;;  %v2099_v29 = vsel %vm2089_vm0, %v2085_v17, 1326507024  ;;  %v9861_v39 = vpop.eup %8014  ;;  %vm1953_vm3 = vcmp.lt.s32.totalorder %v9384_v8, 0 }
 0x1c6   : > { %14227 = vst [vmem:[#allocation47_spill] sm:$0xff] %v14226_v20  ;;  %v9857_v48 = vmul.u32.u64.low %v9806_v57, %v2097_v56  ;;  %v9858_v31 = vmul.u32.u64.high %v9806_v57, %v2097_v56, %v9857_v48  ;;  %v2034_v30 = vmul.f32 %v2033_v63, %v2031_v3  ;;  %v2090_v58 = vsel %vm2086_vm11, %v2070_v10, %v2073_v13 }
 0x1c7   : > { %v2092_v50 = vsel %vm2088_vm7, %v2076_v40, %v2091_v41  ;;  %v2100_v38 = vsel %vm2088_vm7, %v2082_v51, %v2099_v29  ;;  %v1920_v4 = vsub.s32 32, %v9827_v1  ;;  %v2225_v17 = vclz %v7190_v28 }
 0x1c8   : > { %v2101_v46 = vsel %vm2087_vm4, %v2098_v37, %v2100_v38  ;;  %v2366_v56 = vand.u32 2139095040, %v9824_v62  ;;  %v1904_v35 = vadd.s32 %v9649_v2, %v9658_v19  ;;  %v1925_v5 = vadd.s32 127, %v1924_v7 }
 0x1c9   : > { %v9873_v3 = vmul.u32.u64.low %v9806_v57, %v2101_v46  ;;  %v9874_v63 = vmul.u32.u64.high %v9806_v57, %v2101_v46, %v9873_v3  ;;  %v14229_v13 = vand.u32 2147483647, %v9384_v8  ;;  %v14230_v29 = vmov 0 }
 0x1ca   : > { %v2093_v40 = vsel %vm2087_vm4, %v2090_v58, %v2092_v50  ;;  %v2112_v37 = vadd.s32 1, %v9858_v31  ;;  %v2367_v51 = vshrl.u32 %v2366_v56, 23  ;;  %v761_v41 = vmul.f32 %v9800_v54, %v654_v11  ;;  %v669_v3 = vpop.permute.xlu1 %668 }
 0x1cb   : > { %vm9878_vm11 = vcmp.le.f32.partialorder %v14229_v13, 0.7853982  ;;  %v14233_v2 = vsub.s32 4, %v9407_v53  ;;  %8016 = vcosq.f32 %v9790_v18  ;;  %v14235_v46 = vsub.s32 4, %v9516_v6  ;;  %v664_v13 = vpop.permute.xlu0 %663 }
 0x1cc   : > { %v14231_v29 = vsel %vm9878_vm11, 4294967295, %v14230_v29  ;;  %vm14236_vm0 = vcmp.lt.s32.totalorder %v9320_v52, 0  ;;  %v7191_v7 = vadd.s32 4294967294, %v2225_v17  ;;  %v2035_v10 = vxor.u32 2147483648, %v2034_v30 }
 0x1cd   : > { %14232 = vst [vmem:[#allocation49_spill] sm:$0xff] %v14231_v29  ;;  %v9890_v19 = vsel %vm1747_vm10, %v14233_v2, %v9407_v53  ;;  %v9898_v45 = vsel %vm14236_vm0, %v14235_v46, %v9516_v6  ;;  %v2037_v11 = vsub.s32 4, %v9612_v21  ;;  %v1922_v28 = vshrl.u32 %v1904_v35, %v1920_v4 }
 0x1ce   : > { %14234 = vst [vmem:[#allocation50_spill] sm:$0xff] %v9890_v19  ;;  %v7197_v58 = vadd.s32 4294967169, %v2367_v51  ;;  %v1730_v53 = vsel %vm9841_vm9, %v9320_v52, %v9794_v34  ;;  %v1926_v50 = vshll.u32 %v1925_v5, 23  ;;  %v2109_v38 = vmul.u32 %v9806_v57, %v2093_v40 }
 0x1cf   : > { %vm2111_vm10 = vc.u32 %v9874_v63, %v9857_v48  ;;  %v1921_v6 = vshll.u32 %v9730_v23, %v9827_v1  ;;  %v14008_v56 = vand.u32 2147483647, %v9824_v62  ;;  %v9913_v35 = vadd.f32 %v9821_v15, %v761_v41 }
 0x1d0   : > { %v2113_v17 = vsel %vm2111_vm10, %v2112_v37, %v9858_v31  ;;  %8018 = vsinq.f32 %v9790_v18  ;;  %vm7192_vm4 = vcmp.lt.s32.totalorder %v7191_v7, 0  ;;  %v2373_v5 = vadd.s32 1, %v7197_v58 }
 0x1d1   : > { %14237 = vst [vmem:[#allocation51_spill] sm:$0xff] %v9913_v35  ;;  %v2114_v34 = vadd.s32 %v2113_v17, %v2109_v38  ;;  %8020 = vcosq.f32 %v1730_v53  ;;  %v2036_v57 = vsel %vm1953_vm3, %v2035_v10, %v2034_v30  ;;  %v9921_v23 = vsel %vm1953_vm3, %v2037_v11, %v9612_v21 }
 0x1d2   : > { %14238 = vst [vmem:[#allocation52_spill] sm:$0xff] %v9921_v23  ;;  %v1923_v1 = vor.u32 %v1922_v28, %v1921_v6  ;;  %8022 = vsinq.f32 %v1730_v53  ;;  %v1927_v31 = vor.u32 4788187, %v1926_v50  ;;  %vm2374_vm7 = vcmp.gt.s32.totalorder %v2373_v5, 0 }
 0x1d3   : > { %v2115_v4 = vadd.s32 536870912, %v2114_v34  ;;  %v9923_v18 = vsel %vm7192_vm4, 0, %v7191_v7  ;;  %v2370_v40 = vand.u32 8388607, %v14008_v56  ;;  %v2375_v37 = vsel %vm2374_vm7, %v2373_v5, 0 }
 0x1d4   : > { %v2263_v30 = vand.u32 2139095040, %v9913_v35  ;;  %v9931_v21 = vsel %vm9878_vm11, %v9384_v8, %v2036_v57  ;;  %v2377_v2 = vand.u32 31, %v2375_v37  ;;  %v1930_v46 = vcvt.s32.f32 %v1923_v1 }
 0x1d5   : > { %v9934_v41 = vshrl.u32 %v2115_v4, 30  ;;  %v2213_v7 = vadd.s32 %v9743_v61, %v9761_v25  ;;  %v9939_v10 = vmul.f32 %v9800_v54, %v669_v3  ;;  %v9942_v11 = vmul.f32 %v9800_v54, %v664_v13 }
 0x1d6   : > { %v1928_v28 = vand.u32 2147483647, %v1927_v31  ;;  %v2233_v58 = vsub.s32 4294967266, %v9923_v18  ;;  %v2378_v50 = vsub.s32 32, %v2377_v2  ;;  %v2371_v38 = vor.u32 8388608, %v2370_v40 }
 0x1d7   : > { %v2117_v53 = vshll.u32 %v9934_v41, 30  ;;  %v2376_v6 = vshrl.u32 %v2375_v37, 5  ;;  %v2380_v17 = vshll.u32 %v14171_v22, %v2377_v2  ;;  %v2264_v5 = vshrl.u32 %v2263_v30, 23 }
 0x1d8   : > { %v2381_v25 = vshrl.u32 %v14178_v33, %v2378_v50  ;;  %v2383_v61 = vshll.u32 %v14178_v33, %v2377_v2  ;;  %v2386_v1 = vshll.u32 %v14162_v55, %v2377_v2  ;;  %v9952_v4 = vpop.eup %8016  ;;  %v2384_v31 = vshrl.u32 %v14162_v55, %v2378_v50 }
 0x1d9   : > { %v9947_v57 = vsub.s32 %v2114_v34, %v2117_v53  ;;  %14239 = vst [vmem:[#allocation53_spill] sm:$0xff] %v9952_v4  ;;  %v2387_v3 = vshrl.u32 %v14163_v43, %v2378_v50  ;;  %v2389_v13 = vshll.u32 %v14163_v43, %v2377_v2  ;;  %v2390_v40 = vshrl.u32 %v14164_v27, %v2378_v50 }
 0x1da   : > { %v2234_v37 = vadd.s32 127, %v2233_v58  ;;  %v2382_v30 = vor.u32 %v2381_v25, %v2380_v17  ;;  %v2393_v53 = vshrl.u32 %v14169_v36, %v2378_v50  ;;  %v2385_v56 = vor.u32 %v2384_v31, %v2383_v61 }
 0x1db   : > { %v2120_v34 = vsub.s32 0, %v9947_v57  ;;  %v2388_v51 = vor.u32 %v2387_v3, %v2386_v1  ;;  %v2391_v8 = vor.u32 %v2390_v40, %v2389_v13  ;;  %v2392_v29 = vshll.u32 %v14164_v27, %v2377_v2 }
 0x1dc   : > { %v9961_v23 = vmul.f32 %v1930_v46, %v1928_v28  ;;  %v2229_v4 = vsub.s32 32, %v9923_v18  ;;  %v2411_v19 = vshll.u32 %v2371_v38, 8  ;;  %vm2395_vm3 = vcmp.lt.s32.totalorder %v2376_v6, 1 }
 0x1dd   : > { %v7186_v60 = vmin.u32 %v2120_v34, %v9947_v57  ;;  %v9965_v52 = vpop.eup %8018  ;;  %v2394_v58 = vor.u32 %v2393_v53, %v2392_v29  ;;  %vm2398_vm0 = vcmp.lt.s32.totalorder %v2376_v6, 4  ;;  %v7193_v17 = vadd.s32 4294967169, %v2264_v5 }
 0x1de   : > { %14240 = vst [vmem:[#allocation54_spill] sm:$0xff] %v9965_v52  ;;  %v9967_v25 = vpop.eup %8020  ;;  %v2379_v1 = vshrl.u32 %v14171_v22, %v2378_v50  ;;  %v2400_v2 = vsel %vm2398_vm0, %v2388_v51, 2102212464  ;;  %v2403_v46 = vsel %vm2395_vm3, %v2382_v30, %v2385_v56  ;;  %v2235_v31 = vshll.u32 %v2234_v37, 23 }
 0x1df   : > { %14241 = vst [vmem:[#allocation55_spill] sm:$0xff] %v9967_v25  ;;  %v2122_v61 = vclz %v7186_v60  ;;  %v9972_v28 = vpop.eup %8022  ;;  %vm2396_vm10 = vcmp.lt.s32.totalorder %v2376_v6, 2  ;;  %vm2397_vm4 = vcmp.lt.s32.totalorder %v2376_v6, 3  ;;  %v2404_v38 = vsel %vm2398_vm0, %v2391_v8, 920167782 }
 0x1e0   : > { %14242 = vst [vmem:[#allocation56_spill] sm:$0xff] %v9972_v28  ;;  %v2399_v3 = vsel %vm2395_vm3, %v2379_v1, %v2382_v30  ;;  %v2405_v5 = vsel %vm2397_vm4, %v2388_v51, %v2404_v38  ;;  %v2407_v13 = vsel %vm2395_vm3, %v2385_v56, %v2388_v51  ;;  %v2401_v60 = vsel %vm2397_vm4, %v2385_v56, %v2400_v2 }
 0x1e1   : > { %v7187_v29 = vadd.s32 4294967294, %v2122_v61  ;;  %v2406_v50 = vsel %vm2396_vm10, %v2403_v46, %v2405_v5  ;;  %v2408_v40 = vsel %vm2398_vm0, %v2394_v58, 1326507024  ;;  %v2270_v34 = vadd.s32 1, %v7193_v17 }
 0x1e2   : > { %v2409_v53 = vsel %vm2397_vm4, %v2391_v8, %v2408_v40  ;;  %v9979_v52 = vmul.u32.u64.low %v2411_v19, %v2406_v50  ;;  %v9980_v37 = vmul.u32.u64.high %v2411_v19, %v2406_v50, %v9979_v52  ;;  %v2231_v25 = vshrl.u32 %v2213_v7, %v2229_v4 }
 0x1e3   : > { %vm7188_vm7 = vcmp.lt.s32.totalorder %v7187_v29, 0  ;;  %v2410_v61 = vsel %vm2396_vm10, %v2407_v13, %v2409_v53  ;;  %v14020_v30 = vand.u32 2147483647, %v9913_v35  ;;  %vm2271_vm11 = vcmp.gt.s32.totalorder %v2270_v34, 0 }
 0x1e4   : > { %v2230_v56 = vshll.u32 %v9829_v12, %v9923_v18  ;;  %v2236_v51 = vor.u32 4788187, %v2235_v31  ;;  %v2402_v1 = vsel %vm2396_vm10, %v2399_v3, %v2401_v60  ;;  %v2272_v58 = vsel %vm2271_vm11, %v2270_v34, 0 }
 0x1e5   : > { %v9988_v17 = vsel %vm7188_vm7, 0, %v7187_v29  ;;  %v9990_v8 = vmul.u32.u64.low %v2411_v19, %v2410_v61  ;;  %v9991_v2 = vmul.u32.u64.high %v2411_v19, %v2410_v61, %v9990_v8  ;;  %v2274_v46 = vand.u32 31, %v2272_v58 }
 0x1e6   : > { %v2421_v4 = vadd.s32 1, %v9980_v37  ;;  %v9997_v38 = vadd.f32 %v9821_v15, %v9939_v10  ;;  %v10001_v12 = vadd.f32 %v9821_v15, %v9942_v11  ;;  %v2232_v18 = vor.u32 %v2231_v25, %v2230_v56 }
 0x1e7   : > { %v2110_v6 = vadd.s32 %v9857_v48, %v9874_v63  ;;  %v2267_v31 = vand.u32 8388607, %v14020_v30  ;;  %v2275_v29 = vsub.s32 32, %v2274_v46  ;;  %v2237_v3 = vand.u32 2147483647, %v2236_v51 }
 0x1e8   : > { %14243 = vst [vmem:[#allocation57_spill] sm:$0xff] %v9997_v38  ;;  %14244 = vst [vmem:[#allocation58_spill] sm:$0xff] %v10001_v12  ;;  %v2130_v5 = vsub.s32 4294967266, %v9988_v17  ;;  %v2418_v13 = vmul.u32 %v2411_v19, %v2402_v1  ;;  %v2273_v60 = vshrl.u32 %v2272_v58, 5  ;;  %vm2420_vm11 = vc.u32 %v9991_v2, %v9979_v52 }
 0x1e9   : > { %v2277_v10 = vshll.u32 %v14171_v22, %v2274_v46  ;;  %v2278_v11 = vshrl.u32 %v14178_v33, %v2275_v29  ;;  %v2280_v25 = vshll.u32 %v14178_v33, %v2274_v46  ;;  %v2422_v48 = vsel %vm2420_vm11, %v2421_v4, %v9980_v37 }
 0x1ea   : > { %v2281_v63 = vshrl.u32 %v14162_v55, %v2275_v29  ;;  %v2283_v50 = vshll.u32 %v14162_v55, %v2274_v46  ;;  %v2286_v40 = vshll.u32 %v14163_v43, %v2274_v46  ;;  %v2423_v34 = vadd.s32 %v2422_v48, %v2418_v13 }
 0x1eb   : > { %v2279_v19 = vor.u32 %v2278_v11, %v2277_v10  ;;  %v2284_v53 = vshrl.u32 %v14163_v43, %v2275_v29  ;;  %v2287_v61 = vshrl.u32 %v14164_v27, %v2275_v29  ;;  %v2239_v56 = vcvt.s32.f32 %v2232_v18 }
 0x1ec   : > { %v2282_v51 = vor.u32 %v2281_v63, %v2280_v25  ;;  %v2289_v1 = vshll.u32 %v14164_v27, %v2274_v46  ;;  %v2290_v58 = vshrl.u32 %v14169_v36, %v2275_v29  ;;  %v2424_v8 = vadd.s32 536870912, %v2423_v34 }
 0x1ed   : > { %v2268_v37 = vor.u32 8388608, %v2267_v31  ;;  %v2285_v4 = vor.u32 %v2284_v53, %v2283_v50  ;;  %v2288_v30 = vor.u32 %v2287_v61, %v2286_v40  ;;  %v2240_v7 = vmul.f32 %v2239_v56, %v2237_v3 }
 0x1ee   : > { %v2131_v28 = vadd.s32 127, %v2130_v5  ;;  %v2291_v13 = vor.u32 %v2290_v58, %v2289_v1  ;;  %vm2292_vm0 = vcmp.lt.s32.totalorder %v2273_v60, 1  ;;  %v2126_v10 = vsub.s32 32, %v9988_v17 }
 0x1ef   : > { %v10023_v11 = vshrl.u32 %v2424_v8, 30  ;;  %vm2295_vm10 = vcmp.lt.s32.totalorder %v2273_v60, 4  ;;  %v2300_v18 = vsel %vm2292_vm0, %v2279_v19, %v2282_v51  ;;  %v2276_v46 = vshrl.u32 %v14171_v22, %v2275_v29 }
 0x1f0   : > { %vm2294_vm4 = vcmp.lt.s32.totalorder %v2273_v60, 3  ;;  %v2297_v25 = vsel %vm2295_vm10, %v2285_v4, 2102212464  ;;  %v2301_v31 = vsel %vm2295_vm10, %v2288_v30, 920167782  ;;  %v14246_v63 = vmov 0 }
 0x1f1   : > { %v14245_v48 = vand.u32 2147483647, %v9496_v0  ;;  %v2426_v3 = vshll.u32 %v10023_v11, 30  ;;  %vm2293_vm11 = vcmp.lt.s32.totalorder %v2273_v60, 2  ;;  %v2302_v5 = vsel %vm2294_vm4, %v2285_v4, %v2301_v31 }
 0x1f2   : > { %v2304_v50 = vsel %vm2292_vm0, %v2282_v51, %v2285_v4  ;;  %v2132_v40 = vshll.u32 %v2131_v28, 23  ;;  %v2303_v53 = vsel %vm2293_vm11, %v2300_v18, %v2302_v5  ;;  %v2305_v29 = vsel %vm2295_vm10, %v2291_v13, 1326507024 }
 0x1f3   : > { %vm10029_vm7 = vcmp.le.f32.partialorder %v14245_v48, 0.7853982  ;;  %v2308_v61 = vshll.u32 %v2268_v37, 8  ;;  %vm2159_vm3 = vcmp.lt.s32.totalorder %v9588_v42, 0  ;;  %v10038_v56 = vsub.s32 %v2423_v34, %v2426_v3 }
 0x1f4   : > { %v14247_v63 = vsel %vm10029_vm7, 4294967295, %v14246_v63  ;;  %v2296_v1 = vsel %vm2292_vm0, %v2276_v46, %v2279_v19  ;;  %v2298_v58 = vsel %vm2294_vm4, %v2282_v51, %v2297_v25  ;;  %v2306_v8 = vsel %vm2294_vm4, %v2288_v30, %v2305_v29 }
 0x1f5   : > { %14248 = vst [vmem:[#allocation59_spill] sm:$0xff] %v14247_v63  ;;  %v2128_v48 = vshrl.u32 %v2110_v6, %v2126_v10  ;;  %v2307_v31 = vsel %vm2293_vm11, %v2304_v50, %v2306_v8  ;;  %v10044_v20 = vmul.u32.u64.low %v2308_v61, %v2303_v53  ;;  %v10045_v4 = vmul.u32.u64.high %v2308_v61, %v2303_v53, %v10044_v20 }
 0x1f6   : > { %8024 = vcosq.f32 %v9931_v21  ;;  %v2429_v28 = vsub.s32 0, %v10038_v56  ;;  %v10050_v37 = vmul.u32.u64.low %v2308_v61, %v2307_v31  ;;  %v10051_v34 = vmul.u32.u64.high %v2308_v61, %v2307_v31, %v10050_v37 }
 0x1f7   : > { %v14249_v19 = vand.u32 2147483647, %v9588_v42  ;;  %v14250_v51 = vmov 0  ;;  %v2127_v30 = vshll.u32 %v9947_v57, %v9988_v17  ;;  %v2133_v6 = vor.u32 4788187, %v2132_v40 }
 0x1f8   : > { %v2299_v13 = vsel %vm2293_vm11, %v2296_v1, %v2298_v58  ;;  %v2572_v10 = vand.u32 2139095040, %v9997_v38  ;;  %v14253_v18 = vxor.u32 2147483648, %v9961_v23  ;;  %vm14254_vm10 = vcmp.lt.s32.totalorder %v9496_v0, 0 }
 0x1f9   : > { %vm10055_vm0 = vcmp.le.f32.partialorder %v14249_v19, 0.7853982  ;;  %v2241_v25 = vxor.u32 2147483648, %v2240_v7  ;;  %v7198_v3 = vmin.u32 %v2429_v28, %v10038_v56  ;;  %v14024_v5 = vand.u32 2147483647, %v9997_v38  ;;  %v679_v28 = vpop.permute.xlu1 %678 }
 0x1fa   : > { %v14251_v51 = vsel %vm10055_vm0, 4294967295, %v14250_v51  ;;  %v1933_v46 = vsel %vm14254_vm10, %v14253_v18, %v9961_v23  ;;  %v2129_v50 = vor.u32 %v2128_v48, %v2127_v30  ;;  %v2318_v57 = vadd.s32 1, %v10045_v4 }
 0x1fb   : > { %14252 = vst [vmem:[#allocation60_spill] sm:$0xff] %v14251_v51  ;;  %v2573_v17 = vshrl.u32 %v2572_v10, 23  ;;  %v2469_v60 = vand.u32 2139095040, %v10001_v12  ;;  %8026 = vsinq.f32 %v9931_v21  ;;  %v2431_v40 = vclz %v7198_v3 }
 0x1fc   : > { %v2315_v53 = vmul.u32 %v2308_v61, %v2299_v13  ;;  %vm2317_vm11 = vc.u32 %v10051_v34, %v10044_v20  ;;  %v1936_v23 = vsel %vm10029_vm7, %v9496_v0, %v1933_v46  ;;  %v2134_v29 = vand.u32 2147483647, %v2133_v6  ;;  %v674_v46 = vpop.permute.xlu0 %673 }
 0x1fd   : > { %v2319_v1 = vsel %vm2317_vm11, %v2318_v57, %v10045_v4  ;;  %v7205_v58 = vadd.s32 4294967169, %v2573_v17  ;;  %v2243_v8 = vsub.s32 4, %v9808_v16  ;;  %v7199_v48 = vadd.s32 4294967294, %v2431_v40 }
 0x1fe   : > { %v2320_v31 = vadd.s32 %v2319_v1, %v2315_v53  ;;  %v2576_v21 = vand.u32 8388607, %v14024_v5  ;;  %v2242_v61 = vsel %vm2159_vm3, %v2241_v25, %v2240_v7  ;;  %v2136_v37 = vcvt.s32.f32 %v2129_v50 }
 0x1ff   : > { %v2579_v19 = vadd.s32 1, %v7205_v58  ;;  %v2470_v30 = vshrl.u32 %v2469_v60, 23  ;;  %v14255_v6 = vsub.s32 4, %v9712_v47  ;;  %8028 = vcosq.f32 %v1936_v23 }
 0x200   : > { %v2140_v13 = vsub.s32 4, %v9934_v41  ;;  %v2321_v10 = vadd.s32 536870912, %v2320_v31  ;;  %v10093_v18 = vmul.f32 %v2136_v37, %v2134_v29  ;;  %vm7200_vm11 = vcmp.lt.s32.totalorder %v7199_v48, 0 }
 0x201   : > { %v10090_v4 = vsel %vm14254_vm10, %v14255_v6, %v9712_v47  ;;  %vm2580_vm4 = vcmp.gt.s32.totalorder %v2579_v19, 0  ;;  %v766_v7 = vmul.f32 %v9800_v54, %v679_v28  ;;  %v10099_v25 = vsel %vm10055_vm0, %v9588_v42, %v2242_v61 }
 0x202   : > { %v10101_v3 = vshrl.u32 %v2321_v10, 30  ;;  %v2577_v47 = vor.u32 8388608, %v2576_v21  ;;  %v14023_v50 = vand.u32 2147483647, %v10001_v12  ;;  %8030 = vsinq.f32 %v1936_v23 }
 0x203   : > { %v10107_v57 = vsel %vm2159_vm3, %v2243_v8, %v9808_v16  ;;  %v2581_v17 = vsel %vm2580_vm4, %v2579_v19, 0  ;;  %v7201_v60 = vadd.s32 4294967169, %v2470_v30  ;;  %vm14257_vm10 = vcmp.lt.s32.totalorder %v9668_v24, 0  ;;  %v10120_v23 = vpop.eup %8024 }
 0x204   : > { %14256 = vst [vmem:[#allocation61_spill] sm:$0xff] %v10107_v57  ;;  %v10112_v40 = vsel %vm14257_vm10, %v2140_v13, %v9934_v41  ;;  %v10114_v53 = vsel %vm7200_vm11, 0, %v7199_v48  ;;  %v2323_v29 = vshll.u32 %v10101_v3, 30  ;;  %v10118_v1 = vmul.f32 %v9800_v54, %v674_v46  ;;  %14259 = vst [vmem:[#allocation63_spill] sm:$0xff] %v10120_v23 }
 0x205   : > { %14258 = vst [vmem:[#allocation62_spill] sm:$0xff] %v10112_v40  ;;  %8032 = vcosq.f32 %v10099_v25  ;;  %v2419_v58 = vadd.s32 %v9979_v52, %v9991_v2  ;;  %v2583_v8 = vand.u32 31, %v2581_v17  ;;  %v10128_v41 = vshll.u32 %v2577_v47, 8 }
 0x206   : > { %v10126_v21 = vsub.s32 %v2320_v31, %v2323_v29  ;;  %v10132_v48 = vand.u32 8388607, %v14023_v50  ;;  %v10135_v54 = vadd.f32 %v9821_v15, %v766_v7  ;;  %v2435_v28 = vsub.s32 32, %v10114_v53 }
 0x207   : > { %v2439_v61 = vsub.s32 4294967266, %v10114_v53  ;;  %v2584_v37 = vsub.s32 32, %v2583_v8  ;;  %v2476_v19 = vadd.s32 1, %v7201_v60  ;;  %v2582_v2 = vshrl.u32 %v2581_v17, 5 }
 0x208   : > { %14260 = vst [vmem:[#allocation64_spill] sm:$0xff] %v10135_v54  ;;  %v2326_v52 = vsub.s32 0, %v10126_v21  ;;  %v2586_v31 = vshll.u32 %v14171_v22, %v2583_v8  ;;  %v2589_v30 = vshll.u32 %v14178_v33, %v2583_v8  ;;  %v10142_v6 = vpop.eup %8026  ;;  %v2592_v7 = vshll.u32 %v14162_v55, %v2583_v8 }
 0x209   : > { %14261 = vst [vmem:[#allocation65_spill] sm:$0xff] %v10142_v6  ;;  %v2587_v13 = vshrl.u32 %v14178_v33, %v2584_v37  ;;  %v2590_v10 = vshrl.u32 %v14162_v55, %v2584_v37  ;;  %v2593_v46 = vshrl.u32 %v14163_v43, %v2584_v37  ;;  %v2595_v60 = vshll.u32 %v14163_v43, %v2583_v8 }
 0x20a   : > { %v7194_v47 = vmin.u32 %v2326_v52, %v10126_v21  ;;  %v2596_v17 = vshrl.u32 %v14164_v27, %v2584_v37  ;;  %v2598_v29 = vshll.u32 %v14164_v27, %v2583_v8  ;;  %v2599_v42 = vshrl.u32 %v14169_v36, %v2584_v37 }
 0x20b   : > { %v2588_v50 = vor.u32 %v2587_v13, %v2586_v31  ;;  %v2591_v5 = vor.u32 %v2590_v10, %v2589_v30  ;;  %v2594_v16 = vor.u32 %v2593_v46, %v2592_v7  ;;  %v2440_v51 = vadd.s32 127, %v2439_v61 }
 0x20c   : > { %v2328_v57 = vclz %v7194_v47  ;;  %v2597_v40 = vor.u32 %v2596_v17, %v2595_v60  ;;  %v2778_v23 = vand.u32 2139095040, %v10135_v54  ;;  %v10154_v6 = vpop.eup %8028  ;;  %v2436_v52 = vshll.u32 %v10038_v56, %v10114_v53 }
 0x20d   : > { %14262 = vst [vmem:[#allocation66_spill] sm:$0xff] %v10154_v6  ;;  %v2600_v0 = vor.u32 %v2599_v42, %v2598_v29  ;;  %vm2604_vm3 = vcmp.lt.s32.totalorder %v2582_v2, 4  ;;  %v2585_v8 = vshrl.u32 %v14171_v22, %v2584_v37  ;;  %vm2601_vm11 = vcmp.lt.s32.totalorder %v2582_v2, 1 }
 0x20e   : > { %v7195_v63 = vadd.s32 4294967294, %v2328_v57  ;;  %v2606_v31 = vsel %vm2604_vm3, %v2594_v16, 2102212464  ;;  %v2437_v30 = vshrl.u32 %v2419_v58, %v2435_v28  ;;  %vm2603_vm10 = vcmp.lt.s32.totalorder %v2582_v2, 3 }
 0x20f   : > { %v2609_v61 = vsel %vm2601_vm11, %v2588_v50, %v2591_v5  ;;  %v2610_v13 = vsel %vm2604_vm3, %v2597_v40, 920167782  ;;  %v10161_v10 = vpop.eup %8030  ;;  %v2441_v7 = vshll.u32 %v2440_v51, 23  ;;  %vm2602_vm0 = vcmp.lt.s32.totalorder %v2582_v2, 2 }
 0x210   : > { %v2605_v46 = vsel %vm2601_vm11, %v2585_v8, %v2588_v50  ;;  %v2611_v42 = vsel %vm2603_vm10, %v2594_v16, %v2610_v13  ;;  %v2607_v56 = vsel %vm2603_vm10, %v2591_v5, %v2606_v31  ;;  %v2613_v53 = vsel %vm2601_vm11, %v2591_v5, %v2594_v16 }
 0x211   : > { %v2612_v57 = vsel %vm2602_vm0, %v2609_v61, %v2611_v42  ;;  %v2614_v37 = vsel %vm2604_vm3, %v2600_v0, 1326507024  ;;  %vm7196_vm4 = vcmp.lt.s32.totalorder %v7195_v63, 0  ;;  %vm14264_vm7 = vcmp.gt.s32.totalorder %v2476_v19, 0 }
 0x212   : > { %v10167_v47 = vpop.eup %8032  ;;  %v2478_v58 = vsel %vm14264_vm7, %v2476_v19, 0  ;;  %v14034_v28 = vand.u32 2147483647, %v10135_v54  ;;  %v2779_v60 = vshrl.u32 %v2778_v23, 23  ;;  %v2438_v51 = vor.u32 %v2437_v30, %v2436_v52 }
 0x213   : > { %14263 = vst [vmem:[#allocation67_spill] sm:$0xff] %v10167_v47  ;;  %v2615_v50 = vsel %vm2603_vm10, %v2597_v40, %v2614_v37  ;;  %v10173_v17 = vmul.u32.u64.low %v10128_v41, %v2612_v57  ;;  %v10174_v29 = vmul.u32.u64.high %v10128_v41, %v2612_v57, %v10173_v17  ;;  %8034 = vsinq.f32 %v10099_v25 }
 0x214   : > { %v2442_v5 = vor.u32 4788187, %v2441_v7  ;;  %v2608_v0 = vsel %vm2602_vm0, %v2605_v46, %v2607_v56  ;;  %v2616_v16 = vsel %vm2602_vm0, %v2613_v53, %v2615_v50  ;;  %v10180_v8 = vsel %vm7196_vm4, 0, %v7195_v63 }
 0x215   : > { %v10183_v19 = vmul.u32.u64.low %v10128_v41, %v2616_v16  ;;  %v10184_v23 = vmul.u32.u64.high %v10128_v41, %v2616_v16, %v10183_v19  ;;  %v2480_v52 = vand.u32 31, %v2478_v58  ;;  %v14265_v40 = vxor.u32 2147483648, %v10093_v18 }
 0x216   : > { %vm14266_vm7 = vcmp.lt.s32.totalorder %v9668_v24, 0  ;;  %v2474_v30 = vor.u32 8388608, %v10132_v48  ;;  %v7213_v2 = vadd.s32 4294967169, %v2779_v60  ;;  %v2445_v61 = vcvt.s32.f32 %v2438_v51 }
 0x217   : > { %v10191_v31 = vsel %vm14266_vm7, %v14265_v40, %v10093_v18  ;;  %v2627_v63 = vadd.s32 1, %v10174_v29  ;;  %v2481_v13 = vsub.s32 32, %v2480_v52  ;;  %v10198_v7 = vand.u32 8388607, %v14034_v28 }
 0x218   : > { %v2443_v46 = vand.u32 2147483647, %v2442_v5  ;;  %v2332_v42 = vsub.s32 32, %v10180_v8  ;;  %v2624_v56 = vmul.u32 %v10128_v41, %v2608_v0  ;;  %v2479_v18 = vshrl.u32 %v2478_v58, 5 }
 0x219   : > { %vm2626_vm0 = vc.u32 %v10184_v23, %v10173_v17  ;;  %v2483_v48 = vshll.u32 %v14171_v22, %v2480_v52  ;;  %v2484_v57 = vshrl.u32 %v14178_v33, %v2481_v13  ;;  %v2486_v53 = vshll.u32 %v14178_v33, %v2480_v52 }
 0x21a   : > { %v2628_v37 = vsel %vm2626_vm0, %v2627_v63, %v10174_v29  ;;  %v2487_v60 = vshrl.u32 %v14162_v55, %v2481_v13  ;;  %v2489_v51 = vshll.u32 %v14162_v55, %v2480_v52  ;;  %v2490_v50 = vshrl.u32 %v14163_v43, %v2481_v13 }
 0x21b   : > { %v2629_v5 = vadd.s32 %v2628_v37, %v2624_v56  ;;  %v2485_v41 = vor.u32 %v2484_v57, %v2483_v48  ;;  %v2492_v58 = vshll.u32 %v14163_v43, %v2480_v52  ;;  %v2493_v0 = vshrl.u32 %v14164_v27, %v2481_v13 }
 0x21c   : > { %v2488_v16 = vor.u32 %v2487_v60, %v2486_v53  ;;  %v2491_v19 = vor.u32 %v2490_v50, %v2489_v51  ;;  %v2495_v40 = vshll.u32 %v14164_v27, %v2480_v52  ;;  %v2496_v28 = vshrl.u32 %v14169_v36, %v2481_v13 }
 0x21d   : > { %v2316_v29 = vadd.s32 %v10044_v20, %v10051_v34  ;;  %v2336_v63 = vsub.s32 4294967266, %v10180_v8  ;;  %v2630_v25 = vadd.s32 536870912, %v2629_v5  ;;  %v2494_v47 = vor.u32 %v2493_v0, %v2492_v58 }
 0x21e   : > { %v14267_v56 = vand.u32 2147483647, %v9668_v24  ;;  %v14268_v48 = vmov 0  ;;  %v10224_v57 = vmul.f32 %v2445_v61, %v2443_v46  ;;  %v2497_v53 = vor.u32 %v2496_v28, %v2495_v40 }
 0x21f   : > { %v2514_v37 = vshll.u32 %v2474_v30, 8  ;;  %v2783_v52 = vor.u32 8388608, %v10198_v7  ;;  %v2334_v60 = vshrl.u32 %v2316_v29, %v2332_v42  ;;  %v10227_v51 = vshrl.u32 %v2630_v25, 30 }
 0x220   : > { %vm10220_vm3 = vcmp.le.f32.partialorder %v14267_v56, 0.7853982  ;;  %vm2498_vm4 = vcmp.lt.s32.totalorder %v2479_v18, 1  ;;  %vm2501_vm11 = vcmp.lt.s32.totalorder %v2479_v18, 4  ;;  %v2785_v58 = vadd.s32 1, %v7213_v2  ;;  %v10230_v0 = vpop.eup %8034 }
 0x221   : > { %v14269_v48 = vsel %vm10220_vm3, 4294967295, %v14268_v48  ;;  %v2503_v20 = vsel %vm2501_vm11, %v2491_v19, 2102212464  ;;  %v2506_v34 = vsel %vm2498_vm4, %v2485_v41, %v2488_v16  ;;  %v2507_v50 = vsel %vm2501_vm11, %v2494_v47, 920167782  ;;  %14271 = vst [vmem:[#allocation69_spill] sm:$0xff] %v10230_v0 }
 0x222   : > { %14270 = vst [vmem:[#allocation68_spill] sm:$0xff] %v14269_v48  ;;  %v2337_v56 = vadd.s32 127, %v2336_v63  ;;  %v2632_v61 = vshll.u32 %v10227_v51, 30  ;;  %v2482_v28 = vshrl.u32 %v14171_v22, %v2481_v13  ;;  %vm2500_vm10 = vcmp.lt.s32.totalorder %v2479_v18, 3 }
 0x223   : > { %vm2499_vm7 = vcmp.lt.s32.totalorder %v2479_v18, 2  ;;  %v2508_v30 = vsel %vm2500_vm10, %v2491_v19, %v2507_v50  ;;  %v2510_v25 = vsel %vm2498_vm4, %v2488_v16, %v2491_v19  ;;  %v2511_v7 = vsel %vm2501_vm11, %v2497_v53, 1326507024 }
 0x224   : > { %v10235_v46 = vsub.s32 %v2629_v5, %v2632_v61  ;;  %v2502_v42 = vsel %vm2498_vm4, %v2482_v28, %v2485_v41  ;;  %v2504_v40 = vsel %vm2500_vm10, %v2488_v16, %v2503_v20  ;;  %v2509_v29 = vsel %vm2499_vm7, %v2506_v34, %v2508_v30 }
 0x225   : > { %v2512_v2 = vsel %vm2500_vm10, %v2494_v47, %v2511_v7  ;;  %v10238_v6 = vmul.u32.u64.low %v2514_v37, %v2509_v29  ;;  %v10239_v0 = vmul.u32.u64.high %v2514_v37, %v2509_v29, %v10238_v6  ;;  %vm2786_vm0 = vcmp.gt.s32.totalorder %v2785_v58, 0 }
 0x226   : > { %v2333_v13 = vshll.u32 %v10126_v21, %v10180_v8  ;;  %v2635_v63 = vsub.s32 0, %v10235_v46  ;;  %v2513_v50 = vsel %vm2499_vm7, %v2510_v25, %v2512_v2  ;;  %v2787_v19 = vsel %vm2786_vm0, %v2785_v58, 0 }
 0x227   : > { %v2505_v53 = vsel %vm2499_vm7, %v2502_v42, %v2504_v40  ;;  %v10245_v5 = vmul.u32.u64.low %v2514_v37, %v2513_v50  ;;  %v10246_v61 = vmul.u32.u64.high %v2514_v37, %v2513_v50, %v10245_v5  ;;  %v2789_v18 = vand.u32 31, %v2787_v19 }
 0x228   : > { %v10252_v47 = vsel %vm10220_vm3, %v9668_v24, %v10191_v31  ;;  %v7206_v16 = vmin.u32 %v2635_v63, %v10235_v46  ;;  %v10258_v21 = vadd.f32 %v9821_v15, %v10118_v1  ;;  %v10260_v8 = vor.u32 %v2334_v60, %v2333_v13 }
 0x229   : > { %v2338_v20 = vshll.u32 %v2337_v56, 23  ;;  %v2524_v34 = vadd.s32 1, %v10239_v0  ;;  %v2790_v58 = vsub.s32 32, %v2789_v18  ;;  %v2521_v30 = vmul.u32 %v2514_v37, %v2505_v53 }
 0x22a   : > { %14272 = vst [vmem:[#allocation70_spill] sm:$0xff] %v10258_v21  ;;  %v2637_v28 = vclz %v7206_v16  ;;  %v10263_v25 = vshrl.u32 %v2787_v19, 5  ;;  %v10265_v31 = vshll.u32 %v2783_v52, 8  ;;  %vm2523_vm4 = vc.u32 %v10246_v61, %v10238_v6 }
 0x22b   : > { %v2792_v7 = vshll.u32 %v14171_v22, %v2789_v18  ;;  %v2793_v15 = vshrl.u32 %v14178_v33, %v2790_v58  ;;  %v2795_v1 = vshll.u32 %v14178_v33, %v2789_v18  ;;  %v2525_v56 = vsel %vm2523_vm4, %v2524_v34, %v10239_v0 }
 0x22c   : > { %v7207_v60 = vadd.s32 4294967294, %v2637_v28  ;;  %v2796_v42 = vshrl.u32 %v14162_v55, %v2790_v58  ;;  %v2799_v37 = vshrl.u32 %v14163_v43, %v2790_v58  ;;  %v2526_v40 = vadd.s32 %v2525_v56, %v2521_v30 }
 0x22d   : > { %v2798_v52 = vshll.u32 %v14162_v55, %v2789_v18  ;;  %v2801_v29 = vshll.u32 %v14163_v43, %v2789_v18  ;;  %v2802_v2 = vshrl.u32 %v14164_v27, %v2790_v58  ;;  %v2794_v13 = vor.u32 %v2793_v15, %v2792_v7 }
 0x22e   : > { %vm7208_vm11 = vcmp.lt.s32.totalorder %v7207_v60, 0  ;;  %v2797_v63 = vor.u32 %v2796_v42, %v2795_v1  ;;  %v2805_v50 = vshrl.u32 %v14169_v36, %v2790_v58  ;;  %v2527_v53 = vadd.s32 536870912, %v2526_v40 }
 0x22f   : > { %v2640_v19 = vsel %vm7208_vm11, 0, %v7207_v60  ;;  %v2800_v5 = vor.u32 %v2799_v37, %v2798_v52  ;;  %v2803_v0 = vor.u32 %v2802_v2, %v2801_v29  ;;  %v2339_v16 = vor.u32 4788187, %v2338_v20 }
 0x230   : > { %v2342_v34 = vcvt.s32.f32 %v10260_v8  ;;  %v2645_v28 = vsub.s32 4294967266, %v2640_v19  ;;  %v2804_v30 = vshll.u32 %v14164_v27, %v2789_v18  ;;  %v2625_v56 = vadd.s32 %v10173_v17, %v10184_v23 }
 0x231   : > { %v10283_v41 = vshrl.u32 %v2527_v53, 30  ;;  %vm2807_vm10 = vcmp.lt.s32.totalorder %v10263_v25, 1  ;;  %v2675_v7 = vand.u32 2139095040, %v10258_v21  ;;  %vm2810_vm0 = vcmp.lt.s32.totalorder %v10263_v25, 4 }
 0x232   : > { %v2646_v15 = vadd.s32 127, %v2645_v28  ;;  %v2806_v1 = vor.u32 %v2805_v50, %v2804_v30  ;;  %v2815_v8 = vsel %vm2807_vm10, %v2794_v13, %v2797_v63  ;;  %vm2809_vm4 = vcmp.lt.s32.totalorder %v10263_v25, 3 }
 0x233   : > { %v2529_v18 = vshll.u32 %v10283_v41, 30  ;;  %v2812_v17 = vsel %vm2810_vm0, %v2800_v5, 2102212464  ;;  %v2816_v23 = vsel %vm2810_vm0, %v2803_v0, 920167782  ;;  %v2641_v20 = vsub.s32 32, %v2640_v19 }
 0x234   : > { %v2791_v60 = vshrl.u32 %v14171_v22, %v2790_v58  ;;  %vm2808_vm11 = vcmp.lt.s32.totalorder %v10263_v25, 2  ;;  %v2817_v42 = vsel %vm2809_vm4, %v2800_v5, %v2816_v23  ;;  %v14273_v37 = vand.u32 2147483647, %v9824_v62 }
 0x235   : > { %v14274_v52 = vmov 0  ;;  %v2340_v29 = vand.u32 2147483647, %v2339_v16  ;;  %v10307_v2 = vsub.s32 %v2526_v40, %v2529_v18  ;;  %v2818_v50 = vsel %vm2808_vm11, %v2815_v8, %v2817_v42 }
 0x236   : > { %vm10303_vm7 = vcmp.le.f32.partialorder %v14273_v37, 0.7853982  ;;  %v2819_v58 = vsel %vm2807_vm10, %v2797_v63, %v2800_v5  ;;  %v2647_v53 = vshll.u32 %v2646_v15, 23  ;;  %v2811_v28 = vsel %vm2807_vm10, %v2791_v60, %v2794_v13 }
 0x237   : > { %v14275_v52 = vsel %vm10303_vm7, 4294967295, %v14274_v52  ;;  %v2813_v30 = vsel %vm2809_vm4, %v2797_v63, %v2812_v17  ;;  %v2820_v23 = vsel %vm2810_vm0, %v2806_v1, 1326507024  ;;  %v2532_v16 = vsub.s32 0, %v10307_v2 }
 0x238   : > { %14276 = vst [vmem:[#allocation71_spill] sm:$0xff] %v14275_v52  ;;  %v2821_v40 = vsel %vm2809_vm4, %v2803_v0, %v2820_v23  ;;  %v10323_v8 = vmul.u32.u64.low %v10265_v31, %v2818_v50  ;;  %v10324_v18 = vmul.u32.u64.high %v10265_v31, %v2818_v50, %v10323_v8  ;;  %8036 = vcosq.f32 %v10252_v47 }
 0x239   : > { %vm14045_vm10 = vcmp.lt.s32.totalorder %v9913_v35, 0  ;;  %v2643_v13 = vshrl.u32 %v2625_v56, %v2641_v20  ;;  %v2822_v63 = vsel %vm2808_vm11, %v2819_v58, %v2821_v40  ;;  %v2676_v5 = vshrl.u32 %v2675_v7, 23 }
 0x23a   : > { %v2343_v15 = vmul.f32 %v2342_v34, %v2340_v29  ;;  %v7202_v1 = vmin.u32 %v2532_v16, %v10307_v2  ;;  %v10333_v17 = vmul.u32.u64.low %v10265_v31, %v2822_v63  ;;  %v10334_v0 = vmul.u32.u64.high %v10265_v31, %v2822_v63, %v10333_v17 }
 0x23b   : > { %v2642_v60 = vshll.u32 %v10235_v46, %v2640_v19  ;;  %v2648_v42 = vor.u32 4788187, %v2647_v53  ;;  %v2814_v37 = vsel %vm2808_vm11, %v2811_v28, %v2813_v30  ;;  %v7209_v50 = vadd.s32 4294967169, %v2676_v5 }
 0x23c   : > { %v14277_v56 = vxor.u32 2147483648, %v10224_v57  ;;  %vm14278_vm0 = vcmp.lt.s32.totalorder %v9824_v62, 0  ;;  %v2534_v34 = vclz %v7202_v1  ;;  %v2833_v20 = vadd.s32 1, %v10324_v18 }
 0x23d   : > { %v14038_v29 = vand.u32 2147483647, %v10258_v21  ;;  %8038 = vsinq.f32 %v10252_v47  ;;  %v14279_v46 = vsub.s32 4, %v10023_v11  ;;  %vm14280_vm4 = vmmov %vm14278_vm0  ;;  %v2644_v19 = vor.u32 %v2643_v13, %v2642_v60  ;;  %v689_v13 = vpop.permute.xlu1 %688 }
 0x23e   : > { %v2448_v7 = vsel %vm14278_vm0, %v14277_v56, %v10224_v57  ;;  %v2682_v58 = vadd.s32 1, %v7209_v50  ;;  %v2344_v53 = vxor.u32 2147483648, %v2343_v15  ;;  %v7203_v28 = vadd.s32 4294967294, %v2534_v34  ;;  %v10378_v56 = vld [vmem:[%s14143_s4] ss:$0 sm:$0xff] }
 0x23f   : > { %v10352_v25 = vsel %vm14280_vm4, %v14279_v46, %v10023_v11  ;;  %v2830_v57 = vmul.u32 %v10265_v31, %v2814_v37  ;;  %vm2832_vm11 = vc.u32 %v10334_v0, %v10323_v8  ;;  %v10360_v47 = vsel %vm10303_vm7, %v9824_v62, %v2448_v7 }
 0x240   : > { %14281 = vst [vmem:[#allocation72_spill] sm:$0xff] %v10352_v25  ;;  %v2649_v30 = vand.u32 2147483647, %v2648_v42  ;;  %v2834_v23 = vsel %vm2832_vm11, %v2833_v20, %v10324_v18  ;;  %vm2683_vm0 = vcmp.gt.s32.totalorder %v2682_v58, 0  ;;  %vm7204_vm4 = vcmp.lt.s32.totalorder %v7203_v28, 0 }
 0x241   : > { %v2835_v11 = vadd.s32 %v2834_v23, %v2830_v57  ;;  %v2679_v16 = vand.u32 8388607, %v14038_v29  ;;  %v2684_v40 = vsel %vm2683_vm0, %v2682_v58, 0  ;;  %v2651_v63 = vcvt.s32.f32 %v2644_v19  ;;  %v684_v19 = vpop.permute.xlu0 %683 }
 0x242   : > { %v2537_v5 = vsel %vm7204_vm4, 0, %v7203_v28  ;;  %v2686_v1 = vand.u32 31, %v2684_v40  ;;  %8040 = vcosq.f32 %v10360_v47  ;;  %v10369_v17 = vsel %vm14045_vm10, %v2344_v53, %v2343_v15 }
 0x243   : > { %v2522_v18 = vadd.s32 %v10238_v6, %v10246_v61  ;;  %v2542_v60 = vsub.s32 4294967266, %v2537_v5  ;;  %v10373_v42 = vmul.f32 %v2651_v63, %v2649_v30  ;;  %v2836_v37 = vadd.s32 536870912, %v2835_v11 }
 0x244   : > { %v2687_v50 = vsub.s32 32, %v2686_v1  ;;  %v768_v7 = vmul.f32 %v10378_v56, %v689_v13  ;;  %v2538_v34 = vsub.s32 32, %v2537_v5  ;;  %v2680_v46 = vor.u32 8388608, %v2679_v16 }
 0x245   : > { %v2543_v20 = vadd.s32 127, %v2542_v60  ;;  %v2689_v15 = vshll.u32 %v14171_v22, %v2686_v1  ;;  %v10382_v58 = vshrl.u32 %v2836_v37, 30  ;;  %v2692_v61 = vshll.u32 %v14178_v33, %v2686_v1  ;;  %v10387_v28 = vpop.eup %8036 }
 0x246   : > { %v2690_v6 = vshrl.u32 %v14178_v33, %v2687_v50  ;;  %v2693_v53 = vshrl.u32 %v14162_v55, %v2687_v50  ;;  %14282 = vst [vmem:[#allocation73_spill] sm:$0xff] %v10387_v28  ;;  %v2696_v30 = vshrl.u32 %v14163_v43, %v2687_v50  ;;  %v2698_v23 = vshll.u32 %v14163_v43, %v2686_v1 }
 0x247   : > { %v2544_v57 = vshll.u32 %v2543_v20, 23  ;;  %v2699_v16 = vshrl.u32 %v14164_v27, %v2687_v50  ;;  %v2838_v13 = vshll.u32 %v10382_v58, 30  ;;  %v2685_v63 = vshrl.u32 %v2684_v40, 5  ;;  %v10398_v20 = vld [vmem:[%s14144_s5] ss:$0 sm:$0xff] }
 0x248   : > { %v2695_v60 = vshll.u32 %v14162_v55, %v2686_v1  ;;  %v767_v37 = vmul.f32 %v10378_v56, %v684_v19  ;;  %v2691_v29 = vor.u32 %v2690_v6, %v2689_v15  ;;  %v2694_v31 = vor.u32 %v2693_v53, %v2692_v61 }
 0x249   : > { %v2700_v62 = vor.u32 %v2699_v16, %v2698_v23  ;;  %v10401_v52 = vadd.f32 %v10398_v20, %v768_v7  ;;  %v10403_v25 = vsub.s32 %v2835_v11, %v2838_v13  ;;  %v2701_v40 = vshll.u32 %v14164_v27, %v2686_v1 }
 0x24a   : > { %v2697_v28 = vor.u32 %v2696_v30, %v2695_v60  ;;  %v2702_v24 = vshrl.u32 %v14169_v36, %v2687_v50  ;;  %v10407_v48 = vpop.eup %8038  ;;  %v2539_v15 = vshll.u32 %v10307_v2, %v2537_v5  ;;  %v2540_v19 = vshrl.u32 %v2522_v18, %v2538_v34 }
 0x24b   : > { %14283 = vst [vmem:[#allocation74_spill] sm:$0xff] %v10401_v52  ;;  %14284 = vst [vmem:[#allocation75_spill] sm:$0xff] %v10407_v48  ;;  %v2545_v6 = vor.u32 4788187, %v2544_v57  ;;  %v2720_v61 = vshll.u32 %v2680_v46, 8  ;;  %v14286_v23 = vmov 0  ;;  %v2688_v30 = vshrl.u32 %v14171_v22, %v2687_v50 }
 0x24c   : > { %v14285_v53 = vand.u32 2147483647, %v9913_v35  ;;  %v2841_v11 = vsub.s32 0, %v10403_v25  ;;  %v2703_v7 = vor.u32 %v2702_v24, %v2701_v40  ;;  %vm2704_vm0 = vcmp.lt.s32.totalorder %v2685_v63, 1 }
 0x24d   : > { %vm2707_vm4 = vcmp.lt.s32.totalorder %v2685_v63, 4  ;;  %vm14049_vm7 = vcmp.lt.s32.totalorder %v2685_v63, 2  ;;  %vm2706_vm3 = vcmp.lt.s32.totalorder %v2685_v63, 3  ;;  %v2712_v2 = vsel %vm2704_vm0, %v2691_v29, %v2694_v31 }
 0x24e   : > { %vm10412_vm11 = vcmp.le.f32.partialorder %v14285_v53, 0.7853982  ;;  %v2713_v5 = vsel %vm2707_vm4, %v2700_v62, 920167782  ;;  %v7214_v1 = vmin.u32 %v2841_v11, %v10403_v25  ;;  %v2709_v18 = vsel %vm2707_vm4, %v2697_v28, 2102212464 }
 0x24f   : > { %v14287_v23 = vsel %vm10412_vm11, 4294967295, %v14286_v23  ;;  %v2714_v34 = vsel %vm2706_vm3, %v2697_v28, %v2713_v5  ;;  %v2716_v46 = vsel %vm2704_vm0, %v2694_v31, %v2697_v28  ;;  %v2541_v57 = vor.u32 %v2540_v19, %v2539_v15  ;;  %v10424_v13 = vpop.eup %8040 }
 0x250   : > { %v2715_v24 = vsel %vm14049_vm7, %v2712_v2, %v2714_v34  ;;  %v2717_v16 = vsel %vm2707_vm4, %v2703_v7, 1326507024  ;;  %14288 = vst [vmem:[#allocation76_spill] sm:$0xff] %v10424_v13  ;;  %v2843_v60 = vclz %v7214_v1  ;;  %v14289_v11 = vand.u32 2147483647, %v9997_v38 }
 0x251   : > { %v2718_v40 = vsel %vm2706_vm3, %v2700_v62, %v2717_v16  ;;  %v10427_v53 = vmul.u32.u64.low %v2720_v61, %v2715_v24  ;;  %v10428_v48 = vmul.u32.u64.high %v2720_v61, %v2715_v24, %v10427_v53  ;;  %v14290_v5 = vmov 0 }
 0x252   : > { %vm10433_vm10 = vcmp.le.f32.partialorder %v14289_v11, 0.7853982  ;;  %v2653_v50 = vxor.u32 2147483648, %v10373_v42  ;;  %v2708_v28 = vsel %vm2704_vm0, %v2688_v30, %v2691_v29  ;;  %v2710_v15 = vsel %vm2706_vm3, %v2694_v31, %v2709_v18 }
 0x253   : > { %v14291_v5 = vsel %vm10433_vm10, 4294967295, %v14290_v5  ;;  %vm14293_vm4 = vcmp.lt.s32.totalorder %v2685_v63, 2  ;;  %v2546_v19 = vand.u32 2147483647, %v2545_v6  ;;  %v7215_v7 = vadd.s32 4294967294, %v2843_v60 }
 0x254   : > { %14292 = vst [vmem:[#allocation77_spill] sm:$0xff] %v14291_v5  ;;  %v2719_v62 = vsel %vm14293_vm4, %v2716_v46, %v2718_v40  ;;  %8042 = vsinq.f32 %v10360_v47  ;;  %v14050_v34 = vand.u32 2147483647, %v10401_v52  ;;  %v2984_v24 = vand.u32 2139095040, %v10401_v52  ;;  %vm14295_vm7 = vmmov %vm14293_vm4 }
 0x255   : > { %v10442_v2 = vmul.u32.u64.low %v2720_v61, %v2719_v62  ;;  %v10443_v1 = vmul.u32.u64.high %v2720_v61, %v2719_v62, %v10442_v2  ;;  %v10449_v16 = vadd.f32 %v10398_v20, %v767_v37  ;;  %v2548_v11 = vcvt.s32.f32 %v2541_v57 }
 0x256   : > { %vm7216_vm0 = vcmp.lt.s32.totalorder %v7215_v7, 0  ;;  %v2711_v29 = vsel %vm14295_vm7, %v2708_v28, %v2710_v15  ;;  %v2730_v31 = vadd.s32 1, %v10428_v48  ;;  %v2348_v6 = vsel %vm10412_vm11, %v9913_v35, %v10369_v17 }
 0x257   : > { %14294 = vst [vmem:[#allocation78_spill] sm:$0xff] %v10449_v16  ;;  %v2655_v47 = vsub.s32 4, %v10227_v51  ;;  %v10458_v18 = vsel %vm7216_vm0, 0, %v7215_v7  ;;  %v2985_v46 = vshrl.u32 %v2984_v24, 23  ;;  %vm14296_vm3 = vcmp.lt.s32.totalorder %v9997_v38, 0  ;;  %v699_v7 = vpop.permute.xlu1 %698 }
 0x258   : > { %v2654_v37 = vsel %vm14296_vm3, %v2653_v50, %v10373_v42  ;;  %v2549_v57 = vmul.f32 %v2548_v11, %v2546_v19  ;;  %v2552_v63 = vsub.s32 4, %v10283_v41  ;;  %v2851_v30 = vsub.s32 4294967266, %v10458_v18  ;;  %vm14299_vm0 = vmmov %vm14296_vm3 }
 0x259   : > { %v2727_v60 = vmul.u32 %v2720_v61, %v2711_v29  ;;  %vm2729_vm7 = vc.u32 %v10443_v1, %v10427_v53  ;;  %v7221_v40 = vadd.s32 4294967169, %v2985_v46  ;;  %v2988_v17 = vand.u32 8388607, %v14050_v34 }
 0x25a   : > { %8044 = vcosq.f32 %v2348_v6  ;;  %v2852_v28 = vadd.s32 127, %v2851_v30  ;;  %v2731_v15 = vsel %vm2729_vm7, %v2730_v31, %v10428_v48  ;;  %v2881_v62 = vand.u32 2139095040, %v10449_v16 }
 0x25b   : > { %v14297_v42 = vsub.s32 4, %v10101_v3  ;;  %vm14298_vm4 = vcmp.lt.s32.totalorder %v9913_v35, 0  ;;  %8046 = vsinq.f32 %v2348_v6  ;;  %v2732_v61 = vadd.s32 %v2731_v15, %v2727_v60 }
 0x25c   : > { %v2991_v19 = vadd.s32 1, %v7221_v40  ;;  %v10481_v2 = vsel %vm14299_vm0, %v2655_v47, %v10227_v51  ;;  %v2657_v48 = vsel %vm10433_vm10, %v9997_v38, %v2654_v37  ;;  %v2550_v24 = vxor.u32 2147483648, %v2549_v57 }
 0x25d   : > { %v10476_v50 = vsel %vm14298_vm4, %v14297_v42, %v10101_v3  ;;  %14300 = vst [vmem:[#allocation79_spill] sm:$0xff] %v10481_v2  ;;  %vm14301_vm3 = vcmp.lt.s32.totalorder %v10001_v12, 0  ;;  %v2847_v3 = vsub.s32 32, %v10458_v18  ;;  %v2733_v29 = vadd.s32 536870912, %v2732_v61 }
 0x25e   : > { %v10489_v11 = vsel %vm14301_vm3, %v2552_v63, %v10283_v41  ;;  %v2989_v31 = vor.u32 8388608, %v2988_v17  ;;  %vm2992_vm7 = vcmp.gt.s32.totalorder %v2991_v19, 0  ;;  %v2853_v6 = vshll.u32 %v2852_v28, 23  ;;  %vm14303_vm4 = vmmov %vm14301_vm3 }
 0x25f   : > { %14302 = vst [vmem:[#allocation80_spill] sm:$0xff] %v10489_v11  ;;  %v2993_v46 = vsel %vm2992_vm7, %v2991_v19, 0  ;;  %v2882_v30 = vshrl.u32 %v2881_v62, 23  ;;  %v770_v51 = vmul.f32 %v10378_v56, %v699_v7  ;;  %8048 = vcosq.f32 %v2657_v48 }
 0x260   : > { %v2831_v47 = vadd.s32 %v10323_v8, %v10334_v0  ;;  %v10495_v37 = vshrl.u32 %v2733_v29, 30  ;;  %v2995_v60 = vand.u32 31, %v2993_v46  ;;  %8050 = vsinq.f32 %v2657_v48 }
 0x261   : > { %v10499_v41 = vsel %vm14303_vm4, %v2550_v24, %v2549_v57  ;;  %v2848_v63 = vshll.u32 %v10403_v25, %v10458_v18  ;;  %v14058_v40 = vand.u32 2147483647, %v10449_v16  ;;  %v10505_v62 = vshll.u32 %v2989_v31, 8  ;;  %v10507_v8 = vpop.eup %8042 }
 0x262   : > { %v2849_v17 = vshrl.u32 %v2831_v47, %v2847_v3  ;;  %v2735_v28 = vshll.u32 %v10495_v37, 30  ;;  %v2996_v15 = vsub.s32 32, %v2995_v60  ;;  %14304 = vst [vmem:[#allocation81_spill] sm:$0xff] %v10507_v8  ;;  %v10509_v0 = vor.u32 4788187, %v2853_v6 }
 0x263   : > { %v2994_v42 = vshrl.u32 %v2993_v46, 5  ;;  %v2998_v19 = vshll.u32 %v14171_v22, %v2995_v60  ;;  %v7217_v57 = vadd.s32 4294967169, %v2882_v30  ;;  %v3001_v18 = vshll.u32 %v14178_v33, %v2995_v60 }
 0x264   : > { %v10512_v7 = vsub.s32 %v2732_v61, %v2735_v28  ;;  %v2999_v25 = vshrl.u32 %v14178_v33, %v2996_v15  ;;  %v3004_v48 = vshll.u32 %v14162_v55, %v2995_v60  ;;  %v3002_v24 = vshrl.u32 %v14162_v55, %v2996_v15 }
 0x265   : > { %v3005_v3 = vshrl.u32 %v14163_v43, %v2996_v15  ;;  %v3007_v29 = vshll.u32 %v14163_v43, %v2995_v60  ;;  %v3008_v31 = vshrl.u32 %v14164_v27, %v2996_v15  ;;  %v3010_v46 = vshll.u32 %v14164_v27, %v2995_v60 }
 0x266   : > { %v2738_v6 = vsub.s32 0, %v10512_v7  ;;  %v3011_v61 = vshrl.u32 %v14169_v36, %v2996_v15  ;;  %v10526_v30 = vand.u32 8388607, %v14058_v40  ;;  %v3000_v47 = vor.u32 %v2999_v25, %v2998_v19 }
 0x267   : > { %v3003_v28 = vor.u32 %v3002_v24, %v3001_v18  ;;  %v3006_v34 = vor.u32 %v3005_v3, %v3004_v48  ;;  %v3009_v38 = vor.u32 %v3008_v31, %v3007_v29  ;;  %v10528_v5 = vpop.eup %8044  ;;  %v2850_v2 = vor.u32 %v2849_v17, %v2848_v63 }
 0x268   : > { %14305 = vst [vmem:[#allocation82_spill] sm:$0xff] %v10528_v5  ;;  %v7210_v11 = vmin.u32 %v2738_v6, %v10512_v7  ;;  %v3012_v13 = vor.u32 %v3011_v61, %v3010_v46  ;;  %v10532_v8 = vadd.f32 %v10398_v20, %v770_v51  ;;  %v10534_v60 = vpop.eup %8046  ;;  %v2855_v35 = vand.u32 2147483647, %v10509_v0 }
 0x269   : > { %14307 = vst [vmem:[#allocation84_spill] sm:$0xff] %v10534_v60  ;;  %v2997_v40 = vshrl.u32 %v14171_v22, %v2996_v15  ;;  %vm3016_vm0 = vcmp.lt.s32.totalorder %v2994_v42, 4  ;;  %v2888_v19 = vadd.s32 1, %v7217_v57  ;;  %vm3013_vm3 = vcmp.lt.s32.totalorder %v2994_v42, 1 }
 0x26a   : > { %14306 = vst [vmem:[#allocation83_spill] sm:$0xff] %v10532_v8  ;;  %v2740_v25 = vclz %v7210_v11  ;;  %vm3014_vm7 = vcmp.lt.s32.totalorder %v2994_v42, 2  ;;  %v3018_v18 = vsel %vm3016_vm0, %v3006_v34, 2102212464  ;;  %vm3015_vm4 = vcmp.lt.s32.totalorder %v2994_v42, 3 }
 0x26b   : > { %v3021_v63 = vsel %vm3013_vm3, %v3000_v47, %v3003_v28  ;;  %v3022_v17 = vsel %vm3016_vm0, %v3009_v38, 920167782  ;;  %v3025_v48 = vsel %vm3013_vm3, %v3003_v28, %v3006_v34  ;;  %v3017_v3 = vsel %vm3013_vm3, %v2997_v40, %v3000_v47  ;;  %v694_v40 = vpop.permute.xlu0 %693 }
 0x26c   : > { %v7211_v24 = vadd.s32 4294967294, %v2740_v25  ;;  %v3023_v51 = vsel %vm3015_vm4, %v3006_v34, %v3022_v17  ;;  %v3026_v29 = vsel %vm3016_vm0, %v3012_v13, 1326507024  ;;  %v10538_v31 = vpop.eup %8048  ;;  %v3019_v6 = vsel %vm3015_vm4, %v3003_v28, %v3018_v18 }
 0x26d   : > { %14308 = vst [vmem:[#allocation85_spill] sm:$0xff] %v10538_v31  ;;  %v3024_v0 = vsel %vm3014_vm7, %v3021_v63, %v3023_v51  ;;  %v3027_v15 = vsel %vm3015_vm4, %v3009_v38, %v3026_v29  ;;  %vm2889_vm10 = vcmp.gt.s32.totalorder %v2888_v19, 0  ;;  %v10541_v57 = vpop.eup %8050  ;;  %v2857_v25 = vcvt.s32.f32 %v2850_v2 }
 0x26e   : > { %14309 = vst [vmem:[#allocation86_spill] sm:$0xff] %v10541_v57  ;;  %vm7212_vm11 = vcmp.lt.s32.totalorder %v7211_v24, 0  ;;  %v3028_v11 = vsel %vm3014_vm7, %v3025_v48, %v3027_v15  ;;  %v10545_v46 = vmul.u32.u64.low %v10505_v62, %v3024_v0  ;;  %v10546_v61 = vmul.u32.u64.high %v10505_v62, %v3024_v0, %v10545_v46 }
 0x26f   : > { %v2743_v34 = vsel %vm7212_vm11, 0, %v7211_v24  ;;  %v10550_v13 = vmul.u32.u64.low %v10505_v62, %v3028_v11  ;;  %v10551_v47 = vmul.u32.u64.high %v10505_v62, %v3028_v11, %v10550_v13  ;;  %v2890_v28 = vsel %vm2889_vm10, %v2888_v19, 0 }
 0x270   : > { %v2744_v38 = vsub.s32 32, %v2743_v34  ;;  %v2748_v18 = vsub.s32 4294967266, %v2743_v34  ;;  %v3020_v63 = vsel %vm3014_vm7, %v3017_v3, %v3019_v6  ;;  %v2728_v17 = vadd.s32 %v10427_v53, %v10443_v1 }
 0x271   : > { %v2886_v48 = vor.u32 8388608, %v10526_v30  ;;  %v2892_v51 = vand.u32 31, %v2890_v28  ;;  %v10558_v29 = vmul.f32 %v10378_v56, %v694_v40  ;;  %v10560_v24 = vmul.f32 %v2857_v25, %v2855_v35 }
 0x272   : > { %v2749_v0 = vadd.s32 127, %v2748_v18  ;;  %v3039_v15 = vadd.s32 1, %v10546_v61  ;;  %v3190_v2 = vand.u32 2139095040, %v10532_v8  ;;  %v2746_v19 = vshrl.u32 %v2728_v17, %v2744_v38 }
 0x273   : > { %v3036_v42 = vmul.u32 %v10505_v62, %v3020_v63  ;;  %vm3038_vm10 = vc.u32 %v10551_v47, %v10545_v46  ;;  %v2893_v53 = vsub.s32 32, %v2892_v51  ;;  %v2745_v1 = vshll.u32 %v10512_v7, %v2743_v34 }
 0x274   : > { %v2750_v30 = vshll.u32 %v2749_v0, 23  ;;  %v3040_v3 = vsel %vm3038_vm10, %v3039_v15, %v10546_v61  ;;  %v2891_v6 = vshrl.u32 %v2890_v28, 5  ;;  %v2895_v11 = vshll.u32 %v14171_v22, %v2892_v51 }
 0x275   : > { %v3041_v35 = vadd.s32 %v3040_v3, %v3036_v42  ;;  %v2896_v40 = vshrl.u32 %v14178_v33, %v2893_v53  ;;  %v2899_v13 = vshrl.u32 %v14162_v55, %v2893_v53  ;;  %v2898_v62 = vshll.u32 %v14178_v33, %v2892_v51 }
 0x276   : > { %v2751_v25 = vor.u32 4788187, %v2750_v30  ;;  %v2901_v38 = vshll.u32 %v14162_v55, %v2892_v51  ;;  %v2902_v18 = vshrl.u32 %v14163_v43, %v2893_v53  ;;  %v14310_v7 = vand.u32 2147483647, %v10001_v12 }
 0x277   : > { %v14311_v34 = vmov 0  ;;  %v2747_v61 = vor.u32 %v2746_v19, %v2745_v1  ;;  %v3042_v28 = vadd.s32 536870912, %v3041_v35  ;;  %v2897_v63 = vor.u32 %v2896_v40, %v2895_v11 }
 0x278   : > { %vm10577_vm11 = vcmp.le.f32.partialorder %v14310_v7, 0.7853982  ;;  %v10581_v17 = vshll.u32 %v2886_v48, 8  ;;  %v2900_v0 = vor.u32 %v2899_v13, %v2898_v62  ;;  %v2903_v15 = vor.u32 %v2902_v18, %v2901_v38 }
 0x279   : > { %v14312_v34 = vsel %vm10577_vm11, 4294967295, %v14311_v34  ;;  %v2904_v42 = vshll.u32 %v14163_v43, %v2892_v51  ;;  %v2905_v30 = vshrl.u32 %v14164_v27, %v2893_v53  ;;  %v2859_v3 = vxor.u32 2147483648, %v10560_v24 }
 0x27a   : > { %v10587_v31 = vshrl.u32 %v3042_v28, 30  ;;  %v2907_v7 = vshll.u32 %v14164_v27, %v2892_v51  ;;  %v2908_v19 = vshrl.u32 %v14169_v36, %v2893_v53  ;;  %v2752_v1 = vand.u32 2147483647, %v2751_v25 }
 0x27b   : > { %v2906_v11 = vor.u32 %v2905_v30, %v2904_v42  ;;  %vm2910_vm3 = vcmp.lt.s32.totalorder %v2891_v6, 1  ;;  %v3191_v48 = vshrl.u32 %v3190_v2, 23  ;;  %v2754_v40 = vcvt.s32.f32 %v2747_v61 }
 0x27c   : > { %v3044_v13 = vshll.u32 %v10587_v31, 30  ;;  %v2909_v62 = vor.u32 %v2908_v19, %v2907_v7  ;;  %vm2913_vm7 = vcmp.lt.s32.totalorder %v2891_v6, 4  ;;  %v14313_v38 = vand.u32 2147483647, %v10135_v54 }
 0x27d   : > { %v14314_v18 = vmov 0  ;;  %vm2912_vm10 = vcmp.lt.s32.totalorder %v2891_v6, 3  ;;  %v2915_v28 = vsel %vm2913_vm7, %v2903_v15, 2102212464  ;;  %v2918_v51 = vsel %vm2910_vm3, %v2897_v63, %v2900_v0 }
 0x27e   : > { %vm10594_vm4 = vcmp.le.f32.partialorder %v14313_v38, 0.7853982  ;;  %v2919_v57 = vsel %vm2913_vm7, %v2906_v11, 920167782  ;;  %vm2674_vm0 = vcmp.lt.s32.totalorder %v10258_v21, 0  ;;  %v10600_v25 = vsub.s32 %v3041_v35, %v3044_v13 }
 0x27f   : > { %v14315_v18 = vsel %vm10594_vm4, 4294967295, %v14314_v18  ;;  %v2894_v2 = vshrl.u32 %v14171_v22, %v2893_v53  ;;  %vm2911_vm2 = vcmp.lt.s32.totalorder %v2891_v6, 2  ;;  %v2920_v61 = vsel %vm2912_vm10, %v2903_v15, %v2919_v57 }
 0x280   : > { %14316 = vst [vmem:[#allocation87_spill] sm:$0xff] %v14315_v18  ;;  %v2755_v42 = vmul.f32 %v2754_v40, %v2752_v1  ;;  %v2921_v30 = vsel %vm2911_vm2, %v2918_v51, %v2920_v61  ;;  %v2922_v7 = vsel %vm2910_vm3, %v2900_v0, %v2903_v15  ;;  %v2923_v19 = vsel %vm2913_vm7, %v2909_v62, 1326507024 }
 0x281   : > { %v3047_v38 = vsub.s32 0, %v10600_v25  ;;  %v2914_v5 = vsel %vm2910_vm3, %v2894_v2, %v2897_v63  ;;  %v2916_v60 = vsel %vm2912_vm10, %v2900_v0, %v2915_v28  ;;  %v2924_v35 = vsel %vm2912_vm10, %v2906_v11, %v2923_v19 }
 0x282   : > { %v2554_v53 = vsel %vm10577_vm11, %v10001_v12, %v10499_v41  ;;  %v2925_v57 = vsel %vm2911_vm2, %v2922_v7, %v2924_v35  ;;  %v10616_v1 = vmul.u32.u64.low %v10581_v17, %v2921_v30  ;;  %v10617_v40 = vmul.u32.u64.high %v10581_v17, %v2921_v30, %v10616_v1 }
 0x283   : > { %v14317_v15 = vand.u32 2147483647, %v10258_v21  ;;  %v14318_v63 = vmov 0  ;;  %v7222_v0 = vmin.u32 %v3047_v38, %v10600_v25  ;;  %v14067_v41 = vand.u32 2147483647, %v10532_v8 }
 0x284   : > { %v10628_v11 = vmul.u32.u64.low %v10581_v17, %v2925_v57  ;;  %v10629_v13 = vmul.u32.u64.high %v10581_v17, %v2925_v57, %v10628_v11  ;;  %vm14321_vm3 = vcmp.lt.s32.totalorder %v10135_v54, 0  ;;  %v2756_v28 = vxor.u32 2147483648, %v2755_v42 }
 0x285   : > { %vm10622_vm7 = vcmp.le.f32.partialorder %v14317_v15, 0.7853982  ;;  %v2860_v62 = vsel %vm14321_vm3, %v2859_v3, %v10560_v24  ;;  %v2917_v51 = vsel %vm2911_vm2, %v2914_v5, %v2916_v60  ;;  %v7229_v2 = vadd.s32 4294967169, %v3191_v48 }
 0x286   : > { %v14319_v63 = vsel %vm10622_vm7, 4294967295, %v14318_v63  ;;  %8052 = vcosq.f32 %v2554_v53  ;;  %v2861_v61 = vsub.s32 4, %v10382_v58  ;;  %v3049_v30 = vclz %v7222_v0 }
 0x287   : > { %14320 = vst [vmem:[#allocation88_spill] sm:$0xff] %v14319_v63  ;;  %v10639_v7 = vadd.f32 %v10398_v20, %v10558_v29  ;;  %8054 = vsinq.f32 %v2554_v53  ;;  %v2758_v19 = vsub.s32 4, %v10495_v37  ;;  %v2936_v38 = vadd.s32 1, %v10617_v40 }
 0x288   : > { %v3197_v35 = vadd.s32 1, %v7229_v2  ;;  %v2863_v24 = vsel %vm10594_vm4, %v10135_v54, %v2860_v62  ;;  %v7223_v5 = vadd.s32 4294967294, %v3049_v30  ;;  %v2933_v60 = vmul.u32 %v10581_v17, %v2917_v51 }
 0x289   : > { %14322 = vst [vmem:[#allocation89_spill] sm:$0xff] %v10639_v7  ;;  %vm2935_vm2 = vc.u32 %v10629_v13, %v10616_v1  ;;  %v2757_v29 = vsel %vm2674_vm0, %v2756_v28, %v2755_v42  ;;  %v3194_v3 = vand.u32 8388607, %v14067_v41  ;;  %v3087_v57 = vand.u32 2139095040, %v10639_v7 }
 0x28a   : > { %v2937_v6 = vsel %vm2935_vm2, %v2936_v38, %v10617_v40  ;;  %vm3198_vm10 = vcmp.gt.s32.totalorder %v3197_v35, 0  ;;  %vm7224_vm3 = vcmp.lt.s32.totalorder %v7223_v5, 0  ;;  %vm14323_vm4 = vcmp.lt.s32.totalorder %v10135_v54, 0 }
 0x28b   : > { %v2938_v48 = vadd.s32 %v2937_v6, %v2933_v60  ;;  %v3199_v53 = vsel %vm3198_vm10, %v3197_v35, 0  ;;  %v10658_v17 = vsel %vm14323_vm4, %v2861_v61, %v10382_v58  ;;  %8056 = vcosq.f32 %v2863_v24 }
 0x28c   : > { %14324 = vst [vmem:[#allocation90_spill] sm:$0xff] %v10658_v17  ;;  %v10663_v42 = vsel %vm2674_vm0, %v2758_v19, %v10495_v37  ;;  %v3201_v40 = vand.u32 31, %v3199_v53  ;;  %8058 = vsinq.f32 %v2863_v24  ;;  %v3037_v15 = vadd.s32 %v10545_v46, %v10551_v47 }
 0x28d   : > { %14325 = vst [vmem:[#allocation91_spill] sm:$0xff] %v10663_v42  ;;  %v2939_v11 = vadd.s32 536870912, %v2938_v48  ;;  %v10671_v62 = vsel %vm10622_vm7, %v10258_v21, %v2757_v29  ;;  %v3052_v58 = vsel %vm7224_vm3, 0, %v7223_v5  ;;  %v3195_v28 = vor.u32 8388608, %v3194_v3 }
 0x28e   : > { %v3202_v51 = vsub.s32 32, %v3201_v40  ;;  %v10675_v37 = vshrl.u32 %v3199_v53, 5  ;;  %v3204_v61 = vshll.u32 %v14171_v22, %v3201_v40  ;;  %v3088_v30 = vshrl.u32 %v3087_v57, 23 }
 0x28f   : > { %v10673_v2 = vshrl.u32 %v2939_v11, 30  ;;  %v3207_v47 = vshll.u32 %v14178_v33, %v3201_v40  ;;  %v3053_v35 = vsub.s32 32, %v3052_v58  ;;  %v3057_v24 = vsub.s32 4294967266, %v3052_v58 }
 0x290   : > { %v3205_v46 = vshrl.u32 %v14178_v33, %v3202_v51  ;;  %v3208_v19 = vshrl.u32 %v14162_v55, %v3202_v51  ;;  %v3211_v38 = vshrl.u32 %v14163_v43, %v3202_v51  ;;  %v3210_v60 = vshll.u32 %v14162_v55, %v3201_v40 }
 0x291   : > { %v2941_v5 = vshll.u32 %v10673_v2, 30  ;;  %v3213_v3 = vshll.u32 %v14163_v43, %v3201_v40  ;;  %v3214_v53 = vshrl.u32 %v14164_v27, %v3202_v51  ;;  %v10688_v41 = vshll.u32 %v3195_v28, 8 }
 0x292   : > { %v3206_v29 = vor.u32 %v3205_v46, %v3204_v61  ;;  %v3209_v6 = vor.u32 %v3208_v19, %v3207_v47  ;;  %v3212_v11 = vor.u32 %v3211_v38, %v3210_v60  ;;  %v7225_v0 = vadd.s32 4294967169, %v3088_v30 }
 0x293   : > { %v10686_v57 = vsub.s32 %v2938_v48, %v2941_v5  ;;  %v10690_v54 = vpop.eup %8052  ;;  %v3054_v18 = vshll.u32 %v10600_v25, %v3052_v58  ;;  %v3215_v17 = vor.u32 %v3214_v53, %v3213_v3  ;;  %v3216_v21 = vshll.u32 %v14164_v27, %v3201_v40  ;;  %v709_v53 = vpop.permute.xlu1 %708 }
 0x294   : > { %14326 = vst [vmem:[#allocation92_spill] sm:$0xff] %v10690_v54  ;;  %v3217_v61 = vshrl.u32 %v14169_v36, %v3202_v51  ;;  %v10695_v46 = vpop.eup %8054  ;;  %v3055_v47 = vshrl.u32 %v3037_v15, %v3053_v35  ;;  %v3058_v19 = vadd.s32 127, %v3057_v24  ;;  %vm3219_vm0 = vcmp.lt.s32.totalorder %v10675_v37, 1 }
 0x295   : > { %14327 = vst [vmem:[#allocation93_spill] sm:$0xff] %v10695_v46  ;;  %v2944_v48 = vsub.s32 0, %v10686_v57  ;;  %v3203_v28 = vshrl.u32 %v14171_v22, %v3202_v51  ;;  %vm3222_vm4 = vcmp.lt.s32.totalorder %v10675_v37, 4  ;;  %v3227_v25 = vsel %vm3219_vm0, %v3206_v29, %v3209_v6 }
 0x296   : > { %v3218_v30 = vor.u32 %v3217_v61, %v3216_v21  ;;  %vm3221_vm2 = vcmp.lt.s32.totalorder %v10675_v37, 3  ;;  %v3224_v58 = vsel %vm3222_vm4, %v3212_v11, 2102212464  ;;  %v3228_v38 = vsel %vm3222_vm4, %v3215_v17, 920167782 }
 0x297   : > { %v7218_v40 = vmin.u32 %v2944_v48, %v10686_v57  ;;  %vm3220_vm10 = vcmp.lt.s32.totalorder %v10675_v37, 2  ;;  %v3229_v15 = vsel %vm3221_vm2, %v3212_v11, %v3228_v38  ;;  %v3231_v35 = vsel %vm3219_vm0, %v3209_v6, %v3212_v11  ;;  %v704_v11 = vpop.permute.xlu0 %703 }
 0x298   : > { %v3232_v24 = vsel %vm3222_vm4, %v3218_v30, 1326507024  ;;  %v10708_v51 = vpop.eup %8056  ;;  %v3059_v21 = vshll.u32 %v3058_v19, 23  ;;  %v3223_v60 = vsel %vm3219_vm0, %v3203_v28, %v3206_v29  ;;  %v3230_v3 = vsel %vm3220_vm10, %v3227_v25, %v3229_v15 }
 0x299   : > { %14328 = vst [vmem:[#allocation94_spill] sm:$0xff] %v10708_v51  ;;  %v2946_v5 = vclz %v7218_v40  ;;  %v10714_v61 = vpop.eup %8058  ;;  %v3225_v48 = vsel %vm3221_vm2, %v3209_v6, %v3224_v58  ;;  %v3233_v63 = vsel %vm3221_vm2, %v3215_v17, %v3232_v24  ;;  %v14073_v29 = vand.u32 2147483647, %v10639_v7 }
 0x29a   : > { %14329 = vst [vmem:[#allocation95_spill] sm:$0xff] %v10714_v61  ;;  %v10717_v38 = vmul.u32.u64.low %v10688_v41, %v3230_v3  ;;  %v10718_v42 = vmul.u32.u64.high %v10688_v41, %v3230_v3, %v10717_v38  ;;  %v3234_v19 = vsel %vm3220_vm10, %v3231_v35, %v3233_v63  ;;  %v3094_v28 = vadd.s32 1, %v7225_v0 }
 0x29b   : > { %v7219_v30 = vadd.s32 4294967294, %v2946_v5  ;;  %v3056_v40 = vor.u32 %v3055_v47, %v3054_v18  ;;  %v10725_v25 = vmul.u32.u64.low %v10688_v41, %v3234_v19  ;;  %v10726_v15 = vmul.u32.u64.high %v10688_v41, %v3234_v19, %v10725_v25 }
 0x29c   : > { %v772_v17 = vmul.f32 %v10378_v56, %v709_v53  ;;  %v3226_v6 = vsel %vm3220_vm10, %v3223_v60, %v3225_v48  ;;  %vm3095_vm0 = vcmp.gt.s32.totalorder %v3094_v28, 0  ;;  %v10732_v58 = vmul.f32 %v10378_v56, %v704_v11 }
 0x29d   : > { %vm7220_vm3 = vcmp.lt.s32.totalorder %v7219_v30, 0  ;;  %v3060_v24 = vor.u32 4788187, %v3059_v21  ;;  %v3245_v35 = vadd.s32 1, %v10718_v42  ;;  %v3096_v0 = vsel %vm3095_vm0, %v3094_v28, 0 }
 0x29e   : > { %v2949_v63 = vsel %vm7220_vm3, 0, %v7219_v30  ;;  %v2934_v18 = vadd.s32 %v10616_v1, %v10629_v13  ;;  %v3091_v3 = vand.u32 8388607, %v14073_v29  ;;  %v3063_v53 = vcvt.s32.f32 %v3056_v40 }
 0x29f   : > { %v2950_v47 = vsub.s32 32, %v2949_v63  ;;  %v2954_v5 = vsub.s32 4294967266, %v2949_v63  ;;  %v3242_v37 = vmul.u32 %v10688_v41, %v3226_v6  ;;  %vm3244_vm4 = vc.u32 %v10726_v15, %v10717_v38 }
 0x2a0   : > { %v3098_v60 = vand.u32 31, %v3096_v0  ;;  %v2951_v21 = vshll.u32 %v10686_v57, %v2949_v63  ;;  %v3246_v30 = vsel %vm3244_vm4, %v3245_v35, %v10718_v42  ;;  %v3061_v19 = vand.u32 2147483647, %v3060_v24 }
 0x2a1   : > { %v2952_v48 = vshrl.u32 %v2934_v18, %v2950_v47  ;;  %v2955_v11 = vadd.s32 127, %v2954_v5  ;;  %v3247_v1 = vadd.s32 %v3246_v30, %v3242_v37  ;;  %v10744_v13 = vshrl.u32 %v3096_v0, 5 }
 0x2a2   : > { %v3099_v28 = vsub.s32 32, %v3098_v60  ;;  %v3101_v40 = vshll.u32 %v14171_v22, %v3098_v60  ;;  %v3104_v41 = vshll.u32 %v14178_v33, %v3098_v60  ;;  %v3107_v63 = vshll.u32 %v14162_v55, %v3098_v60 }
 0x2a3   : > { %v2953_v25 = vor.u32 %v2952_v48, %v2951_v21  ;;  %v2956_v29 = vshll.u32 %v2955_v11, 23  ;;  %v3248_v6 = vadd.s32 536870912, %v3247_v1  ;;  %v3110_v24 = vshll.u32 %v14163_v43, %v3098_v60 }
 0x2a4   : > { %v3102_v51 = vshrl.u32 %v14178_v33, %v3099_v28  ;;  %v3105_v57 = vshrl.u32 %v14162_v55, %v3099_v28  ;;  %v3108_v42 = vshrl.u32 %v14163_v43, %v3099_v28  ;;  %v3111_v35 = vshrl.u32 %v14164_v27, %v3099_v28 }
 0x2a5   : > { %v2957_v18 = vor.u32 4788187, %v2956_v29  ;;  %v10754_v0 = vshrl.u32 %v3248_v6, 30  ;;  %v3113_v37 = vshll.u32 %v14164_v27, %v3098_v60  ;;  %v3114_v30 = vshrl.u32 %v14169_v36, %v3099_v28 }
 0x2a6   : > { %v3103_v47 = vor.u32 %v3102_v51, %v3101_v40  ;;  %v3106_v5 = vor.u32 %v3105_v57, %v3104_v41  ;;  %v3109_v48 = vor.u32 %v3108_v42, %v3107_v63  ;;  %v3112_v11 = vor.u32 %v3111_v35, %v3110_v24 }
 0x2a7   : > { %v2958_v21 = vand.u32 2147483647, %v2957_v18  ;;  %v2960_v29 = vcvt.s32.f32 %v2953_v25  ;;  %v3250_v61 = vshll.u32 %v10754_v0, 30  ;;  %v3092_v12 = vor.u32 8388608, %v3091_v3 }
 0x2a8   : > { %v10761_v54 = vadd.f32 %v10398_v20, %v772_v17  ;;  %v3064_v6 = vmul.f32 %v3063_v53, %v3061_v19  ;;  %v3100_v51 = vshrl.u32 %v14171_v22, %v3099_v28  ;;  %v3115_v40 = vor.u32 %v3114_v30, %v3113_v37 }
 0x2a9   : > { %vm3116_vm10 = vcmp.lt.s32.totalorder %v10744_v13, 1  ;;  %v2961_v60 = vmul.f32 %v2960_v29, %v2958_v21  ;;  %v10766_v41 = vsub.s32 %v3247_v1, %v3250_v61  ;;  %vm3119_vm0 = vcmp.lt.s32.totalorder %v10744_v13, 4 }
 0x2aa   : > { %14330 = vst [vmem:[#allocation96_spill] sm:$0xff] %v10761_v54  ;;  %v3124_v25 = vsel %vm3116_vm10, %v3103_v47, %v3106_v5  ;;  %v14331_v3 = vand.u32 2147483647, %v10401_v52  ;;  %v14332_v17 = vmov 0  ;;  %vm3117_vm2 = vcmp.lt.s32.totalorder %v10744_v13, 2 }
 0x2ab   : > { %vm3118_vm7 = vcmp.lt.s32.totalorder %v10744_v13, 3  ;;  %v3125_v53 = vsel %vm3119_vm0, %v3112_v11, 920167782  ;;  %v3128_v61 = vsel %vm3116_vm10, %v3106_v5, %v3109_v48  ;;  %v3253_v19 = vsub.s32 0, %v10766_v41 }
 0x2ac   : > { %vm10773_vm4 = vcmp.le.f32.partialorder %v14331_v3, 0.7853982  ;;  %v3121_v1 = vsel %vm3119_vm0, %v3109_v48, 2102212464  ;;  %v3126_v28 = vsel %vm3118_vm7, %v3109_v48, %v3125_v53  ;;  %v3129_v57 = vsel %vm3119_vm0, %v3115_v40, 1326507024 }
 0x2ad   : > { %v14333_v17 = vsel %vm10773_vm4, 4294967295, %v14332_v17  ;;  %v3065_v63 = vxor.u32 2147483648, %v3064_v6  ;;  %v14335_v18 = vand.u32 2147483647, %v10449_v16  ;;  %v14336_v42 = vmov 0 }
 0x2ae   : > { %14334 = vst [vmem:[#allocation97_spill] sm:$0xff] %v14333_v17  ;;  %v3127_v24 = vsel %vm3117_vm2, %v3124_v25, %v3126_v28  ;;  %v3130_v35 = vsel %vm3118_vm7, %v3112_v11, %v3129_v57  ;;  %v3132_v37 = vshll.u32 %v3092_v12, 8  ;;  %v2962_v21 = vxor.u32 2147483648, %v2961_v60 }
 0x2af   : > { %vm10786_vm3 = vcmp.le.f32.partialorder %v14335_v18, 0.7853982  ;;  %v7230_v30 = vmin.u32 %v3253_v19, %v10766_v41  ;;  %v3120_v48 = vsel %vm3116_vm10, %v3100_v51, %v3103_v47  ;;  %v3131_v29 = vsel %vm3117_vm2, %v3128_v61, %v3130_v35 }
 0x2b0   : > { %v14337_v42 = vsel %vm10786_vm3, 4294967295, %v14336_v42  ;;  %v3122_v40 = vsel %vm3118_vm7, %v3106_v5, %v3121_v1  ;;  %v10801_v3 = vmul.u32.u64.low %v3132_v37, %v3131_v29  ;;  %v10802_v53 = vmul.u32.u64.high %v3132_v37, %v3131_v29, %v10801_v3 }
 0x2b1   : > { %14338 = vst [vmem:[#allocation98_spill] sm:$0xff] %v14337_v42  ;;  %v3396_v25 = vand.u32 2139095040, %v10761_v54  ;;  %v2964_v11 = vsub.s32 4, %v10673_v2  ;;  %v3255_v12 = vclz %v7230_v30  ;;  %8060 = vcosq.f32 %v10671_v62  ;;  %v719_v3 = vpop.permute.xlu1 %718 }
 0x2b2   : > { %v10806_v28 = vmul.u32.u64.low %v3132_v37, %v3127_v24  ;;  %v10807_v57 = vmul.u32.u64.high %v3132_v37, %v3127_v24, %v10806_v28  ;;  %vm14339_vm10 = vcmp.lt.s32.totalorder %v10401_v52, 0  ;;  %v14340_v5 = vsub.s32 4, %v10587_v31 }
 0x2b3   : > { %v3066_v47 = vsel %vm14339_vm10, %v3065_v63, %v3064_v6  ;;  %vm14341_vm7 = vmmov %vm14339_vm10  ;;  %vm3189_vm0 = vcmp.lt.s32.totalorder %v10532_v8, 0  ;;  %v3397_v61 = vshrl.u32 %v3396_v25, 23  ;;  %8062 = vsinq.f32 %v10671_v62 }
 0x2b4   : > { %v10818_v51 = vsel %vm14341_vm7, %v14340_v5, %v10587_v31  ;;  %v7231_v19 = vadd.s32 4294967294, %v3255_v12  ;;  %v3123_v1 = vsel %vm3117_vm2, %v3120_v48, %v3122_v40  ;;  %v14081_v18 = vand.u32 2147483647, %v10761_v54 }
 0x2b5   : > { %14342 = vst [vmem:[#allocation99_spill] sm:$0xff] %v10818_v51  ;;  %vm14343_vm10 = vcmp.lt.s32.totalorder %v10449_v16, 0  ;;  %vm3141_vm11 = vc.u32 %v10802_v53, %v10806_v28  ;;  %v7237_v63 = vadd.s32 4294967169, %v3397_v61  ;;  %v10831_v31 = vadd.f32 %v10398_v20, %v10732_v58 }
 0x2b6   : > { %v2963_v6 = vsel %vm14343_vm10, %v2962_v21, %v2961_v60  ;;  %v3069_v62 = vsel %vm10773_vm4, %v10401_v52, %v3066_v47  ;;  %vm14345_vm2 = vmmov %vm14343_vm10  ;;  %vm7232_vm7 = vcmp.lt.s32.totalorder %v7231_v19, 0  ;;  %v3142_v60 = vadd.s32 1, %v10807_v57 }
 0x2b7   : > { %14344 = vst [vmem:[#allocation100_spill] sm:$0xff] %v10831_v31  ;;  %v10839_v13 = vsel %vm14345_vm2, %v2964_v11, %v10673_v2  ;;  %v3258_v24 = vsel %vm7232_vm7, 0, %v7231_v19  ;;  %v3273_v35 = vsub.s32 4, %v10754_v0  ;;  %v3139_v21 = vmul.u32 %v3132_v37, %v3123_v1 }
 0x2b8   : > { %14346 = vst [vmem:[#allocation101_spill] sm:$0xff] %v10839_v13  ;;  %v3403_v30 = vadd.s32 1, %v7237_v63  ;;  %v2966_v20 = vsel %vm10786_vm3, %v10449_v16, %v2963_v6  ;;  %v3263_v58 = vsub.s32 4294967266, %v3258_v24  ;;  %v3143_v48 = vsel %vm3141_vm11, %v3142_v60, %v10807_v57 }
 0x2b9   : > { %v3400_v29 = vand.u32 8388607, %v14081_v18  ;;  %8064 = vcosq.f32 %v3069_v62  ;;  %v3144_v2 = vadd.s32 %v3143_v48, %v3139_v21  ;;  %v3293_v40 = vand.u32 2139095040, %v10831_v31 }
 0x2ba   : > { %vm3404_vm10 = vcmp.gt.s32.totalorder %v3403_v30, 0  ;;  %8066 = vsinq.f32 %v3069_v62  ;;  %v3259_v25 = vsub.s32 32, %v3258_v24  ;;  %v3264_v37 = vadd.s32 127, %v3263_v58 }
 0x2bb   : > { %v3405_v11 = vsel %vm3404_vm10, %v3403_v30, 0  ;;  %8068 = vcosq.f32 %v2966_v20  ;;  %v3243_v12 = vadd.s32 %v10717_v38, %v10726_v15  ;;  %v3145_v47 = vadd.s32 536870912, %v3144_v2  ;;  %v714_v30 = vpop.permute.xlu0 %713 }
 0x2bc   : > { %v3407_v5 = vand.u32 31, %v3405_v11  ;;  %8070 = vsinq.f32 %v2966_v20  ;;  %v10855_v57 = vsel %vm3189_vm0, %v3273_v35, %v10754_v0  ;;  %v3401_v61 = vor.u32 8388608, %v3400_v29 }
 0x2bd   : > { %14347 = vst [vmem:[#allocation102_spill] sm:$0xff] %v10855_v57  ;;  %v10858_v19 = vmul.f32 %v10378_v56, %v719_v3  ;;  %v10860_v1 = vshrl.u32 %v3145_v47, 30  ;;  %v3294_v62 = vshrl.u32 %v3293_v40, 23  ;;  %v3261_v60 = vshrl.u32 %v3243_v12, %v3259_v25 }
 0x2be   : > { %v3408_v6 = vsub.s32 32, %v3407_v5  ;;  %v3265_v38 = vshll.u32 %v3264_v37, 23  ;;  %v10863_v15 = vshrl.u32 %v3405_v11, 5  ;;  %v3410_v21 = vshll.u32 %v14171_v22, %v3407_v5  ;;  %v10870_v48 = vpop.eup %8060 }
 0x2bf   : > { %v3147_v0 = vshll.u32 %v10860_v1, 30  ;;  %v3413_v20 = vshll.u32 %v14178_v33, %v3407_v5  ;;  %v3416_v58 = vshll.u32 %v14162_v55, %v3407_v5  ;;  %14348 = vst [vmem:[#allocation103_spill] sm:$0xff] %v10870_v48  ;;  %v3419_v3 = vshll.u32 %v14163_v43, %v3407_v5 }
 0x2c0   : > { %v3411_v35 = vshrl.u32 %v14178_v33, %v3408_v6  ;;  %v3414_v29 = vshrl.u32 %v14162_v55, %v3408_v6  ;;  %v3417_v40 = vshrl.u32 %v14163_v43, %v3408_v6  ;;  %v3420_v25 = vshrl.u32 %v14164_v27, %v3408_v6  ;;  %v10876_v37 = vpop.eup %8062 }
 0x2c1   : > { %14349 = vst [vmem:[#allocation104_spill] sm:$0xff] %v10876_v37  ;;  %v10878_v11 = vsub.s32 %v3144_v2, %v3147_v0  ;;  %v10880_v47 = vshll.u32 %v3401_v61, 8  ;;  %v10883_v18 = vmul.f32 %v10378_v56, %v714_v30  ;;  %v3260_v63 = vshll.u32 %v10766_v41, %v3258_v24 }
 0x2c2   : > { %v3412_v12 = vor.u32 %v3411_v35, %v3410_v21  ;;  %v3415_v57 = vor.u32 %v3414_v29, %v3413_v20  ;;  %v3418_v52 = vor.u32 %v3417_v40, %v3416_v58  ;;  %v3421_v16 = vor.u32 %v3420_v25, %v3419_v3 }
 0x2c3   : > { %v3150_v17 = vsub.s32 0, %v10878_v11  ;;  %v3422_v51 = vshll.u32 %v14164_v27, %v3407_v5  ;;  %v3423_v42 = vshrl.u32 %v14169_v36, %v3408_v6  ;;  %v14350_v2 = vand.u32 2147483647, %v10831_v31 }
 0x2c4   : > { %v3262_v61 = vor.u32 %v3261_v60, %v3260_v63  ;;  %v3266_v21 = vor.u32 4788187, %v3265_v38  ;;  %vm3425_vm11 = vcmp.lt.s32.totalorder %v10863_v15, 1  ;;  %v7233_v56 = vadd.s32 4294967169, %v3294_v62 }
 0x2c5   : > { %v10891_v0 = vand.u32 8388607, %v14350_v2  ;;  %v7226_v41 = vmin.u32 %v3150_v17, %v10878_v11  ;;  %v3424_v24 = vor.u32 %v3423_v42, %v3422_v51  ;;  %vm3428_vm2 = vcmp.lt.s32.totalorder %v10863_v15, 4 }
 0x2c6   : > { %v3433_v30 = vsel %vm3425_vm11, %v3412_v12, %v3415_v57  ;;  %v10898_v5 = vpop.eup %8064  ;;  %v3409_v35 = vshrl.u32 %v14171_v22, %v3408_v6  ;;  %vm3427_vm7 = vcmp.lt.s32.totalorder %v10863_v15, 3  ;;  %v3430_v63 = vsel %vm3428_vm2, %v3418_v52, 2102212464 }
 0x2c7   : > { %14351 = vst [vmem:[#allocation105_spill] sm:$0xff] %v10898_v5  ;;  %v3434_v62 = vsel %vm3428_vm2, %v3421_v16, 920167782  ;;  %v10906_v60 = vpop.eup %8066  ;;  %v3152_v17 = vclz %v7226_v41  ;;  %vm3426_vm10 = vcmp.lt.s32.totalorder %v10863_v15, 2  ;;  %v3437_v51 = vsel %vm3425_vm11, %v3415_v57, %v3418_v52 }
 0x2c8   : > { %14352 = vst [vmem:[#allocation106_spill] sm:$0xff] %v10906_v60  ;;  %v3435_v42 = vsel %vm3427_vm7, %v3418_v52, %v3434_v62  ;;  %v10913_v6 = vpop.eup %8068  ;;  %v3267_v38 = vand.u32 2147483647, %v3266_v21  ;;  %v3429_v20 = vsel %vm3425_vm11, %v3409_v35, %v3412_v12  ;;  %v3438_v29 = vsel %vm3428_vm2, %v3424_v24, 1326507024  ;;  %v729_v24 = vpop.permute.xlu1 %728 }
 0x2c9   : > { %14353 = vst [vmem:[#allocation107_spill] sm:$0xff] %v10913_v6  ;;  %v3436_v58 = vsel %vm3426_vm10, %v3433_v30, %v3435_v42  ;;  %v10921_v40 = vpop.eup %8070  ;;  %v7227_v3 = vadd.s32 4294967294, %v3152_v17  ;;  %v3431_v25 = vsel %vm3427_vm7, %v3415_v57, %v3430_v63  ;;  %v3439_v52 = vsel %vm3427_vm7, %v3421_v16, %v3438_v29 }
 0x2ca   : > { %14354 = vst [vmem:[#allocation108_spill] sm:$0xff] %v10921_v40  ;;  %v3300_v2 = vadd.s32 1, %v7233_v56  ;;  %v3269_v21 = vcvt.s32.f32 %v3262_v61  ;;  %v3440_v12 = vsel %vm3426_vm10, %v3437_v51, %v3439_v52  ;;  %v3432_v16 = vsel %vm3426_vm10, %v3429_v20, %v3431_v25  ;;  %v10945_v51 = vld [vmem:[%s14143_s4] ss:$0 sm:$0xff]  ;;  %s13212_s4 = scalar_lea.vmem [#allocation2], %s7125_s3 }
 0x2cb   : > { %v10930_v41 = vmul.u32.u64.low %v10880_v47, %v3436_v58  ;;  %v10931_v30 = vmul.u32.u64.high %v10880_v47, %v3436_v58, %v10930_v41  ;;  %vm7228_vm11 = vcmp.lt.s32.totalorder %v7227_v3, 0  ;;  %v3140_v56 = vadd.s32 %v10806_v28, %v10802_v53  ;;  %v10955_v20 = vld [vmem:[%s14144_s5] ss:$0 sm:$0xff]  ;;  %s6975_s21 = sshll.u32 %s13212_s4, 4  ;;  %s13848_s21 = int_to_ptr.vmem [resolvable:$true] %s6975_s21 }
 0x2cc   : > { %v10935_v35 = vmul.u32.u64.low %v10880_v47, %v3440_v12  ;;  %v10936_v62 = vmul.u32.u64.high %v10880_v47, %v3440_v12, %v10935_v35  ;;  %vm3301_vm2 = vcmp.gt.s32.totalorder %v3300_v2, 0  ;;  %v3270_v57 = vmul.f32 %v3269_v21, %v3267_v38  ;;  %s8473_s2 = scalar_lea.vmem %s13848_s21, 4096 }
 0x2cd   : > { %v3155_v63 = vsel %vm7228_vm11, 0, %v7227_v3  ;;  %v3302_v61 = vsel %vm3301_vm2, %v3300_v2, 0  ;;  %v10948_v58 = vmul.f32 %v10945_v51, %v729_v24  ;;  %v3451_v38 = vadd.s32 1, %v10931_v30  ;;  %p8474_p11 = scmp.ne.s32.totalorder %s13848_s21, %s8473_s2 }
 0x2ce   : > { %v3156_v17 = vsub.s32 32, %v3155_v63  ;;  %v3160_v42 = vsub.s32 4294967266, %v3155_v63  ;;  %v3298_v29 = vor.u32 8388608, %v10891_v0  ;;  %v3304_v15 = vand.u32 31, %v3302_v61 }
 0x2cf   : > { %v10959_v53 = vadd.f32 %v10955_v20, %v10858_v19  ;;  %v3448_v25 = vmul.u32 %v10880_v47, %v3432_v16  ;;  %vm3450_vm7 = vc.u32 %v10936_v62, %v10930_v41  ;;  %v3271_v52 = vxor.u32 2147483648, %v3270_v57  ;;  %p8475_p12 = pnand %p8474_p11, %p8689_p5 }
 0x2d0   : > { %v3158_v28 = vshrl.u32 %v3140_v56, %v3156_v17  ;;  %v3161_v3 = vadd.s32 127, %v3160_v42  ;;  %v3157_v0 = vshll.u32 %v10878_v11, %v3155_v63  ;;  %v3452_v2 = vsel %vm3450_vm7, %v3451_v38, %v10931_v30 }
 0x2d1   : > { %14355 = vst [vmem:[#allocation109_spill] sm:$0xff] %v10959_v53  ;;  %v3305_v21 = vsub.s32 32, %v3304_v15  ;;  %v3453_v24 = vadd.s32 %v3452_v2, %v3448_v25  ;;  %v3307_v35 = vshll.u32 %v14171_v22, %v3304_v15  ;;  %v3310_v19 = vshll.u32 %v14178_v33, %v3304_v15  ;;  %p8476_p13 = pneg %p8475_p12 }
 0x2d2   : > { %v3162_v12 = vshll.u32 %v3161_v3, 23  ;;  %v3159_v5 = vor.u32 %v3158_v28, %v3157_v0  ;;  %v3303_v60 = vshrl.u32 %v3302_v61, 5  ;;  %v3313_v11 = vshll.u32 %v14162_v55, %v3304_v15  ;;  %v724_v0 = vpop.permute.xlu0 %723 }
 0x2d3   : > { %v3308_v56 = vshrl.u32 %v14178_v33, %v3305_v21  ;;  %v3311_v47 = vshrl.u32 %v14162_v55, %v3305_v21  ;;  %v3314_v16 = vshrl.u32 %v14163_v43, %v3305_v21  ;;  %v3454_v42 = vadd.s32 536870912, %v3453_v24 }
 0x2d4   : > { %v3163_v17 = vor.u32 4788187, %v3162_v12  ;;  %v14356_v30 = vand.u32 2147483647, %v10532_v8  ;;  %v14357_v63 = vmov 0  ;;  %v3316_v28 = vshll.u32 %v14163_v43, %v3304_v15 }
 0x2d5   : > { %v3309_v38 = vor.u32 %v3308_v56, %v3307_v35  ;;  %v3312_v3 = vor.u32 %v3311_v47, %v3310_v19  ;;  %v3317_v25 = vshrl.u32 %v14164_v27, %v3305_v21  ;;  %v10980_v6 = vshrl.u32 %v3454_v42, 30 }
 0x2d6   : > { %vm10974_vm10 = vcmp.le.f32.partialorder %v14356_v30, 0.7853982  ;;  %v3164_v2 = vand.u32 2147483647, %v3163_v17  ;;  %v3319_v61 = vshll.u32 %v14164_v27, %v3304_v15  ;;  %v3320_v12 = vshrl.u32 %v14169_v36, %v3305_v21 }
 0x2d7   : > { %v14358_v63 = vsel %vm10974_vm10, 4294967295, %v14357_v63  ;;  %v3166_v40 = vcvt.s32.f32 %v3159_v5  ;;  %v3315_v13 = vor.u32 %v3314_v16, %v3313_v11  ;;  %v3318_v30 = vor.u32 %v3317_v25, %v3316_v28 }
 0x2d8   : > { %14359 = vst [vmem:[#allocation110_spill] sm:$0xff] %v14358_v63  ;;  %v3602_v48 = vand.u32 2139095040, %v10959_v53  ;;  %v3272_v35 = vsel %vm3189_vm0, %v3271_v52, %v3270_v57  ;;  %v3456_v19 = vshll.u32 %v10980_v6, 30  ;;  %v3321_v56 = vor.u32 %v3320_v12, %v3319_v61 }
 0x2d9   : > { %v10990_v47 = vmul.f32 %v10945_v51, %v724_v0  ;;  %v3167_v17 = vmul.f32 %v3166_v40, %v3164_v2  ;;  %vm3322_vm2 = vcmp.lt.s32.totalorder %v3303_v60, 1  ;;  %v3338_v15 = vshll.u32 %v3298_v29, 8 }
 0x2da   : > { %v10993_v16 = vsub.s32 %v3453_v24, %v3456_v19  ;;  %vm3324_vm7 = vcmp.lt.s32.totalorder %v3303_v60, 3  ;;  %vm3325_vm4 = vcmp.lt.s32.totalorder %v3303_v60, 4  ;;  %v3330_v42 = vsel %vm3322_vm2, %v3309_v38, %v3312_v3 }
 0x2db   : > { %v14360_v57 = vand.u32 2147483647, %v10639_v7  ;;  %v14361_v52 = vmov 0  ;;  %v3331_v11 = vsel %vm3325_vm4, %v3318_v30, 920167782  ;;  %v3334_v28 = vsel %vm3322_vm2, %v3312_v3, %v3315_v13 }
 0x2dc   : > { %v3335_v40 = vsel %vm3325_vm4, %v3321_v56, 1326507024  ;;  %v3603_v25 = vshrl.u32 %v3602_v48, 23  ;;  %v3459_v29 = vsub.s32 0, %v10993_v16  ;;  %vm3323_vm11 = vcmp.lt.s32.totalorder %v3303_v60, 2 }
 0x2dd   : > { %vm10998_vm0 = vcmp.le.f32.partialorder %v14360_v57, 0.7853982  ;;  %v3327_v24 = vsel %vm3325_vm4, %v3315_v13, 2102212464  ;;  %v3332_v0 = vsel %vm3324_vm7, %v3315_v13, %v3331_v11  ;;  %v3168_v2 = vxor.u32 2147483648, %v3167_v17 }
 0x2de   : > { %v14362_v52 = vsel %vm10998_vm0, 4294967295, %v14361_v52  ;;  %v3306_v61 = vshrl.u32 %v14171_v22, %v3305_v21  ;;  %v3333_v12 = vsel %vm3323_vm11, %v3330_v42, %v3332_v0  ;;  %v3336_v19 = vsel %vm3324_vm7, %v3318_v30, %v3335_v40 }
 0x2df   : > { %v3275_v57 = vsel %vm10974_vm10, %v10532_v8, %v3272_v35  ;;  %v7238_v56 = vmin.u32 %v3459_v29, %v10993_v16  ;;  %v3337_v48 = vsel %vm3323_vm11, %v3334_v28, %v3336_v19  ;;  %v7245_v5 = vadd.s32 4294967169, %v3603_v25 }
 0x2e0   : > { %v3326_v37 = vsel %vm3322_vm2, %v3306_v61, %v3309_v38  ;;  %v3328_v13 = vsel %vm3324_vm7, %v3312_v3, %v3327_v24  ;;  %v11015_v11 = vmul.u32.u64.low %v3338_v15, %v3337_v48  ;;  %v11016_v46 = vmul.u32.u64.high %v3338_v15, %v3337_v48, %v11015_v11 }
 0x2e1   : > { %v3461_v21 = vclz %v7238_v56  ;;  %v11018_v42 = vmul.u32.u64.low %v3338_v15, %v3333_v12  ;;  %v11019_v0 = vmul.u32.u64.high %v3338_v15, %v3333_v12, %v11018_v42  ;;  %v3609_v30 = vadd.s32 1, %v7245_v5  ;;  %v7906_v11 = vld [vmem:[%s13938_s7 + $0x20] ss:$12 sps:$4 sm:$0xff]  }
 0x2e2   : > { %8072 = vcosq.f32 %v3275_v57  ;;  %vm14363_vm4 = vcmp.lt.s32.totalorder %v10639_v7, 0  ;;  %v14364_v40 = vand.u32 2147483647, %v10959_v53  ;;  %v3329_v25 = vsel %vm3323_vm11, %v3326_v37, %v3328_v13  ;;  %7566 = vmatprep.subr.bf16.mxu1 %v7906_v11 }
 0x2e3   : > { %v3169_v35 = vsel %vm14363_vm4, %v3168_v2, %v3167_v17  ;;  %8074 = vsinq.f32 %v3275_v57  ;;  %v7239_v3 = vadd.s32 4294967294, %v3461_v21  ;;  %vm3610_vm2 = vcmp.gt.s32.totalorder %v3609_v30, 0  ;;  %v7903_v17 = vld [vmem:[%s13938_s7 + $0x1c] ss:$12 sps:$4 sm:$0xff]   ;;  %7567 = vmatpush3.bf16.msra.mxu1 %v7906_v11 }
 0x2e4   : > { %v3606_v38 = vand.u32 8388607, %v14364_v40  ;;  %v3449_v29 = vadd.s32 %v10930_v41, %v10936_v62  ;;  %vm3347_vm7 = vc.u32 %v11016_v46, %v11018_v42  ;;  %v3611_v5 = vsel %vm3610_vm2, %v3609_v30, 0  ;;  %v7905_v41 = vld [vmem:[%s13938_s7 + $0x18] ss:$12 sps:$4 sm:$0xff]   ;;  %4303 = vmatprep.subr.bf16.mxu0 %v7903_v17 }
 0x2e5   : > { %v11039_v2 = vsel %vm10998_vm0, %v10639_v7, %v3169_v35  ;;  %vm7240_vm11 = vcmp.lt.s32.totalorder %v7239_v3, 0  ;;  %v3348_v37 = vadd.s32 1, %v11019_v0  ;;  %v3613_v60 = vand.u32 31, %v3611_v5  ;;  %4304 = vmatpush1.bf16.msra.mxu0 %v7905_v41 }
 0x2e6   : > { %v3464_v62 = vsel %vm7240_vm11, 0, %v7239_v3  ;;  %v3345_v61 = vmul.u32 %v3338_v15, %v3329_v25  ;;  %v3607_v12 = vor.u32 8388608, %v3606_v38  ;;  %v11047_v19 = vadd.f32 %v10955_v20, %v10883_v18  ;;  %v7907_v18 = vld [vmem:[%s13938_s7 + $0x4] ss:$12 sps:$4 sm:$0xff]   ;;  %v7909_v25 = vld [vmem:[%s13938_s7] ss:$12 sps:$4 sm:$0xff]  }
 0x2e7   : > { %v3465_v57 = vsub.s32 32, %v3464_v62  ;;  %v3469_v56 = vsub.s32 4294967266, %v3464_v62  ;;  %v3349_v48 = vsel %vm3347_vm7, %v3348_v37, %v11019_v0  ;;  %v11050_v13 = vshrl.u32 %v3611_v5, 5  ;;  %4305 = vmatprep.subr.bf16.mxu0 %v7907_v18 }
 0x2e8   : > { %v3466_v21 = vshll.u32 %v10993_v16, %v3464_v62  ;;  %v3350_v15 = vadd.s32 %v3349_v48, %v3345_v61  ;;  %v3614_v30 = vsub.s32 32, %v3613_v60  ;;  %v3616_v35 = vshll.u32 %v14171_v22, %v3613_v60  ;;  %v7910_v16 = vld [vmem:[%s13938_s7 + $0x8] ss:$12 sps:$4 sm:$0xff]  }
 0x2e9   : > { %v3467_v40 = vshrl.u32 %v3449_v29, %v3465_v57  ;;  %v3470_v38 = vadd.s32 127, %v3469_v56  ;;  %v3619_v0 = vshll.u32 %v14178_v33, %v3613_v60  ;;  %v3622_v3 = vshll.u32 %v14162_v55, %v3613_v60  ;;  %4306 = vmatpush1.bf16.msra.mxu0 %v7909_v25  ;;  %7568 = vmatprep.subr.bf16.mxu1 %v7910_v16 }
 0x2ea   : > { %v3351_v5 = vadd.s32 536870912, %v3350_v15  ;;  %v3617_v17 = vshrl.u32 %v14178_v33, %v3614_v30  ;;  %v3620_v37 = vshrl.u32 %v14162_v55, %v3614_v30  ;;  %v3625_v29 = vshll.u32 %v14163_v43, %v3613_v60  ;;  %7569 = vmatpush3.bf16.msra.mxu1 %v7910_v16 }
 0x2eb   : > { %v3468_v41 = vor.u32 %v3467_v40, %v3466_v21  ;;  %v3471_v62 = vshll.u32 %v3470_v38, 23  ;;  %v3623_v61 = vshrl.u32 %v14163_v43, %v3614_v30  ;;  %v3626_v57 = vshrl.u32 %v14164_v27, %v3614_v30 }
 0x2ec   : > { %v11074_v56 = vshrl.u32 %v3351_v5, 30  ;;  %v3618_v48 = vor.u32 %v3617_v17, %v3616_v35  ;;  %v11076_v24 = vshll.u32 %v3607_v12, 8  ;;  %v3499_v28 = vand.u32 2139095040, %v11047_v19 }
 0x2ed   : > { %v3472_v8 = vor.u32 4788187, %v3471_v62  ;;  %v3621_v11 = vor.u32 %v3620_v37, %v3619_v0  ;;  %v3624_v18 = vor.u32 %v3623_v61, %v3622_v3  ;;  %v3627_v21 = vor.u32 %v3626_v57, %v3625_v29 }
 0x2ee   : > { %v3353_v40 = vshll.u32 %v11074_v56, 30  ;;  %v3615_v38 = vshrl.u32 %v14171_v22, %v3614_v30  ;;  %v3628_v25 = vshll.u32 %v14164_v27, %v3613_v60  ;;  %v3629_v63 = vshrl.u32 %v14169_v36, %v3614_v30 }
 0x2ef   : > { %v11083_v5 = vpop.eup %8072  ;;  %v3473_v35 = vand.u32 2147483647, %v3472_v8  ;;  %v3475_v12 = vcvt.s32.f32 %v3468_v41  ;;  %vm3631_vm2 = vcmp.lt.s32.totalorder %v11050_v13, 1  ;;  %vm3632_vm7 = vcmp.lt.s32.totalorder %v11050_v13, 2 }
 0x2f0   : > { %14365 = vst [vmem:[#allocation111_spill] sm:$0xff] %v11083_v5  ;;  %v11087_v0 = vpop.eup %8074  ;;  %v11089_v3 = vsub.s32 %v3350_v15, %v3353_v40  ;;  %v3630_v17 = vor.u32 %v3629_v63, %v3628_v25  ;;  %vm3633_vm11 = vcmp.lt.s32.totalorder %v11050_v13, 3  ;;  %vm3634_vm4 = vcmp.lt.s32.totalorder %v11050_v13, 4 }
 0x2f1   : > { %14366 = vst [vmem:[#allocation112_spill] sm:$0xff] %v11087_v0  ;;  %v14367_v60 = vand.u32 2147483647, %v10761_v54  ;;  %v14368_v30 = vmov 0  ;;  %v3476_v8 = vmul.f32 %v3475_v12, %v3473_v35  ;;  %v3636_v16 = vsel %vm3634_vm4, %v3624_v18, 2102212464 }
 0x2f2   : > { %v3639_v37 = vsel %vm3631_vm2, %v3618_v48, %v3621_v11  ;;  %v3640_v29 = vsel %vm3634_vm4, %v3627_v21, 920167782  ;;  %v3356_v41 = vsub.s32 0, %v11089_v3  ;;  %v3635_v62 = vsel %vm3631_vm2, %v3615_v38, %v3618_v48 }
 0x2f3   : > { %vm11095_vm10 = vcmp.le.f32.partialorder %v14367_v60, 0.7853982  ;;  %v3641_v63 = vsel %vm3633_vm11, %v3624_v18, %v3640_v29  ;;  %v3643_v15 = vsel %vm3631_vm2, %v3621_v11, %v3624_v18  ;;  %v3477_v61 = vxor.u32 2147483648, %v3476_v8  ;;  %v739_v29 = vpop.permute.xlu1 %738 }
 0x2f4   : > { %v14369_v30 = vsel %vm11095_vm10, 4294967295, %v14368_v30  ;;  %v3637_v57 = vsel %vm3633_vm11, %v3621_v11, %v3636_v16  ;;  %v3642_v40 = vsel %vm3632_vm7, %v3639_v37, %v3641_v63  ;;  %v3644_v25 = vsel %vm3634_vm4, %v3630_v17, 1326507024 }
 0x2f5   : > { %14370 = vst [vmem:[#allocation113_spill] sm:$0xff] %v14369_v30  ;;  %v7234_v35 = vmin.u32 %v3356_v41, %v11089_v3  ;;  %v3645_v12 = vsel %vm3633_vm11, %v3627_v21, %v3644_v25  ;;  %v11110_v60 = vmul.u32.u64.low %v11076_v24, %v3642_v40  ;;  %v11111_v48 = vmul.u32.u64.high %v11076_v24, %v3642_v40, %v11110_v60  ;;  %v734_v41 = vpop.permute.xlu0 %733 }
 0x2f6   : > { %v14371_v18 = vsub.s32 4, %v10860_v1  ;;  %vm14372_vm2 = vcmp.lt.s32.totalorder %v10639_v7, 0  ;;  %8076 = vcosq.f32 %v11039_v2  ;;  %v14373_v11 = vsub.s32 4, %v10980_v6 }
 0x2f7   : > { %vm14374_vm4 = vcmp.lt.s32.totalorder %v10761_v54, 0  ;;  %v3646_v21 = vsel %vm3632_vm7, %v3643_v15, %v3645_v12  ;;  %8078 = vsinq.f32 %v11039_v2  ;;  %vm14103_vm11 = vcmp.lt.s32.totalorder %v10831_v31, 0 }
 0x2f8   : > { %v11118_v38 = vsel %vm14372_vm2, %v14371_v18, %v10860_v1  ;;  %v11126_v17 = vsel %vm14374_vm4, %v14373_v11, %v10980_v6  ;;  %v3358_v16 = vclz %v7234_v35  ;;  %vm14376_vm2 = vmmov %vm14374_vm4  ;;  %v3638_v6 = vsel %vm3632_vm7, %v3635_v62, %v3637_v57 }
 0x2f9   : > { %14375 = vst [vmem:[#allocation114_spill] sm:$0xff] %v11126_v17  ;;  %v11133_v1 = vmul.u32.u64.low %v11076_v24, %v3646_v21  ;;  %v11134_v37 = vmul.u32.u64.high %v11076_v24, %v3646_v21, %v11133_v1  ;;  %v3478_v63 = vsel %vm14376_vm2, %v3477_v61, %v3476_v8  ;;  %v3500_v40 = vshrl.u32 %v3499_v28, 23 }
 0x2fa   : > { %v11142_v15 = vadd.f32 %v10955_v20, %v10948_v58  ;;  %v7235_v2 = vadd.s32 4294967294, %v3358_v16  ;;  %v3657_v25 = vadd.s32 1, %v11111_v48  ;;  %v14099_v35 = vand.u32 2147483647, %v11047_v19 }
 0x2fb   : > { %v11148_v12 = vadd.f32 %v10955_v20, %v10990_v47  ;;  %v3346_v8 = vadd.s32 %v11018_v42, %v11016_v46  ;;  %v7241_v61 = vadd.s32 4294967169, %v3500_v40  ;;  %v11153_v13 = vmul.f32 %v10945_v51, %v739_v29 }
 0x2fc   : > { %14377 = vst [vmem:[#allocation115_spill] sm:$0xff] %v11142_v15  ;;  %v11156_v28 = vmul.f32 %v10945_v51, %v734_v41  ;;  %v3481_v58 = vsel %vm11095_vm10, %v10761_v54, %v3478_v63  ;;  %vm7236_vm7 = vcmp.lt.s32.totalorder %v7235_v2, 0  ;;  %v3654_v62 = vmul.u32 %v11076_v24, %v3638_v6 }
 0x2fd   : > { %vm3656_vm4 = vc.u32 %v11134_v37, %v11110_v60  ;;  %v3361_v47 = vsel %vm7236_vm7, 0, %v7235_v2  ;;  %v3376_v57 = vsub.s32 4, %v11074_v56  ;;  %v3506_v42 = vadd.s32 1, %v7241_v61 }
 0x2fe   : > { %v3658_v46 = vsel %vm3656_vm4, %v3657_v25, %v11111_v48  ;;  %v3362_v18 = vsub.s32 32, %v3361_v47  ;;  %v3366_v11 = vsub.s32 4294967266, %v3361_v47  ;;  %v11167_v51 = vand.u32 8388607, %v14099_v35 }
 0x2ff   : > { %v3659_v21 = vadd.s32 %v3658_v46, %v3654_v62  ;;  %8080 = vcosq.f32 %v3481_v58  ;;  %v3363_v16 = vshll.u32 %v11089_v3, %v3361_v47  ;;  %vm3507_vm2 = vcmp.gt.s32.totalorder %v3506_v42, 0 }
 0x300   : > { %v3808_v24 = vand.u32 2139095040, %v11142_v15  ;;  %v3364_v1 = vshrl.u32 %v3346_v8, %v3362_v18  ;;  %v3367_v29 = vadd.s32 127, %v3366_v11  ;;  %v3508_v63 = vsel %vm3507_vm2, %v3506_v42, 0 }
 0x301   : > { %v3660_v41 = vadd.s32 536870912, %v3659_v21  ;;  %8082 = vsinq.f32 %v3481_v58  ;;  %v11174_v48 = vsel %vm14103_vm11, %v3376_v57, %v11074_v56  ;;  %v3510_v6 = vand.u32 31, %v3508_v63 }
 0x302   : > { %14378 = vst [vmem:[#allocation116_spill] sm:$0xff] %v11174_v48  ;;  %v3365_v2 = vor.u32 %v3364_v1, %v3363_v16  ;;  %v3368_v25 = vshll.u32 %v3367_v29, 23  ;;  %v3504_v3 = vor.u32 8388608, %v11167_v51  ;;  %v11181_v8 = vadd.s32 %v11110_v60, %v11134_v37 }
 0x303   : > { %v11177_v61 = vshrl.u32 %v3660_v41, 30  ;;  %v11183_v62 = vshrl.u32 %v3508_v63, 5  ;;  %v3511_v58 = vsub.s32 32, %v3510_v6  ;;  %v3809_v47 = vshrl.u32 %v3808_v24, 23  ;;  %v11185_v46 = vpop.eup %8076 }
 0x304   : > { %14379 = vst [vmem:[#allocation117_spill] sm:$0xff] %v11185_v46  ;;  %v3369_v56 = vor.u32 4788187, %v3368_v25  ;;  %v3513_v42 = vshll.u32 %v14171_v22, %v3510_v6  ;;  %v3516_v18 = vshll.u32 %v14178_v33, %v3510_v6  ;;  %v11190_v11 = vpop.eup %8078  ;;  %v3519_v37 = vshll.u32 %v14162_v55, %v3510_v6 }
 0x305   : > { %v3662_v57 = vshll.u32 %v11177_v61, 30  ;;  %v3514_v51 = vshrl.u32 %v14178_v33, %v3511_v58  ;;  %v3517_v60 = vshrl.u32 %v14162_v55, %v3511_v58  ;;  %v3520_v16 = vshrl.u32 %v14163_v43, %v3511_v58 }
 0x306   : > { %v3370_v24 = vand.u32 2147483647, %v3369_v56  ;;  %v3372_v1 = vcvt.s32.f32 %v3365_v2  ;;  %v3522_v41 = vshll.u32 %v14163_v43, %v3510_v6  ;;  %v3523_v40 = vshrl.u32 %v14164_v27, %v3511_v58 }
 0x307   : > { %v11196_v29 = vsub.s32 %v3659_v21, %v3662_v57  ;;  %v3515_v63 = vor.u32 %v3514_v51, %v3513_v42  ;;  %v3518_v25 = vor.u32 %v3517_v60, %v3516_v18  ;;  %v3521_v35 = vor.u32 %v3520_v16, %v3519_v37 }
 0x308   : > { %v14380_v54 = vand.u32 2147483647, %v10831_v31  ;;  %v14381_v30 = vmov 0  ;;  %v3373_v17 = vmul.f32 %v3372_v1, %v3370_v24  ;;  %v3525_v2 = vshll.u32 %v14164_v27, %v3510_v6 }
 0x309   : > { %v3665_v48 = vsub.s32 0, %v11196_v29  ;;  %v3526_v21 = vshrl.u32 %v14169_v36, %v3511_v58  ;;  %v3524_v56 = vor.u32 %v3523_v40, %v3522_v41  ;;  %vm3528_vm4 = vcmp.lt.s32.totalorder %v11183_v62, 1 }
 0x30a   : > { %vm11202_vm7 = vcmp.le.f32.partialorder %v14380_v54, 0.7853982  ;;  %v7253_v57 = vadd.s32 4294967169, %v3809_v47  ;;  %v14384_v42 = vand.u32 2147483647, %v11142_v15  ;;  %v3374_v51 = vxor.u32 2147483648, %v3373_v17 }
 0x30b   : > { %v14382_v30 = vsel %vm11202_vm7, 4294967295, %v14381_v30  ;;  %v7246_v54 = vmin.u32 %v3665_v48, %v11196_v29  ;;  %v3527_v60 = vor.u32 %v3526_v21, %v3525_v2  ;;  %vm3531_vm2 = vcmp.lt.s32.totalorder %v11183_v62, 4 }
 0x30c   : > { %14383 = vst [vmem:[#allocation118_spill] sm:$0xff] %v14382_v30  ;;  %v3812_v18 = vand.u32 8388607, %v14384_v42  ;;  %v3512_v37 = vshrl.u32 %v14171_v22, %v3511_v58  ;;  %vm3530_vm11 = vcmp.lt.s32.totalorder %v11183_v62, 3  ;;  %v3536_v6 = vsel %vm3528_vm4, %v3515_v63, %v3518_v25  ;;  %v11220_v47 = vpop.eup %8080 }
 0x30d   : > { %v3537_v40 = vsel %vm3531_vm2, %v3524_v56, 920167782  ;;  %14385 = vst [vmem:[#allocation119_spill] sm:$0xff] %v11220_v47  ;;  %v3667_v16 = vclz %v7246_v54  ;;  %vm14107_vm0 = vcmp.lt.s32.totalorder %v11183_v62, 2  ;;  %v3533_v48 = vsel %vm3531_vm2, %v3521_v35, 2102212464 }
 0x30e   : > { %v3538_v58 = vsel %vm3530_vm11, %v3521_v35, %v3537_v40  ;;  %v3540_v1 = vsel %vm3528_vm4, %v3518_v25, %v3521_v35  ;;  %v3544_v41 = vshll.u32 %v3504_v3, 8  ;;  %v3813_v2 = vor.u32 8388608, %v3812_v18  ;;  %v11232_v21 = vpop.eup %8082 }
 0x30f   : > { %v3539_v24 = vsel %vm14107_vm0, %v3536_v6, %v3538_v58  ;;  %14386 = vst [vmem:[#allocation120_spill] sm:$0xff] %v11232_v21  ;;  %vm14387_vm10 = vcmp.lt.s32.totalorder %v10831_v31, 0  ;;  %v7247_v54 = vadd.s32 4294967294, %v3667_v16  ;;  %v3532_v47 = vsel %vm3528_vm4, %v3512_v37, %v3515_v63 }
 0x310   : > { %v3375_v42 = vsel %vm14387_vm10, %v3374_v51, %v3373_v17  ;;  %v3541_v40 = vsel %vm3531_vm2, %v3527_v60, 1326507024  ;;  %v3534_v6 = vsel %vm3530_vm11, %v3518_v25, %v3533_v48  ;;  %v3685_v17 = vsub.s32 4, %v11177_v61 }
 0x311   : > { %v3542_v35 = vsel %vm3530_vm11, %v3524_v56, %v3541_v40  ;;  %v11244_v3 = vmul.u32.u64.low %v3544_v41, %v3539_v24  ;;  %v11245_v18 = vmul.u32.u64.high %v3544_v41, %v3539_v24, %v11244_v3  ;;  %vm7248_vm0 = vcmp.lt.s32.totalorder %v7247_v54, 0  ;;  %v11262_v56 = vld [vmem:[%s14389_s6 + $0x20] ss:$12 sps:$4 sm:$0xff]  }
 0x312   : > { %vm14388_vm10 = vcmp.lt.s32.totalorder %v11183_v62, 2  ;;  %v3815_v63 = vadd.s32 1, %v7253_v57  ;;  %v11254_v60 = vsel %vm11202_vm7, %v10831_v31, %v3375_v42  ;;  %v3670_v25 = vsel %vm7248_vm0, 0, %v7247_v54  ;;  %7602 = vmatprep.subr.bf16.mxu0 %v11262_v56 }
 0x313   : > { %v3543_v51 = vsel %vm14388_vm10, %v3540_v1, %v3542_v35  ;;  %v3671_v48 = vsub.s32 32, %v3670_v25  ;;  %v3675_v58 = vsub.s32 4294967266, %v3670_v25  ;;  %vm14390_vm11 = vmmov %vm14388_vm10  ;;  %v3554_v57 = vadd.s32 1, %v11245_v18 }
 0x314   : > { %v11256_v37 = vmul.u32.u64.low %v3544_v41, %v3543_v51  ;;  %v11257_v16 = vmul.u32.u64.high %v3544_v41, %v3543_v51, %v11256_v37  ;;  %v3535_v24 = vsel %vm14390_vm11, %v3532_v47, %v3534_v6  ;;  %vm3816_vm4 = vcmp.gt.s32.totalorder %v3815_v63, 0 }
 0x315   : > { %v3817_v1 = vsel %vm3816_vm4, %v3815_v63, 0  ;;  %v11267_v42 = vshll.u32 %v3813_v2, 8  ;;  %v3672_v40 = vshll.u32 %v11196_v29, %v3670_v25  ;;  %v3673_v35 = vshrl.u32 %v11181_v8, %v3671_v48 }
 0x316   : > { %v3676_v51 = vadd.s32 127, %v3675_v58  ;;  %v3819_v37 = vand.u32 31, %v3817_v1  ;;  %8084 = vcosq.f32 %v11254_v60  ;;  %vm14391_vm0 = vcmp.lt.s32.totalorder %v10959_v53, 0 }
 0x317   : > { %v11277_v62 = vsel %vm14391_vm0, %v3685_v17, %v11177_v61  ;;  %v3551_v47 = vmul.u32 %v3544_v41, %v3535_v24  ;;  %vm3553_vm2 = vc.u32 %v11257_v16, %v11244_v3  ;;  %v3674_v2 = vor.u32 %v3673_v35, %v3672_v40 }
 0x318   : > { %14392 = vst [vmem:[#allocation121_spill] sm:$0xff] %v11277_v62  ;;  %v3677_v6 = vshll.u32 %v3676_v51, 23  ;;  %v3555_v63 = vsel %vm3553_vm2, %v3554_v57, %v11245_v18  ;;  %v3820_v29 = vsub.s32 32, %v3819_v37  ;;  %v3818_v8 = vshrl.u32 %v3817_v1, 5 }
 0x319   : > { %v3556_v25 = vadd.s32 %v3555_v63, %v3551_v47  ;;  %v3822_v48 = vshll.u32 %v14171_v22, %v3819_v37  ;;  %v3705_v58 = vand.u32 2139095040, %v11148_v12  ;;  %v3825_v61 = vshll.u32 %v14178_v33, %v3819_v37 }
 0x31a   : > { %v3678_v54 = vor.u32 4788187, %v3677_v6  ;;  %v3823_v21 = vshrl.u32 %v14178_v33, %v3820_v29  ;;  %v3828_v41 = vshll.u32 %v14162_v55, %v3819_v37  ;;  %v3681_v17 = vcvt.s32.f32 %v3674_v2 }
 0x31b   : > { %v3557_v24 = vadd.s32 536870912, %v3556_v25  ;;  %v3826_v40 = vshrl.u32 %v14162_v55, %v3820_v29  ;;  %v3829_v18 = vshrl.u32 %v14163_v43, %v3820_v29  ;;  %v3831_v1 = vshll.u32 %v14163_v43, %v3819_v37 }
 0x31c   : > { %v3679_v57 = vand.u32 2147483647, %v3678_v54  ;;  %v3824_v35 = vor.u32 %v3823_v21, %v3822_v48  ;;  %v3832_v51 = vshrl.u32 %v14164_v27, %v3820_v29  ;;  %v14393_v47 = vand.u32 2147483647, %v10959_v53 }
 0x31d   : > { %v14394_v6 = vmov 0  ;;  %v11297_v63 = vshrl.u32 %v3557_v24, 30  ;;  %v3827_v2 = vor.u32 %v3826_v40, %v3825_v61  ;;  %v3830_v62 = vor.u32 %v3829_v18, %v3828_v41 }
 0x31e   : > { %vm11293_vm10 = vcmp.le.f32.partialorder %v14393_v47, 0.7853982  ;;  %v3835_v31 = vshrl.u32 %v14169_v36, %v3820_v29  ;;  %v3682_v30 = vmul.f32 %v3681_v17, %v3679_v57  ;;  %v3833_v5 = vor.u32 %v3832_v51, %v3831_v1 }
 0x31f   : > { %v14395_v6 = vsel %vm11293_vm10, 4294967295, %v14394_v6  ;;  %v3834_v21 = vshll.u32 %v14164_v27, %v3819_v37  ;;  %v3706_v54 = vshrl.u32 %v3705_v58, 23  ;;  %v3559_v48 = vshll.u32 %v11297_v63, 30 }
 0x320   : > { %14396 = vst [vmem:[#allocation122_spill] sm:$0xff] %v14395_v6  ;;  %v3821_v0 = vshrl.u32 %v14171_v22, %v3820_v29  ;;  %vm3837_vm11 = vcmp.lt.s32.totalorder %v3818_v8, 1  ;;  %v14397_v47 = vand.u32 2147483647, %v11148_v12  ;;  %v3683_v46 = vxor.u32 2147483648, %v3682_v30 }
 0x321   : > { %v3836_v24 = vor.u32 %v3835_v31, %v3834_v21  ;;  %vm3840_vm4 = vcmp.lt.s32.totalorder %v3818_v8, 4  ;;  %v3845_v61 = vsel %vm3837_vm11, %v3824_v35, %v3827_v2  ;;  %v11306_v41 = vsub.s32 %v3556_v25, %v3559_v48 }
 0x322   : > { %v3709_v7 = vand.u32 8388607, %v14397_v47  ;;  %vm3839_vm0 = vcmp.lt.s32.totalorder %v3818_v8, 3  ;;  %v3842_v17 = vsel %vm3840_vm4, %v3830_v62, 2102212464  ;;  %vm3838_vm2 = vcmp.lt.s32.totalorder %v3818_v8, 2 }
 0x323   : > { %v3846_v37 = vsel %vm3840_vm4, %v3833_v5, 920167782  ;;  %v3841_v58 = vsel %vm3837_vm11, %v3821_v0, %v3824_v35  ;;  %v7249_v40 = vadd.s32 4294967169, %v3706_v54  ;;  %vm14398_vm7 = vcmp.lt.s32.totalorder %v10959_v53, 0  ;;  %v11317_v1 = vpop.eup %8084 }
 0x324   : > { %v3847_v29 = vsel %vm3839_vm0, %v3830_v62, %v3846_v37  ;;  %v3684_v18 = vsel %vm14398_vm7, %v3683_v46, %v3682_v30  ;;  %v3562_v31 = vsub.s32 0, %v11306_v41  ;;  %v3849_v25 = vsel %vm3837_vm11, %v3827_v2, %v3830_v62 }
 0x325   : > { %v3848_v57 = vsel %vm3838_vm2, %v3845_v61, %v3847_v29  ;;  %v3843_v51 = vsel %vm3839_vm0, %v3827_v2, %v3842_v17  ;;  %v3850_v21 = vsel %vm3840_vm4, %v3836_v24, 1326507024  ;;  %8086 = vsinq.f32 %v11254_v60 }
 0x326   : > { %v11322_v0 = vmul.u32.u64.low %v11267_v42, %v3848_v57  ;;  %v11323_v35 = vmul.u32.u64.high %v11267_v42, %v3848_v57, %v11322_v0  ;;  %v7242_v30 = vmin.u32 %v3562_v31, %v11306_v41  ;;  %v3851_v46 = vsel %vm3839_vm0, %v3833_v5, %v3850_v21 }
 0x327   : > { %v3710_v54 = vor.u32 8388608, %v3709_v7  ;;  %v11332_v62 = vsel %vm11293_vm10, %v10959_v53, %v3684_v18  ;;  %v3852_v2 = vsel %vm3838_vm2, %v3849_v25, %v3851_v46  ;;  %v3712_v48 = vadd.s32 1, %v7249_v40 }
 0x328   : > { %v11337_v47 = vadd.f32 %v10955_v20, %v11153_v13  ;;  %v3564_v24 = vclz %v7242_v30  ;;  %v3844_v60 = vsel %vm3838_vm2, %v3841_v58, %v3843_v51  ;;  %v3552_v7 = vadd.s32 %v11244_v3, %v11257_v16 }
 0x329   : > { %v11341_v61 = vmul.u32.u64.low %v11267_v42, %v3852_v2  ;;  %v11342_v17 = vmul.u32.u64.high %v11267_v42, %v3852_v2, %v11341_v61  ;;  %v3863_v5 = vadd.s32 1, %v11323_v35  ;;  %vm3713_vm7 = vcmp.gt.s32.totalorder %v3712_v48, 0 }
 0x32a   : > { %v14116_v37 = vand.u32 2147483647, %v11337_v47  ;;  %v7243_v29 = vadd.s32 4294967294, %v3564_v24  ;;  %v3714_v13 = vsel %vm3713_vm7, %v3712_v48, 0  ;;  %v4014_v18 = vand.u32 2139095040, %v11337_v47 }
 0x32b   : > { %8088 = vcosq.f32 %v11332_v62  ;;  %v3860_v8 = vmul.u32 %v11267_v42, %v3844_v60  ;;  %v3716_v58 = vand.u32 31, %v3714_v13  ;;  %v11352_v31 = vshll.u32 %v3710_v54, 8 }
 0x32c   : > { %vm7244_vm11 = vcmp.lt.s32.totalorder %v7243_v29, 0  ;;  %vm3862_vm4 = vc.u32 %v11342_v17, %v11322_v0  ;;  %v11356_v3 = vshrl.u32 %v3714_v13, 5  ;;  %v11360_v16 = vadd.f32 %v10955_v20, %v11156_v28 }
 0x32d   : > { %v3567_v57 = vsel %vm7244_vm11, 0, %v7243_v29  ;;  %v3864_v25 = vsel %vm3862_vm4, %v3863_v5, %v11323_v35  ;;  %v3717_v51 = vsub.s32 32, %v3716_v58  ;;  %v11365_v42 = vand.u32 8388607, %v14116_v37 }
 0x32e   : > { %v3568_v21 = vsub.s32 32, %v3567_v57  ;;  %v3572_v30 = vsub.s32 4294967266, %v3567_v57  ;;  %v3865_v46 = vadd.s32 %v3864_v25, %v3860_v8  ;;  %v4015_v54 = vshrl.u32 %v4014_v18, 23 }
 0x32f   : > { %v3719_v2 = vshll.u32 %v14171_v22, %v3716_v58  ;;  %v3720_v48 = vshrl.u32 %v14178_v33, %v3717_v51  ;;  %v3722_v24 = vshll.u32 %v14178_v33, %v3716_v58  ;;  %v3723_v20 = vshrl.u32 %v14162_v55, %v3717_v51 }
 0x330   : > { %v3569_v28 = vshll.u32 %v11306_v41, %v3567_v57  ;;  %v3570_v35 = vshrl.u32 %v3552_v7, %v3568_v21  ;;  %v3573_v60 = vadd.s32 127, %v3572_v30  ;;  %v3866_v61 = vadd.s32 536870912, %v3865_v46 }
 0x331   : > { %v3721_v5 = vor.u32 %v3720_v48, %v3719_v2  ;;  %v3724_v29 = vor.u32 %v3723_v20, %v3722_v24  ;;  %v3725_v13 = vshll.u32 %v14162_v55, %v3716_v58  ;;  %v3726_v8 = vshrl.u32 %v14163_v43, %v3717_v51 }
 0x332   : > { %v3571_v18 = vor.u32 %v3570_v35, %v3569_v28  ;;  %v3574_v25 = vshll.u32 %v3573_v60, 23  ;;  %v3867_v37 = vshrl.u32 %v3866_v61, 30  ;;  %v3729_v40 = vshrl.u32 %v14164_v27, %v3717_v51  ;;  %v11375_v53 = vpop.eup %8086 }
 0x333   : > { %v3727_v6 = vor.u32 %v3726_v8, %v3725_v13  ;;  %v3728_v41 = vshll.u32 %v14163_v43, %v3716_v58  ;;  %v3731_v7 = vshll.u32 %v14164_v27, %v3716_v58  ;;  %v3732_v57 = vshrl.u32 %v14169_v36, %v3717_v51 }
 0x334   : > { %v14399_v21 = vand.u32 2147483647, %v11047_v19  ;;  %v14400_v30 = vmov 0  ;;  %v3575_v2 = vor.u32 4788187, %v3574_v25  ;;  %v3868_v48 = vshll.u32 %v3867_v37, 30 }
 0x335   : > { %v3718_v24 = vshrl.u32 %v14171_v22, %v3717_v51  ;;  %vm3734_vm7 = vcmp.lt.s32.totalorder %v11356_v3, 1  ;;  %v3578_v20 = vcvt.s32.f32 %v3571_v18  ;;  %v3730_v28 = vor.u32 %v3729_v40, %v3728_v41 }
 0x336   : > { %vm11383_vm2 = vcmp.le.f32.partialorder %v14399_v21, 0.7853982  ;;  %v3733_v35 = vor.u32 %v3732_v57, %v3731_v7  ;;  %vm3735_vm11 = vcmp.lt.s32.totalorder %v11356_v3, 2  ;;  %v3576_v58 = vand.u32 2147483647, %v3575_v2 }
 0x337   : > { %v14401_v30 = vsel %vm11383_vm2, 4294967295, %v14400_v30  ;;  %vm14121_vm4 = vcmp.lt.s32.totalorder %v11142_v15, 0  ;;  %v11391_v60 = vsub.s32 %v3865_v46, %v3868_v48  ;;  %vm3736_vm0 = vcmp.lt.s32.totalorder %v11356_v3, 3 }
 0x338   : > { %vm3737_vm10 = vcmp.lt.s32.totalorder %v11356_v3, 4  ;;  %v3738_v61 = vsel %vm3734_vm7, %v3718_v24, %v3721_v5  ;;  %v3742_v13 = vsel %vm3734_vm7, %v3721_v5, %v3724_v29  ;;  %v11399_v8 = vpop.eup %8088  ;;  %v3579_v18 = vmul.f32 %v3578_v20, %v3576_v58 }
 0x339   : > { %v3739_v51 = vsel %vm3737_vm10, %v3727_v6, 2102212464  ;;  %v3743_v40 = vsel %vm3737_vm10, %v3730_v28, 920167782  ;;  %14402 = vst [vmem:[#allocation123_spill] sm:$0xff] %v11399_v8  ;;  %v3871_v25 = vsub.s32 0, %v11391_v60  ;;  %v3746_v21 = vsel %vm3734_vm7, %v3724_v29, %v3727_v6 }
 0x33a   : > { %v3740_v46 = vsel %vm3736_vm0, %v3724_v29, %v3739_v51  ;;  %v3744_v41 = vsel %vm3736_vm0, %v3727_v6, %v3743_v40  ;;  %v3891_v7 = vsub.s32 4, %v3867_v37  ;;  %v3747_v5 = vsel %vm3737_vm10, %v3733_v35, 1326507024 }
 0x33b   : > { %v3745_v57 = vsel %vm3735_vm11, %v3742_v13, %v3744_v41  ;;  %v3580_v2 = vxor.u32 2147483648, %v3579_v18  ;;  %v7254_v48 = vmin.u32 %v3871_v25, %v11391_v60  ;;  %v3741_v24 = vsel %vm3735_vm11, %v3738_v61, %v3740_v46 }
 0x33c   : > { %v3748_v20 = vsel %vm3736_vm0, %v3730_v28, %v3747_v5  ;;  %v11418_v51 = vmul.u32.u64.low %v11352_v31, %v3745_v57  ;;  %v11419_v40 = vmul.u32.u64.high %v11352_v31, %v3745_v57, %v11418_v51  ;;  %v7261_v13 = vadd.s32 4294967169, %v4015_v54 }
 0x33d   : > { %v3749_v58 = vsel %vm3735_vm11, %v3746_v21, %v3748_v20  ;;  %vm14403_vm10 = vcmp.lt.s32.totalorder %v11047_v19, 0  ;;  %v3873_v29 = vclz %v7254_v48  ;;  %8090 = vsinq.f32 %v11332_v62 }
 0x33e   : > { %v3581_v6 = vsel %vm14403_vm10, %v3580_v2, %v3579_v18  ;;  %v11425_v35 = vmul.u32.u64.low %v11352_v31, %v3749_v58  ;;  %v11426_v25 = vmul.u32.u64.high %v11352_v31, %v3749_v58, %v11425_v35  ;;  %v14404_v3 = vsub.s32 4, %v11297_v63  ;;  %vm14405_vm0 = vmmov %vm14403_vm10 }
 0x33f   : > { %v11439_v54 = vsel %vm11383_vm2, %v11047_v19, %v3581_v6  ;;  %v4021_v61 = vadd.s32 1, %v7261_v13  ;;  %v3861_v18 = vadd.s32 %v11322_v0, %v11342_v17  ;;  %v7255_v46 = vadd.s32 4294967294, %v3873_v29 }
 0x340   : > { %v11434_v28 = vsel %vm14405_vm0, %v14404_v3, %v11297_v63  ;;  %v4019_v41 = vor.u32 8388608, %v11365_v42  ;;  %v11447_v57 = vsel %vm14121_vm4, %v3891_v7, %v3867_v37  ;;  %v3757_v63 = vmul.u32 %v11352_v31, %v3741_v24 }
 0x341   : > { %14406 = vst [vmem:[#allocation124_spill] sm:$0xff] %v11447_v57  ;;  %v3760_v21 = vadd.s32 1, %v11419_v40  ;;  %vm4022_vm7 = vcmp.gt.s32.totalorder %v4021_v61, 0  ;;  %8092 = vcosq.f32 %v11439_v54  ;;  %vm7256_vm11 = vcmp.lt.s32.totalorder %v7255_v46, 0 }
 0x342   : > { %vm3759_vm10 = vc.u32 %v11426_v25, %v11418_v51  ;;  %v4023_v0 = vsel %vm4022_vm7, %v4021_v61, 0  ;;  %v3876_v17 = vsel %vm7256_vm11, 0, %v7255_v46  ;;  %v11456_v31 = vshll.u32 %v4019_v41, 8 }
 0x343   : > { %v3761_v42 = vsel %vm3759_vm10, %v3760_v21, %v11419_v40  ;;  %v4025_v5 = vand.u32 31, %v4023_v0  ;;  %v3877_v37 = vsub.s32 32, %v3876_v17  ;;  %v3881_v7 = vsub.s32 4294967266, %v3876_v17 }
 0x344   : > { %v3762_v48 = vadd.s32 %v3761_v42, %v3757_v63  ;;  %v3878_v24 = vshll.u32 %v11391_v60, %v3876_v17  ;;  %v4024_v20 = vshrl.u32 %v4023_v0, 5  ;;  %v14408_v62 = vmov 0 }
 0x345   : > { %v4026_v58 = vsub.s32 32, %v4025_v5  ;;  %v4028_v13 = vshll.u32 %v14171_v22, %v4025_v5  ;;  %v3879_v6 = vshrl.u32 %v3861_v18, %v3877_v37  ;;  %v3882_v29 = vadd.s32 127, %v3881_v7 }
 0x346   : > { %v3763_v35 = vadd.s32 536870912, %v3762_v48  ;;  %v4031_v3 = vshll.u32 %v14178_v33, %v4025_v5  ;;  %v4034_v46 = vshll.u32 %v14162_v55, %v4025_v5  ;;  %v4037_v37 = vshll.u32 %v14163_v43, %v4025_v5 }
 0x347   : > { %v4029_v40 = vshrl.u32 %v14178_v33, %v4026_v58  ;;  %v4032_v61 = vshrl.u32 %v14162_v55, %v4026_v58  ;;  %v4035_v41 = vshrl.u32 %v14163_v43, %v4026_v58  ;;  %v3880_v63 = vor.u32 %v3879_v6, %v3878_v24 }
 0x348   : > { %v3883_v21 = vshll.u32 %v3882_v29, 23  ;;  %v3764_v60 = vshrl.u32 %v3763_v35, 30  ;;  %v4038_v0 = vshrl.u32 %v14164_v27, %v4026_v58  ;;  %v4027_v17 = vshrl.u32 %v14171_v22, %v4026_v58 }
 0x349   : > { %v4030_v18 = vor.u32 %v4029_v40, %v4028_v13  ;;  %v4033_v42 = vor.u32 %v4032_v61, %v4031_v3  ;;  %v14407_v7 = vand.u32 2147483647, %v11142_v15  ;;  %v4036_v8 = vor.u32 %v4035_v41, %v4034_v46 }
 0x34a   : > { %v3884_v2 = vor.u32 4788187, %v3883_v21  ;;  %v3765_v57 = vshll.u32 %v3764_v60, 30  ;;  %v4040_v24 = vshll.u32 %v14164_v27, %v4025_v5  ;;  %v3887_v6 = vcvt.s32.f32 %v3880_v63  ;;  %v11476_v13 = vpop.eup %8090 }
 0x34b   : > { %vm11470_vm0 = vcmp.le.f32.partialorder %v14407_v7, 0.7853982  ;;  %v4039_v29 = vor.u32 %v4038_v0, %v4037_v37  ;;  %v4041_v35 = vshrl.u32 %v14169_v36, %v4026_v58  ;;  %vm4043_vm7 = vcmp.lt.s32.totalorder %v4024_v20, 1  ;;  %14411 = vst [vmem:[#allocation126_spill] sm:$0xff] %v11476_v13 }
 0x34c   : > { %v14409_v62 = vsel %vm11470_vm0, 4294967295, %v14408_v62  ;;  %v3885_v3 = vand.u32 2147483647, %v3884_v2  ;;  %v11479_v40 = vsub.s32 %v3762_v48, %v3765_v57  ;;  %vm4044_vm10 = vcmp.lt.s32.totalorder %v4024_v20, 2 }
 0x34d   : > { %14410 = vst [vmem:[#allocation125_spill] sm:$0xff] %v14409_v62  ;;  %vm4045_vm4 = vcmp.lt.s32.totalorder %v4024_v20, 3  ;;  %v4042_v61 = vor.u32 %v4041_v35, %v4040_v24  ;;  %vm4046_vm2 = vcmp.lt.s32.totalorder %v4024_v20, 4  ;;  %v4047_v46 = vsel %vm4043_vm7, %v4027_v17, %v4030_v18 }
 0x34e   : > { %v4051_v5 = vsel %vm4043_vm7, %v4030_v18, %v4033_v42  ;;  %v3888_v41 = vmul.f32 %v3887_v6, %v3885_v3  ;;  %v3768_v63 = vsub.s32 0, %v11479_v40  ;;  %v4048_v58 = vsel %vm4046_vm2, %v4036_v8, 2102212464  ;;  %v11484_v0 = vpop.eup %8092 }
 0x34f   : > { %v4052_v21 = vsel %vm4046_vm2, %v4039_v29, 920167782  ;;  %v4049_v2 = vsel %vm4045_vm4, %v4033_v42, %v4048_v58  ;;  %v4055_v48 = vsel %vm4043_vm7, %v4033_v42, %v4036_v8  ;;  %v4056_v37 = vsel %vm4046_vm2, %v4042_v61, 1326507024 }
 0x350   : > { %v4053_v57 = vsel %vm4045_vm4, %v4036_v8, %v4052_v21  ;;  %v3889_v7 = vxor.u32 2147483648, %v3888_v41  ;;  %v7250_v24 = vmin.u32 %v3768_v63, %v11479_v40  ;;  %v3788_v17 = vsub.s32 4, %v3764_v60 }
 0x351   : > { %v4054_v18 = vsel %vm4044_vm10, %v4051_v5, %v4053_v57  ;;  %v4050_v6 = vsel %vm4044_vm10, %v4047_v46, %v4049_v2  ;;  %v4057_v35 = vsel %vm4045_vm4, %v4039_v29, %v4056_v37  ;;  %vm14412_vm11 = vcmp.lt.s32.totalorder %v11142_v15, 0 }
 0x352   : > { %v11494_v3 = vmul.u32.u64.low %v11456_v31, %v4054_v18  ;;  %v11495_v13 = vmul.u32.u64.high %v11456_v31, %v4054_v18, %v11494_v3  ;;  %v3890_v58 = vsel %vm14412_vm11, %v3889_v7, %v3888_v41  ;;  %v3770_v21 = vclz %v7250_v24 }
 0x353   : > { %v4058_v8 = vsel %vm4044_vm10, %v4055_v48, %v4057_v35  ;;  %v14413_v42 = vand.u32 2139095040, %v11360_v16  ;;  %v3893_v5 = vsel %vm11470_vm0, %v11142_v15, %v3890_v58  ;;  %v14414_v63 = vand.u32 2147483647, %v11360_v16 }
 0x354   : > { %v11506_v46 = vmul.u32.u64.low %v11456_v31, %v4058_v8  ;;  %v11507_v29 = vmul.u32.u64.high %v11456_v31, %v4058_v8, %v11506_v46  ;;  %8094 = vsinq.f32 %v11439_v54  ;;  %v7251_v41 = vadd.s32 4294967294, %v3770_v21 }
 0x355   : > { %v3912_v61 = vshrl.u32 %v14413_v42, 23  ;;  %v3915_v2 = vand.u32 8388607, %v14414_v63  ;;  %v907_v20 = vsel %vm9153_vm12, 0, %v9103_v32  ;;  %v3758_v48 = vadd.s32 %v11418_v51, %v11426_v25 }
 0x356   : > { %vm14415_vm2 = vcmp.lt.s32.totalorder %v11148_v12, 0  ;;  %v4066_v7 = vmul.u32 %v11456_v31, %v4050_v6  ;;  %v4069_v24 = vadd.s32 1, %v11495_v13  ;;  %8096 = vcosq.f32 %v3893_v5  ;;  %v7914_v31 = vld [vmem:[%s14389_s6 + $0x1c] ss:$12 sps:$4 sm:$0xff]  }
 0x357   : > { %v7257_v57 = vadd.s32 4294967169, %v3912_v61  ;;  %v11519_v37 = vsel %vm14415_vm2, %v3788_v17, %v3764_v60  ;;  %vm7252_vm4 = vcmp.lt.s32.totalorder %v7251_v41, 0  ;;  %v11523_v18 = vand.u32 3, %v907_v20  ;;  %4817 = vmatprep.subr.bf16.mxu1 %v7914_v31 }
 0x358   : > { %v3773_v35 = vsel %vm7252_vm4, 0, %v7251_v41  ;;  %vm4068_vm7 = vc.u32 %v11507_v29, %v11494_v3  ;;  %v3916_v14 = vor.u32 8388608, %v3915_v2  ;;  %v914_v32 = vxor.u32 2147483648, %v9331_v9 }
 0x359   : > { %v3918_v54 = vadd.s32 1, %v7257_v57  ;;  %8098 = vsinq.f32 %v3893_v5  ;;  %v3774_v51 = vsub.s32 32, %v3773_v35  ;;  %v3778_v25 = vsub.s32 4294967266, %v3773_v35 }
 0x35a   : > { %v4070_v60 = vsel %vm4068_vm7, %v4069_v24, %v11495_v13  ;;  %v3775_v17 = vshll.u32 %v11479_v40, %v3773_v35  ;;  %v11533_v6 = vadd.s32 %v11494_v3, %v11507_v29  ;;  %vm913_vm11 = vcmp.eq.s32.totalorder %v11523_v18, 0 }
 0x35b   : > { %v4071_v58 = vadd.s32 %v4070_v60, %v4066_v7  ;;  %vm3919_vm12 = vcmp.gt.s32.totalorder %v3918_v54, 0  ;;  %v3776_v21 = vshrl.u32 %v3758_v48, %v3774_v51  ;;  %v3779_v8 = vadd.s32 127, %v3778_v25 }
 0x35c   : > { %v3920_v42 = vsel %vm3919_vm12, %v3918_v54, 0  ;;  %v11536_v13 = vshll.u32 %v3916_v14, 8  ;;  %v11539_v46 = vsel %vm913_vm11, %v9255_v59, %v914_v32  ;;  %v917_v3 = vxor.u32 2147483648, %v9255_v59 }
 0x35d   : > { %v4072_v61 = vadd.s32 536870912, %v4071_v58  ;;  %v3922_v5 = vand.u32 31, %v3920_v42  ;;  %v3777_v63 = vor.u32 %v3776_v21, %v3775_v17  ;;  %v3780_v40 = vshll.u32 %v3779_v8, 23 }
 0x35e   : > { %v11541_v2 = vshrl.u32 %v3920_v42, 5  ;;  %v14417_v7 = vand.u32 2147483647, %v11148_v12  ;;  %vm14421_vm0 = vcmp.lt.s32.totalorder %v11148_v12, 0 }
 0x35f   : > { %v4073_v29 = vshrl.u32 %v4072_v61, 30  ;;  %v3923_v41 = vsub.s32 32, %v3922_v5  ;;  %v3925_v57 = vshll.u32 %v14171_v22, %v3922_v5  ;;  %v3781_v54 = vor.u32 4788187, %v3780_v40 }
 0x360   : > { %vm11550_vm10 = vcmp.le.f32.partialorder %v14417_v7, 0.7853982  ;;  %v3784_v35 = vcvt.s32.f32 %v3777_v63  ;;  %v3928_v14 = vshll.u32 %v14178_v33, %v3922_v5  ;;  %v3931_v59 = vshll.u32 %v14162_v55, %v3922_v5 }
 0x361   : > { %v4074_v32 = vshll.u32 %v4073_v29, 30  ;;  %v4097_v51 = vsub.s32 4, %v4073_v29  ;;  %v3926_v25 = vshrl.u32 %v14178_v33, %v3923_v41  ;;  %v3934_v60 = vshll.u32 %v14163_v43, %v3922_v5  ;;  %v11563_v42 = vpop.eup %8094 }
 0x362   : > { %v3782_v31 = vand.u32 2147483647, %v3781_v54  ;;  %v3929_v17 = vshrl.u32 %v14162_v55, %v3923_v41  ;;  %v3932_v21 = vshrl.u32 %v14163_v43, %v3923_v41  ;;  %v3935_v8 = vshrl.u32 %v14164_v27, %v3923_v41 }
 0x363   : > { %v11565_v61 = vsub.s32 %v4071_v58, %v4074_v32  ;;  %v3924_v63 = vshrl.u32 %v14171_v22, %v3923_v41  ;;  %v3927_v40 = vor.u32 %v3926_v25, %v3925_v57  ;;  %v3937_v33 = vshll.u32 %v14164_v27, %v3922_v5  ;;  %v11570_v43 = vpop.eup %8096  ;;  %v14420_v22 = vld [vmem:[#allocation9_spill] sm:$0xff] }
 0x364   : > { %v3785_v7 = vmul.f32 %v3784_v35, %v3782_v31  ;;  %v3930_v54 = vor.u32 %v3929_v17, %v3928_v14  ;;  %v3933_v55 = vor.u32 %v3932_v21, %v3931_v59  ;;  %v3936_v48 = vor.u32 %v3935_v8, %v3934_v60 }
 0x365   : > { %v4077_v15 = vsub.s32 0, %v11565_v61  ;;  %v3938_v62 = vshrl.u32 %v14169_v36, %v3923_v41  ;;  %vm3940_vm12 = vcmp.lt.s32.totalorder %v11541_v2, 1  ;;  %vm3941_vm11 = vcmp.lt.s32.totalorder %v11541_v2, 2 }
 0x366   : > { %vm910_vm4 = vweird.f32 %v14420_v22  ;;  %v3786_v58 = vxor.u32 2147483648, %v3785_v7  ;;  %vm3942_vm2 = vcmp.lt.s32.totalorder %v11541_v2, 3  ;;  %vm3943_vm7 = vcmp.lt.s32.totalorder %v11541_v2, 4  ;;  %v11579_v5 = vpop.eup %8098 }
 0x367   : > { %v3944_v27 = vsel %vm3940_vm12, %v3924_v63, %v3927_v40  ;;  %v7262_v57 = vmin.u32 %v4077_v15, %v11565_v61  ;;  %v3939_v35 = vor.u32 %v3938_v62, %v3937_v33  ;;  %v3945_v36 = vsel %vm3943_vm7, %v3933_v55, 2102212464 }
 0x368   : > { %v3948_v41 = vsel %vm3940_vm12, %v3927_v40, %v3930_v54  ;;  %v3787_v14 = vsel %vm14421_vm0, %v3786_v58, %v3785_v7  ;;  %v3946_v59 = vsel %vm3942_vm2, %v3930_v54, %v3945_v36  ;;  %v3949_v32 = vsel %vm3943_vm7, %v3936_v48, 920167782 }
 0x369   : > { %v3952_v25 = vsel %vm3940_vm12, %v3930_v54, %v3933_v55  ;;  %v3790_v60 = vsel %vm11550_vm10, %v11148_v12, %v3787_v14  ;;  %v4079_v15 = vclz %v7262_v57  ;;  %v3947_v62 = vsel %vm3941_vm11, %v3944_v27, %v3946_v59  ;;  %v14426_v57 = vld [vmem:[#allocation31_spill] sm:$0xff] }
 0x36a   : > { %v3950_v31 = vsel %vm3942_vm2, %v3933_v55, %v3949_v32  ;;  %8100 = vcosq.f32 %v3790_v60  ;;  %vm14422_vm0 = vcmp.lt.s32.totalorder %v11337_v47, 0  ;;  %v3953_v8 = vsel %vm3943_vm7, %v3939_v35, 1326507024 }
 0x36b   : > { %v11599_v17 = vsel %vm14422_vm0, %v4097_v51, %v4073_v29  ;;  %v3951_v21 = vsel %vm3941_vm11, %v3948_v41, %v3950_v31  ;;  %v7263_v63 = vadd.s32 4294967294, %v4079_v15  ;;  %v3954_v40 = vsel %vm3942_vm2, %v3936_v48, %v3953_v8  ;;  %v14428_v41 = vld [vmem:[#allocation30_spill] sm:$0xff] }
 0x36c   : > { %v3963_v33 = vmul.u32 %v11536_v13, %v3947_v62  ;;  %vm14423_vm12 = vcmp.eq.s32.totalorder %v11523_v18, 2  ;;  %v3955_v29 = vsel %vm3941_vm11, %v3952_v25, %v3954_v40  ;;  %vm14424_vm7 = vcmp.lt.s32.totalorder %v11523_v18, 2  ;;  %v14431_v40 = vld [vmem:[#allocation8_spill] sm:$0xff] }
 0x36d   : > { %v918_v7 = vsel %vm14423_vm12, %v917_v3, %v9331_v9  ;;  %v11614_v51 = vmul.u32.u64.low %v11536_v13, %v3951_v21  ;;  %v11615_v54 = vmul.u32.u64.high %v11536_v13, %v3951_v21, %v11614_v51  ;;  %8102 = vsinq.f32 %v3790_v60  ;;  %v14429_v21 = vld [vmem:[#allocation16_spill] sm:$0xff] }
 0x36e   : > { %v919_v55 = vsel %vm14424_vm7, %v11539_v46, %v918_v7  ;;  %vm7264_vm0 = vcmp.lt.s32.totalorder %v7263_v63, 0  ;;  %v11621_v48 = vmul.u32.u64.low %v11536_v13, %v3955_v29  ;;  %v11622_v58 = vmul.u32.u64.high %v11536_v13, %v3955_v29, %v11621_v48  ;;  %v14427_v46 = vld [vmem:[#allocation11_spill] sm:$0xff] }
 0x36f   : > { %v4082_v27 = vsel %vm7264_vm0, 0, %v7263_v63  ;;  %v920_v9 = vsel %vm910_vm4, nan, %v919_v55  ;;  %v14425_v2 = vsel %vm9271_vm14, 0, %v9289_v44  ;;  %v1017_v35 = vxor.u32 2147483648, %v14426_v57  ;;  %v14435_v55 = vld [vmem:[#allocation22_spill] sm:$0xff] }
 0x370   : > { %v1014_v3 = vand.u32 3, %v14425_v2  ;;  %v4083_v36 = vsub.s32 32, %v4082_v27  ;;  %v4087_v18 = vsub.s32 4294967266, %v4082_v27  ;;  %vm1013_vm2 = vweird.f32 %v14427_v46 }
 0x371   : > { %v1020_v14 = vxor.u32 2147483648, %v14428_v41  ;;  %v4084_v13 = vshll.u32 %v11565_v61, %v4082_v27  ;;  %v3966_v59 = vadd.s32 1, %v11615_v54  ;;  %vm3965_vm14 = vc.u32 %v11622_v58, %v11614_v51 }
 0x372   : > { %vm1015_vm11 = vcmp.lt.s32.totalorder %v1014_v3, 2  ;;  %vm1016_vm12 = vcmp.eq.s32.totalorder %v1014_v3, 0  ;;  %v4085_v22 = vshrl.u32 %v11533_v6, %v4083_v36  ;;  %v4088_v20 = vadd.s32 127, %v4087_v18 }
 0x373   : > { %vm1019_vm4 = vcmp.eq.s32.totalorder %v1014_v3, 2  ;;  %v11638_v44 = vadd.s32 %v11614_v51, %v11622_v58  ;;  %v3967_v32 = vsel %vm3965_vm14, %v3966_v59, %v11615_v54  ;;  %v1018_v25 = vsel %vm1016_vm12, %v14428_v41, %v1017_v35  ;;  %v7918_v58 = vld [vmem:[%s14389_s6 + $0x8] ss:$12 sps:$4 sm:$0xff]   ;;  %v14437_v35 = vld [vmem:[#allocation19_spill] sm:$0xff]  ;;  %v14440_v59 = vld [vmem:[#allocation28_spill] sm:$0xff] }
 0x374   : > { %v1021_v60 = vsel %vm1019_vm4, %v1020_v14, %v14426_v57  ;;  %v4086_v61 = vor.u32 %v4085_v22, %v4084_v13  ;;  %v4089_v15 = vshll.u32 %v4088_v20, 23  ;;  %vm3910_vm7 = vcmp.lt.s32.totalorder %v11360_v16, 0  ;;  %v14436_v3 = vld [vmem:[#allocation18_spill] sm:$0xff]  ;;  %v14441_v20 = vld [vmem:[#allocation25_spill] sm:$0xff] }
 0x375   : > { %v3968_v62 = vadd.s32 %v3967_v32, %v3963_v33  ;;  %v1022_v31 = vsel %vm1015_vm11, %v1018_v25, %v1021_v60  ;;  %vm14127_vm0 = vcmask 261120   ;;  %v1113_v63 = vsel %vm9028_vm1, 0, %v14429_v21 }
 0x376   : > { %v1023_v6 = vsel %vm1013_vm2, nan, %v1022_v31  ;;  %vm1116_vm14 = vweird.f32 %v14431_v40  ;;  %v14432_v7 = vand.u32 2147483647, %v11337_v47  ;;  %v4090_v51 = vor.u32 4788187, %v4089_v15  ;;  %v14448_v40 = vld [vmem:[#allocation13_spill] sm:$0xff] }
 0x377   : > { %v3969_v54 = vadd.s32 536870912, %v3968_v62  ;;  %v4186_v33 = vpack.c.bf16 %v1023_v6, %v920_v9  ;;  %v1120_v48 = vxor.u32 2147483648, %v14435_v55  ;;  %v4093_v27 = vcvt.s32.f32 %v4086_v61  ;;  %v11664_v46 = vpop.eup %8100  ;;  %v14439_v9 = vld [vmem:[#allocation10_spill] sm:$0xff] }
 0x378   : > { %vm11652_vm12 = vcmp.le.f32.partialorder %v14432_v7, 0.7853982  ;;  %v1117_v2 = vand.u32 3, %v1113_v63  ;;  %v1123_v57 = vxor.u32 2147483648, %v14436_v3  ;;  %v1216_v18 = vsel %vm9233_vm6, 0, %v14437_v35 }
 0x379   : > { %v4091_v41 = vand.u32 2147483647, %v4090_v51  ;;  %v3970_v14 = vshrl.u32 %v3969_v54, 30  ;;  %7271 = vmatmul.mubr.msk.bf16.vlgmr.msra.gmra.mxu0 %vm14127_vm0, %v4186_v33  ;;  %7570 = vmatprep.mubr.msk.bf16.mxu1 %vm14127_vm0, %v4186_v33  ;;  %v1220_v13 = vand.u32 3, %v1216_v18  ;;  %v1223_v22 = vxor.u32 2147483648, %v14440_v59  ;;  %v14443_v33 = vld [vmem:[#allocation34_spill] sm:$0xff] }
 0x37a   : > { %7603 = vmatpush3.bf16.msra.mxu0 %v11262_v56  ;;  %vm1119_vm2 = vcmp.eq.s32.totalorder %v1117_v2, 0  ;;  %vm1122_vm11 = vcmp.eq.s32.totalorder %v1117_v2, 2  ;;  %v1226_v32 = vxor.u32 2147483648, %v14441_v20  ;;  %v14442_v25 = vmov 0   ;;  %v11674_v6 = vpop.eup %8102  ;;  %v14447_v18 = vld [vmem:[#allocation40_spill] sm:$0xff] }
 0x37b   : > { %4333 = vmatprep.mubr.bf16.mxu0 %v14442_v25  ;;  %v4094_v60 = vmul.f32 %v4093_v27, %v4091_v41  ;;  %v3971_v61 = vshll.u32 %v3970_v14, 30  ;;  %v3994_v15 = vsub.s32 4, %v3970_v14  ;;  %v1121_v31 = vsel %vm1119_vm2, %v14436_v3, %v1120_v48  ;;  %7604 = vmatprep.subr.bf16.mxu0 %v7918_v58  ;;  %v14455_v48 = vld [vmem:[#allocation12_spill] sm:$0xff] }
 0x37c   : > { %vm1118_vm6 = vcmp.lt.s32.totalorder %v1117_v2, 2  ;;  %v1124_v21 = vsel %vm1122_vm11, %v1123_v57, %v14435_v55  ;;  %vm1221_vm4 = vcmp.lt.s32.totalorder %v1220_v13, 2  ;;  %vm1222_vm0 = vcmp.eq.s32.totalorder %v1220_v13, 0 }
 0x37d   : > { %v4095_v56 = vxor.u32 2147483648, %v4094_v60  ;;  %v11677_v8 = vsub.s32 %v3968_v62, %v3971_v61  ;;  %v1125_v63 = vsel %vm1118_vm6, %v1121_v31, %v1124_v21  ;;  %vm1225_vm1 = vcmp.eq.s32.totalorder %v1220_v13, 2  ;;  %v14451_v61 = vld [vmem:[#allocation26_spill] sm:$0xff] }
 0x37e   : > { %v11681_v7 = vsel %vm3910_vm7, %v3994_v15, %v3970_v14  ;;  %v1224_v51 = vsel %vm1222_vm0, %v14441_v20, %v1223_v22  ;;  %v1227_v54 = vsel %vm1225_vm1, %v1226_v32, %v14440_v59  ;;  %v1319_v27 = vsel %vm9456_vm5, 0, %v14443_v33  ;;  %7605 = vmatpush3.bf16.msra.mxu0 %v7918_v58  ;;  %v7912_v58 = vld [vmem:[%s14389_s6 + $0x18] ss:$12 sps:$4 sm:$0xff]  }
 0x37f   : > { %vm14445_vm2 = vcmp.lt.s32.totalorder %v11337_v47, 0  ;;  %v3974_v62 = vsub.s32 0, %v11677_v8  ;;  %v1126_v2 = vsel %vm1116_vm14, nan, %v1125_v63  ;;  %v1228_v3 = vsel %vm1221_vm4, %v1224_v51, %v1227_v54  ;;  %v14449_v59 = vld [vmem:[#allocation39_spill] sm:$0xff]  ;;  %v7917_v20 = vld [vmem:[%s14389_s6 + $0x4] ss:$12 sps:$4 sm:$0xff]  }
 0x380   : > { %v4096_v55 = vsel %vm14445_vm2, %v4095_v56, %v4094_v60  ;;  %vm14446_vm0 = vweird.f32 %v14439_v9  ;;  %v1323_v36 = vand.u32 3, %v1319_v27  ;;  %v1326_v41 = vxor.u32 2147483648, %v14447_v18  ;;  %v14454_v63 = vld [vmem:[#allocation36_spill] sm:$0xff]  ;;  %v14456_v27 = vld [vmem:[#allocation35_spill] sm:$0xff] }
 0x381   : > { %v4099_v57 = vsel %vm11652_vm12, %v11337_v47, %v4096_v55  ;;  %v1229_v35 = vsel %vm14446_vm0, nan, %v1228_v3  ;;  %v7258_v14 = vmin.u32 %v3974_v62, %v11677_v8  ;;  %vm1322_vm5 = vweird.f32 %v14448_v40  ;;  %v7915_v54 = vld [vmem:[%s14389_s6] ss:$12 sps:$4 sm:$0xff]  }
 0x382   : > { %v4187_v13 = vpack.c.bf16 %v1229_v35, %v1126_v2  ;;  %v1329_v22 = vxor.u32 2147483648, %v14449_v59  ;;  %8104 = vcosq.f32 %v4099_v57  ;;  %vm1324_vm14 = vcmp.lt.s32.totalorder %v1323_v36, 2 }
 0x383   : > { %vm1325_vm1 = vcmp.eq.s32.totalorder %v1323_v36, 0  ;;  %vm1328_vm11 = vcmp.eq.s32.totalorder %v1323_v36, 2  ;;  %v3976_v9 = vclz %v7258_v14  ;;  %vm14450_vm6 = vcmask 261120  }
 0x384   : > { %7571 = vmatmul.mubr.msk.bf16.vlgmr.msra.gmra.mxu1 %vm14450_vm6, %v4187_v13  ;;  %v1327_v32 = vsel %vm1325_vm1, %v14449_v59, %v1326_v41  ;;  %v1330_v60 = vsel %vm1328_vm11, %v1329_v22, %v14447_v18  ;;  %v1422_v31 = vsel %vm9419_vm13, 0, %v14451_v61  ;;  %vm14453_vm4 = vmmov %vm14450_vm6  ;;  %8106 = vsinq.f32 %v4099_v57  ;;  %v14460_v61 = vld [vmem:[#allocation37_spill] sm:$0xff] }
 0x385   : > { %7272 = vmatmul.mubr.msk.bf16.gmra.mxu0 %vm14453_vm4, %v4187_v13  ;;  %v1331_v21 = vsel %vm1324_vm14, %v1327_v32, %v1330_v60  ;;  %v1426_v56 = vand.u32 3, %v1422_v31  ;;  %v1429_v51 = vxor.u32 2147483648, %v14454_v63  ;;  %4818 = vmatpush1.bf16.msra.mxu1 %v7912_v58  ;;  %v7259_v33 = vadd.s32 4294967294, %v3976_v9  ;;  %v14457_v58 = vld [vmem:[#allocation48_spill] sm:$0xff]  ;;  %vm14458_vm6 = vmmov %vm14453_vm4  ;;  %v14459_v60 = vld [vmem:[#allocation17_spill] sm:$0xff] }
 0x386   : > { %4343 = vmatprep.mubr.bf16.mxu0 %v14442_v25  ;;  %vm1425_vm2 = vweird.f32 %v14455_v48  ;;  %v1432_v55 = vxor.u32 2147483648, %v14456_v27  ;;  %v1525_v62 = vsel %vm9726_vm8, 0, %v9677_v26  ;;  %4819 = vmatprep.subr.bf16.mxu1 %v7917_v20  ;;  %v1332_v2 = vsel %vm1322_vm5, nan, %v1331_v21  ;;  %v14462_v21 = vld [vmem:[#allocation46_spill] sm:$0xff] }
 0x387   : > { %vm1427_vm13 = vcmp.lt.s32.totalorder %v1426_v56, 2  ;;  %vm1428_vm0 = vcmp.eq.s32.totalorder %v1426_v56, 0  ;;  %vm1431_vm14 = vcmp.eq.s32.totalorder %v1426_v56, 2  ;;  %vm7260_vm1 = vcmp.lt.s32.totalorder %v7259_v33, 0 }
 0x388   : > { %v1430_v3 = vsel %vm1428_vm0, %v14456_v27, %v1429_v51  ;;  %v1433_v57 = vsel %vm1431_vm14, %v1432_v55, %v14454_v63  ;;  %v1529_v35 = vand.u32 3, %v1525_v62  ;;  %v3979_v36 = vsel %vm7260_vm1, 0, %v7259_v33  ;;  %v14464_v51 = vld [vmem:[#allocation14_spill] sm:$0xff]  ;;  %v14465_v33 = vld [vmem:[#allocation45_spill] sm:$0xff]  ;;  %v14467_v62 = vld [vmem:[#allocation24_spill] sm:$0xff] }
 0x389   : > { %v1434_v18 = vsel %vm1427_vm13, %v1430_v3, %v1433_v57  ;;  %v1532_v41 = vxor.u32 2147483648, %v9861_v39  ;;  %v1535_v49 = vxor.u32 2147483648, %v14457_v58  ;;  %4820 = vmatpush1.bf16.msra.mxu1 %v7915_v54  ;;  %v3980_v26 = vsub.s32 32, %v3979_v36  ;;  %v14479_v27 = vld [vmem:[#allocation59_spill] sm:$0xff] }
 0x38a   : > { %v3981_v14 = vshll.u32 %v11677_v8, %v3979_v36  ;;  %v3984_v13 = vsub.s32 4294967266, %v3979_v36  ;;  %v1435_v40 = vsel %vm1425_vm2, nan, %v1434_v18  ;;  %vm1530_vm8 = vcmp.lt.s32.totalorder %v1529_v35, 2  ;;  %vm14463_vm2 = vmmov %vm14458_vm6  ;;  %v14471_v18 = vld [vmem:[#allocation56_spill] sm:$0xff] }
 0x38b   : > { %v4188_v59 = vpack.c.bf16 %v1435_v40, %v1332_v2  ;;  %vm1531_vm5 = vcmp.eq.s32.totalorder %v1529_v35, 0  ;;  %vm1534_vm11 = vcmp.eq.s32.totalorder %v1529_v35, 2  ;;  %v3982_v22 = vshrl.u32 %v11638_v44, %v3980_v26 }
 0x38c   : > { %v3985_v20 = vadd.s32 127, %v3984_v13  ;;  %v1533_v9 = vsel %vm1531_vm5, %v14457_v58, %v1532_v41  ;;  %v1536_v32 = vsel %vm1534_vm11, %v1535_v49, %v9861_v39  ;;  %vm1528_vm4 = vweird.f32 %v14459_v60 }
 0x38d   : > { %7574 = vmatprep.mubr.msk.bf16.mxu1 %vm14458_vm6, %v4188_v59  ;;  %v1537_v8 = vsel %vm1530_vm8, %v1533_v9, %v1536_v32  ;;  %v1628_v31 = vsel %vm9637_vm15, 0, %v14460_v61  ;;  %v1635_v56 = vxor.u32 2147483648, %v14462_v21  ;;  %7273 = vmatmul.mubr.msk.bf16.gmra.mxu0 %vm14463_vm2, %v4188_v59  ;;  %v3983_v63 = vor.u32 %v3982_v22, %v3981_v14  ;;  %v14473_v59 = vld [vmem:[#allocation50_spill] sm:$0xff]  ;;  %v14474_v22 = vld [vmem:[#allocation43_spill] sm:$0xff] }
 0x38e   : > { %v3986_v44 = vshll.u32 %v3985_v20, 23  ;;  %vm1631_vm13 = vweird.f32 %v14464_v51  ;;  %v1632_v54 = vand.u32 3, %v1628_v31  ;;  %4353 = vmatprep.mubr.bf16.mxu0 %v14442_v25  ;;  %v1538_v39 = vsel %vm1528_vm4, nan, %v1537_v8 }
 0x38f   : > { %v1638_v48 = vxor.u32 2147483648, %v14465_v33  ;;  %v1731_v55 = vsel %vm9841_vm9, 0, %v9898_v45  ;;  %vm1734_vm15 = vweird.f32 %v14467_v62  ;;  %v11751_v2 = vpop.eup %8104  ;;  %v14468_v3 = vand.u32 2147483647, %v11360_v16  ;;  %v14472_v45 = vld [vmem:[#allocation55_spill] sm:$0xff] }
 0x390   : > { %v3987_v35 = vor.u32 4788187, %v3986_v44  ;;  %v3990_v36 = vcvt.s32.f32 %v3983_v63  ;;  %vm1634_vm14 = vcmp.eq.s32.totalorder %v1632_v54, 0  ;;  %v1738_v41 = vxor.u32 2147483648, %v14471_v18 }
 0x391   : > { %vm11755_vm0 = vcmp.le.f32.partialorder %v14468_v3, 0.7853982  ;;  %v1636_v58 = vsel %vm1634_vm14, %v14465_v33, %v1635_v56  ;;  %vm1637_vm1 = vcmp.eq.s32.totalorder %v1632_v54, 2  ;;  %v1735_v49 = vand.u32 3, %v1731_v55  ;;  %v11762_v14 = vpop.eup %8106  ;;  %v14478_v33 = vld [vmem:[#allocation53_spill] sm:$0xff] }
 0x392   : > { %v1741_v26 = vxor.u32 2147483648, %v14472_v45  ;;  %v3988_v13 = vand.u32 2147483647, %v3987_v35  ;;  %vm1633_vm9 = vcmp.lt.s32.totalorder %v1632_v54, 2  ;;  %v1639_v40 = vsel %vm1637_vm1, %v1638_v48, %v14462_v21  ;;  %v14476_v21 = vld [vmem:[#allocation54_spill] sm:$0xff]  ;;  %v14477_v54 = vld [vmem:[#allocation20_spill] sm:$0xff] }
 0x393   : > { %vm14475_vm8 = vnez %v14474_v22  ;;  %v1640_v9 = vsel %vm1633_vm9, %v1636_v58, %v1639_v40  ;;  %vm1736_vm5 = vcmp.lt.s32.totalorder %v1735_v49, 2  ;;  %vm1737_vm11 = vcmp.eq.s32.totalorder %v1735_v49, 0  ;;  %v11799_v40 = vld [vmem:[%s13939_s8 + $0xb0] ss:$12 sps:$4 sm:$0xff]   ;;  %v14485_v22 = vld [vmem:[#allocation52_spill] sm:$0xff] }
 0x394   : > { %v1834_v20 = vsel %vm14475_vm8, 0, %v14473_v59  ;;  %vm1740_vm6 = vcmp.eq.s32.totalorder %v1735_v49, 2  ;;  %v3991_v32 = vmul.f32 %v3990_v36, %v3988_v13  ;;  %v1641_v60 = vsel %vm1631_vm13, nan, %v1640_v9  ;;  %7638 = vmatprep.subr.bf16.mxu1 %v11799_v40 }
 0x395   : > { %v1739_v8 = vsel %vm1737_vm11, %v14472_v45, %v1738_v41  ;;  %v1742_v61 = vsel %vm1740_vm6, %v1741_v26, %v14471_v18  ;;  %v4189_v15 = vpack.c.bf16 %v1641_v60, %v1538_v39  ;;  %v1838_v56 = vand.u32 3, %v1834_v20  ;;  %v14483_v41 = vld [vmem:[#allocation66_spill] sm:$0xff]  ;;  %v14484_v45 = vld [vmem:[#allocation33_spill] sm:$0xff] }
 0x396   : > { %v1743_v31 = vsel %vm1736_vm5, %v1739_v8, %v1742_v61  ;;  %v1841_v63 = vxor.u32 2147483648, %v14476_v21  ;;  %v3992_v44 = vxor.u32 2147483648, %v3991_v32  ;;  %vm1837_vm4 = vweird.f32 %v14477_v54  ;;  %v14486_v20 = vld [vmem:[#allocation49_spill] sm:$0xff] }
 0x397   : > { %v1844_v48 = vxor.u32 2147483648, %v14478_v33  ;;  %vm14480_vm2 = vnez %v14479_v27  ;;  %vm14481_vm14 = vcmask 261120   ;;  %v1744_v51 = vsel %vm1734_vm15, nan, %v1743_v31  ;;  %v14496_v27 = vld [vmem:[#allocation42_spill] sm:$0xff] }
 0x398   : > { %v1937_v55 = vsel %vm14480_vm2, 0, %v10090_v4  ;;  %7575 = vmatmul.mubr.msk.bf16.gmra.mxu1 %vm14481_vm14, %v4189_v15  ;;  %vm1839_vm13 = vcmp.lt.s32.totalorder %v1838_v56, 2  ;;  %vm1840_vm1 = vcmp.eq.s32.totalorder %v1838_v56, 0  ;;  %vm1843_vm9 = vcmp.eq.s32.totalorder %v1838_v56, 2  ;;  %vm14482_vm8 = vmmov %vm14481_vm14  ;;  %v14491_v56 = vld [vmem:[#allocation62_spill] sm:$0xff] }
 0x399   : > { %7274 = vmatmul.mubr.msk.bf16.gmra.mxu0 %vm14482_vm8, %v4189_v15  ;;  %v3993_v39 = vsel %vm3910_vm7, %v3992_v44, %v3991_v32  ;;  %v1842_v3 = vsel %vm1840_vm1, %v14478_v33, %v1841_v63  ;;  %v1845_v35 = vsel %vm1843_vm9, %v1844_v48, %v14476_v21  ;;  %v1941_v36 = vand.u32 3, %v1937_v55  ;;  %v14488_v32 = vld [vmem:[#allocation65_spill] sm:$0xff]  ;;  %v14490_v15 = vld [vmem:[#allocation63_spill] sm:$0xff]  ;;  %v14492_v21 = vld [vmem:[#allocation68_spill] sm:$0xff] }
 0x39a   : > { %4363 = vmatprep.mubr.bf16.mxu0 %v14442_v25  ;;  %v3996_v4 = vsel %vm11755_vm0, %v11360_v16, %v3993_v39  ;;  %v1846_v62 = vsel %vm1839_vm13, %v1842_v3, %v1845_v35  ;;  %v1944_v18 = vxor.u32 2147483648, %v10161_v10  ;;  %v1947_v58 = vxor.u32 2147483648, %v14483_v41  ;;  %v14494_v44 = vld [vmem:[#allocation27_spill] sm:$0xff]  ;;  %v14497_v55 = vld [vmem:[#allocation73_spill] sm:$0xff] }
 0x39b   : > { %8108 = vcosq.f32 %v3996_v4  ;;  %v1847_v49 = vsel %vm1837_vm4, nan, %v1846_v62  ;;  %vm1940_vm7 = vweird.f32 %v14484_v45  ;;  %vm1943_vm15 = vcmp.eq.s32.totalorder %v1941_v36, 0  ;;  %vm14489_vm4 = vmmov %vm14482_vm8  ;;  %v14495_v33 = vld [vmem:[#allocation75_spill] sm:$0xff]  ;;  %v14500_v62 = vld [vmem:[#allocation60_spill] sm:$0xff] }
 0x39c   : > { %v4190_v26 = vpack.c.bf16 %v1847_v49, %v1744_v51  ;;  %vm1942_vm5 = vcmp.lt.s32.totalorder %v1941_v36, 2  ;;  %v1945_v13 = vsel %vm1943_vm15, %v14483_v41, %v1944_v18  ;;  %vm1946_vm11 = vcmp.eq.s32.totalorder %v1941_v36, 2  ;;  %vm14498_vm8 = vmmov %vm14489_vm4 }
 0x39d   : > { %8110 = vsinq.f32 %v3996_v4  ;;  %v1948_v59 = vsel %vm1946_vm11, %v1947_v58, %v10161_v10  ;;  %vm14487_vm6 = vnez %v14486_v20  ;;  %v2047_v60 = vxor.u32 2147483648, %v14488_v32  ;;  %v14499_v4 = vld [vmem:[#allocation61_spill] sm:$0xff] }
 0x39e   : > { %v2040_v9 = vsel %vm14487_vm6, 0, %v14485_v22  ;;  %7578 = vmatprep.mubr.msk.bf16.mxu1 %vm14489_vm4, %v4190_v26  ;;  %v1949_v8 = vsel %vm1942_vm5, %v1945_v13, %v1948_v59  ;;  %v2050_v31 = vxor.u32 2147483648, %v14490_v15  ;;  %vm14493_vm2 = vnez %v14492_v21  ;;  %v14502_v13 = vld [vmem:[#allocation69_spill] sm:$0xff]  ;;  %v14503_v22 = vld [vmem:[#allocation67_spill] sm:$0xff]  ;;  %v14507_v21 = vld [vmem:[#allocation84_spill] sm:$0xff] }
 0x39f   : > { %v2044_v61 = vand.u32 3, %v2040_v9  ;;  %v2143_v63 = vsel %vm14493_vm2, 0, %v14491_v56  ;;  %v1950_v10 = vsel %vm1940_vm7, nan, %v1949_v8  ;;  %vm2043_vm14 = vweird.f32 %v14494_v44  ;;  %v7930_v9 = vld [vmem:[%s13939_s8 + $0xac] ss:$12 sps:$4 sm:$0xff]  }
 0x3a0   : > { %v2147_v54 = vand.u32 3, %v2143_v63  ;;  %v2150_v48 = vxor.u32 2147483648, %v14495_v33  ;;  %vm2146_vm9 = vweird.f32 %v14496_v27  ;;  %v2153_v51 = vxor.u32 2147483648, %v14497_v55  ;;  %5465 = vmatprep.subr.bf16.mxu0 %v7930_v9  ;;  %v14510_v27 = vld [vmem:[#allocation72_spill] sm:$0xff] }
 0x3a1   : > { %vm2046_vm13 = vcmp.eq.s32.totalorder %v2044_v61, 0  ;;  %vm2049_vm1 = vcmp.eq.s32.totalorder %v2044_v61, 2  ;;  %7275 = vmatmul.mubr.msk.bf16.gmra.mxu0 %vm14498_vm8, %v4190_v26  ;;  %vm2045_vm15 = vcmp.lt.s32.totalorder %v2044_v61, 2  ;;  %vm14501_vm11 = vnez %v14500_v62  ;;  %v14515_v62 = vld [vmem:[#allocation76_spill] sm:$0xff] }
 0x3a2   : > { %v2048_v39 = vsel %vm2046_vm13, %v14490_v15, %v2047_v60  ;;  %v2051_v3 = vsel %vm2049_vm1, %v2050_v31, %v14488_v32  ;;  %vm2149_vm5 = vcmp.eq.s32.totalorder %v2147_v54, 0  ;;  %4373 = vmatprep.mubr.bf16.mxu0 %v14442_v25  ;;  %vm2152_vm7 = vcmp.eq.s32.totalorder %v2147_v54, 2  ;;  %v14504_v60 = vld [vmem:[#allocation38_spill] sm:$0xff]  ;;  %vm14505_vm13 = vmmov %vm14498_vm8 }
 0x3a3   : > { %v2052_v35 = vsel %vm2045_vm15, %v2048_v39, %v2051_v3  ;;  %v2151_v36 = vsel %vm2149_vm5, %v14497_v55, %v2150_v48  ;;  %v2246_v18 = vsel %vm14501_vm11, 0, %v14499_v4  ;;  %vm2148_vm6 = vcmp.lt.s32.totalorder %v2147_v54, 2  ;;  %v14509_v48 = vld [vmem:[#allocation51_spill] sm:$0xff]  ;;  %v14513_v39 = vld [vmem:[#allocation81_spill] sm:$0xff]  ;;  %vm14514_vm5 = vmmov %vm14505_vm13 }
 0x3a4   : > { %v2053_v41 = vsel %vm2043_vm14, nan, %v2052_v35  ;;  %v2154_v58 = vsel %vm2152_vm7, %v2153_v51, %v14495_v33  ;;  %v2250_v49 = vand.u32 3, %v2246_v18  ;;  %v2253_v59 = vxor.u32 2147483648, %v14502_v13  ;;  %v14511_v55 = vld [vmem:[#allocation71_spill] sm:$0xff] }
 0x3a5   : > { %v4191_v45 = vpack.c.bf16 %v2053_v41, %v1950_v10  ;;  %v2155_v26 = vsel %vm2148_vm6, %v2151_v36, %v2154_v58  ;;  %v2256_v20 = vxor.u32 2147483648, %v14503_v22  ;;  %vm2249_vm4 = vweird.f32 %v14504_v60  ;;  %v14508_v10 = vld [vmem:[#allocation82_spill] sm:$0xff]  ;;  %v14517_v58 = vld [vmem:[#allocation44_spill] sm:$0xff] }
 0x3a6   : > { %v2156_v32 = vsel %vm2146_vm9, nan, %v2155_v26  ;;  %vm2252_vm2 = vcmp.eq.s32.totalorder %v2250_v49, 0  ;;  %vm2255_vm14 = vcmp.eq.s32.totalorder %v2250_v49, 2  ;;  %vm2251_vm1 = vcmp.lt.s32.totalorder %v2250_v49, 2  ;;  %v14518_v49 = vld [vmem:[#allocation80_spill] sm:$0xff]  ;;  %v14520_v26 = vld [vmem:[#allocation93_spill] sm:$0xff] }
 0x3a7   : > { %7579 = vmatmul.mubr.msk.bf16.gmra.mxu1 %vm14505_vm13, %v4191_v45  ;;  %v2254_v8 = vsel %vm2252_vm2, %v14503_v22, %v2253_v59  ;;  %v2257_v61 = vsel %vm2255_vm14, %v2256_v20, %v14502_v13  ;;  %vm14506_vm8 = vnez %v14287_v23  ;;  %v2356_v63 = vxor.u32 2147483648, %v14507_v21 }
 0x3a8   : > { %v2349_v15 = vsel %vm14506_vm8, 0, %v10476_v50  ;;  %v2258_v31 = vsel %vm2251_vm1, %v2254_v8, %v2257_v61  ;;  %v2359_v44 = vxor.u32 2147483648, %v14508_v10  ;;  %v11845_v54 = vpop.eup %8108  ;;  %vm2352_vm9 = vweird.f32 %v14509_v48  ;;  %v14522_v61 = vld [vmem:[#allocation58_spill] sm:$0xff] }
 0x3a9   : > { %v2353_v56 = vand.u32 3, %v2349_v15  ;;  %v2259_v33 = vsel %vm2249_vm4, nan, %v2258_v31  ;;  %vm14512_vm15 = vnez %v14511_v55  ;;  %v2459_v3 = vxor.u32 2147483648, %v14513_v39  ;;  %7276 = vmatmul.mubr.msk.bf16.gmra.mxu0 %vm14514_vm5, %v4191_v45  ;;  %vm14516_vm4 = vmmov %vm14514_vm5  ;;  %v14524_v15 = vld [vmem:[#allocation77_spill] sm:$0xff] }
 0x3aa   : > { %v2452_v51 = vsel %vm14512_vm15, 0, %v14510_v27  ;;  %v4192_v23 = vpack.c.bf16 %v2259_v33, %v2156_v32  ;;  %4383 = vmatprep.mubr.bf16.mxu0 %v14442_v25  ;;  %v11854_v50 = vpop.eup %8110  ;;  %v2462_v18 = vxor.u32 2147483648, %v14515_v62  ;;  %vm2455_vm2 = vweird.f32 %v14517_v58  ;;  %v14521_v32 = vld [vmem:[#allocation92_spill] sm:$0xff]  ;;  %v14528_v55 = vld [vmem:[#allocation57_spill] sm:$0xff] }
 0x3ab   : > { %vm2354_vm7 = vcmp.lt.s32.totalorder %v2353_v56, 2  ;;  %vm2355_vm11 = vcmp.eq.s32.totalorder %v2353_v56, 0  ;;  %vm2358_vm6 = vcmp.eq.s32.totalorder %v2353_v56, 2  ;;  %v2456_v4 = vand.u32 3, %v2452_v51  ;;  %v14526_v56 = vld [vmem:[#allocation86_spill] sm:$0xff]  ;;  %v14529_v51 = vld [vmem:[#allocation85_spill] sm:$0xff] }
 0x3ac   : > { %v2357_v35 = vsel %vm2355_vm11, %v14508_v10, %v2356_v63  ;;  %v2360_v36 = vsel %vm2358_vm6, %v2359_v44, %v14507_v21  ;;  %7582 = vmatprep.mubr.msk.bf16.mxu1 %vm14516_vm4, %v4192_v23  ;;  %vm14519_vm14 = vnez %v14312_v34  ;;  %v2562_v13 = vxor.u32 2147483648, %v14520_v26  ;;  %v14523_v34 = vld [vmem:[#allocation79_spill] sm:$0xff]  ;;  %vm14527_vm6 = vmmov %vm14516_vm4 }
 0x3ad   : > { %v2361_v41 = vsel %vm2354_vm7, %v2357_v35, %v2360_v36  ;;  %v2555_v45 = vsel %vm14519_vm14, 0, %v14518_v49  ;;  %vm2457_vm13 = vcmp.lt.s32.totalorder %v2456_v4, 2  ;;  %vm2458_vm1 = vcmp.eq.s32.totalorder %v2456_v4, 0  ;;  %v14531_v35 = vld [vmem:[#allocation88_spill] sm:$0xff] }
 0x3ae   : > { %v2362_v59 = vsel %vm2352_vm9, nan, %v2361_v41  ;;  %vm2461_vm8 = vcmp.eq.s32.totalorder %v2456_v4, 2  ;;  %v2460_v22 = vsel %vm2458_vm1, %v14515_v62, %v2459_v3  ;;  %v2559_v9 = vand.u32 3, %v2555_v45  ;;  %v14530_v3 = vld [vmem:[#allocation91_spill] sm:$0xff]  ;;  %v14534_v41 = vld [vmem:[#allocation104_spill] sm:$0xff]  ;;  %v14535_v45 = vld [vmem:[#allocation70_spill] sm:$0xff] }
 0x3af   : > { %v2463_v20 = vsel %vm2461_vm8, %v2462_v18, %v14513_v39  ;;  %v2565_v60 = vxor.u32 2147483648, %v14521_v32  ;;  %vm2558_vm15 = vweird.f32 %v14522_v61  ;;  %vm14525_vm5 = vnez %v14524_v15  ;;  %v14540_v15 = vld [vmem:[#allocation95_spill] sm:$0xff] }
 0x3b0   : > { %v2464_v8 = vsel %vm2457_vm13, %v2460_v22, %v2463_v20  ;;  %v2658_v31 = vsel %vm14525_vm5, 0, %v14523_v34  ;;  %v2665_v21 = vxor.u32 2147483648, %v14526_v56  ;;  %vm2560_vm9 = vcmp.lt.s32.totalorder %v2559_v9, 2  ;;  %v14538_v22 = vld [vmem:[#allocation87_spill] sm:$0xff] }
 0x3b1   : > { %v2465_v63 = vsel %vm2455_vm2, nan, %v2464_v8  ;;  %vm2561_vm7 = vcmp.eq.s32.totalorder %v2559_v9, 0  ;;  %vm2564_vm11 = vcmp.eq.s32.totalorder %v2559_v9, 2  ;;  %v2662_v48 = vand.u32 3, %v2658_v31  ;;  %7277 = vmatmul.mubr.msk.bf16.gmra.mxu0 %vm14527_vm6, %v4192_v23  ;;  %vm14533_vm2 = vmmov %vm14527_vm6 }
 0x3b2   : > { %v4193_v10 = vpack.c.bf16 %v2465_v63, %v2362_v59  ;;  %v2563_v44 = vsel %vm2561_vm7, %v14521_v32, %v2562_v13  ;;  %v2566_v33 = vsel %vm2564_vm11, %v2565_v60, %v14520_v26  ;;  %vm2661_vm4 = vweird.f32 %v14528_v55  ;;  %4393 = vmatprep.mubr.bf16.mxu0 %v14442_v25  ;;  %v14536_v26 = vld [vmem:[#allocation103_spill] sm:$0xff]  ;;  %v14537_v59 = vld [vmem:[#allocation90_spill] sm:$0xff]  ;;  %v14542_v63 = vld [vmem:[#allocation101_spill] sm:$0xff] }
 0x3b3   : > { %v2567_v27 = vsel %vm2560_vm9, %v2563_v44, %v2566_v33  ;;  %v2668_v39 = vxor.u32 2147483648, %v14529_v51  ;;  %vm14532_vm14 = vnez %v14531_v35  ;;  %vm2663_vm13 = vcmp.lt.s32.totalorder %v2662_v48, 2  ;;  %vm14544_vm6 = vmmov %vm14533_vm2  ;;  %v14547_v35 = vld [vmem:[#allocation108_spill] sm:$0xff] }
 0x3b4   : > { %v2761_v36 = vsel %vm14532_vm14, 0, %v14530_v3  ;;  %7583 = vmatmul.mubr.msk.bf16.gmra.mxu1 %vm14533_vm2, %v4193_v10  ;;  %v2568_v4 = vsel %vm2558_vm15, nan, %v2567_v27  ;;  %vm2664_vm1 = vcmp.eq.s32.totalorder %v2662_v48, 0  ;;  %vm2667_vm8 = vcmp.eq.s32.totalorder %v2662_v48, 2  ;;  %v14545_v27 = vld [vmem:[#allocation64_spill] sm:$0xff] }
 0x3b5   : > { %v2666_v23 = vsel %vm2664_vm1, %v14529_v51, %v2665_v21  ;;  %v2669_v62 = vsel %vm2667_vm8, %v2668_v39, %v14526_v56  ;;  %v2765_v18 = vand.u32 3, %v2761_v36  ;;  %v2768_v58 = vxor.u32 2147483648, %v14534_v41  ;;  %v14541_v56 = vld [vmem:[#allocation94_spill] sm:$0xff] }
 0x3b6   : > { %v2670_v49 = vsel %vm2663_vm13, %v2666_v23, %v2669_v62  ;;  %vm2764_vm5 = vweird.f32 %v14535_v45  ;;  %v2771_v13 = vxor.u32 2147483648, %v14536_v26  ;;  %vm14539_vm9 = vnez %v14538_v22  ;;  %vm14546_vm13 = vmmov %vm14544_vm6  ;;  %v14549_v62 = vld [vmem:[#allocation99_spill] sm:$0xff]  ;;  %v14553_v22 = vld [vmem:[#allocation106_spill] sm:$0xff] }
 0x3b7   : > { %v2864_v20 = vsel %vm14539_vm9, 0, %v14537_v59  ;;  %v2671_v9 = vsel %vm2661_vm4, nan, %v2670_v49  ;;  %vm2766_vm15 = vcmp.lt.s32.totalorder %v2765_v18, 2  ;;  %vm2767_vm7 = vcmp.eq.s32.totalorder %v2765_v18, 0  ;;  %v14552_v49 = vld [vmem:[#allocation78_spill] sm:$0xff] }
 0x3b8   : > { %vm2770_vm11 = vcmp.eq.s32.totalorder %v2765_v18, 2  ;;  %v4194_v32 = vpack.c.bf16 %v2671_v9, %v2568_v4  ;;  %v2769_v60 = vsel %vm2767_vm7, %v14536_v26, %v2768_v58  ;;  %v2868_v61 = vand.u32 3, %v2864_v20  ;;  %v14548_v4 = vld [vmem:[#allocation107_spill] sm:$0xff]  ;;  %v14550_v18 = vld [vmem:[#allocation97_spill] sm:$0xff]  ;;  %vm14555_vm7 = vmmov %vm14544_vm6 }
 0x3b9   : > { %v2772_v8 = vsel %vm2770_vm11, %v2771_v13, %v14534_v41  ;;  %v2871_v31 = vxor.u32 2147483648, %v14540_v15  ;;  %v2874_v21 = vxor.u32 2147483648, %v14541_v56  ;;  %v2967_v33 = vsel %vm10786_vm3, 0, %v14542_v63  ;;  %7278 = vmatmul.mubr.msk.bf16.gmra.mxu0 %vm14546_vm13, %v4193_v10  ;;  %v14554_v9 = vld [vmem:[#allocation105_spill] sm:$0xff] }
 0x3ba   : > { %v2773_v34 = vsel %vm2766_vm15, %v2769_v60, %v2772_v8  ;;  %7586 = vmatprep.mubr.msk.bf16.mxu1 %vm14544_vm6, %v4194_v32  ;;  %vm2867_vm4 = vweird.f32 %v14545_v27  ;;  %vm2870_vm14 = vcmp.eq.s32.totalorder %v2868_v61, 0  ;;  %vm2873_vm2 = vcmp.eq.s32.totalorder %v2868_v61, 2  ;;  %4403 = vmatprep.mubr.bf16.mxu0 %v14442_v25  ;;  %v14558_v63 = vld [vmem:[#allocation117_spill] sm:$0xff] }
 0x3bb   : > { %v2774_v48 = vsel %vm2764_vm5, nan, %v2773_v34  ;;  %vm2869_vm1 = vcmp.lt.s32.totalorder %v2868_v61, 2  ;;  %v2872_v55 = vsel %vm2870_vm14, %v14541_v56, %v2871_v31  ;;  %v2875_v51 = vsel %vm2873_vm2, %v2874_v21, %v14540_v15  ;;  %v14556_v61 = vld [vmem:[#allocation74_spill] sm:$0xff] }
 0x3bc   : > { %v2971_v39 = vand.u32 3, %v2967_v33  ;;  %v2876_v3 = vsel %vm2869_vm1, %v2872_v55, %v2875_v51  ;;  %v2974_v36 = vxor.u32 2147483648, %v14547_v35  ;;  %v2977_v23 = vxor.u32 2147483648, %v14548_v4  ;;  %v14559_v33 = vld [vmem:[#allocation102_spill] sm:$0xff]  ;;  %vm14562_vm1 = vmmov %vm14555_vm7 }
 0x3bd   : > { %vm14551_vm3 = vnez %v14550_v18  ;;  %v2877_v58 = vsel %vm2867_vm4, nan, %v2876_v3  ;;  %vm2970_vm8 = vweird.f32 %v14552_v49  ;;  %v3077_v20 = vxor.u32 2147483648, %v14553_v22  ;;  %v14566_v18 = vld [vmem:[#allocation111_spill] sm:$0xff]  ;;  %v14568_v49 = vld [vmem:[#allocation118_spill] sm:$0xff] }
 0x3be   : > { %v3070_v41 = vsel %vm14551_vm3, 0, %v14549_v62  ;;  %vm2973_vm5 = vcmp.eq.s32.totalorder %v2971_v39, 0  ;;  %vm2976_vm9 = vcmp.eq.s32.totalorder %v2971_v39, 2  ;;  %v4195_v10 = vpack.c.bf16 %v2877_v58, %v2774_v48  ;;  %v14560_v48 = vld [vmem:[#allocation110_spill] sm:$0xff]  ;;  %v14565_v62 = vld [vmem:[#allocation83_spill] sm:$0xff]  ;;  %v14567_v58 = vld [vmem:[#allocation116_spill] sm:$0xff] }
 0x3bf   : > { %vm2972_vm15 = vcmp.lt.s32.totalorder %v2971_v39, 2  ;;  %v2975_v45 = vsel %vm2973_vm5, %v14548_v4, %v2974_v36  ;;  %v2978_v26 = vsel %vm2976_vm9, %v2977_v23, %v14547_v35  ;;  %v3074_v59 = vand.u32 3, %v3070_v41  ;;  %v14564_v4 = vld [vmem:[#allocation112_spill] sm:$0xff] }
 0x3c0   : > { %v2979_v13 = vsel %vm2972_vm15, %v2975_v45, %v2978_v26  ;;  %v3080_v60 = vxor.u32 2147483648, %v14554_v9  ;;  %7587 = vmatmul.mubr.msk.bf16.gmra.mxu1 %vm14555_vm7, %v4195_v10  ;;  %vm3073_vm11 = vweird.f32 %v14556_v61  ;;  %vm14557_vm6 = vnez %v14362_v52  ;;  %v14571_v61 = vld [vmem:[#allocation114_spill] sm:$0xff] }
 0x3c1   : > { %v2980_v8 = vsel %vm2970_vm8, nan, %v2979_v13  ;;  %v3173_v34 = vsel %vm14557_vm6, 0, %v11118_v38  ;;  %v3180_v15 = vxor.u32 2147483648, %v11190_v11  ;;  %vm3075_vm4 = vcmp.lt.s32.totalorder %v3074_v59, 2  ;;  %7279 = vmatmul.mubr.msk.bf16.gmra.mxu0 %vm14562_vm1, %v4194_v32  ;;  %v14563_v38 = vld [vmem:[#allocation89_spill] sm:$0xff] }
 0x3c2   : > { %vm3076_vm14 = vcmp.eq.s32.totalorder %v3074_v59, 0  ;;  %vm3079_vm2 = vcmp.eq.s32.totalorder %v3074_v59, 2  ;;  %v3177_v31 = vand.u32 3, %v3173_v34  ;;  %v3183_v44 = vxor.u32 2147483648, %v14558_v63  ;;  %4413 = vmatprep.mubr.bf16.mxu0 %v14442_v25  ;;  %v14572_v34 = vld [vmem:[#allocation113_spill] sm:$0xff] }
 0x3c3   : > { %v3078_v56 = vsel %vm3076_vm14, %v14554_v9, %v3077_v20  ;;  %v3081_v21 = vsel %vm3079_vm2, %v3080_v60, %v14553_v22  ;;  %vm14561_vm13 = vnez %v14560_v48  ;;  %vm3176_vm3 = vweird.f32 %v14563_v38  ;;  %v14578_v48 = vld [vmem:[#allocation119_spill] sm:$0xff] }
 0x3c4   : > { %v3276_v27 = vsel %vm14561_vm13, 0, %v14559_v33  ;;  %v3082_v52 = vsel %vm3075_vm4, %v3078_v56, %v3081_v21  ;;  %vm3179_vm8 = vcmp.eq.s32.totalorder %v3177_v31, 0  ;;  %vm3182_vm5 = vcmp.eq.s32.totalorder %v3177_v31, 2  ;;  %v14575_v56 = vld [vmem:[#allocation100_spill] sm:$0xff] }
 0x3c5   : > { %v3083_v55 = vsel %vm3073_vm11, nan, %v3082_v52  ;;  %vm3178_vm9 = vcmp.lt.s32.totalorder %v3177_v31, 2  ;;  %v3181_v51 = vsel %vm3179_vm8, %v14558_v63, %v3180_v15  ;;  %v3184_v39 = vsel %vm3182_vm5, %v3183_v44, %v11190_v11  ;;  %vm14570_vm11 = vmmov %vm14562_vm1  ;;  %v14576_v44 = vld [vmem:[#allocation96_spill] sm:$0xff] }
 0x3c6   : > { %v4196_v3 = vpack.c.bf16 %v3083_v55, %v2980_v8  ;;  %v3185_v35 = vsel %vm3178_vm9, %v3181_v51, %v3184_v39  ;;  %v3280_v36 = vand.u32 3, %v3276_v27  ;;  %v3283_v32 = vxor.u32 2147483648, %v14564_v4  ;;  %vm14574_vm8 = vmmov %vm14570_vm11  ;;  %v14577_v33 = vld [vmem:[#allocation120_spill] sm:$0xff] }
 0x3c7   : > { %v3186_v23 = vsel %vm3176_vm3, nan, %v3185_v35  ;;  %vm3279_vm15 = vweird.f32 %v14565_v62  ;;  %v3286_v41 = vxor.u32 2147483648, %v14566_v18  ;;  %vm14569_vm7 = vnez %v14568_v49  ;;  %v14582_v35 = vld [vmem:[#allocation122_spill] sm:$0xff] }
 0x3c8   : > { %v3379_v45 = vsel %vm14569_vm7, 0, %v14567_v58  ;;  %7590 = vmatprep.mubr.msk.bf16.mxu1 %vm14570_vm11, %v4196_v3  ;;  %vm3281_vm6 = vcmp.lt.s32.totalorder %v3280_v36, 2  ;;  %vm3282_vm4 = vcmp.eq.s32.totalorder %v3280_v36, 0  ;;  %vm3285_vm14 = vcmp.eq.s32.totalorder %v3280_v36, 2  ;;  %vm14580_vm7 = vmmov %vm14574_vm8  ;;  %v14584_v58 = vld [vmem:[#allocation126_spill] sm:$0xff] }
 0x3c9   : > { %v3383_v11 = vand.u32 3, %v3379_v45  ;;  %v3284_v26 = vsel %vm3282_vm4, %v14566_v18, %v3283_v32  ;;  %v3287_v13 = vsel %vm3285_vm14, %v3286_v41, %v14564_v4  ;;  %v3386_v59 = vxor.u32 2147483648, %v11375_v53  ;;  %7280 = vmatmul.mubr.msk.bf16.gmra.mxu0 %vm14574_vm8, %v4195_v10  ;;  %v14585_v45 = vld [vmem:[#allocation123_spill] sm:$0xff]  ;;  %vm14586_vm8 = vmmov %vm14580_vm7 }
 0x3ca   : > { %v3389_v22 = vxor.u32 2147483648, %v11317_v1  ;;  %v3288_v20 = vsel %vm3281_vm6, %v3284_v26, %v3287_v13  ;;  %vm14573_vm3 = vnez %v14572_v34  ;;  %vm3382_vm5 = vweird.f32 %v14575_v56  ;;  %4423 = vmatprep.mubr.bf16.mxu0 %v14442_v25  ;;  %v14588_v13 = vld [vmem:[#allocation109_spill] sm:$0xff] }
 0x3cb   : > { %vm3384_vm2 = vcmp.lt.s32.totalorder %v3383_v11, 2  ;;  %vm3385_vm13 = vcmp.eq.s32.totalorder %v3383_v11, 0  ;;  %vm3388_vm1 = vcmp.eq.s32.totalorder %v3383_v11, 2  ;;  %v3289_v9 = vsel %vm3279_vm15, nan, %v3288_v20  ;;  %v14589_v20 = vld [vmem:[#allocation124_spill] sm:$0xff] }
 0x3cc   : > { %v3387_v60 = vsel %vm3385_vm13, %v11317_v1, %v3386_v59  ;;  %v3390_v8 = vsel %vm3388_vm1, %v3389_v22, %v11375_v53  ;;  %v3482_v15 = vsel %vm14573_vm3, 0, %v14571_v61  ;;  %v11960_v31 = vpack.c.bf16 %v3289_v9, %v3186_v23 }
 0x3cd   : > { %v3391_v21 = vsel %vm3384_vm2, %v3387_v60, %v3390_v8  ;;  %v3486_v63 = vand.u32 3, %v3482_v15  ;;  %vm3485_vm9 = vweird.f32 %v14576_v44  ;;  %v3489_v1 = vxor.u32 2147483648, %v14577_v33 }
 0x3ce   : > { %v3492_v53 = vxor.u32 2147483648, %v14578_v48  ;;  %vm14579_vm15 = vnez %v14401_v30  ;;  %7591 = vmatmul.mubr.msk.bf16.gmra.mxu1 %vm14580_vm7, %v11960_v31  ;;  %v3392_v10 = vsel %vm3382_vm5, nan, %v3391_v21  ;;  %v3592_v51 = vxor.u32 2147483648, %v11563_v42  ;;  %vm14587_vm5 = vmmov %vm14580_vm7 }
 0x3cf   : > { %v3585_v27 = vsel %vm14579_vm15, 0, %v11434_v28  ;;  %vm3487_vm11 = vcmp.lt.s32.totalorder %v3486_v63, 2  ;;  %vm3488_vm6 = vcmp.eq.s32.totalorder %v3486_v63, 0  ;;  %vm3491_vm4 = vcmp.eq.s32.totalorder %v3486_v63, 2  ;;  %v14581_v28 = vld [vmem:[#allocation121_spill] sm:$0xff] }
 0x3d0   : > { %v3490_v52 = vsel %vm3488_vm6, %v14578_v48, %v3489_v1  ;;  %v3493_v38 = vsel %vm3491_vm4, %v3492_v53, %v14577_v33  ;;  %v3589_v55 = vand.u32 3, %v3585_v27  ;;  %vm3588_vm14 = vweird.f32 %v11047_v19  ;;  %v14590_v19 = vld [vmem:[#allocation125_spill] sm:$0xff] }
 0x3d1   : > { %v3494_v39 = vsel %vm3487_vm11, %v3490_v52, %v3493_v38  ;;  %v3595_v30 = vxor.u32 2147483648, %v11484_v0  ;;  %vm14583_vm2 = vnez %v14582_v35  ;;  %v3695_v49 = vxor.u32 2147483648, %v14584_v58  ;;  %7281 = vmatmul.mubr.msk.bf16.gmra.mxu0 %vm14586_vm8, %v4196_v3  ;;  %v7960_v35 = vld [vmem:[%s13939_s8 + $0x38] ss:$12 sps:$4 sm:$0xff]  }
 0x3d2   : > { %v3688_v36 = vsel %vm14583_vm2, 0, %v14581_v28  ;;  %v3495_v4 = vsel %vm3485_vm9, nan, %v3494_v39  ;;  %vm3590_vm13 = vcmp.lt.s32.totalorder %v3589_v55, 2  ;;  %vm3591_vm1 = vcmp.eq.s32.totalorder %v3589_v55, 0  ;;  %4433 = vmatprep.mubr.bf16.mxu0 %v14442_v25  ;;  %v7921_v28 = vld [vmem:[%s8725_s28 + $0x10] sm:$0xff]  }
 0x3d3   : > { %vm3594_vm3 = vcmp.eq.s32.totalorder %v3589_v55, 2  ;;  %v11982_v32 = vpack.c.bf16 %v3495_v4, %v3392_v10  ;;  %v3593_v23 = vsel %vm3591_vm1, %v11484_v0, %v3592_v51  ;;  %v3692_v18 = vand.u32 3, %v3688_v36  ;;  %v7928_v36 = vld [vmem:[%s13939_s8 + $0xa8] ss:$12 sps:$4 sm:$0xff]  }
 0x3d4   : > { %v3596_v62 = vsel %vm3594_vm3, %v3595_v30, %v11563_v42  ;;  %v3698_v11 = vxor.u32 2147483648, %v14585_v45  ;;  %v3791_v26 = vsel %vm11550_vm10, 0, %v11519_v37  ;;  %vm3691_vm9 = vweird.f32 %v14588_v13  ;;  %v7953_v30 = vld [vmem:[%s13939_s8 + $0x68] ss:$12 sps:$4 sm:$0xff]  }
 0x3d5   : > { %v3597_v41 = vsel %vm3590_vm13, %v3593_v23, %v3596_v62  ;;  %7594 = vmatprep.mubr.msk.bf16.mxu1 %vm14587_vm5, %v11982_v32  ;;  %vm3694_vm15 = vcmp.eq.s32.totalorder %v3692_v18, 0  ;;  %vm3697_vm7 = vcmp.eq.s32.totalorder %v3692_v18, 2  ;;  %vm3693_vm11 = vcmp.lt.s32.totalorder %v3692_v18, 2  ;;  %vm14592_vm13 = vmmov %vm14587_vm5  ;;  %v7934_v4 = vld [vmem:[%s13939_s8 + $0x94] ss:$12 sps:$4 sm:$0xff]   ;;  %v7922_v23 = vld [vmem:[%s8725_s28 + $0x18] sm:$0xff]  }
 0x3d6   : > { %v3598_v0 = vsel %vm3588_vm14, nan, %v3597_v41  ;;  %v3696_v42 = vsel %vm3694_vm15, %v14585_v45, %v3695_v49  ;;  %v3699_v24 = vsel %vm3697_vm7, %v3698_v11, %v14584_v58  ;;  %v3795_v37 = vand.u32 3, %v3791_v26  ;;  %v7932_v62 = vld [vmem:[%s13939_s8 + $0x90] ss:$12 sps:$4 sm:$0xff]   ;;  %v7966_v41 = vld [vmem:[%s13939_s8 + $0x8] ss:$12 sps:$4 sm:$0xff]  }
 0x3d7   : > { %v3700_v59 = vsel %vm3693_vm11, %v3696_v42, %v3699_v24  ;;  %v3798_v3 = vxor.u32 2147483648, %v11674_v6  ;;  %v3801_v22 = vxor.u32 2147483648, %v11664_v46  ;;  %vm14591_vm10 = vnez %v14590_v19  ;;  %v7939_v18 = vld [vmem:[%s13939_s8 + $0x7c] ss:$12 sps:$4 sm:$0xff]   ;;  %v7937_v58 = vld [vmem:[%s13939_s8 + $0x78] ss:$12 sps:$4 sm:$0xff]  }
 0x3d8   : > { %v3894_v9 = vsel %vm14591_vm10, 0, %v14589_v20  ;;  %v3701_v60 = vsel %vm3691_vm9, nan, %v3700_v59  ;;  %vm3794_vm6 = vweird.f32 %v11148_v12  ;;  %vm3797_vm4 = vcmp.eq.s32.totalorder %v3795_v37, 0  ;;  %v7943_v49 = vld [vmem:[%s13939_s8 + $0x64] ss:$12 sps:$4 sm:$0xff]   ;;  %v7924_v13 = vld [vmem:[%s8725_s28 + $0x28] sm:$0xff]  }
 0x3d9   : > { %vm3800_vm14 = vcmp.eq.s32.totalorder %v3795_v37, 2  ;;  %v4199_v8 = vpack.c.bf16 %v3701_v60, %v3598_v0  ;;  %vm3796_vm2 = vcmp.lt.s32.totalorder %v3795_v37, 2  ;;  %v3799_v61 = vsel %vm3797_vm4, %v11664_v46, %v3798_v3  ;;  %7282 = vmatmul.mubr.msk.bf16.gmra.mxu0 %vm14587_vm5, %v11960_v31  ;;  %v7923_v45 = vld [vmem:[%s8725_s28 + $0x20] sm:$0xff]   ;;  %v7948_v26 = vld [vmem:[%s13939_s8 + $0x4c] ss:$12 sps:$4 sm:$0xff]   ;;  %v7925_v24 = vld [vmem:[%s8725_s28 + $0x30] sm:$0xff]  }
 0x3da   : > { %v3802_v34 = vsel %vm3800_vm14, %v3801_v22, %v11674_v6  ;;  %v3898_v56 = vand.u32 3, %v3894_v9  ;;  %v3901_v21 = vxor.u32 2147483648, %v11579_v5  ;;  %v3904_v63 = vxor.u32 2147483648, %v11570_v43  ;;  %4443 = vmatprep.mubr.bf16.mxu0 %v14442_v25  ;;  %v7941_v11 = vld [vmem:[%s13939_s8 + $0x60] ss:$12 sps:$4 sm:$0xff]   ;;  %v7927_v22 = vld [vmem:[%s8725_s28 + $0x38] sm:$0xff]  }
 0x3db   : > { %v3803_v15 = vsel %vm3796_vm2, %v3799_v61, %v3802_v34  ;;  %7595 = vmatmul.mubr.msk.bf16.gmra.mxu1 %vm14592_vm13, %v4199_v8  ;;  %v3997_v12 = vsel %vm11755_vm0, 0, %v11681_v7  ;;  %v4004_v33 = vxor.u32 2147483648, %v11854_v50  ;;  %v4007_v48 = vxor.u32 2147483648, %v11845_v54  ;;  %v14593_v7 = vld [vmem:[#allocation115_spill] sm:$0xff]  ;;  %vm14595_vm2 = vmmov %vm14587_vm5  ;;  %v7946_v0 = vld [vmem:[%s13939_s8 + $0x48] ss:$12 sps:$4 sm:$0xff]  }
 0x3dc   : > { %v3804_v44 = vsel %vm3794_vm6, nan, %v3803_v15  ;;  %vm3899_vm1 = vcmp.lt.s32.totalorder %v3898_v56, 2  ;;  %vm3900_vm3 = vcmp.eq.s32.totalorder %v3898_v56, 0  ;;  %vm3903_vm8 = vcmp.eq.s32.totalorder %v3898_v56, 2  ;;  %vm14596_vm13 = vmmov %vm14595_vm2  ;;  %v7952_v42 = vld [vmem:[%s13939_s8 + $0x34] ss:$12 sps:$4 sm:$0xff]  }
 0x3dd   : > { %v4001_v46 = vand.u32 3, %v3997_v12  ;;  %v3902_v6 = vsel %vm3900_vm3, %v11570_v43, %v3901_v21  ;;  %v3905_v1 = vsel %vm3903_vm8, %v3904_v63, %v11579_v5  ;;  %v4100_v57 = vsel %vm11652_vm12, 0, %v11599_v17  ;;  %vm14594_vm12 = vmmov %vm14587_vm5  ;;  %v7950_v37 = vld [vmem:[%s13939_s8 + $0x30] ss:$12 sps:$4 sm:$0xff]   ;;  %v7955_v3 = vld [vmem:[%s13939_s8 + $0x18] ss:$12 sps:$4 sm:$0xff]  }
 0x3de   : > { %vm3897_vm0 = vweird.f32 %v14593_v7  ;;  %v3906_v53 = vsel %vm3899_vm1, %v3902_v6, %v3905_v1  ;;  %v4104_v52 = vand.u32 3, %v4100_v57  ;;  %v4107_v38 = vxor.u32 2147483648, %v11762_v14  ;;  %vm14597_vm1 = vmmov %vm14595_vm2  ;;  %v7957_v59 = vld [vmem:[%s13939_s8 + $0x1c] ss:$12 sps:$4 sm:$0xff]   ;;  %v7963_v20 = vld [vmem:[%s13939_s8 + $0x4] ss:$12 sps:$4 sm:$0xff]  }
 0x3df   : > { %vm4003_vm9 = vcmp.eq.s32.totalorder %v4001_v46, 0  ;;  %vm4006_vm15 = vcmp.eq.s32.totalorder %v4001_v46, 2  ;;  %v3907_v27 = vsel %vm3897_vm0, nan, %v3906_v53  ;;  %vm4002_vm7 = vcmp.lt.s32.totalorder %v4001_v46, 2  ;;  %vm14598_vm3 = vmmov %vm14597_vm1  ;;  %v7931_v19 = vld [vmem:[%s8725_s28 + $0x40] sm:$0xff]   ;;  %v7940_v61 = vld [vmem:[%s8725_s28 + $0x50] sm:$0xff]  }
 0x3e0   : > { %v4005_v31 = vsel %vm4003_vm9, %v11845_v54, %v4004_v33  ;;  %v4008_v43 = vsel %vm4006_vm15, %v4007_v48, %v11854_v50  ;;  %v4200_v5 = vpack.c.bf16 %v3907_v27, %v3804_v44  ;;  %v4110_v17 = vxor.u32 2147483648, %v11751_v2  ;;  %vm14599_vm8 = vmmov %vm14597_vm1  ;;  %v7961_v9 = vld [vmem:[%s13939_s8] ss:$12 sps:$4 sm:$0xff]   ;;  %v7945_v34 = vld [vmem:[%s8725_s28 + $0x58] sm:$0xff]  }
 0x3e1   : > { %v4009_v10 = vsel %vm4002_vm7, %v4005_v31, %v4008_v43  ;;  %vm4000_vm11 = vweird.f32 %v11360_v16  ;;  %vm4106_vm10 = vcmp.eq.s32.totalorder %v4104_v52, 0  ;;  %vm4109_vm6 = vcmp.eq.s32.totalorder %v4104_v52, 2  ;;  %7283 = vmatmul.mubr.msk.bf16.gmra.mxu0 %vm14595_vm2, %v11982_v32  ;;  %v7919_v16 = vld [vmem:[%s8725_s28] sm:$0xff]   ;;  %vm14600_vm5 = vmmov %vm14597_vm1  ;;  %v7954_v56 = vld [vmem:[%s8725_s28 + $0x68] sm:$0xff]  }
 0x3e2   : > { %7598 = vmatprep.mubr.msk.bf16.mxu1 %vm14594_vm12, %v4200_v5  ;;  %v4010_v29 = vsel %vm4000_vm11, nan, %v4009_v10  ;;  %vm4105_vm4 = vcmp.lt.s32.totalorder %v4104_v52, 2  ;;  %v4108_v54 = vsel %vm4106_vm10, %v11751_v2, %v4107_v38  ;;  %v4111_v50 = vsel %vm4109_vm6, %v4110_v17, %v11762_v14  ;;  %4453 = vmatprep.mubr.bf16.mxu0 %v14442_v25  ;;  %v7944_v2 = vld [vmem:[%s13939_s8 + $0x80] ss:$12 sps:$4 sm:$0xff]   ;;  %vm14601_vm0 = vmmov %vm14597_vm1  ;;  %v7958_v21 = vld [vmem:[%s8725_s28 + $0x70] sm:$0xff]  }
 0x3e3   : > { %vm4103_vm14 = vweird.f32 %v11337_v47  ;;  %v4112_v55 = vsel %vm4105_vm4, %v4108_v54, %v4111_v50  ;;  %v7935_v47 = vld [vmem:[%s13939_s8 + $0x98] ss:$12 sps:$4 sm:$0xff]   ;;  %v7920_v14 = vld [vmem:[%s8725_s28 + $0x8] sm:$0xff]   ;;  %vm14602_vm9 = vmmov %vm14601_vm0 }
 0x3e4   : > { %v4113_v51 = vsel %vm4103_vm14, nan, %v4112_v55  ;;  %vm14603_vm15 = vmmov %vm14601_vm0  ;;  %v7965_v32 = vld [vmem:[%s13939_s8 + $0x20] ss:$12 sps:$4 sm:$0xff]   ;;  %v12167_v63 = vld [vmem:[%s8725_s28 + $0x78] sm:$0xff]  }
 0x3e5   : > { %v4201_v39 = vpack.c.bf16 %v4113_v51, %v4010_v29  ;;  %vm14604_vm7 = vmmov %vm14601_vm0  ;;  %v12146_v60 = vld [vmem:[%s13942_s11] sm:$0xff]   ;;  %v4115_v12 = vld [vmem:[%s12175_s20 + $0x8] sm:$0xff] }
 0x3e6   : > { %vm14605_vm12 = vmmov %vm14601_vm0  ;;  %v7949_v15 = vld [vmem:[%s8725_s28 + $0x60] sm:$0xff]   ;;  %v4116_v57 = vld [vmem:[%s12175_s20 + $0x10] sm:$0xff] }
 0x3e7   : > { %7599 = vmatmul.mubr.msk.bf16.gmra.mxu1 %vm14596_vm13, %v4201_v39  ;;  %vm14606_vm11 = vmmov %vm14601_vm0  ;;  %v4114_v44 = vld [vmem:[%s12175_s20] sm:$0xff]  ;;  %v4117_v7 = vld [vmem:[%s12175_s20 + $0x18] sm:$0xff] }
 0x3e8   : > { %4837 = vmatprep.mubr.bf16.mxu1 %v14442_v25  ;;  %vm14607_vm10 = vmmov %vm14601_vm0  ;;  %v5272_v46 = vpack.c.bf16 %v4115_v12, %v4114_v44  ;;  %v5273_v27 = vpack.c.bf16 %v4117_v7, %v4116_v57  ;;  %v4118_v10 = vld [vmem:[%s12175_s20 + $0x20] sm:$0xff]  ;;  %v4119_v52 = vld [vmem:[%s12175_s20 + $0x28] sm:$0xff] }
 0x3e9   : > { %7284 = vmatmul.mubr.msk.bf16.gmra.mxu0 %vm14597_vm1, %v4199_v8  ;;  %vm14608_vm6 = vmmov %vm14601_vm0  ;;  %v7936_v8 = vld [vmem:[%s8725_s28 + $0x48] sm:$0xff]   ;;  %v5274_v29 = vpack.c.bf16 %v4119_v52, %v4118_v10  ;;  %v4130_v52 = vld [vmem:[%s12175_s20 + $0x80] sm:$0xff] }
 0x3ea   : > { %4463 = vmatprep.mubr.bf16.mxu0 %v14442_v25  ;;  %vm14609_vm4 = vmmov %vm14601_vm0 }
 0x3eb   : > { %vm14610_vm14 = vmmov %vm14601_vm0 }
 0x3ec   : > { %vm14611_vm2 = vmmov %vm14601_vm0 }
 0x3ed   : > { %vm14612_vm13 = vmmov %vm14601_vm0 }
 0x3ee   : > { %vm14613_vm1 = vmmov %vm14601_vm0 }
 0x3ef   : > { %7325 = vmatmul.mubr.msk.bf16.vlgmr.msra.gmra.mxu1 %vm14598_vm3, %v7919_v16  ;;  %vm14614_vm3 = vmmov %vm14601_vm0 }
 0x3f0   : > { %4847 = vmatprep.mubr.bf16.mxu1 %v14442_v25  ;;  %7639 = vmatpush3.bf16.msra.mxu1 %v11799_v40  ;;  %v7959_v40 = vld [vmem:[%s13939_s8 + $0x50] ss:$12 sps:$4 sm:$0xff]  }
 0x3f1   : > { %7640 = vmatprep.subr.bf16.mxu1 %v7935_v47  ;;  %7285 = vmatmul.mubr.msk.bf16.gmra.mxu0 %vm14599_vm8, %v4200_v5  ;;  %vm14615_vm8 = vmmov %vm14601_vm0 }
 0x3f2   : > { %4473 = vmatprep.mubr.bf16.mxu0 %v14442_v25 }
 0x3f4   : > { %7641 = vmatpush3.bf16.msra.mxu1 %v7935_v47 }
 0x3f5   : > { %7642 = vmatprep.subr.bf16.mxu1 %v7944_v2 }
 0x3f7   : > { %7326 = vmatmul.mubr.msk.bf16.gmra.mxu1 %vm14600_vm5, %v7920_v14  ;;  %vm14616_vm5 = vmmov %vm14601_vm0 }
 0x3f8   : > { %4857 = vmatprep.mubr.bf16.mxu1 %v14442_v25  ;;  %7643 = vmatpush3.bf16.msra.mxu1 %v7944_v2 }
 0x3f9   : > { %7644 = vmatprep.subr.bf16.mxu1 %v7953_v30  ;;  %7286 = vmatmul.mubr.msk.bf16.gmra.mxu0 %vm14601_vm0, %v4201_v39  ;;  %v4120_v39 = vld [vmem:[%s12175_s20 + $0x30] sm:$0xff] }
 0x3fa   : > { %7606 = vmatprep.mubr.msk.bf16.mxu0 %vm14602_vm9, %v7919_v16  ;;  %vm14617_vm9 = vmmov %vm14601_vm0  ;;  %v4121_v16 = vld [vmem:[%s12175_s20 + $0x38] sm:$0xff] }
 0x3fc   : > { %7645 = vmatpush3.bf16.msra.mxu1 %v7953_v30 }
 0x3fd   : > { %7646 = vmatprep.subr.bf16.mxu1 %v7959_v40 }
 0x3ff   : > { %7327 = vmatmul.mubr.msk.bf16.gmra.mxu1 %vm14603_vm15, %v7921_v28  ;;  %vm14618_vm15 = vmmov %vm14601_vm0 }
 0x400   : > { %4867 = vmatprep.mubr.bf16.mxu1 %v14442_v25  ;;  %7647 = vmatpush3.bf16.msra.mxu1 %v7959_v40 }
 0x401   : > { %7648 = vmatprep.subr.bf16.mxu1 %v7960_v35  ;;  %7607 = vmatmul.mubr.msk.bf16.vlgmr.msra.gmra.mxu0 %vm14604_vm7, %v7920_v14  ;;  %vm14619_vm7 = vmmov %vm14601_vm0  ;;  %v5275_v14 = vpack.c.bf16 %v4121_v16, %v4120_v39 }
 0x402   : > { %5466 = vmatpush1.bf16.msra.mxu0 %v7928_v36  ;;  %7610 = vmatprep.mubr.msk.bf16.mxu0 %vm14605_vm12, %v7921_v28  ;;  %vm14620_vm12 = vmmov %vm14601_vm0  ;;  %v4122_v36 = vld [vmem:[%s12175_s20 + $0x40] sm:$0xff] }
 0x403   : > { %5467 = vmatprep.subr.bf16.mxu0 %v7934_v4  ;;  %v4123_v4 = vld [vmem:[%s12175_s20 + $0x48] sm:$0xff] }
 0x404   : > { %7649 = vmatpush3.bf16.msra.mxu1 %v7960_v35 }
 0x405   : > { %7650 = vmatprep.subr.bf16.mxu1 %v7965_v32 }
 0x406   : > { %5468 = vmatpush1.bf16.msra.mxu0 %v7932_v62  ;;  %v5276_v62 = vpack.c.bf16 %v4123_v4, %v4122_v36 }
 0x407   : > { %7328 = vmatmul.mubr.msk.bf16.gmra.mxu1 %vm14606_vm11, %v7922_v23  ;;  %5469 = vmatprep.subr.bf16.mxu0 %v7939_v18  ;;  %vm14621_vm11 = vmmov %vm14601_vm0 }
 0x408   : > { %4877 = vmatprep.mubr.bf16.mxu1 %v14442_v25  ;;  %7651 = vmatpush3.bf16.msra.mxu1 %v7965_v32 }
 0x409   : > { %7652 = vmatprep.subr.bf16.mxu1 %v7966_v41  ;;  %7611 = vmatmul.mubr.msk.bf16.gmra.mxu0 %vm14607_vm10, %v7922_v23  ;;  %vm14622_vm10 = vmmov %vm14601_vm0 }
 0x40a   : > { %7614 = vmatprep.mubr.msk.bf16.mxu0 %vm14608_vm6, %v7923_v45  ;;  %5470 = vmatpush1.bf16.msra.mxu0 %v7937_v58  ;;  %vm14623_vm6 = vmmov %vm14601_vm0 }
 0x40b   : > { %5471 = vmatprep.subr.bf16.mxu0 %v7943_v49 }
 0x40c   : > { %7653 = vmatpush3.bf16.msra.mxu1 %v7966_v41 }
 0x40d   : > { %7686 = vmatprep.subr.bf16.mxu1 %v12146_v60 }
 0x40e   : > { %5472 = vmatpush1.bf16.msra.mxu0 %v7941_v11  ;;  %v4125_v11 = vld [vmem:[%s12175_s20 + $0x58] sm:$0xff] }
 0x40f   : > { %7329 = vmatmul.mubr.msk.bf16.gmra.mxu1 %vm14609_vm4, %v7923_v45  ;;  %5473 = vmatprep.subr.bf16.mxu0 %v7948_v26  ;;  %vm14626_vm4 = vmmov %vm14601_vm0  ;;  %v4124_v45 = vld [vmem:[%s12175_s20 + $0x50] sm:$0xff] }
 0x410   : > { %4887 = vmatprep.mubr.bf16.mxu1 %v14442_v25 }
 0x411   : > { %7615 = vmatmul.mubr.msk.bf16.gmra.mxu0 %vm14610_vm14, %v7924_v13  ;;  %vm14627_vm14 = vmmov %vm14601_vm0 }
 0x412   : > { %7618 = vmatprep.mubr.msk.bf16.mxu0 %vm14611_vm2, %v7925_v24  ;;  %5474 = vmatpush1.bf16.msra.mxu0 %v7946_v0  ;;  %vm14628_vm2 = vmmov %vm14601_vm0 }
 0x413   : > { %5475 = vmatprep.subr.bf16.mxu0 %v7952_v42 }
 0x416   : > { %5476 = vmatpush1.bf16.msra.mxu0 %v7950_v37 }
 0x417   : > { %7330 = vmatmul.mubr.msk.bf16.gmra.mxu1 %vm14612_vm13, %v7924_v13  ;;  %5477 = vmatprep.subr.bf16.mxu0 %v7957_v59  ;;  %vm14629_vm13 = vmmov %vm14601_vm0  ;;  %v5277_v13 = vpack.c.bf16 %v4125_v11, %v4124_v45  ;;  %v4132_v11 = vld [vmem:[%s12175_s20 + $0x90] sm:$0xff] }
 0x418   : > { %4897 = vmatprep.mubr.bf16.mxu1 %v14442_v25 }
 0x419   : > { %7619 = vmatmul.mubr.msk.bf16.gmra.mxu0 %vm14613_vm1, %v7927_v22  ;;  %vm14630_vm1 = vmmov %vm14601_vm0 }
 0x41a   : > { %7622 = vmatprep.mubr.msk.bf16.mxu0 %vm14614_vm3, %v7931_v19  ;;  %5478 = vmatpush1.bf16.msra.mxu0 %v7955_v3  ;;  %vm14634_vm3 = vmmov %vm14601_vm0 }
 0x41b   : > { %5479 = vmatprep.subr.bf16.mxu0 %v7963_v20  ;;  %v4127_v20 = vld [vmem:[%s12175_s20 + $0x68] sm:$0xff] }
 0x41e   : > { %5480 = vmatpush1.bf16.msra.mxu0 %v7961_v9 }
 0x41f   : > { %7331 = vmatmul.mubr.msk.bf16.gmra.mxu1 %vm14615_vm8, %v7925_v24  ;;  %vm14641_vm8 = vmmov %vm14601_vm0 }
 0x420   : > { %4907 = vmatprep.mubr.bf16.mxu1 %v14442_v25 }
 0x421   : > { %7623 = vmatmul.mubr.msk.bf16.gmra.mxu0 %vm14616_vm5, %v7936_v8  ;;  %vm6643_vm5 = vcmask 130048  }
 0x422   : > { %7626 = vmatprep.mubr.msk.bf16.mxu0 %vm14601_vm0, %v7940_v61 }
 0x427   : > { %7332 = vmatmul.mubr.msk.bf16.gmra.mxu1 %vm14617_vm9, %v7927_v22  ;;  %v4126_v22 = vld [vmem:[%s12175_s20 + $0x60] sm:$0xff] }
 0x428   : > { %4917 = vmatprep.mubr.bf16.mxu1 %v14442_v25 }
 0x429   : > { %7627 = vmatmul.mubr.msk.bf16.gmra.mxu0 %vm14618_vm15, %v7945_v34 }
 0x42a   : > { %7630 = vmatprep.mubr.msk.bf16.mxu0 %vm14619_vm7, %v7949_v15 }
 0x42f   : > { %7333 = vmatmul.mubr.msk.bf16.gmra.mxu1 %vm14620_vm12, %v7931_v19 }
 0x430   : > { %4927 = vmatprep.mubr.bf16.mxu1 %v14442_v25 }
 0x431   : > { %7631 = vmatmul.mubr.msk.bf16.gmra.mxu0 %vm14621_vm11, %v7954_v56 }
 0x432   : > { %7634 = vmatprep.mubr.msk.bf16.mxu0 %vm14622_vm10, %v7958_v21 }
 0x437   : > { %7334 = vmatmul.mubr.msk.bf16.gmra.mxu1 %vm14623_vm6, %v7936_v8  ;;  %v5278_v8 = vpack.c.bf16 %v4127_v20, %v4126_v22 }
 0x438   : > { %4937 = vmatprep.mubr.bf16.mxu1 %v14442_v25 }
 0x439   : > { %7635 = vmatmul.mubr.msk.bf16.gmra.mxu0 %vm14626_vm4, %v12167_v63  ;;  %v12182_v33 = vpop.f32.mrf.mxu0 }
 0x43a   : > { %5497 = vmatprep.mubr.bf16.mxu0 %v14442_v25 }
 0x43b   : > { %v12186_v6 = vpop.f32.mrf.mxu0 }
 0x43d   : > { %v12188_v1 = vpop.f32.mrf.mxu0 }
 0x43f   : > { %7335 = vmatmul.mubr.msk.bf16.gmra.mxu1 %vm14627_vm14, %v7940_v61  ;;  %v12190_v48 = vpop.f32.mrf.mxu0 }
 0x440   : > { %4947 = vmatprep.mubr.bf16.mxu1 %v14442_v25 }
 0x441   : > { %5498 = vmatmul.mubr.bf16.vlgmr.msra.gmra.mxu0 %v5272_v46 }
 0x442   : > { %5507 = vmatprep.mubr.bf16.mxu0 %v14442_v25 }
 0x444   : > { %v12201_v43 = vpop.f32.mrf.mxu1 }
 0x445   : > { %v12197_v53 = vpop.f32.mrf.mxu0 }
 0x446   : > { %v12211_v17 = vpop.f32.mrf.mxu1 }
 0x447   : > { %7336 = vmatmul.mubr.msk.bf16.gmra.mxu1 %vm14628_vm2, %v7945_v34  ;;  %v12199_v31 = vpop.f32.mrf.mxu0 }
 0x448   : > { %4957 = vmatprep.mubr.bf16.mxu1 %v14442_v25  ;;  %v12216_v50 = vpop.f32.mrf.mxu1 }
 0x449   : > { %5508 = vmatmul.mubr.bf16.gmra.mxu0 %v5273_v27  ;;  %v12203_v5 = vpop.f32.mrf.mxu0 }
 0x44a   : > { %5517 = vmatprep.mubr.bf16.mxu0 %v14442_v25  ;;  %v12226_v47 = vpop.f32.mrf.mxu1 }
 0x44b   : > { %v12208_v38 = vpop.f32.mrf.mxu0  ;;  %14631 = vst [vmem:[#allocation23_spill] sm:$0xff] %v12226_v47 }
 0x44d   : > { %v12214_v54 = vpop.f32.mrf.mxu0 }
 0x44f   : > { %7337 = vmatmul.mubr.msk.bf16.gmra.mxu1 %vm14629_vm13, %v7949_v15  ;;  %v12218_v55 = vpop.f32.mrf.mxu0 }
 0x450   : > { %4967 = vmatprep.mubr.bf16.mxu1 %v14442_v25 }
 0x451   : > { %5518 = vmatmul.mubr.bf16.gmra.mxu0 %v5274_v29  ;;  %v12221_v51 = vpop.f32.mrf.mxu0 }
 0x452   : > { %5527 = vmatprep.mubr.bf16.mxu0 %v14442_v25 }
 0x453   : > { %v12228_v2 = vpop.f32.mrf.mxu0 }
 0x457   : > { %7338 = vmatmul.mubr.msk.bf16.gmra.mxu1 %vm14630_vm1, %v7954_v56 }
 0x458   : > { %4977 = vmatprep.mubr.bf16.mxu1 %v14442_v25  ;;  %v12231_v30 = vpop.f32.mrf.mxu1 }
 0x459   : > { %14632 = vst [vmem:[#allocation9_spill] sm:$0xff] %v12231_v30  ;;  %v12233_v40 = vpop.f32.mrf.mxu0  ;;  %5528 = vmatmul.mubr.bf16.gmra.mxu0 %v5275_v14 }
 0x45a   : > { %5537 = vmatprep.mubr.bf16.mxu0 %v14442_v25  ;;  %v12236_v28 = vpop.f32.mrf.mxu1 }
 0x45b   : > { %14633 = vst [vmem:[#allocation31_spill] sm:$0xff] %v12236_v28  ;;  %v12238_v35 = vpop.f32.mrf.mxu0 }
 0x45c   : > { %v12246_v23 = vpop.f32.mrf.mxu1 }
 0x45d   : > { %v12243_v32 = vpop.f32.mrf.mxu0  ;;  %14636 = vst [vmem:[#allocation30_spill] sm:$0xff] %v12246_v23  ;;  %v7977_v23 = vld [vmem:[%s8742_s26 + $0x48] sm:$0xff]  }
 0x45e   : > { %14635 = vst [vmem:[#allocation11_spill] sm:$0xff] %v12243_v32  ;;  %v12253_v58 = vpop.f32.mrf.mxu1 }
 0x45f   : > { %7339 = vmatmul.mubr.msk.bf16.gmra.mxu1 %vm14634_vm3, %v7958_v21  ;;  %v12248_v18 = vpop.f32.mrf.mxu0  ;;  %14639 = vst [vmem:[#allocation8_spill] sm:$0xff] %v12253_v58  ;;  %v4128_v21 = vld [vmem:[%s12175_s20 + $0x70] sm:$0xff] }
 0x460   : > { %4987 = vmatprep.mubr.bf16.mxu1 %v14442_v25  ;;  %14637 = vst [vmem:[#allocation16_spill] sm:$0xff] %v12248_v18 }
 0x461   : > { %v12250_v41 = vpop.f32.mrf.mxu0  ;;  %5538 = vmatmul.mubr.bf16.gmra.mxu0 %v5276_v62 }
 0x462   : > { %14638 = vst [vmem:[#allocation15_spill] sm:$0xff] %v12250_v41  ;;  %5547 = vmatprep.mubr.bf16.mxu0 %v14442_v25 }
 0x463   : > { %v12255_v49 = vpop.f32.mrf.mxu0 }
 0x464   : > { %14640 = vst [vmem:[#allocation22_spill] sm:$0xff] %v12255_v49  ;;  %v7978_v49 = vld [vmem:[%s8742_s26 + $0x50] sm:$0xff]  }
 0x465   : > { %v12261_v26 = vpop.f32.mrf.mxu0 }
 0x466   : > { %14642 = vst [vmem:[#allocation18_spill] sm:$0xff] %v12261_v26 }
 0x467   : > { %7340 = vmatmul.mubr.msk.bf16.gmra.mxu1 %vm14641_vm8, %v12167_v63  ;;  %v12263_v0 = vpop.f32.mrf.mxu1  ;;  %v12265_v42 = vpop.f32.mrf.mxu0  ;;  %v4129_v63 = vld [vmem:[%s12175_s20 + $0x78] sm:$0xff] }
 0x468   : > { %7654 = vmatprep.mubr.bf16.mxu1 %v5272_v46  ;;  %14643 = vst [vmem:[#allocation19_spill] sm:$0xff] %v12263_v0  ;;  %14644 = vst [vmem:[#allocation21_spill] sm:$0xff] %v12265_v42  ;;  %v5279_v12 = vpack.c.bf16 %v4129_v63, %v4128_v21  ;;  %v4134_v21 = vld [vmem:[%s12175_s20 + $0xa0] sm:$0xff]  ;;  %v4135_v63 = vld [vmem:[%s12175_s20 + $0xa8] sm:$0xff] }
 0x469   : > { %v12267_v24 = vpop.f32.mrf.mxu1  ;;  %v12269_v37 = vpop.f32.mrf.mxu0  ;;  %5548 = vmatmul.mubr.bf16.gmra.mxu0 %v5277_v13 }
 0x46a   : > { %14645 = vst [vmem:[#allocation10_spill] sm:$0xff] %v12267_v24  ;;  %14646 = vst [vmem:[#allocation28_spill] sm:$0xff] %v12269_v37  ;;  %5557 = vmatprep.mubr.bf16.mxu0 %v14442_v25  ;;  %v7971_v24 = vld [vmem:[%s8742_s26 + $0x18] sm:$0xff]  }
 0x46b   : > { %v12272_v59 = vpop.f32.mrf.mxu1  ;;  %v12274_v3 = vpop.f32.mrf.mxu0 }
 0x46c   : > { %14647 = vst [vmem:[#allocation25_spill] sm:$0xff] %v12274_v3 }
 0x46d   : > { %v12278_v19 = vpop.f32.mrf.mxu0  ;;  %v12281_v9 = vpop.f32.mrf.mxu1 }
 0x46e   : > { %14648 = vst [vmem:[#allocation34_spill] sm:$0xff] %v12278_v19 }
 0x46f   : > { %7655 = vmatmul.mubr.bf16.vlgmr.msra.gmra.mxu1 %v5273_v27  ;;  %v12283_v61 = vpop.f32.mrf.mxu0 }
 0x470   : > { %7658 = vmatprep.mubr.bf16.mxu1 %v5274_v29  ;;  %7687 = vmatpush3.bf16.msra.mxu1 %v12146_v60  ;;  %14649 = vst [vmem:[#allocation32_spill] sm:$0xff] %v12283_v61  ;;  %v4131_v29 = vld [vmem:[%s12175_s20 + $0x88] sm:$0xff]  ;;  %v4145_v61 = vld [vmem:[%s12175_s20 + $0xf8] sm:$0xff] }
 0x471   : > { %v12285_v34 = vpop.f32.mrf.mxu0  ;;  %5558 = vmatmul.mubr.bf16.gmra.mxu0 %v5278_v8  ;;  %v5280_v16 = vpack.c.bf16 %v4131_v29, %v4130_v52 }
 0x472   : > { %14650 = vst [vmem:[#allocation40_spill] sm:$0xff] %v12285_v34  ;;  %5567 = vmatprep.mubr.bf16.mxu0 %v14442_v25 }
 0x473   : > { %v12290_v56 = vpop.f32.mrf.mxu0 }
 0x474   : > { %v12288_v15 = vpop.f32.mrf.mxu1  ;;  %14651 = vst [vmem:[#allocation13_spill] sm:$0xff] %v12290_v56 }
 0x475   : > { %v12296_v44 = vpop.f32.mrf.mxu0 }
 0x476   : > { %v12294_v60 = vpop.f32.mrf.mxu1  ;;  %14652 = vst [vmem:[#allocation39_spill] sm:$0xff] %v12296_v44  ;;  %v4141_v44 = vld [vmem:[%s12175_s20 + $0xd8] sm:$0xff] }
 0x477   : > { %7659 = vmatmul.mubr.bf16.gmra.mxu1 %v5275_v14  ;;  %v12300_v57 = vpop.f32.mrf.mxu0 }
 0x478   : > { %7662 = vmatprep.mubr.bf16.mxu1 %v5276_v62  ;;  %v12298_v46 = vpop.f32.mrf.mxu1  ;;  %14653 = vst [vmem:[#allocation26_spill] sm:$0xff] %v12300_v57  ;;  %v4140_v57 = vld [vmem:[%s12175_s20 + $0xd0] sm:$0xff] }
 0x479   : > { %v12302_v7 = vpop.f32.mrf.mxu0  ;;  %5568 = vmatmul.mubr.bf16.gmra.mxu0 %v5279_v12 }
 0x47a   : > { %14654 = vst [vmem:[#allocation29_spill] sm:$0xff] %v12302_v7  ;;  %5577 = vmatprep.mubr.bf16.mxu0 %v14442_v25  ;;  %v12305_v27 = vpop.f32.mrf.mxu1 }
 0x47b   : > { %v12307_v10 = vpop.f32.mrf.mxu0 }
 0x47c   : > { %14655 = vst [vmem:[#allocation36_spill] sm:$0xff] %v12307_v10 }
 0x47d   : > { %v12311_v39 = vpop.f32.mrf.mxu0 }
 0x47e   : > { %14656 = vst [vmem:[#allocation12_spill] sm:$0xff] %v12311_v39 }
 0x47f   : > { %7663 = vmatmul.mubr.bf16.gmra.mxu1 %v5277_v13  ;;  %v12315_v36 = vpop.f32.mrf.mxu0  ;;  %v4133_v13 = vld [vmem:[%s12175_s20 + $0x98] sm:$0xff] }
 0x480   : > { %7666 = vmatprep.mubr.bf16.mxu1 %v5278_v8  ;;  %v12313_v14 = vpop.f32.mrf.mxu1  ;;  %14657 = vst [vmem:[#allocation35_spill] sm:$0xff] %v12315_v36  ;;  %v5281_v8 = vpack.c.bf16 %v4133_v13, %v4132_v11  ;;  %v4136_v11 = vld [vmem:[%s12175_s20 + $0xb0] sm:$0xff]  ;;  %v4137_v13 = vld [vmem:[%s12175_s20 + $0xb8] sm:$0xff]  ;;  %v4138_v36 = vld [vmem:[%s12175_s20 + $0xc0] sm:$0xff] }
 0x481   : > { %v12319_v62 = vpop.f32.mrf.mxu0  ;;  %5578 = vmatmul.mubr.bf16.gmra.mxu0 %v5280_v16 }
 0x482   : > { %v12317_v4 = vpop.f32.mrf.mxu1  ;;  %14658 = vst [vmem:[#allocation48_spill] sm:$0xff] %v12319_v62  ;;  %5587 = vmatprep.mubr.bf16.mxu0 %v14442_v25  ;;  %v5282_v62 = vpack.c.bf16 %v4135_v63, %v4134_v21 }
 0x483   : > { %v12322_v45 = vpop.f32.mrf.mxu0 }
 0x484   : > { %14659 = vst [vmem:[#allocation17_spill] sm:$0xff] %v12322_v45  ;;  %v12326_v22 = vpop.f32.mrf.mxu1 }
 0x485   : > { %v12328_v20 = vpop.f32.mrf.mxu0 }
 0x486   : > { %14660 = vst [vmem:[#allocation37_spill] sm:$0xff] %v12328_v20  ;;  %v12334_v29 = vpop.f32.mrf.mxu1 }
 0x487   : > { %7667 = vmatmul.mubr.bf16.gmra.mxu1 %v5279_v12  ;;  %v12332_v52 = vpop.f32.mrf.mxu0 }
 0x488   : > { %7670 = vmatprep.mubr.bf16.mxu1 %v5280_v16  ;;  %14661 = vst [vmem:[#allocation41_spill] sm:$0xff] %v12332_v52 }
 0x489   : > { %v12336_v45 = vpop.f32.mrf.mxu0  ;;  %5588 = vmatmul.mubr.bf16.gmra.mxu0 %v5281_v8 }
 0x48a   : > { %14662 = vst [vmem:[#allocation46_spill] sm:$0xff] %v12336_v45  ;;  %5597 = vmatprep.mubr.bf16.mxu0 %v14442_v25  ;;  %v4139_v45 = vld [vmem:[%s12175_s20 + $0xc8] sm:$0xff] }
 0x48b   : > { %v12339_v12 = vpop.f32.mrf.mxu0 }
 0x48c   : > { %14663 = vst [vmem:[#allocation14_spill] sm:$0xff] %v12339_v12  ;;  %v5283_v12 = vpack.c.bf16 %v4137_v13, %v4136_v11  ;;  %v4143_v11 = vld [vmem:[%s12175_s20 + $0xe8] sm:$0xff] }
 0x48d   : > { %v12343_v16 = vpop.f32.mrf.mxu0 }
 0x48e   : > { %v12341_v20 = vpop.f32.mrf.mxu1  ;;  %14664 = vst [vmem:[#allocation45_spill] sm:$0xff] %v12343_v16 }
 0x48f   : > { %7671 = vmatmul.mubr.bf16.gmra.mxu1 %v5281_v8  ;;  %v12351_v21 = vpop.f32.mrf.mxu0  ;;  %v5284_v8 = vpack.c.bf16 %v4139_v45, %v4138_v36  ;;  %v5285_v36 = vpack.c.bf16 %v4141_v44, %v4140_v57 }
 0x490   : > { %7674 = vmatprep.mubr.bf16.mxu1 %v5282_v62  ;;  %v12347_v52 = vpop.f32.mrf.mxu1  ;;  %14665 = vst [vmem:[#allocation47_spill] sm:$0xff] %v12351_v21  ;;  %v4142_v21 = vld [vmem:[%s12175_s20 + $0xe0] sm:$0xff] }
 0x491   : > { %v12355_v39 = vpop.f32.mrf.mxu0  ;;  %5598 = vmatmul.mubr.bf16.gmra.mxu0 %v5282_v62 }
 0x492   : > { %v12353_v63 = vpop.f32.mrf.mxu1  ;;  %14666 = vst [vmem:[#allocation24_spill] sm:$0xff] %v12355_v39  ;;  %5607 = vmatprep.mubr.bf16.mxu0 %v14442_v25  ;;  %v5286_v39 = vpack.c.bf16 %v4143_v11, %v4142_v21  ;;  %v7968_v21 = vld [vmem:[%s8742_s26] sm:$0xff]  }
 0x493   : > { %v12358_v16 = vpop.f32.mrf.mxu0 }
 0x494   : > { %14667 = vst [vmem:[#allocation56_spill] sm:$0xff] %v12358_v16  ;;  %v12360_v10 = vpop.f32.mrf.mxu1 }
 0x495   : > { %v12362_v7 = vpop.f32.mrf.mxu0 }
 0x496   : > { %14668 = vst [vmem:[#allocation55_spill] sm:$0xff] %v12362_v7 }
 0x497   : > { %7675 = vmatmul.mubr.bf16.gmra.mxu1 %v5283_v12  ;;  %v12368_v13 = vpop.f32.mrf.mxu0 }
 0x498   : > { %7678 = vmatprep.mubr.bf16.mxu1 %v5284_v8  ;;  %14669 = vst [vmem:[#allocation50_spill] sm:$0xff] %v12368_v13  ;;  %v4144_v13 = vld [vmem:[%s12175_s20 + $0xf0] sm:$0xff] }
 0x499   : > { %v12372_v45 = vpop.f32.mrf.mxu0  ;;  %5608 = vmatmul.mubr.bf16.gmra.mxu0 %v5283_v12  ;;  %v5287_v12 = vpack.c.bf16 %v4145_v61, %v4144_v13 }
 0x49a   : > { %14670 = vst [vmem:[#allocation43_spill] sm:$0xff] %v12372_v45  ;;  %5617 = vmatprep.mubr.bf16.mxu0 %v14442_v25 }
 0x49b   : > { %v12370_v62 = vpop.f32.mrf.mxu1  ;;  %v12377_v7 = vpop.f32.mrf.mxu0 }
 0x49c   : > { %14672 = vst [vmem:[#allocation20_spill] sm:$0xff] %v12377_v7 }
 0x49d   : > { %v12374_v16 = vpop.f32.mrf.mxu1  ;;  %v12381_v34 = vpop.f32.mrf.mxu0 }
 0x49e   : > { %14671 = vst [vmem:[#allocation54_spill] sm:$0xff] %v12374_v16  ;;  %14674 = vst [vmem:[#allocation59_spill] sm:$0xff] %v12381_v34 }
 0x49f   : > { %7679 = vmatmul.mubr.bf16.gmra.mxu1 %v5285_v36  ;;  %v12379_v56 = vpop.f32.mrf.mxu1  ;;  %v12385_v44 = vpop.f32.mrf.mxu0 }
 0x4a0   : > { %14673 = vst [vmem:[#allocation53_spill] sm:$0xff] %v12379_v56  ;;  %7682 = vmatprep.mubr.bf16.mxu1 %v5286_v39  ;;  %14675 = vst [vmem:[#allocation66_spill] sm:$0xff] %v12385_v44  ;;  %v7981_v56 = vld [vmem:[%s8742_s26 + $0x68] sm:$0xff]  }
 0x4a1   : > { %v12387_v57 = vpop.f32.mrf.mxu1  ;;  %v12389_v45 = vpop.f32.mrf.mxu0  ;;  %5618 = vmatmul.mubr.bf16.gmra.mxu0 %v5284_v8  ;;  %v7969_v8 = vld [vmem:[%s8742_s26 + $0x8] sm:$0xff]  }
 0x4a2   : > { %14676 = vst [vmem:[#allocation33_spill] sm:$0xff] %v12387_v57  ;;  %14677 = vst [vmem:[#allocation52_spill] sm:$0xff] %v12389_v45  ;;  %5627 = vmatprep.mubr.bf16.mxu0 %v14442_v25 }
 0x4a3   : > { %v12393_v11 = vpop.f32.mrf.mxu0 }
 0x4a4   : > { %14678 = vst [vmem:[#allocation49_spill] sm:$0xff] %v12393_v11  ;;  %v7970_v11 = vld [vmem:[%s8742_s26 + $0x10] sm:$0xff]  }
 0x4a5   : > { %v12397_v7 = vpop.f32.mrf.mxu0 }
 0x4a6   : > { %14680 = vst [vmem:[#allocation63_spill] sm:$0xff] %v12397_v7 }
 0x4a7   : > { %v12395_v34 = vpop.f32.mrf.mxu1  ;;  %7683 = vmatmul.mubr.bf16.gmra.mxu1 %v5287_v12  ;;  %v12402_v61 = vpop.f32.mrf.mxu0 }
 0x4a8   : > { %14679 = vst [vmem:[#allocation65_spill] sm:$0xff] %v12395_v34  ;;  %7688 = vmatprep.mubr.msk.bf16.mxu1 %vm6643_vm5, %v7968_v21  ;;  %14682 = vst [vmem:[#allocation68_spill] sm:$0xff] %v12402_v61 }
 0x4a9   : > { %v12400_v44 = vpop.f32.mrf.mxu1  ;;  %v12407_v45 = vpop.f32.mrf.mxu0  ;;  %5628 = vmatmul.mubr.bf16.gmra.mxu0 %v5285_v36 }
 0x4aa   : > { %14681 = vst [vmem:[#allocation62_spill] sm:$0xff] %v12400_v44  ;;  %14684 = vst [vmem:[#allocation75_spill] sm:$0xff] %v12407_v45  ;;  %5637 = vmatprep.mubr.bf16.mxu0 %v14442_v25 }
 0x4ab   : > { %v12404_v13 = vpop.f32.mrf.mxu1  ;;  %v12413_v7 = vpop.f32.mrf.mxu0 }
 0x4ac   : > { %14683 = vst [vmem:[#allocation27_spill] sm:$0xff] %v12404_v13  ;;  %14686 = vst [vmem:[#allocation73_spill] sm:$0xff] %v12413_v7  ;;  %v7972_v7 = vld [vmem:[%s8742_s26 + $0x20] sm:$0xff]  }
 0x4ad   : > { %v12411_v19 = vpop.f32.mrf.mxu1  ;;  %v12418_v61 = vpop.f32.mrf.mxu0 }
 0x4ae   : > { %14685 = vst [vmem:[#allocation42_spill] sm:$0xff] %v12411_v19  ;;  %14687 = vst [vmem:[#allocation61_spill] sm:$0xff] %v12418_v61 }
 0x4af   : > { %v12415_v21 = vpop.f32.mrf.mxu1  ;;  %7689 = vmatmul.mubr.msk.bf16.vlgmr.msra.gmra.mxu1 %vm6643_vm5, %v7969_v8  ;;  %v12423_v45 = vpop.f32.mrf.mxu0 }
 0x4b0   : > { %7692 = vmatprep.mubr.msk.bf16.mxu1 %vm6643_vm5, %v7970_v11  ;;  %14688 = vst [vmem:[#allocation60_spill] sm:$0xff] %v12423_v45 }
 0x4b1   : > { %v12421_v3 = vpop.f32.mrf.mxu1  ;;  %v12428_v37 = vpop.f32.mrf.mxu0  ;;  %5638 = vmatmul.mubr.bf16.gmra.mxu0 %v5286_v39 }
 0x4b2   : > { %14689 = vst [vmem:[#allocation69_spill] sm:$0xff] %v12428_v37  ;;  %5647 = vmatprep.mubr.bf16.mxu0 %v14442_v25  ;;  %v7973_v25 = vld [vmem:[%s8742_s26 + $0x28] sm:$0xff]  }
 0x4b3   : > { %v12425_v36 = vpop.f32.mrf.mxu1  ;;  %v12434_v61 = vpop.f32.mrf.mxu0 }
 0x4b4   : > { %14690 = vst [vmem:[#allocation67_spill] sm:$0xff] %v12434_v61  ;;  %v7974_v61 = vld [vmem:[%s8742_s26 + $0x30] sm:$0xff]  }
 0x4b5   : > { %v12432_v8 = vpop.f32.mrf.mxu1  ;;  %v12439_v45 = vpop.f32.mrf.mxu0 }
 0x4b6   : > { %14691 = vst [vmem:[#allocation38_spill] sm:$0xff] %v12439_v45 }
 0x4b7   : > { %v12436_v11 = vpop.f32.mrf.mxu1  ;;  %7693 = vmatmul.mubr.msk.bf16.gmra.mxu1 %vm6643_vm5, %v7971_v24  ;;  %v12444_v37 = vpop.f32.mrf.mxu0 }
 0x4b8   : > { %7696 = vmatprep.mubr.msk.bf16.mxu1 %vm6643_vm5, %v7972_v7  ;;  %14692 = vst [vmem:[#allocation84_spill] sm:$0xff] %v12444_v37 }
 0x4b9   : > { %v12442_v19 = vpop.f32.mrf.mxu1  ;;  %v12449_v13 = vpop.f32.mrf.mxu0  ;;  %5648 = vmatmul.mubr.bf16.gmra.mxu0 %v5287_v12 }
 0x4ba   : > { %14693 = vst [vmem:[#allocation82_spill] sm:$0xff] %v12449_v13  ;;  %v7975_v13 = vld [vmem:[%s8742_s26 + $0x38] sm:$0xff]  }
 0x4bb   : > { %v12446_v39 = vpop.f32.mrf.mxu1  ;;  %v12454_v24 = vpop.f32.mrf.mxu0 }
 0x4bc   : > { %14694 = vst [vmem:[#allocation51_spill] sm:$0xff] %v12454_v24  ;;  %v7976_v24 = vld [vmem:[%s8742_s26 + $0x40] sm:$0xff]  }
 0x4bd   : > { %v12452_v44 = vpop.f32.mrf.mxu1  ;;  %v12459_v7 = vpop.f32.mrf.mxu0 }
 0x4be   : > { %14695 = vst [vmem:[#allocation72_spill] sm:$0xff] %v12459_v7 }
 0x4bf   : > { %v12456_v45 = vpop.f32.mrf.mxu1  ;;  %7697 = vmatmul.mubr.msk.bf16.gmra.mxu1 %vm6643_vm5, %v7973_v25  ;;  %v12464_v0 = vpop.f32.mrf.mxu0 }
 0x4c0   : > { %7700 = vmatprep.mubr.msk.bf16.mxu1 %vm6643_vm5, %v7974_v61  ;;  %14696 = vst [vmem:[#allocation71_spill] sm:$0xff] %v12464_v0 }
 0x4c1   : > { %v12462_v37 = vpop.f32.mrf.mxu1  ;;  %v12469_v42 = vpop.f32.mrf.mxu0 }
 0x4c3   : > { %v12466_v12 = vpop.f32.mrf.mxu1  ;;  %v12474_v58 = vpop.f32.mrf.mxu0 }
 0x4c5   : > { %v12472_v34 = vpop.f32.mrf.mxu1  ;;  %v12479_v61 = vpop.f32.mrf.mxu0 }
 0x4c7   : > { %v12476_v25 = vpop.f32.mrf.mxu1  ;;  %7701 = vmatmul.mubr.msk.bf16.gmra.mxu1 %vm6643_vm5, %v7975_v13  ;;  %v12484_v7 = vpop.f32.mrf.mxu0  ;;  %v5161_v13 = vlaneseq }
 0x4c8   : > { %7704 = vmatprep.mubr.msk.bf16.mxu1 %vm6643_vm5, %v7976_v24  ;;  %14697 = vst [vmem:[#allocation81_spill] sm:$0xff] %v12484_v7 }
 0x4c9   : > { %v12482_v0 = vpop.f32.mrf.mxu1  ;;  %v12489_v28 = vpop.f32.mrf.mxu0 }
 0x4ca   : > { %14699 = vst [vmem:[#allocation44_spill] sm:$0xff] %v12489_v28  ;;  %v12506_v28 = vshrl.u32 %v5161_v13, 7 }
 0x4cb   : > { %v12486_v26 = vpop.f32.mrf.mxu1  ;;  %v12494_v57 = vpop.f32.mrf.mxu0 }
 0x4cc   : > { %14698 = vst [vmem:[#allocation76_spill] sm:$0xff] %v12486_v26  ;;  %14701 = vst [vmem:[#allocation93_spill] sm:$0xff] %v12494_v57  ;;  %v14128_v57 = vsub.s32 2, %v12506_v28 }
 0x4cd   : > { %v12492_v41 = vpop.f32.mrf.mxu1  ;;  %v12499_v24 = vpop.f32.mrf.mxu0 }
 0x4ce   : > { %14700 = vst [vmem:[#allocation80_spill] sm:$0xff] %v12492_v41  ;;  %14703 = vst [vmem:[#allocation58_spill] sm:$0xff] %v12499_v24  ;;  %v7979_v41 = vld [vmem:[%s8742_s26 + $0x58] sm:$0xff]  }
 0x4cf   : > { %v12496_v30 = vpop.f32.mrf.mxu1  ;;  %7705 = vmatmul.mubr.msk.bf16.gmra.mxu1 %vm6643_vm5, %v7977_v23  ;;  %v12504_v7 = vpop.f32.mrf.mxu0 }
 0x4d0   : > { %14702 = vst [vmem:[#allocation92_spill] sm:$0xff] %v12496_v30  ;;  %7708 = vmatprep.mubr.msk.bf16.mxu1 %vm6643_vm5, %v7978_v49  ;;  %14705 = vst [vmem:[#allocation77_spill] sm:$0xff] %v12504_v7  ;;  %v7980_v30 = vld [vmem:[%s8742_s26 + $0x60] sm:$0xff]  }
 0x4d1   : > { %v12502_v18 = vpop.f32.mrf.mxu1  ;;  %v12511_v26 = vpop.f32.mrf.mxu0  ;;  %v5159_v49 = vld [vmem:[%s13940_s9] sm:$0x7] }
 0x4d2   : > { %14704 = vst [vmem:[#allocation79_spill] sm:$0xff] %v12502_v18  ;;  %14707 = vst [vmem:[#allocation57_spill] sm:$0xff] %v12511_v26  ;;  %v12527_v26 = vrot.slane %v5159_v49, %v14128_v57 }
 0x4d3   : > { %v12508_v47 = vpop.f32.mrf.mxu1  ;;  %v12517_v24 = vpop.f32.mrf.mxu0 }
 0x4d4   : > { %14706 = vst [vmem:[#allocation86_spill] sm:$0xff] %v12508_v47  ;;  %14709 = vst [vmem:[#allocation91_spill] sm:$0xff] %v12517_v24 }
 0x4d5   : > { %v12515_v23 = vpop.f32.mrf.mxu1  ;;  %v7617_v7 = vpop.f32.mrf.mxu0 }
 0x4d6   : > { %14708 = vst [vmem:[#allocation85_spill] sm:$0xff] %v12515_v23  ;;  %v5076_v47 = vadd.f32 %v7617_v7, %v12272_v59  ;;  %v7982_v59 = vld [vmem:[%s8742_s26 + $0x70] sm:$0xff]  }
 0x4d7   : > { %v12522_v13 = vpop.f32.mrf.mxu1  ;;  %7709 = vmatmul.mubr.msk.bf16.gmra.mxu1 %vm6643_vm5, %v7979_v41  ;;  %v5067_v24 = vpop.f32.mrf.mxu0 }
 0x4d8   : > { %14710 = vst [vmem:[#allocation88_spill] sm:$0xff] %v12522_v13  ;;  %7712 = vmatprep.mubr.msk.bf16.mxu1 %vm6643_vm5, %v7980_v30  ;;  %v12534_v18 = vadd.f32 %v12527_v26, %v5076_v47  ;;  %v5068_v32 = vadd.f32 %v5067_v24, %v12281_v9 }
 0x4d9   : > { %v12531_v23 = vpop.f32.mrf.mxu1  ;;  %v7620_v41 = vpop.f32.mrf.mxu0 }
 0x4da   : > { %14711 = vst [vmem:[#allocation104_spill] sm:$0xff] %v12531_v23  ;;  %14712 = vst [vmem:[#allocation70_spill] sm:$0xff] %v12534_v18  ;;  %v12541_v16 = vadd.f32 %v12527_v26, %v5068_v32  ;;  %v5089_v57 = vadd.f32 %v7620_v41, %v12288_v15 }
 0x4db   : > { %v12537_v13 = vpop.f32.mrf.mxu1  ;;  %v5080_v30 = vpop.f32.mrf.mxu0 }
 0x4dc   : > { %14713 = vst [vmem:[#allocation103_spill] sm:$0xff] %v12541_v16  ;;  %v12548_v23 = vadd.f32 %v12527_v26, %v5089_v57  ;;  %v5081_v47 = vadd.f32 %v5080_v30, %v12294_v60 }
 0x4dd   : > { %v12545_v7 = vpop.f32.mrf.mxu1  ;;  %v7621_v24 = vpop.f32.mrf.mxu0 }
 0x4de   : > { %14714 = vst [vmem:[#allocation90_spill] sm:$0xff] %v12548_v23  ;;  %v12555_v32 = vadd.f32 %v12527_v26, %v5081_v47  ;;  %v5092_v15 = vadd.f32 %v7621_v24, %v12298_v46 }
 0x4df   : > { %v12551_v9 = vpop.f32.mrf.mxu1  ;;  %7713 = vmatmul.mubr.msk.bf16.gmra.mxu1 %vm6643_vm5, %v7981_v56  ;;  %v5083_v16 = vpop.f32.mrf.mxu0  ;;  %v7983_v56 = vld [vmem:[%s8742_s26 + $0x78] sm:$0xff]   ;;  %s14130_s26 = sshll.u32 %s8672_s17, 12 }
 0x4e0   : > { %14715 = vst [vmem:[#allocation87_spill] sm:$0xff] %v12555_v32  ;;  %7716 = vmatprep.mubr.msk.bf16.mxu1 %vm6643_vm5, %v7982_v59  ;;  %v12562_v57 = vadd.f32 %v12527_v26, %v5092_v15  ;;  %v5084_v60 = vadd.f32 %v5083_v16, %v12305_v27  ;;  %v5167_v27 = vsub.s32 1, %v12506_v28  ;;  %s13846_s18 = scalar_lea.hbm %s13944_s13, %s14130_s26 }
 0x4e1   : > { %v12559_v41 = vpop.f32.mrf.mxu1  ;;  %v7624_v23 = vpop.f32.mrf.mxu0 }
 0x4e2   : > { %14716 = vst [vmem:[#allocation95_spill] sm:$0xff] %v12562_v57  ;;  %v12569_v18 = vadd.f32 %v12527_v26, %v5084_v60  ;;  %v5105_v47 = vadd.f32 %v7624_v23, %v12313_v14  ;;  %v5163_v57 = vsub.s32 0, %v12506_v28 }
 0x4e3   : > { %v12565_v30 = vpop.f32.mrf.mxu1  ;;  %v5096_v59 = vpop.f32.mrf.mxu0 }
 0x4e4   : > { %14717 = vst [vmem:[#allocation94_spill] sm:$0xff] %v12569_v18  ;;  %v12575_v24 = vadd.f32 %v12527_v26, %v5105_v47  ;;  %v5097_v15 = vadd.f32 %v5096_v59, %v12317_v4  ;;  %v4840_v59 = vadd.f32 %v12415_v21, %v12182_v33  ;;  %v12595_v18 = vrot.slane %v5159_v49, %v5163_v57  ;;  %v5320_v33 = vld [vmem:[%s13941_s10] sm:$0x7] }
 0x4e5   : > { %v12572_v46 = vpop.f32.mrf.mxu1  ;;  %v7625_v32 = vpop.f32.mrf.mxu0  ;;  %v4846_v21 = vadd.f32 %v12432_v8, %v12190_v48  ;;  %v14725_v48 = vsub.s32 2, %v12506_v28 }
 0x4e6   : > { %14718 = vst [vmem:[#allocation101_spill] sm:$0xff] %v12575_v24  ;;  %v12584_v60 = vadd.f32 %v12527_v26, %v5097_v15  ;;  %v5108_v14 = vadd.f32 %v7625_v32, %v12326_v22  ;;  %v4842_v22 = vadd.f32 %v12421_v3, %v12186_v6  ;;  %v4844_v32 = vadd.f32 %v12425_v36, %v12188_v1 }
 0x4e7   : > { %v12580_v16 = vpop.f32.mrf.mxu1  ;;  %7717 = vmatmul.mubr.msk.bf16.gmra.mxu1 %vm6643_vm5, %v7983_v56  ;;  %v5099_v47 = vpop.f32.mrf.mxu0  ;;  %v12631_v8 = vrot.slane %v5320_v33, %v14725_v48 }
 0x4e8   : > { %14719 = vst [vmem:[#allocation98_spill] sm:$0xff] %v12580_v16  ;;  %14720 = vst [vmem:[#allocation64_spill] sm:$0xff] %v12584_v60  ;;  %v12590_v24 = vadd.f32 %v12527_v26, %v5108_v14  ;;  %v5100_v4 = vadd.f32 %v5099_v47, %v12334_v29  ;;  %v12597_v16 = vrot.slane %v5159_v49, %v5167_v27 }
 0x4e9   : > { %v12587_v23 = vpop.f32.mrf.mxu1  ;;  %v7628_v15 = vpop.f32.mrf.mxu0  ;;  %v4850_v49 = vadd.f32 %v12436_v11, %v12197_v53  ;;  %v12633_v53 = vrot.slane %v5320_v33, %v5167_v27  ;;  %v4852_v27 = vadd.f32 %v12442_v19, %v12199_v31  ;;  %v4862_v31 = vadd.f32 %v12462_v37, %v12218_v55 }
 0x4ea   : > { %14721 = vst [vmem:[#allocation108_spill] sm:$0xff] %v12590_v24  ;;  %14722 = vst [vmem:[#allocation107_spill] sm:$0xff] %v12597_v16  ;;  %v12606_v14 = vadd.f32 %v12527_v26, %v5100_v4  ;;  %v5121_v29 = vadd.f32 %v7628_v15, %v12341_v20  ;;  %v12623_v20 = vadd.f32 %v12595_v18, %v4840_v59  ;;  %v14756_v24 = vld [vmem:[#allocation8_spill] sm:$0xff] }
 0x4eb   : > { %v12599_v56 = vpop.f32.mrf.mxu1  ;;  %v5112_v6 = vpop.f32.mrf.mxu0  ;;  %v12627_v15 = vrot.slane %v5320_v33, %v5163_v57  ;;  %v12636_v11 = vadd.f32 %v12597_v16, %v4842_v22  ;;  %v12646_v57 = vadd.f32 %v12597_v16, %v4846_v21  ;;  %v12649_v28 = vadd.f32 %v12595_v18, %v4850_v49 }
 0x4ec   : > { %14723 = vst [vmem:[#allocation99_spill] sm:$0xff] %v12606_v14  ;;  %v12619_v1 = vadd.f32 %v12527_v26, %v5121_v29  ;;  %v5113_v3 = vadd.f32 %v5112_v6, %v12347_v52  ;;  %v12639_v29 = vadd.f32 %v12595_v18, %v4844_v32  ;;  %v4854_v22 = vadd.f32 %v12446_v39, %v12203_v5  ;;  %v14730_v39 = vld [vmem:[#allocation54_spill] sm:$0xff] }
 0x4ed   : > { %v12616_v47 = vpop.f32.mrf.mxu1  ;;  %v7629_v4 = vpop.f32.mrf.mxu0  ;;  %v4856_v6 = vadd.f32 %v12452_v44, %v12208_v38  ;;  %v4864_v5 = vadd.f32 %v12466_v12, %v12221_v51  ;;  %v4866_v19 = vadd.f32 %v12472_v34, %v12228_v2  ;;  %v5041_v38 = vadd.f32 %v12469_v42, %v12201_v43  ;;  %v14753_v14 = vld [vmem:[#allocation58_spill] sm:$0xff] }
 0x4ee   : > { %14724 = vst [vmem:[#allocation97_spill] sm:$0xff] %v12619_v1  ;;  %v12642_v52 = vadd.f32 %v12527_v26, %v5113_v3  ;;  %v5124_v59 = vadd.f32 %v7629_v4, %v12353_v63  ;;  %v4860_v63 = vadd.f32 %v12456_v45, %v12214_v54  ;;  %v4870_v45 = vadd.f32 %v12476_v25, %v12233_v40  ;;  %v14752_v1 = vld [vmem:[#allocation30_spill] sm:$0xff] }
 0x4ef   : > { %v12625_v36 = vpop.f32.mrf.mxu1  ;;  %v5115_v32 = vpop.f32.mrf.mxu0  ;;  %v12684_v37 = vadd.f32 %v12597_v16, %v4852_v27  ;;  %v12687_v2 = vadd.f32 %v12595_v18, %v4854_v22  ;;  %v4872_v43 = vadd.f32 %v12482_v0, %v12238_v35  ;;  %v5044_v40 = vadd.f32 %v12479_v61, %v12216_v50  ;;  %v14734_v27 = vld [vmem:[#allocation53_spill] sm:$0xff] }
 0x4f0   : > { %14726 = vst [vmem:[#allocation78_spill] sm:$0xff] %v12642_v52  ;;  %v12662_v21 = vadd.f32 %v12527_v26, %v5124_v59  ;;  %v5116_v49 = vadd.f32 %v5115_v32, %v12360_v10  ;;  %v5033_v10 = vadd.f32 %v12474_v58, %v12211_v17  ;;  %v12696_v58 = vadd.f32 %v12597_v16, %v4856_v6  ;;  %v14735_v6 = vld [vmem:[#allocation11_spill] sm:$0xff] }
 0x4f1   : > { %v12655_v33 = vpop.f32.mrf.mxu1  ;;  %v7632_v54 = vpop.f32.mrf.mxu0  ;;  %v12699_v34 = vadd.f32 %v12595_v18, %v4860_v63  ;;  %v12706_v25 = vadd.f32 %v12597_v16, %v4862_v31  ;;  %v12709_v35 = vadd.f32 %v12595_v18, %v4864_v5  ;;  %v12712_v50 = vadd.f32 %v12597_v16, %v4866_v19  ;;  %v14736_v63 = vld [vmem:[#allocation76_spill] sm:$0xff]  ;;  %v14738_v5 = vld [vmem:[#allocation23_spill] sm:$0xff]  ;;  %v14739_v19 = vld [vmem:[#allocation81_spill] sm:$0xff] }
 0x4f2   : > { %14727 = vst [vmem:[#allocation106_spill] sm:$0xff] %v12662_v21  ;;  %v12680_v55 = vadd.f32 %v12527_v26, %v5116_v49  ;;  %v5137_v51 = vadd.f32 %v7632_v54, %v12370_v62  ;;  %v12715_v0 = vadd.f32 %v12527_v26, %v5041_v38  ;;  %v12720_v4 = vadd.f32 %v12595_v18, %v4870_v45  ;;  %v14751_v21 = vld [vmem:[#allocation93_spill] sm:$0xff] }
 0x4f3   : > { %v12673_v44 = vpop.f32.mrf.mxu1  ;;  %v5128_v17 = vpop.f32.mrf.mxu0  ;;  %v12723_v48 = vadd.f32 %v12527_v26, %v5033_v10  ;;  %v12730_v32 = vadd.f32 %v12597_v16, %v4872_v43  ;;  %v4874_v49 = vadd.f32 %v14736_v63, %v14735_v6  ;;  %v12735_v31 = vadd.f32 %v12527_v26, %v5044_v40  ;;  %v14740_v10 = vld [vmem:[#allocation16_spill] sm:$0xff]  ;;  %v14746_v63 = vld [vmem:[#allocation15_spill] sm:$0xff] }
 0x4f4   : > { %14728 = vst [vmem:[#allocation105_spill] sm:$0xff] %v12680_v55  ;;  %v12702_v62 = vadd.f32 %v12527_v26, %v5137_v51  ;;  %v5129_v12 = vadd.f32 %v5128_v17, %v14730_v39  ;;  %14731 = vst [vmem:[#allocation117_spill] sm:$0xff] %v12715_v0  ;;  %v5036_v38 = vadd.f32 %v14739_v19, %v14738_v5  ;;  %v14741_v51 = vld [vmem:[#allocation80_spill] sm:$0xff]  ;;  %v14742_v39 = vld [vmem:[#allocation9_spill] sm:$0xff] }
 0x4f5   : > { %v12693_v42 = vpop.f32.mrf.mxu1  ;;  %v7633_v3 = vpop.f32.mrf.mxu0  ;;  %14732 = vst [vmem:[#allocation102_spill] sm:$0xff] %v12723_v48  ;;  %14737 = vst [vmem:[#allocation89_spill] sm:$0xff] %v12735_v31  ;;  %v4876_v17 = vadd.f32 %v14741_v51, %v14740_v10  ;;  %v14747_v40 = vld [vmem:[#allocation92_spill] sm:$0xff]  ;;  %v14749_v55 = vld [vmem:[#allocation79_spill] sm:$0xff]  ;;  %v5060_v10 = vadd.f32 %v14753_v14, %v14752_v1 }
 0x4f6   : > { %14729 = vst [vmem:[#allocation74_spill] sm:$0xff] %v12702_v62  ;;  %v12726_v59 = vadd.f32 %v12527_v26, %v5129_v12  ;;  %v5140_v22 = vadd.f32 %v7633_v3, %v14734_v27  ;;  %v14743_v12 = vld [vmem:[#allocation44_spill] sm:$0xff]  ;;  %v14745_v27 = vld [vmem:[#allocation33_spill] sm:$0xff]  ;;  %v14748_v62 = vld [vmem:[#allocation22_spill] sm:$0xff]  ;;  %v12773_v1 = vadd.f32 %v12527_v26, %v5036_v38 }
 0x4f7   : > { %v12717_v61 = vpop.f32.mrf.mxu1  ;;  %v5131_v45 = vpop.f32.mrf.mxu0  ;;  %v5057_v3 = vadd.f32 %v14743_v12, %v14742_v39  ;;  %v4882_v5 = vadd.f32 %v14749_v55, %v14748_v62  ;;  %v14750_v19 = vld [vmem:[#allocation31_spill] sm:$0xff]  ;;  %v14754_v12 = vld [vmem:[#allocation18_spill] sm:$0xff]  ;;  %v12768_v62 = vadd.f32 %v12595_v18, %v4874_v49 }
 0x4f8   : > { %14733 = vst [vmem:[#allocation110_spill] sm:$0xff] %v12726_v59  ;;  %v12746_v43 = vadd.f32 %v12527_v26, %v5140_v22  ;;  %v5132_v6 = vadd.f32 %v5131_v45, %v14745_v27  ;;  %v4880_v59 = vadd.f32 %v14747_v40, %v14746_v63  ;;  %v5049_v52 = vadd.f32 %v14751_v21, %v14750_v19  ;;  %v14755_v22 = vld [vmem:[#allocation86_spill] sm:$0xff]  ;;  %v14757_v45 = vld [vmem:[#allocation77_spill] sm:$0xff]  ;;  %v14786_v48 = vld [vmem:[#allocation39_spill] sm:$0xff] }
 0x4f9   : > { %v12739_v54 = vpop.f32.mrf.mxu1  ;;  %v7636_v39 = vpop.f32.mrf.mxu0  ;;  %v5052_v27 = vadd.f32 %v14757_v45, %v14756_v24  ;;  %v14759_v40 = vld [vmem:[#allocation65_spill] sm:$0xff]  ;;  %14762 = vst [vmem:[#allocation111_spill] sm:$0xff] %v12773_v1  ;;  %v14767_v45 = vld [vmem:[#allocation62_spill] sm:$0xff] }
 0x4fa   : > { %14744 = vst [vmem:[#allocation112_spill] sm:$0xff] %v12746_v43  ;;  %v4884_v43 = vadd.f32 %v14755_v22, %v14754_v12  ;;  %v12764_v63 = vadd.f32 %v12527_v26, %v5132_v6  ;;  %v5153_v55 = vadd.f32 %v7636_v39, %v14759_v40  ;;  %v14760_v21 = vld [vmem:[#allocation21_spill] sm:$0xff]  ;;  %v14763_v12 = vld [vmem:[#allocation19_spill] sm:$0xff]  ;;  %v12780_v6 = vadd.f32 %v12597_v16, %v4876_v17  ;;  %v14780_v0 = vld [vmem:[#allocation34_spill] sm:$0xff] }
 0x4fb   : > { %v12757_v51 = vpop.f32.mrf.mxu1  ;;  %v14761_v19 = vld [vmem:[#allocation85_spill] sm:$0xff]  ;;  %v5144_v24 = vpop.f32.mrf.mxu0  ;;  %v12783_v39 = vadd.f32 %v12527_v26, %v5057_v3  ;;  %v12790_v38 = vadd.f32 %v12595_v18, %v4880_v59  ;;  %v12799_v17 = vadd.f32 %v12527_v26, %v5060_v10  ;;  %v14774_v10 = vld [vmem:[#allocation88_spill] sm:$0xff] }
 0x4fc   : > { %14758 = vst [vmem:[#allocation83_spill] sm:$0xff] %v12764_v63  ;;  %v4886_v14 = vadd.f32 %v14761_v19, %v14760_v21  ;;  %v14764_v22 = vld [vmem:[#allocation57_spill] sm:$0xff]  ;;  %v12786_v49 = vadd.f32 %v12527_v26, %v5153_v55  ;;  %v5145_v40 = vadd.f32 %v5144_v24, %v14767_v45  ;;  %v12793_v21 = vadd.f32 %v12597_v16, %v4882_v5  ;;  %v14772_v5 = vld [vmem:[#allocation27_spill] sm:$0xff]  ;;  %v14773_v45 = vld [vmem:[#allocation28_spill] sm:$0xff] }
 0x4fd   : > { %v12775_v60 = vpop.f32.mrf.mxu1  ;;  %v5073_v31 = vadd.f32 %v14764_v22, %v14763_v12  ;;  %14765 = vst [vmem:[#allocation116_spill] sm:$0xff] %v12783_v39  ;;  %v12796_v19 = vadd.f32 %v12527_v26, %v5049_v52  ;;  %14769 = vst [vmem:[#allocation113_spill] sm:$0xff] %v12799_v17  ;;  %v7637_v3 = vpop.f32.mrf.mxu0  ;;  %v12804_v55 = vadd.f32 %v12595_v18, %v4884_v43  ;;  %v14776_v17 = vld [vmem:[#allocation10_spill] sm:$0xff]  ;;  %v14777_v43 = vld [vmem:[#allocation91_spill] sm:$0xff] }
 0x4fe   : > { %14766 = vst [vmem:[#allocation118_spill] sm:$0xff] %v12786_v49  ;;  %v12807_v22 = vadd.f32 %v12527_v26, %v5052_v27  ;;  %v12810_v59 = vadd.f32 %v12527_v26, %v5145_v40  ;;  %v5156_v24 = vadd.f32 %v7637_v3, %v14772_v5  ;;  %v12814_v52 = vadd.f32 %v12597_v16, %v4886_v14  ;;  %v14779_v40 = vld [vmem:[#allocation104_spill] sm:$0xff]  ;;  %v14782_v5 = vld [vmem:[#allocation42_spill] sm:$0xff] }
 0x4ff   : > { %14768 = vst [vmem:[#allocation114_spill] sm:$0xff] %v12796_v19  ;;  %v12801_v12 = vpop.f32.mrf.mxu1  ;;  %v4890_v49 = vadd.f32 %v14774_v10, %v14773_v45  ;;  %v12819_v63 = vadd.f32 %v12527_v26, %v5073_v31  ;;  %v5065_v19 = vadd.f32 %v14777_v43, %v14776_v17  ;;  %v5147_v27 = vpop.f32.mrf.mxu0  ;;  %v4894_v3 = vadd.f32 %v12537_v13, %v14780_v0  ;;  %v14783_v10 = vld [vmem:[#allocation32_spill] sm:$0xff]  ;;  %v14785_v43 = vld [vmem:[#allocation13_spill] sm:$0xff]  ;;  %v14787_v0 = vld [vmem:[#allocation26_spill] sm:$0xff] }
 0x500   : > { %14770 = vst [vmem:[#allocation100_spill] sm:$0xff] %v12807_v22  ;;  %14771 = vst [vmem:[#allocation96_spill] sm:$0xff] %v12810_v59  ;;  %v14778_v22 = vld [vmem:[#allocation25_spill] sm:$0xff]  ;;  %v12830_v14 = vadd.f32 %v12527_v26, %v5156_v24  ;;  %v5148_v45 = vadd.f32 %v5147_v27, %v14782_v5  ;;  %v4896_v31 = vadd.f32 %v12545_v7, %v14783_v10  ;;  %v14789_v27 = vld [vmem:[#allocation98_spill] sm:$0xff] }
 0x501   : > { %14775 = vst [vmem:[#allocation120_spill] sm:$0xff] %v12819_v63  ;;  %v12823_v39 = vpop.f32.mrf.mxu1  ;;  %v4892_v59 = vadd.f32 %v14779_v40, %v14778_v22  ;;  %v14784_v63 = vld [vmem:[#allocation40_spill] sm:$0xff]  ;;  %v4902_v1 = vadd.f32 %v12559_v41, %v14785_v43  ;;  %v4904_v22 = vadd.f32 %v12565_v30, %v14786_v48  ;;  %v5499_v13 = vpop.f32.mrf.mxu0  ;;  %v4906_v24 = vadd.f32 %v12572_v46, %v14787_v0 }
 0x502   : > { %14781 = vst [vmem:[#allocation119_spill] sm:$0xff] %v12830_v14  ;;  %v4900_v17 = vadd.f32 %v12551_v9, %v14784_v63  ;;  %v14788_v14 = vld [vmem:[#allocation29_spill] sm:$0xff]  ;;  %v12848_v7 = vadd.f32 %v12527_v26, %v5148_v45  ;;  %v5500_v9 = vadd.f32 %v5499_v13, %v12627_v15  ;;  %v12852_v63 = vadd.f32 %v12595_v18, %v4890_v49  ;;  %v14791_v41 = vld [vmem:[#allocation36_spill] sm:$0xff] }
 0x503   : > { %v12841_v40 = vpop.f32.mrf.mxu1  ;;  %v4910_v5 = vadd.f32 %v14789_v27, %v14788_v14  ;;  %v4912_v30 = vadd.f32 %v12587_v23, %v14791_v41  ;;  %v14792_v48 = vld [vmem:[#allocation12_spill] sm:$0xff]  ;;  %v12859_v43 = vadd.f32 %v12527_v26, %v5065_v19  ;;  %v5501_v14 = vpop.f32.mrf.mxu0  ;;  %v12864_v45 = vadd.f32 %v12597_v16, %v4892_v59  ;;  %v14797_v41 = vld [vmem:[#allocation35_spill] sm:$0xff] }
 0x504   : > { %14790 = vst [vmem:[#allocation121_spill] sm:$0xff] %v12848_v7  ;;  %v4914_v10 = vadd.f32 %v12599_v56, %v14792_v48  ;;  %v12867_v13 = vadd.f32 %v12595_v18, %v4894_v3  ;;  %v5819_v49 = vadd.f32 %v5500_v9, %v12623_v20  ;;  %v5502_v0 = vadd.f32 %v5501_v14, %v12633_v53  ;;  %v14798_v7 = vld [vmem:[#allocation48_spill] sm:$0xff] }
 0x505   : > { %14793 = vst [vmem:[#allocation122_spill] sm:$0xff] %v12859_v43  ;;  %v12861_v46 = vpop.f32.mrf.mxu1  ;;  %v12872_v23 = vadd.f32 %v12597_v16, %v4896_v31  ;;  %v12875_v56 = vadd.f32 %v12595_v18, %v4900_v17  ;;  %v12878_v26 = vadd.f32 %v12597_v16, %v4902_v1  ;;  %v12881_v19 = vadd.f32 %v12595_v18, %v4904_v22  ;;  %v5503_v27 = vpop.f32.mrf.mxu0  ;;  %v14799_v43 = vld [vmem:[#allocation17_spill] sm:$0xff] }
 0x506   : > { %v12884_v3 = vadd.f32 %v12597_v16, %v4906_v24  ;;  %v12887_v20 = vadd.f32 %v12595_v18, %v4910_v5  ;;  %v7381_v9 = vmul.f32 -1.442695, %v5819_v49  ;;  %v6043_v31 = vadd.f32 %v5502_v0, %v12636_v11 }
 0x507   : > { %v4949_v59 = vpop.f32.mrf.mxu1  ;;  %v12891_v17 = vadd.f32 %v12597_v16, %v4912_v30  ;;  %v12894_v1 = vadd.f32 %v12595_v18, %v4914_v10  ;;  %v4916_v22 = vadd.f32 %v12616_v47, %v14797_v41  ;;  %v5504_v14 = vadd.f32 %v5503_v27, %v12627_v15  ;;  %v5505_v24 = vpop.f32.mrf.mxu0  ;;  %v14800_v30 = vld [vmem:[#allocation37_spill] sm:$0xff] }
 0x508   : > { %14794 = vst [vmem:[#allocation126_spill] sm:$0xff] %v12887_v20  ;;  %v4920_v5 = vadd.f32 %v12625_v36, %v14798_v7  ;;  %v4922_v49 = vadd.f32 %v12655_v33, %v14799_v43  ;;  %8112 = vpow2.f32 %v7381_v9  ;;  %v7413_v11 = vmul.f32 -1.442695, %v6043_v31  ;;  %v14801_v10 = vld [vmem:[#allocation41_spill] sm:$0xff]  ;;  %v14802_v20 = vld [vmem:[#allocation46_spill] sm:$0xff] }
 0x509   : > { %14795 = vst [vmem:[#allocation123_spill] sm:$0xff] %v12891_v17  ;;  %14796 = vst [vmem:[#allocation109_spill] sm:$0xff] %v12894_v1  ;;  %v4951_v48 = vpop.f32.mrf.mxu1  ;;  %v4924_v0 = vadd.f32 %v12673_v44, %v14800_v30  ;;  %v4926_v1 = vadd.f32 %v12693_v42, %v14801_v10  ;;  %v5820_v47 = vadd.f32 %v5504_v14, %v12639_v29  ;;  %v5509_v41 = vpop.f32.mrf.mxu0  ;;  %v14803_v7 = vld [vmem:[#allocation14_spill] sm:$0xff]  ;;  %v14804_v9 = vld [vmem:[#allocation45_spill] sm:$0xff] }
 0x50a   : > { %v5506_v27 = vadd.f32 %v5505_v24, %v12633_v53  ;;  %v4930_v36 = vadd.f32 %v12717_v61, %v14802_v20  ;;  %v4932_v33 = vadd.f32 %v12739_v54, %v14803_v7  ;;  %8114 = vpow2.f32 %v7413_v11 }
 0x50b   : > { %v4953_v17 = vpop.f32.mrf.mxu1  ;;  %v5510_v43 = vadd.f32 %v5509_v41, %v12627_v15  ;;  %v12915_v44 = vadd.f32 %v12597_v16, %v4916_v22  ;;  %v4934_v42 = vadd.f32 %v12757_v51, %v14804_v9  ;;  %v7382_v29 = vmul.f32 -1.442695, %v5820_v47  ;;  %v5511_v24 = vpop.f32.mrf.mxu0  ;;  %v14807_v9 = vld [vmem:[#allocation24_spill] sm:$0xff] }
 0x50c   : > { %v6044_v14 = vadd.f32 %v5506_v27, %v12646_v57  ;;  %v12921_v30 = vadd.f32 %v12595_v18, %v4920_v5  ;;  %v12924_v61 = vadd.f32 %v12597_v16, %v4922_v49  ;;  %v5512_v20 = vadd.f32 %v5511_v24, %v12633_v53  ;;  %v14810_v24 = vld [vmem:[#allocation50_spill] sm:$0xff] }
 0x50d   : > { %v4955_v31 = vpop.f32.mrf.mxu1  ;;  %v5821_v54 = vadd.f32 %v5510_v43, %v12649_v28  ;;  %v12929_v22 = vadd.f32 %v12595_v18, %v4924_v0  ;;  %v12932_v51 = vadd.f32 %v12597_v16, %v4926_v1  ;;  %8116 = vpow2.f32 %v7382_v29  ;;  %v5513_v10 = vpop.f32.mrf.mxu0  ;;  %v14806_v0 = vld [vmem:[#allocation47_spill] sm:$0xff]  ;;  %v14808_v29 = vld [vmem:[#allocation56_spill] sm:$0xff] }
 0x50e   : > { %v7414_v57 = vmul.f32 -1.442695, %v6044_v14  ;;  %v12935_v5 = vadd.f32 %v12595_v18, %v4930_v36  ;;  %v12938_v49 = vadd.f32 %v12597_v16, %v4932_v33  ;;  %v6045_v28 = vadd.f32 %v5512_v20, %v12684_v37  ;;  %v14809_v37 = vld [vmem:[#allocation55_spill] sm:$0xff] }
 0x50f   : > { %v4959_v11 = vpop.f32.mrf.mxu1  ;;  %v7383_v47 = vmul.f32 -1.442695, %v5821_v54  ;;  %v12942_v27 = vadd.f32 %v12595_v18, %v4934_v42  ;;  %v4936_v1 = vadd.f32 %v12775_v60, %v14806_v0  ;;  %v5514_v7 = vadd.f32 %v5513_v10, %v12627_v15  ;;  %v5515_v43 = vpop.f32.mrf.mxu0  ;;  %v14811_v0 = vld [vmem:[#allocation43_spill] sm:$0xff] }
 0x510   : > { %8118 = vpow2.f32 %v7414_v57  ;;  %v4940_v36 = vadd.f32 %v12801_v12, %v14807_v9  ;;  %v4942_v33 = vadd.f32 %v12823_v39, %v14808_v29  ;;  %v7415_v14 = vmul.f32 -1.442695, %v6045_v28  ;;  %v14812_v12 = vld [vmem:[#allocation20_spill] sm:$0xff] }
 0x511   : > { %14805 = vst [vmem:[#allocation124_spill] sm:$0xff] %v12942_v27  ;;  %v4961_v41 = vpop.f32.mrf.mxu1  ;;  %8120 = vpow2.f32 %v7383_v47  ;;  %v4944_v42 = vadd.f32 %v12841_v40, %v14809_v37  ;;  %v4946_v54 = vadd.f32 %v12861_v46, %v14810_v24  ;;  %v5822_v20 = vadd.f32 %v5514_v7, %v12687_v2  ;;  %v5519_v10 = vpop.f32.mrf.mxu0  ;;  %v14813_v40 = vld [vmem:[#allocation59_spill] sm:$0xff] }
 0x512   : > { %v5516_v57 = vadd.f32 %v5515_v43, %v12633_v53  ;;  %v4950_v27 = vadd.f32 %v4949_v59, %v14811_v0  ;;  %v4952_v9 = vadd.f32 %v4951_v48, %v14812_v12  ;;  %8122 = vpow2.f32 %v7415_v14  ;;  %v14814_v43 = vld [vmem:[#allocation66_spill] sm:$0xff] }
 0x513   : > { %v4963_v60 = vpop.f32.mrf.mxu1  ;;  %v5520_v39 = vadd.f32 %v5519_v10, %v12627_v15  ;;  %v12961_v47 = vadd.f32 %v12597_v16, %v4936_v1  ;;  %v4954_v28 = vadd.f32 %v4953_v17, %v14813_v40  ;;  %v7384_v46 = vmul.f32 -1.442695, %v5822_v20  ;;  %v5521_v2 = vpop.f32.mrf.mxu0 }
 0x514   : > { %v6046_v37 = vadd.f32 %v5516_v57, %v12696_v58  ;;  %v12966_v7 = vadd.f32 %v12595_v18, %v4940_v36  ;;  %v4956_v59 = vadd.f32 %v4955_v31, %v14814_v43  ;;  %v5522_v14 = vadd.f32 %v5521_v2, %v12633_v53 }
 0x515   : > { %v4965_v29 = vpop.f32.mrf.mxu1  ;;  %v5823_v48 = vadd.f32 %v5520_v39, %v12699_v34  ;;  %v8113_v24 = vpop.eup %8112  ;;  %v12972_v1 = vadd.f32 %v12597_v16, %v4942_v33  ;;  %v12975_v17 = vadd.f32 %v12595_v18, %v4944_v42  ;;  %8124 = vpow2.f32 %v7384_v46 }
 0x516   : > { %v7416_v58 = vmul.f32 -1.442695, %v6046_v37  ;;  %v5523_v57 = vpop.f32.mrf.mxu0  ;;  %v12978_v36 = vadd.f32 %v12597_v16, %v4946_v54  ;;  %v12981_v31 = vadd.f32 %v12595_v18, %v4950_v27  ;;  %v12984_v34 = vadd.f32 %v12597_v16, %v4952_v9  ;;  %v14819_v27 = vld [vmem:[#allocation52_spill] sm:$0xff] }
 0x517   : > { %v4969_v20 = vpop.f32.mrf.mxu1  ;;  %v7385_v10 = vmul.f32 -1.442695, %v5823_v48  ;;  %v8115_v0 = vpop.eup %8114  ;;  %v12987_v33 = vadd.f32 %v12595_v18, %v4954_v28  ;;  %v6047_v12 = vadd.f32 %v5522_v14, %v12706_v25  ;;  %v5524_v39 = vadd.f32 %v5523_v57, %v12627_v15  ;;  %v14820_v25 = vld [vmem:[#allocation49_spill] sm:$0xff]  ;;  %v14821_v57 = vld [vmem:[#allocation63_spill] sm:$0xff] }
 0x518   : > { %14815 = vst [vmem:[#allocation125_spill] sm:$0xff] %v12981_v31  ;;  %14816 = vst [vmem:[#allocation115_spill] sm:$0xff] %v12984_v34  ;;  %8126 = vpow2.f32 %v7416_v58  ;;  %v5525_v40 = vpop.f32.mrf.mxu0  ;;  %v12992_v54 = vadd.f32 %v12597_v16, %v4956_v59  ;;  %v4960_v46 = vadd.f32 %v4959_v11, %v14819_v27  ;;  %v5947_v37 = vadd.f32 1.0, %v8113_v24  ;;  %v14822_v31 = vld [vmem:[#allocation68_spill] sm:$0xff] }
 0x519   : > { %14817 = vst [vmem:[#allocation54_spill] sm:$0xff] %v12987_v33  ;;  %v4971_v42 = vpop.f32.mrf.mxu1  ;;  %v6171_v9 = vadd.f32 1.0, %v8115_v0  ;;  %8128 = vpow2.f32 %v7385_v10  ;;  %v7417_v43 = vmul.f32 -1.442695, %v6047_v12  ;;  %v5824_v28 = vadd.f32 %v5524_v39, %v12709_v35  ;;  %v14823_v39 = vld [vmem:[#allocation75_spill] sm:$0xff] }
 0x51a   : > { %14818 = vst [vmem:[#allocation53_spill] sm:$0xff] %v12992_v54  ;;  %v5526_v48 = vadd.f32 %v5525_v40, %v12633_v53  ;;  %v5529_v58 = vpop.f32.mrf.mxu0  ;;  %v8117_v33 = vpop.eup %8116  ;;  %v4962_v14 = vadd.f32 %v4961_v41, %v14820_v25  ;;  %v4964_v34 = vadd.f32 %v4963_v60, %v14821_v57  ;;  %v4966_v59 = vadd.f32 %v4965_v29, %v14822_v31 }
 0x51b   : > { %v4973_v2 = vpop.f32.mrf.mxu1  ;;  %v5530_v54 = vadd.f32 %v5529_v58, %v12627_v15  ;;  %v5948_v24 = vadd.f32 1.0, %v8117_v33  ;;  %8130 = vpow2.f32 %v7417_v43  ;;  %v7386_v0 = vmul.f32 -1.442695, %v5824_v28 }
 0x51c   : > { %v6048_v10 = vadd.f32 %v5526_v48, %v12712_v50  ;;  %v5531_v12 = vpop.f32.mrf.mxu0  ;;  %v4970_v40 = vadd.f32 %v4969_v20, %v14823_v39  ;;  %8132 = vrcp.f32 %v5947_v37  ;;  %v13006_v29 = vadd.f32 %v12595_v18, %v4960_v46 }
 0x51d   : > { %v4975_v11 = vpop.f32.mrf.mxu1  ;;  %v8119_v35 = vpop.eup %8118  ;;  %v5825_v27 = vadd.f32 %v5530_v54, %v12720_v4  ;;  %v5532_v41 = vadd.f32 %v5531_v12, %v12633_v53  ;;  %8134 = vrcp.f32 %v6171_v9  ;;  %v13009_v50 = vadd.f32 %v12597_v16, %v4962_v14 }
 0x51e   : > { %v8121_v60 = vpop.eup %8120  ;;  %v6172_v33 = vadd.f32 1.0, %v8119_v35  ;;  %v7418_v43 = vmul.f32 -1.442695, %v6048_v10  ;;  %v5533_v28 = vpop.f32.mrf.mxu0  ;;  %v13012_v48 = vadd.f32 %v12595_v18, %v4964_v34  ;;  %8136 = vpow2.f32 %v7386_v0  ;;  %v14826_v35 = vld [vmem:[#allocation73_spill] sm:$0xff] }
 0x51f   : > { %v4979_v31 = vpop.f32.mrf.mxu1  ;;  %v5949_v20 = vadd.f32 1.0, %v8121_v60  ;;  %v8123_v4 = vpop.eup %8122  ;;  %8138 = vrcp.f32 %v5948_v24  ;;  %v7387_v37 = vmul.f32 -1.442695, %v5825_v27  ;;  %v6049_v46 = vadd.f32 %v5532_v41, %v12730_v32  ;;  %v14827_v27 = vld [vmem:[#allocation61_spill] sm:$0xff] }
 0x520   : > { %v5534_v58 = vadd.f32 %v5533_v28, %v12627_v15  ;;  %v5535_v9 = vpop.f32.mrf.mxu0  ;;  %v13017_v25 = vadd.f32 %v12597_v16, %v4966_v59  ;;  %v13020_v14 = vadd.f32 %v12595_v18, %v4970_v40  ;;  %8140 = vrcp.f32 %v6172_v33 }
 0x521   : > { %v4981_v54 = vpop.f32.mrf.mxu1  ;;  %v6173_v34 = vadd.f32 1.0, %v8123_v4  ;;  %8142 = vpow2.f32 %v7418_v43  ;;  %v7419_v0 = vmul.f32 -1.442695, %v6049_v46  ;;  %v5536_v24 = vadd.f32 %v5535_v9, %v12633_v53 }
 0x522   : > { %14824 = vst [vmem:[#allocation11_spill] sm:$0xff] %v13017_v25  ;;  %14825 = vst [vmem:[#allocation76_spill] sm:$0xff] %v13020_v14  ;;  %v5826_v10 = vadd.f32 %v5534_v58, %v12768_v62  ;;  %v5539_v12 = vpop.f32.mrf.mxu0  ;;  %v8125_v32 = vpop.eup %8124  ;;  %v4972_v39 = vadd.f32 %v4971_v42, %v14826_v35  ;;  %v4974_v41 = vadd.f32 %v4973_v2, %v14827_v27  ;;  %8144 = vrcp.f32 %v5949_v20  ;;  %v14828_v62 = vld [vmem:[#allocation60_spill] sm:$0xff]  ;;  %v14829_v58 = vld [vmem:[#allocation69_spill] sm:$0xff] }
 0x523   : > { %v4983_v57 = vpop.f32.mrf.mxu1  ;;  %v5540_v59 = vadd.f32 %v5539_v12, %v12627_v15  ;;  %v5950_v60 = vadd.f32 1.0, %v8125_v32  ;;  %8146 = vpow2.f32 %v7387_v37  ;;  %v6050_v43 = vadd.f32 %v5536_v24, %v12780_v6  ;;  %v14831_v6 = vld [vmem:[#allocation67_spill] sm:$0xff] }
 0x524   : > { %v7388_v33 = vmul.f32 -1.442695, %v5826_v10  ;;  %v5541_v28 = vpop.f32.mrf.mxu0  ;;  %v4976_v46 = vadd.f32 %v4975_v11, %v14828_v62  ;;  %v4980_v9 = vadd.f32 %v4979_v31, %v14829_v58  ;;  %8148 = vpow2.f32 %v7419_v0 }
 0x525   : > { %v4985_v40 = vpop.f32.mrf.mxu1  ;;  %v8127_v4 = vpop.eup %8126  ;;  %v5827_v42 = vadd.f32 %v5540_v59, %v12790_v38  ;;  %8150 = vrcp.f32 %v6173_v34  ;;  %v7420_v20 = vmul.f32 -1.442695, %v6050_v43  ;;  %v5542_v12 = vadd.f32 %v5541_v28, %v12633_v53 }
 0x526   : > { %v6174_v2 = vadd.f32 1.0, %v8127_v4  ;;  %v5543_v32 = vpop.f32.mrf.mxu0  ;;  %v8129_v37 = vpop.eup %8128  ;;  %v13033_v10 = vadd.f32 %v12597_v16, %v4972_v39  ;;  %v4982_v24 = vadd.f32 %v4981_v54, %v14831_v6  ;;  %8152 = vpow2.f32 %v7388_v33 }
 0x527   : > { %v4989_v35 = vpop.f32.mrf.mxu1  ;;  %v7389_v11 = vmul.f32 -1.442695, %v5827_v42  ;;  %8154 = vrcp.f32 %v5950_v60  ;;  %v5951_v31 = vadd.f32 1.0, %v8129_v37  ;;  %v6051_v38 = vadd.f32 %v5542_v12, %v12793_v21 }
 0x528   : > { %14830 = vst [vmem:[#allocation23_spill] sm:$0xff] %v13033_v10  ;;  %v5544_v34 = vadd.f32 %v5543_v32, %v12627_v15  ;;  %v5545_v0 = vpop.f32.mrf.mxu0  ;;  %v8131_v59 = vpop.eup %8130  ;;  %v13039_v43 = vadd.f32 %v12595_v18, %v4974_v41  ;;  %v13042_v28 = vadd.f32 %v12597_v16, %v4976_v46  ;;  %8156 = vpow2.f32 %v7420_v20  ;;  %v14835_v41 = vld [vmem:[#allocation38_spill] sm:$0xff] }
 0x529   : > { %v4991_v27 = vpop.f32.mrf.mxu1  ;;  %v5546_v54 = vadd.f32 %v5545_v0, %v12633_v53  ;;  %v8133_v39 = vpop.eup %8132  ;;  %v13046_v33 = vadd.f32 %v12595_v18, %v4980_v9  ;;  %8158 = vrcp.f32 %v6174_v2  ;;  %v7421_v21 = vmul.f32 -1.442695, %v6051_v38  ;;  %v14837_v38 = vld [vmem:[#allocation84_spill] sm:$0xff]  ;;  %v14838_v0 = vld [vmem:[#allocation82_spill] sm:$0xff] }
 0x52a   : > { %14832 = vst [vmem:[#allocation81_spill] sm:$0xff] %v13039_v43  ;;  %14833 = vst [vmem:[#allocation16_spill] sm:$0xff] %v13042_v28  ;;  %v5828_v4 = vadd.f32 %v5544_v34, %v12804_v55  ;;  %v5549_v62 = vpop.f32.mrf.mxu0  ;;  %v13049_v58 = vpop.eup %8134  ;;  %v4984_v42 = vadd.f32 %v4983_v57, %v14835_v41  ;;  %v6175_v12 = vadd.f32 1.0, %v8131_v59  ;;  %8160 = vpow2.f32 %v7389_v11 }
 0x52b   : > { %14834 = vst [vmem:[#allocation80_spill] sm:$0xff] %v13046_v33  ;;  %v4993_v60 = vpop.f32.mrf.mxu1  ;;  %v6052_v46 = vadd.f32 %v5546_v54, %v12814_v52  ;;  %v8137_v20 = vpop.eup %8136  ;;  %v13054_v32 = vadd.f32 %v12597_v16, %v4982_v24  ;;  %8162 = vrcp.f32 %v5951_v31  ;;  %v5550_v37 = vadd.f32 %v5549_v62, %v12627_v15 }
 0x52c   : > { %v7390_v2 = vmul.f32 -1.442695, %v5828_v4  ;;  %v5551_v55 = vpop.f32.mrf.mxu0  ;;  %v8139_v6 = vpop.eup %8138  ;;  %v4986_v34 = vadd.f32 %v4985_v40, %v14837_v38  ;;  %v4990_v57 = vadd.f32 %v4989_v35, %v14838_v0  ;;  %v5952_v59 = vadd.f32 1.0, %v8137_v20 }
 0x52d   : > { %14836 = vst [vmem:[#allocation9_spill] sm:$0xff] %v13054_v32  ;;  %v13056_v9 = vpop.f32.mrf.mxu1  ;;  %8164 = vpow2.f32 %v7421_v21  ;;  %v13061_v11 = vpop.eup %8140  ;;  %v7422_v24 = vmul.f32 -1.442695, %v6052_v46  ;;  %v5829_v54 = vadd.f32 %v5550_v37, %v12852_v63  ;;  %v5552_v31 = vadd.f32 %v5551_v55, %v12633_v53  ;;  %v14840_v32 = vld [vmem:[#allocation51_spill] sm:$0xff] }
 0x52e   : > { %8166 = vpow2.f32 %v7390_v2  ;;  %v5553_v4 = vpop.f32.mrf.mxu0  ;;  %v8143_v41 = vpop.eup %8142  ;;  %v13066_v62 = vadd.f32 %v12595_v18, %v4984_v42  ;;  %v4992_v40 = vadd.f32 %v4991_v27, %v14840_v32  ;;  %v13074_v55 = vadd.f32 %v12597_v16, %v4986_v34 }
 0x52f   : > { %v7656_v52 = vpop.f32.mrf.mxu1  ;;  %8168 = vrcp.f32 %v6175_v12  ;;  %v5554_v35 = vadd.f32 %v5553_v4, %v12627_v15  ;;  %v13070_v21 = vpop.eup %8144  ;;  %v6176_v38 = vadd.f32 1.0, %v8143_v41  ;;  %v7391_v46 = vmul.f32 -1.442695, %v5829_v54 }
 0x530   : > { %14839 = vst [vmem:[#allocation44_spill] sm:$0xff] %v13066_v62  ;;  %8170 = vpow2.f32 %v7422_v24  ;;  %v6053_v63 = vadd.f32 %v5552_v31, %v12864_v45  ;;  %v5555_v2 = vpop.f32.mrf.mxu0  ;;  %v8147_v37 = vpop.eup %8146  ;;  %14841 = vst [vmem:[#allocation33_spill] sm:$0xff] %v13074_v55  ;;  %v13077_v42 = vadd.f32 %v12595_v18, %v4990_v57  ;;  %v14855_v62 = vld [vmem:[#allocation89_spill] sm:$0xff] }
 0x531   : > { %v5692_v20 = vpop.f32.mrf.mxu1  ;;  %8172 = vrcp.f32 %v5952_v59  ;;  %v8149_v12 = vpop.eup %8148  ;;  %v5953_v0 = vadd.f32 1.0, %v8147_v37  ;;  %v5830_v24 = vadd.f32 %v5554_v35, %v12867_v13  ;;  %v5556_v34 = vadd.f32 %v5555_v2, %v12633_v53  ;;  %v14844_v59 = vld [vmem:[#allocation72_spill] sm:$0xff]  ;;  %v14845_v35 = vld [vmem:[#allocation102_spill] sm:$0xff] }
 0x532   : > { %14842 = vst [vmem:[#allocation15_spill] sm:$0xff] %v13077_v42  ;;  %v5693_v27 = vadd.f32 %v5692_v20, %v12631_v8  ;;  %8174 = vrcp.f32 %v6176_v38  ;;  %v7423_v4 = vmul.f32 -1.442695, %v6053_v63  ;;  %v5559_v54 = vpop.f32.mrf.mxu0  ;;  %v13081_v45 = vpop.eup %8150  ;;  %v6177_v41 = vadd.f32 1.0, %v8149_v12 }
 0x533   : > { %v7657_v32 = vpop.f32.mrf.mxu1  ;;  %8176 = vpow2.f32 %v7391_v46  ;;  %v8153_v57 = vpop.eup %8152  ;;  %v13085_v42 = vadd.f32 %v12597_v16, %v4992_v40  ;;  %v4994_v20 = vadd.f32 %v4993_v60, %v14844_v59  ;;  %v5560_v38 = vadd.f32 %v5559_v54, %v12627_v15 }
 0x534   : > { %v6267_v31 = vmul.f32 %v8133_v39, %v5693_v27  ;;  %8178 = vrcp.f32 %v5953_v0  ;;  %v5561_v63 = vpop.f32.mrf.mxu0  ;;  %v13089_v13 = vpop.eup %8154  ;;  %v5954_v46 = vadd.f32 1.0, %v8153_v57  ;;  %v5701_v27 = vadd.f32 %v7656_v52, %v12631_v8 }
 0x535   : > { %14843 = vst [vmem:[#allocation92_spill] sm:$0xff] %v13085_v42  ;;  %v5695_v55 = vpop.f32.mrf.mxu1  ;;  %8180 = vrcp.f32 %v6177_v41  ;;  %v8157_v2 = vpop.eup %8156  ;;  %v7392_v60 = vmul.f32 -1.442695, %v5830_v24  ;;  %v5562_v12 = vadd.f32 %v5561_v63, %v12633_v53  ;;  %v13101_v41 = vadd.f32 %v12595_v18, %v4994_v20 }
 0x536   : > { %v6299_v37 = vadd.f32 %v6267_v31, %v14845_v35  ;;  %v5696_v39 = vadd.f32 %v5695_v55, %v12631_v8  ;;  %8182 = vpow2.f32 %v7423_v4  ;;  %v5563_v0 = vpop.f32.mrf.mxu0  ;;  %v13097_v54 = vpop.eup %8158  ;;  %v6178_v16 = vadd.f32 1.0, %v8157_v2  ;;  %v14847_v35 = vld [vmem:[#allocation111_spill] sm:$0xff] }
 0x537   : > { %v13094_v40 = vpop.f32.mrf.mxu1  ;;  %v6054_v31 = vadd.f32 %v5556_v34, %v12872_v23  ;;  %v8161_v55 = vpop.eup %8160  ;;  %14846 = vst [vmem:[#allocation22_spill] sm:$0xff] %v13101_v41  ;;  %v5564_v52 = vadd.f32 %v5563_v0, %v12627_v15  ;;  %v5831_v23 = vadd.f32 %v5560_v38, %v12875_v56  ;;  %v6055_v18 = vadd.f32 %v5562_v12, %v12878_v26 }
 0x538   : > { %8184 = vtanh.f32 %v6299_v37  ;;  %v6268_v59 = vmul.f32 %v8139_v6, %v5696_v39  ;;  %v5565_v4 = vpop.f32.mrf.mxu0  ;;  %v13107_v63 = vpop.eup %8162  ;;  %v5955_v6 = vadd.f32 1.0, %v8161_v55  ;;  %v6269_v2 = vmul.f32 %v13070_v21, %v5701_v27 }
 0x539   : > { %v13103_v57 = vpop.f32.mrf.mxu1  ;;  %8186 = vrcp.f32 %v5954_v46  ;;  %v5566_v20 = vadd.f32 %v5565_v4, %v12633_v53  ;;  %v7424_v41 = vmul.f32 -1.442695, %v6054_v31  ;;  %v5704_v56 = vadd.f32 %v7657_v32, %v12631_v8 }
 0x53a   : > { %v6300_v37 = vadd.f32 %v6268_v59, %v14847_v35  ;;  %8188 = vrcp.f32 %v6178_v16  ;;  %v8165_v34 = vpop.eup %8164  ;;  %v5569_v46 = vpop.f32.mrf.mxu0  ;;  %v5832_v26 = vadd.f32 %v5564_v52, %v12881_v19  ;;  %v7393_v21 = vmul.f32 -1.442695, %v5831_v23  ;;  %v14849_v52 = vld [vmem:[#allocation71_spill] sm:$0xff] }
 0x53b   : > { %v13111_v39 = vpop.f32.mrf.mxu1  ;;  %8190 = vpow2.f32 %v7392_v60  ;;  %v8167_v0 = vpop.eup %8166  ;;  %v6179_v24 = vadd.f32 1.0, %v8165_v34  ;;  %v5570_v16 = vadd.f32 %v5569_v46, %v12627_v15  ;;  %v6056_v27 = vadd.f32 %v5566_v20, %v12884_v3  ;;  %v14851_v3 = vld [vmem:[#allocation126_spill] sm:$0xff] }
 0x53c   : > { %8192 = vtanh.f32 %v6300_v37  ;;  %v13117_v59 = vpop.eup %8168  ;;  %v5956_v60 = vadd.f32 1.0, %v8167_v0  ;;  %v5571_v12 = vpop.f32.mrf.mxu0  ;;  %v7425_v37 = vmul.f32 -1.442695, %v6055_v18  ;;  %v7394_v18 = vmul.f32 -1.442695, %v5832_v26  ;;  %v14853_v26 = vld [vmem:[#allocation109_spill] sm:$0xff] }
 0x53d   : > { %v13120_v38 = vpop.f32.mrf.mxu1  ;;  %8194 = vrcp.f32 %v5955_v6  ;;  %v8171_v55 = vpop.eup %8170  ;;  %v5572_v31 = vadd.f32 %v5571_v12, %v12633_v53  ;;  %v14848_v6 = vld [vmem:[#allocation117_spill] sm:$0xff]  ;;  %v5833_v23 = vadd.f32 %v5570_v16, %v14851_v3  ;;  %v14852_v12 = vld [vmem:[#allocation123_spill] sm:$0xff]  ;;  %v7426_v16 = vmul.f32 -1.442695, %v6056_v27 }
 0x53e   : > { %8196 = vrcp.f32 %v6179_v24  ;;  %v13125_v4 = vpop.eup %8172  ;;  %v6180_v32 = vadd.f32 1.0, %v8171_v55  ;;  %v5573_v34 = vpop.f32.mrf.mxu0  ;;  %v13130_v46 = vadd.f32 %v6269_v2, %v14848_v6  ;;  %v13136_v24 = vadd.f32 %v13056_v9, %v14849_v52 }
 0x53f   : > { %v13127_v35 = vpop.f32.mrf.mxu1  ;;  %8198 = vrcp.f32 %v5956_v60  ;;  %v13132_v19 = vpop.eup %8174  ;;  %v6057_v2 = vadd.f32 %v5572_v31, %v14852_v12  ;;  %v5574_v55 = vadd.f32 %v5573_v34, %v12627_v15  ;;  %v13148_v9 = vadd.f32 %v13094_v40, %v12631_v8 }
 0x540   : > { %14850 = vst [vmem:[#allocation79_spill] sm:$0xff] %v13136_v24  ;;  %8200 = vpow2.f32 %v7424_v41  ;;  %v8177_v0 = vpop.eup %8176  ;;  %v5575_v6 = vpop.f32.mrf.mxu0  ;;  %v6270_v12 = vmul.f32 %v13089_v13, %v5704_v56  ;;  %v13160_v40 = vadd.f32 %v13103_v57, %v12631_v8 }
 0x541   : > { %v13140_v60 = vpop.f32.mrf.mxu1  ;;  %8202 = vrcp.f32 %v6180_v32  ;;  %v13144_v42 = vpop.eup %8178  ;;  %v5957_v41 = vadd.f32 1.0, %v8177_v0  ;;  %v5834_v31 = vadd.f32 %v5574_v55, %v14853_v26  ;;  %v5576_v34 = vadd.f32 %v5575_v6, %v12633_v53 }
 0x542   : > { %8204 = vpow2.f32 %v7393_v21  ;;  %v13153_v52 = vpop.eup %8180  ;;  %v5579_v3 = vpop.f32.mrf.mxu0  ;;  %v7395_v21 = vmul.f32 -1.442695, %v5833_v23  ;;  %v7427_v55 = vmul.f32 -1.442695, %v6057_v2  ;;  %v8440_v2 = vld [vmem:[%s12175_s20] sm:$0xff]  ;;  %v13180_v33 = vadd.f32 %v6270_v12, %v14855_v62 }
 0x543   : > { %v7665_v32 = vpop.f32.mrf.mxu1  ;;  %8206 = vpow2.f32 %v7425_v37  ;;  %v8183_v20 = vpop.eup %8182  ;;  %v5580_v27 = vadd.f32 %v5579_v3, %v12627_v15  ;;  %v6058_v6 = vadd.f32 %v5576_v34, %v12915_v44  ;;  %v7396_v57 = vmul.f32 -1.442695, %v5834_v31 }
 0x544   : > { %8208 = vrcp.f32 %v5957_v41  ;;  %v6181_v37 = vadd.f32 1.0, %v8183_v20  ;;  %v5581_v13 = vpop.f32.mrf.mxu0  ;;  %v14854_v20 = vsub.f32 1.0, %v13049_v58  ;;  %v6427_v44 = vmul.f32 %v8440_v2, %v13049_v58 }
 0x545   : > { %v8185_v0 = vpop.eup %8184  ;;  %v13163_v24 = vpop.f32.mrf.mxu1  ;;  %8210 = vpow2.f32 %v7394_v18  ;;  %v5835_v41 = vadd.f32 %v5580_v27, %v12921_v30  ;;  %v5582_v23 = vadd.f32 %v5581_v13, %v12633_v53  ;;  %v13184_v30 = vadd.f32 %v13111_v39, %v12631_v8 }
 0x546   : > { %v13167_v56 = vpop.eup %8186  ;;  %8212 = vpow2.f32 %v7426_v16  ;;  %v6395_v18 = vmul.f32 %v8185_v0, %v14854_v20  ;;  %v5583_v34 = vpop.f32.mrf.mxu0  ;;  %v7428_v31 = vmul.f32 -1.442695, %v6058_v6  ;;  %v13196_v39 = vadd.f32 %v13120_v38, %v12631_v8 }
 0x547   : > { %v13171_v26 = vpop.eup %8188  ;;  %v13173_v3 = vpop.f32.mrf.mxu1  ;;  %8214 = vrcp.f32 %v6181_v37  ;;  %v6059_v27 = vadd.f32 %v5582_v23, %v12924_v61  ;;  %v7397_v58 = vmul.f32 -1.442695, %v5835_v41  ;;  %v5584_v62 = vadd.f32 %v5583_v34, %v12627_v15 }
 0x548   : > { %v8191_v16 = vpop.eup %8190  ;;  %8216 = vpow2.f32 %v7395_v21  ;;  %v13189_v13 = vadd.f32 %v6427_v44, %v6395_v18  ;;  %v5585_v12 = vpop.f32.mrf.mxu0  ;;  %v13200_v61 = vadd.f32 %v13127_v35, %v12631_v8  ;;  %v8441_v21 = vld [vmem:[%s12175_s20 + $0x10] sm:$0xff]  ;;  %v13223_v44 = vadd.f32 %v13140_v60, %v12631_v8 }
 0x549   : > { %v8193_v37 = vpop.eup %8192  ;;  %v13187_v0 = vpop.f32.mrf.mxu1  ;;  %8218 = vpow2.f32 %v7427_v55  ;;  %v13204_v55 = vmul.f32 %v8441_v21, %v13081_v45  ;;  %v7429_v23 = vmul.f32 -1.442695, %v6059_v27  ;;  %v5836_v38 = vadd.f32 %v5584_v62, %v12929_v22  ;;  %v8442_v62 = vld [vmem:[%s12175_s20 + $0x8] sm:$0xff] }
 0x54a   : > { %v13192_v20 = vpop.eup %8194  ;;  %8220 = vpow2.f32 %v7396_v57  ;;  %6491 = vst [vmem:[%s13212_s4] sm:$0xff] %v13189_v13  ;;  %v5586_v35 = vadd.f32 %v5585_v12, %v12633_v53  ;;  %v6364_v57 = vsub.f32 1.0, %v13061_v11  ;;  %v5589_v18 = vpop.f32.mrf.mxu0  ;;  %v13226_v34 = vadd.f32 %v7665_v32, %v12631_v8 }
 0x54b   : > { %v13206_v6 = vpop.eup %8196  ;;  %v13208_v41 = vpop.f32.mrf.mxu1  ;;  %v5958_v27 = vadd.f32 1.0, %v8191_v16  ;;  %8222 = vpow2.f32 %v7428_v31  ;;  %v6428_v12 = vmul.f32 %v8442_v62, %v13061_v11  ;;  %v5590_v43 = vadd.f32 %v5589_v18, %v12627_v15 }
 0x54c   : > { %v13219_v2 = vpop.eup %8198  ;;  %8224 = vpow2.f32 %v7397_v58  ;;  %v6396_v22 = vmul.f32 %v8193_v37, %v6364_v57  ;;  %v5591_v10 = vpop.f32.mrf.mxu0  ;;  %v7398_v32 = vmul.f32 -1.442695, %v5836_v38  ;;  %v6060_v16 = vadd.f32 %v5586_v35, %v12932_v51 }
 0x54d   : > { %v8201_v21 = vpop.eup %8200  ;;  %v13228_v28 = vpop.f32.mrf.mxu1  ;;  %8226 = vtanh.f32 %v13130_v46  ;;  %v6273_v11 = vmul.f32 %v13144_v42, %v13148_v9  ;;  %v14857_v9 = vld [vmem:[#allocation116_spill] sm:$0xff] }
 0x54e   : > { %v13233_v25 = vpop.eup %8202  ;;  %v6182_v60 = vadd.f32 1.0, %v8201_v21  ;;  %8228 = vpow2.f32 %v7429_v23  ;;  %v13238_v58 = vadd.f32 %v6428_v12, %v6396_v22  ;;  %v5593_v57 = vpop.f32.mrf.mxu0  ;;  %v13244_v21 = vadd.f32 %v13163_v24, %v12631_v8 }
 0x54f   : > { %v8205_v31 = vpop.eup %8204  ;;  %v7672_v14 = vpop.f32.mrf.mxu1  ;;  %8230 = vrcp.f32 %v5958_v27  ;;  %v13253_v23 = vadd.f32 %v13173_v3, %v12631_v8  ;;  %v13258_v22 = vadd.f32 %v6273_v11, %v14857_v9  ;;  %v7430_v27 = vmul.f32 -1.442695, %v6060_v16 }
 0x550   : > { %v8207_v18 = vpop.eup %8206  ;;  %v13247_v46 = vadd.f32 %v7672_v14, %v12631_v8  ;;  %v5959_v51 = vadd.f32 1.0, %v8205_v31  ;;  %8232 = vrcp.f32 %v6182_v60  ;;  %6492 = vst [vmem:[%s13212_s4 + $0x8] sm:$0xff] %v13238_v58  ;;  %v5595_v24 = vpop.f32.mrf.mxu0  ;;  %v5837_v12 = vadd.f32 %v5590_v43, %v12935_v5 }
 0x551   : > { %v13249_v38 = vpop.eup %8208  ;;  %v5756_v35 = vpop.f32.mrf.mxu1  ;;  %v6183_v42 = vadd.f32 1.0, %v8207_v18  ;;  %8234 = vpow2.f32 %v7398_v32  ;;  %v5592_v18 = vadd.f32 %v5591_v10, %v12633_v53  ;;  %v6271_v11 = vmul.f32 %v13107_v63, %v13160_v40  ;;  %v8443_v10 = vld [vmem:[%s12175_s20 + $0x18] sm:$0xff]  ;;  %v14860_v40 = vld [vmem:[#allocation114_spill] sm:$0xff] }
 0x552   : > { %14856 = vst [vmem:[#allocation31_spill] sm:$0xff] %v13247_v46  ;;  %v8211_v62 = vpop.eup %8210  ;;  %v13261_v14 = vadd.f32 %v5756_v35, %v12631_v8  ;;  %8236 = vrcp.f32 %v5959_v51  ;;  %v13267_v9 = vpop.f32.mrf.mxu0  ;;  %v13273_v32 = vadd.f32 %v13187_v0, %v12631_v8  ;;  %v13281_v63 = vmul.f32 %v8443_v10, %v13097_v54 }
 0x553   : > { %v8213_v3 = vpop.eup %8212  ;;  %v7673_v31 = vpop.f32.mrf.mxu1  ;;  %v5960_v60 = vadd.f32 1.0, %v8211_v62  ;;  %8238 = vtanh.f32 %v13180_v33  ;;  %v13284_v35 = vadd.f32 %v6271_v11, %v14860_v40  ;;  %v5594_v62 = vadd.f32 %v5593_v57, %v12627_v15 }
 0x554   : > { %14858 = vst [vmem:[#allocation93_spill] sm:$0xff] %v13261_v14  ;;  %v13269_v37 = vpop.eup %8214  ;;  %v13276_v5 = vadd.f32 %v7673_v31, %v12631_v8  ;;  %v6184_v43 = vadd.f32 1.0, %v8213_v3  ;;  %8240 = vrcp.f32 %v6183_v42  ;;  %v5601_v0 = vpop.f32.mrf.mxu0  ;;  %v7399_v33 = vmul.f32 -1.442695, %v5837_v12 }
 0x555   : > { %v8217_v16 = vpop.eup %8216  ;;  %v5759_v51 = vpop.f32.mrf.mxu1  ;;  %8242 = vrcp.f32 %v5960_v60  ;;  %v6061_v10 = vadd.f32 %v5592_v18, %v12938_v49  ;;  %v6274_v11 = vmul.f32 %v13167_v56, %v13184_v30  ;;  %v13295_v57 = vadd.f32 %v13208_v41, %v12631_v8  ;;  %v14864_v18 = vld [vmem:[#allocation113_spill] sm:$0xff] }
 0x556   : > { %14859 = vst [vmem:[#allocation30_spill] sm:$0xff] %v13276_v5  ;;  %v8219_v14 = vpop.eup %8218  ;;  %v13288_v31 = vadd.f32 %v5759_v51, %v12631_v8  ;;  %v5961_v3 = vadd.f32 1.0, %v8217_v16  ;;  %8244 = vpow2.f32 %v7430_v27  ;;  %v5603_v40 = vpop.f32.mrf.mxu0  ;;  %v14863_v27 = vld [vmem:[#allocation124_spill] sm:$0xff] }
 0x557   : > { %v8221_v5 = vpop.eup %8220  ;;  %v7676_v46 = vpop.f32.mrf.mxu1  ;;  %v6185_v42 = vadd.f32 1.0, %v8219_v14  ;;  %8246 = vrcp.f32 %v6184_v43  ;;  %v5838_v49 = vadd.f32 %v5594_v62, %v14863_v27  ;;  %v5596_v43 = vadd.f32 %v5595_v24, %v12633_v53 }
 0x558   : > { %14861 = vst [vmem:[#allocation58_spill] sm:$0xff] %v13288_v31  ;;  %v13298_v51 = vadd.f32 %v7676_v46, %v12631_v8  ;;  %v5962_v60 = vadd.f32 1.0, %v8221_v5  ;;  %v8223_v12 = vpop.eup %8222  ;;  %8248 = vrcp.f32 %v5961_v3  ;;  %v13303_v31 = vadd.f32 %v6274_v11, %v14864_v18  ;;  %v5605_v56 = vpop.f32.mrf.mxu0 }
 0x559   : > { %v5772_v16 = vpop.f32.mrf.mxu1  ;;  %v8225_v30 = vpop.eup %8224  ;;  %8250 = vrcp.f32 %v6185_v42  ;;  %v6186_v46 = vadd.f32 1.0, %v8223_v12  ;;  %v7431_v14 = vmul.f32 -1.442695, %v6061_v10  ;;  %v6272_v62 = vmul.f32 %v13125_v4, %v13196_v39  ;;  %v8444_v10 = vld [vmem:[%s12175_s20 + $0x30] sm:$0xff]  ;;  %v14868_v4 = vld [vmem:[#allocation100_spill] sm:$0xff] }
 0x55a   : > { %14862 = vst [vmem:[#allocation18_spill] sm:$0xff] %v13298_v51  ;;  %v13306_v41 = vadd.f32 %v5772_v16, %v12631_v8  ;;  %v8227_v5 = vpop.eup %8226  ;;  %v5963_v3 = vadd.f32 1.0, %v8225_v30  ;;  %8252 = vpow2.f32 %v7399_v33  ;;  %v5609_v11 = vpop.f32.mrf.mxu0  ;;  %v14867_v42 = vsub.f32 1.0, %v13081_v45 }
 0x55b   : > { %v7677_v51 = vpop.f32.mrf.mxu1  ;;  %v8229_v27 = vpop.eup %8228  ;;  %8254 = vrcp.f32 %v5962_v60  ;;  %v6062_v24 = vadd.f32 %v5596_v43, %v12961_v47  ;;  %v13321_v30 = vmul.f32 %v8444_v10, %v13153_v52  ;;  %v6304_v39 = vadd.f32 %v6272_v62, %v14868_v4 }
 0x55c   : > { %14865 = vst [vmem:[#allocation86_spill] sm:$0xff] %v13306_v41  ;;  %v13312_v18 = vadd.f32 %v7677_v51, %v12631_v8  ;;  %v6397_v12 = vmul.f32 %v8227_v5, %v14867_v42  ;;  %v13317_v16 = vpop.eup %8230  ;;  %8256 = vrcp.f32 %v6186_v46  ;;  %v6187_v33 = vadd.f32 1.0, %v8229_v27  ;;  %v5611_v51 = vpop.f32.mrf.mxu0 }
 0x55d   : > { %v5775_v41 = vpop.f32.mrf.mxu1  ;;  %8258 = vtanh.f32 %v13258_v22  ;;  %v7400_v60 = vmul.f32 -1.442695, %v5838_v49  ;;  %v7432_v5 = vmul.f32 -1.442695, %v6062_v24  ;;  %v5600_v62 = vadd.f32 %v13267_v9, %v12627_v15 }
 0x55e   : > { %14866 = vst [vmem:[#allocation8_spill] sm:$0xff] %v13312_v18  ;;  %v13324_v18 = vpop.eup %8232  ;;  %v13327_v45 = vadd.f32 %v5775_v41, %v12631_v8  ;;  %v13330_v47 = vadd.f32 %v13204_v55, %v6397_v12  ;;  %8260 = vrcp.f32 %v5963_v3  ;;  %v5602_v27 = vadd.f32 %v5601_v0, %v12633_v53  ;;  %v13336_v42 = vpop.f32.mrf.mxu0 }
 0x55f   : > { %v8235_v46 = vpop.eup %8234  ;;  %v7680_v43 = vpop.f32.mrf.mxu1  ;;  %8262 = vpow2.f32 %v7431_v14  ;;  %v5604_v55 = vadd.f32 %v5603_v40, %v12627_v15  ;;  %v5606_v22 = vadd.f32 %v5605_v56, %v12633_v53  ;;  %v5839_v9 = vadd.f32 %v5600_v62, %v12966_v7 }
 0x560   : > { %v13338_v10 = vpop.eup %8236  ;;  %v13341_v41 = vadd.f32 %v7680_v43, %v12631_v8  ;;  %6493 = vst [vmem:[%s13212_s4 + $0x10] sm:$0xff] %v13330_v47  ;;  %8264 = vrcp.f32 %v6187_v33  ;;  %v6063_v0 = vadd.f32 %v5602_v27, %v12972_v1  ;;  %v5610_v12 = vadd.f32 %v5609_v11, %v12627_v15  ;;  %v13350_v24 = vpop.f32.mrf.mxu0 }
 0x561   : > { %v8239_v49 = vpop.eup %8238  ;;  %v5788_v3 = vpop.f32.mrf.mxu1  ;;  %v14871_v40 = vsub.f32 1.0, %v13097_v54  ;;  %8266 = vtanh.f32 %v13284_v35  ;;  %v5840_v56 = vadd.f32 %v5604_v55, %v12975_v17  ;;  %v5964_v33 = vadd.f32 1.0, %v8235_v46 }
 0x562   : > { %14869 = vst [vmem:[#allocation77_spill] sm:$0xff] %v13341_v41  ;;  %v13352_v4 = vpop.eup %8240  ;;  %v13355_v43 = vadd.f32 %v5788_v3, %v12631_v8  ;;  %8268 = vpow2.f32 %v7400_v60  ;;  %v6064_v62 = vadd.f32 %v5606_v22, %v12978_v36  ;;  %v13365_v27 = vpop.f32.mrf.mxu0  ;;  %v7401_v17 = vmul.f32 -1.442695, %v5839_v9  ;;  %v14873_v22 = vld [vmem:[#allocation125_spill] sm:$0xff]  ;;  %v14882_v41 = vld [vmem:[#allocation70_spill] sm:$0xff] }
 0x563   : > { %v6398_v14 = vmul.f32 %v8239_v49, %v14871_v40  ;;  %v13361_v7 = vpop.eup %8242  ;;  %v7681_v1 = vpop.f32.mrf.mxu1  ;;  %8270 = vtanh.f32 %v13303_v31  ;;  %v8445_v49 = vld [vmem:[%s12175_s20 + $0x20] sm:$0xff]  ;;  %v7433_v36 = vmul.f32 -1.442695, %v6063_v0  ;;  %v5841_v40 = vadd.f32 %v5610_v12, %v14873_v22 }
 0x564   : > { %14870 = vst [vmem:[#allocation65_spill] sm:$0xff] %v13355_v43  ;;  %v8245_v3 = vpop.eup %8244  ;;  %v13368_v54 = vadd.f32 %v7681_v1, %v12631_v8  ;;  %v13378_v60 = vmul.f32 %v8445_v49, %v13117_v59  ;;  %8272 = vpow2.f32 %v7432_v5  ;;  %v13381_v11 = vpop.f32.mrf.mxu0  ;;  %v7402_v31 = vmul.f32 -1.442695, %v5840_v56 }
 0x565   : > { %v13371_v35 = vadd.f32 %v13281_v63, %v6398_v14  ;;  %v13374_v55 = vpop.eup %8246  ;;  %v5791_v46 = vpop.f32.mrf.mxu1  ;;  %8274 = vtanh.f32 %v6304_v39  ;;  %v6277_v9 = vmul.f32 %v13249_v38, %v13200_v61  ;;  %v6188_v0 = vadd.f32 1.0, %v8245_v3  ;;  %v14876_v39 = vld [vmem:[#allocation120_spill] sm:$0xff] }
 0x566   : > { %14872 = vst [vmem:[#allocation21_spill] sm:$0xff] %v13368_v54  ;;  %v13383_v1 = vpop.eup %8248  ;;  %v13386_v63 = vadd.f32 %v5791_v46, %v12631_v8  ;;  %8276 = vrcp.f32 %v5964_v33  ;;  %v7434_v12 = vmul.f32 -1.442695, %v6064_v62  ;;  %v5612_v49 = vadd.f32 %v5611_v51, %v12633_v53  ;;  %v13395_v22 = vpop.f32.mrf.mxu0  ;;  %v14877_v51 = vld [vmem:[#allocation115_spill] sm:$0xff] }
 0x567   : > { %6494 = vst [vmem:[%s13212_s4 + $0x18] sm:$0xff] %v13371_v35  ;;  %v13392_v14 = vpop.eup %8250  ;;  %v7684_v5 = vpop.f32.mrf.mxu1  ;;  %8278 = vpow2.f32 %v7401_v17  ;;  %v6309_v56 = vadd.f32 %v6277_v9, %v14876_v39  ;;  %v6275_v61 = vmul.f32 %v13192_v20, %v13223_v44  ;;  %v6370_v62 = vsub.f32 1.0, %v13171_v26  ;;  %v8446_v17 = vld [vmem:[%s12175_s20 + $0x38] sm:$0xff]  ;;  %v14879_v20 = vld [vmem:[#allocation122_spill] sm:$0xff] }
 0x568   : > { %14874 = vst [vmem:[#allocation85_spill] sm:$0xff] %v13386_v63  ;;  %v8253_v46 = vpop.eup %8252  ;;  %v13398_v63 = vadd.f32 %v7684_v5, %v12631_v8  ;;  %8280 = vpow2.f32 %v7433_v36  ;;  %v7403_v3 = vmul.f32 -1.442695, %v5841_v40  ;;  %v6065_v54 = vadd.f32 %v5612_v49, %v14877_v51  ;;  %v13417_v39 = vpop.f32.mrf.mxu0 }
 0x569   : > { %v13403_v38 = vpop.eup %8254  ;;  %v5804_v33 = vpop.f32.mrf.mxu1  ;;  %v13414_v9 = vmul.f32 %v8446_v17, %v13171_v26  ;;  %8282 = vpow2.f32 %v7402_v31  ;;  %v6307_v44 = vadd.f32 %v6275_v61, %v14879_v20  ;;  %v5965_v40 = vadd.f32 1.0, %v8253_v46  ;;  %v8447_v46 = vld [vmem:[%s12175_s20 + $0x28] sm:$0xff] }
 0x56a   : > { %14875 = vst [vmem:[#allocation19_spill] sm:$0xff] %v13398_v63  ;;  %v13407_v43 = vpop.eup %8256  ;;  %v13410_v5 = vadd.f32 %v5804_v33, %v12631_v8  ;;  %8284 = vrcp.f32 %v6188_v0  ;;  %v5614_v49 = vadd.f32 %v13336_v42, %v12627_v15  ;;  %v6278_v33 = vmul.f32 %v13317_v16, %v13226_v34 }
 0x56b   : > { %v8259_v63 = vpop.eup %8258  ;;  %v7685_v36 = vpop.f32.mrf.mxu1  ;;  %v14881_v31 = vsub.f32 1.0, %v13153_v52  ;;  %8286 = vpow2.f32 %v7434_v12  ;;  %v7435_v17 = vmul.f32 -1.442695, %v6065_v54  ;;  %v6368_v0 = vsub.f32 1.0, %v13132_v19  ;;  %v8448_v54 = vld [vmem:[%s12175_s20 + $0x50] sm:$0xff] }
 0x56c   : > { %14878 = vst [vmem:[#allocation57_spill] sm:$0xff] %v13410_v5  ;;  %v13423_v51 = vpop.eup %8260  ;;  %v13426_v26 = vadd.f32 %v7685_v36, %v12631_v8  ;;  %v6432_v42 = vmul.f32 %v8447_v46, %v13132_v19  ;;  %8288 = vpow2.f32 %v7403_v3  ;;  %v13434_v34 = vadd.f32 %v6278_v33, %v14882_v41  ;;  %v13450_v41 = vld [vmem:[%s13943_s12] ss:$0 sm:$0xff] }
 0x56d   : > { %v6401_v61 = vmul.f32 %v8259_v63, %v14881_v31  ;;  %v8263_v20 = vpop.eup %8262  ;;  %v5807_v5 = vpop.f32.mrf.mxu1  ;;  %8290 = vtanh.f32 %v6309_v56 }
 0x56e   : > { %14880 = vst [vmem:[#allocation62_spill] sm:$0xff] %v13426_v26  ;;  %v13436_v16 = vpop.eup %8264  ;;  %v13439_v36 = vadd.f32 %v5807_v5, %v12631_v8  ;;  %v13445_v63 = vpop.f32.mrf.mxu0  ;;  %8292 = vrcp.f32 %v5965_v40  ;;  %v6189_v3 = vadd.f32 1.0, %v8263_v20  ;;  %v14884_v5 = vld [vmem:[#allocation54_spill] sm:$0xff]  ;;  %v13462_v26 = vmul.f32 %v8448_v54, %v13269_v37 }
 0x56f   : > { %v13442_v52 = vadd.f32 %v13321_v30, %v6401_v61  ;;  %v8267_v19 = vpop.eup %8266  ;;  %v7690_v12 = vpop.f32.mrf.mxu1  ;;  %v5842_v33 = vadd.f32 %v5614_v49, %v14884_v5  ;;  %v6276_v30 = vmul.f32 %v13219_v2, %v13244_v21  ;;  %v14885_v61 = vsub.f32 1.0, %v13117_v59  ;;  %v14886_v21 = vld [vmem:[#allocation103_spill] sm:$0xff] }
 0x570   : > { %14883 = vst [vmem:[#allocation27_spill] sm:$0xff] %v13439_v36  ;;  %v8269_v31 = vpop.eup %8268  ;;  %v6855_v56 = vadd.f32 %v7690_v12, %v13330_v47  ;;  %8294 = vpow2.f32 %v7435_v17  ;;  %v5616_v2 = vadd.f32 %v13350_v24, %v12633_v53  ;;  %v13472_v12 = vpop.f32.mrf.mxu0  ;;  %v6371_v24 = vsub.f32 1.0, %v13206_v6 }
 0x571   : > { %6497 = vst [vmem:[%s13212_s4 + $0x30] sm:$0xff] %v13442_v52  ;;  %v6399_v46 = vmul.f32 %v8267_v19, %v14885_v61  ;;  %v8271_v40 = vpop.eup %8270  ;;  %v6726_v20 = vpop.f32.mrf.mxu1  ;;  %v5966_v36 = vadd.f32 1.0, %v8269_v31  ;;  %8296 = vtanh.f32 %v6307_v44  ;;  %v13467_v47 = vadd.f32 %v6276_v30, %v14886_v21 }
 0x572   : > { %v8273_v49 = vpop.eup %8272  ;;  %v6894_v59 = vadd.f32 %v13450_v41, %v6855_v56  ;;  %v6853_v19 = vadd.f32 %v6726_v20, %v13189_v13  ;;  %v6402_v17 = vmul.f32 %v8271_v40, %v6370_v62  ;;  %8298 = vrcp.f32 %v6189_v3 }
 0x573   : > { %v6463_v54 = vadd.f32 %v13378_v60, %v6399_v46  ;;  %v8275_v5 = vpop.eup %8274  ;;  %v7691_v44 = vpop.f32.mrf.mxu1  ;;  %v6190_v31 = vadd.f32 1.0, %v8273_v49  ;;  %v7404_v61 = vmul.f32 -1.442695, %v5842_v33  ;;  %8300 = vrcp.f32 %v5966_v36  ;;  %v14887_v33 = vld [vmem:[#allocation53_spill] sm:$0xff] }
 0x574   : > { %v13475_v30 = vpop.eup %8276  ;;  %6926 = vst [vmem:[%s13479_s1 + $0x10] sm:$0xff] %v6894_v59  ;;  %v6892_v13 = vadd.f32 %v13450_v41, %v6853_v19  ;;  %v6856_v60 = vadd.f32 %v7691_v44, %v13371_v35  ;;  %v6466_v62 = vadd.f32 %v13414_v9, %v6402_v17  ;;  %v6400_v3 = vmul.f32 %v8275_v5, %v6368_v0  ;;  %v13495_v36 = vpop.f32.mrf.mxu0 }
 0x575   : > { %6495 = vst [vmem:[%s13212_s4 + $0x20] sm:$0xff] %v6463_v54  ;;  %v8279_v56 = vpop.eup %8278  ;;  %v6729_v46 = vpop.f32.mrf.mxu1  ;;  %v6066_v40 = vadd.f32 %v5616_v2, %v14887_v33  ;;  %v5620_v20 = vadd.f32 %v13365_v27, %v12627_v15  ;;  %v5622_v21 = vadd.f32 %v13381_v11, %v12633_v53  ;;  %8302 = vpow2.f32 %v7404_v61  ;;  %v8449_v61 = vld [vmem:[%s12175_s20 + $0x40] sm:$0xff] }
 0x576   : > { %v8281_v49 = vpop.eup %8280  ;;  %6924 = vst [vmem:[%s13479_s1] sm:$0xff] %v6892_v13  ;;  %v6895_v35 = vadd.f32 %v13450_v41, %v6856_v60  ;;  %v6854_v59 = vadd.f32 %v6729_v46, %v13238_v58  ;;  %6498 = vst [vmem:[%s13212_s4 + $0x38] sm:$0xff] %v6466_v62  ;;  %v6464_v9 = vadd.f32 %v6432_v42, %v6400_v3  ;;  %v5967_v0 = vadd.f32 1.0, %v8279_v56 }
 0x577   : > { %v8283_v2 = vpop.eup %8282  ;;  %v7694_v19 = vpop.f32.mrf.mxu1  ;;  %v6191_v27 = vadd.f32 1.0, %v8281_v49  ;;  %v5843_v11 = vadd.f32 %v5620_v20, %v13006_v29  ;;  %v5624_v17 = vadd.f32 %v13395_v22, %v12627_v15  ;;  %8304 = vrcp.f32 %v6190_v31 }
 0x578   : > { %v13500_v5 = vpop.eup %8284  ;;  %6927 = vst [vmem:[%s13479_s1 + $0x18] sm:$0xff] %v6895_v35  ;;  %v6893_v58 = vadd.f32 %v13450_v41, %v6854_v59  ;;  %v6859_v42 = vadd.f32 %v7694_v19, %v13442_v52  ;;  %6496 = vst [vmem:[%s13212_s4 + $0x28] sm:$0xff] %v6464_v9  ;;  %v5968_v44 = vadd.f32 1.0, %v8283_v2  ;;  %8306 = vrcp.f32 %v5967_v0  ;;  %v13511_v31 = vpop.f32.mrf.mxu0 }
 0x579   : > { %v8287_v13 = vpop.eup %8286  ;;  %v6742_v60 = vpop.f32.mrf.mxu1  ;;  %v6435_v29 = vmul.f32 %v8449_v61, %v13206_v6  ;;  %v7436_v3 = vmul.f32 -1.442695, %v6066_v40  ;;  %v6067_v22 = vadd.f32 %v5622_v21, %v13009_v50  ;;  %8308 = vrcp.f32 %v6191_v27 }
 0x57a   : > { %v8289_v56 = vpop.eup %8288  ;;  %6925 = vst [vmem:[%s13479_s1 + $0x8] sm:$0xff] %v6893_v58  ;;  %v6898_v46 = vadd.f32 %v13450_v41, %v6859_v42  ;;  %v6857_v33 = vadd.f32 %v6742_v60, %v6463_v54  ;;  %v6192_v52 = vadd.f32 1.0, %v8287_v13  ;;  %8310 = vtanh.f32 %v13434_v34  ;;  %v13528_v42 = vpop.f32.mrf.mxu0  ;;  %v14889_v60 = vld [vmem:[#allocation76_spill] sm:$0xff] }
 0x57b   : > { %v8291_v20 = vpop.eup %8290  ;;  %v7695_v49 = vpop.f32.mrf.mxu1  ;;  %v5969_v35 = vadd.f32 1.0, %v8289_v56  ;;  %v7405_v59 = vmul.f32 -1.442695, %v5843_v11  ;;  %v5844_v40 = vadd.f32 %v5624_v17, %v13012_v48  ;;  %8312 = vrcp.f32 %v5968_v44 }
 0x57c   : > { %v13515_v0 = vpop.eup %8292  ;;  %6930 = vst [vmem:[%s13479_s1 + $0x30] sm:$0xff] %v6898_v46  ;;  %v6896_v50 = vadd.f32 %v13450_v41, %v6857_v33  ;;  %v6860_v21 = vadd.f32 %v7695_v49, %v6466_v62  ;;  %v14888_v54 = vsub.f32 1.0, %v13269_v37  ;;  %8314 = vrcp.f32 %v6192_v52 }
 0x57d   : > { %v8295_v19 = vpop.eup %8294  ;;  %v6745_v27 = vpop.f32.mrf.mxu1  ;;  %v7437_v58 = vmul.f32 -1.442695, %v6067_v22  ;;  %v5626_v34 = vadd.f32 %v13417_v39, %v12633_v53  ;;  %v5630_v48 = vadd.f32 %v13445_v63, %v12627_v15  ;;  %8316 = vpow2.f32 %v7436_v3 }
 0x57e   : > { %v6405_v2 = vmul.f32 %v8291_v20, %v14888_v54  ;;  %v8297_v11 = vpop.eup %8296  ;;  %6928 = vst [vmem:[%s13479_s1 + $0x20] sm:$0xff] %v6896_v50  ;;  %v6899_v62 = vadd.f32 %v13450_v41, %v6860_v21  ;;  %v6858_v17 = vadd.f32 %v6745_v27, %v6464_v9  ;;  %8318 = vrcp.f32 %v5969_v35 }
 0x57f   : > { %v7698_v44 = vpop.f32.mrf.mxu1  ;;  %v6403_v13 = vmul.f32 %v8297_v11, %v6371_v24  ;;  %v7406_v39 = vmul.f32 -1.442695, %v5844_v40  ;;  %v5845_v63 = vadd.f32 %v5630_v48, %v14889_v60  ;;  %v13533_v61 = vpop.eup %8298  ;;  %8320 = vtanh.f32 %v13467_v47  ;;  %v14890_v24 = vld [vmem:[#allocation11_spill] sm:$0xff]  ;;  %v14891_v47 = vld [vmem:[#allocation90_spill] sm:$0xff]  ;;  %v14894_v48 = vld [vmem:[#allocation81_spill] sm:$0xff] }
 0x580   : > { %v6469_v37 = vadd.f32 %v13462_v26, %v6405_v2  ;;  %6931 = vst [vmem:[%s13479_s1 + $0x38] sm:$0xff] %v6899_v62  ;;  %v6897_v22 = vadd.f32 %v13450_v41, %v6858_v17  ;;  %v6281_v26 = vmul.f32 %v13383_v1, %v13253_v23  ;;  %8322 = vpow2.f32 %v7405_v59  ;;  %v13542_v33 = vpop.eup %8300  ;;  %v5641_v23 = vpop.f32.mrf.mxu0 }
 0x581   : > { %v6467_v3 = vadd.f32 %v6435_v29, %v6403_v13  ;;  %v6758_v6 = vpop.f32.mrf.mxu1  ;;  %v6068_v56 = vadd.f32 %v5626_v34, %v14890_v24  ;;  %v7407_v46 = vmul.f32 -1.442695, %v5845_v63  ;;  %v5744_v52 = vadd.f32 %v13228_v28, %v12631_v8  ;;  %v8450_v28 = vld [vmem:[%s12175_s20 + $0x58] sm:$0xff]  ;;  %v8451_v13 = vld [vmem:[%s12175_s20 + $0x48] sm:$0xff] }
 0x582   : > { %6501 = vst [vmem:[%s13212_s4 + $0x50] sm:$0xff] %v6469_v37  ;;  %v6863_v9 = vadd.f32 %v7698_v44, %v6469_v37  ;;  %6929 = vst [vmem:[%s13479_s1 + $0x28] sm:$0xff] %v6897_v22  ;;  %8324 = vpow2.f32 %v7437_v58  ;;  %v6313_v49 = vadd.f32 %v6281_v26, %v14891_v47  ;;  %v6193_v1 = vadd.f32 1.0, %v8295_v19  ;;  %v8303_v50 = vpop.eup %8302  ;;  %v5643_v62 = vpop.f32.mrf.mxu0 }
 0x583   : > { %6499 = vst [vmem:[%s13212_s4 + $0x40] sm:$0xff] %v6467_v3  ;;  %v6861_v29 = vadd.f32 %v6758_v6, %v6467_v3  ;;  %v7699_v35 = vpop.f32.mrf.mxu1  ;;  %v5632_v59 = vadd.f32 %v13472_v12, %v12633_v53  ;;  %v6279_v40 = vmul.f32 %v13338_v10, %v13273_v32  ;;  %v6374_v8 = vsub.f32 1.0, %v13324_v18  ;;  %v14892_v10 = vld [vmem:[#allocation23_spill] sm:$0xff] }
 0x584   : > { %v6902_v20 = vadd.f32 %v13450_v41, %v6863_v9  ;;  %v6438_v21 = vmul.f32 %v8450_v28, %v13324_v18  ;;  %8326 = vpow2.f32 %v7406_v39  ;;  %v5634_v54 = vadd.f32 %v13495_v36, %v12627_v15  ;;  %v13560_v2 = vpop.eup %8304  ;;  %v14893_v18 = vld [vmem:[#allocation87_spill] sm:$0xff]  ;;  %v14898_v28 = vld [vmem:[#allocation80_spill] sm:$0xff] }
 0x585   : > { %v6900_v19 = vadd.f32 %v13450_v41, %v6861_v29  ;;  %v13563_v12 = vpop.f32.mrf.mxu1  ;;  %v7438_v32 = vmul.f32 -1.442695, %v6068_v56  ;;  %8328 = vpow2.f32 %v7407_v46  ;;  %v6069_v27 = vadd.f32 %v5632_v59, %v14892_v10  ;;  %v13566_v58 = vpop.eup %8306  ;;  %v14895_v9 = vld [vmem:[#allocation95_spill] sm:$0xff]  ;;  %v14897_v59 = vld [vmem:[#allocation94_spill] sm:$0xff] }
 0x586   : > { %6934 = vst [vmem:[%s13479_s1 + $0x50] sm:$0xff] %v6902_v20  ;;  %8330 = vtanh.f32 %v6313_v49  ;;  %v6311_v34 = vadd.f32 %v6279_v40, %v14893_v18  ;;  %v5846_v11 = vadd.f32 %v5634_v54, %v14894_v48  ;;  %v6282_v36 = vmul.f32 %v13403_v38, %v13295_v57  ;;  %v13572_v17 = vpop.eup %8308  ;;  %v14896_v20 = vld [vmem:[#allocation16_spill] sm:$0xff]  ;;  %v5645_v49 = vpop.f32.mrf.mxu0 }
 0x587   : > { %8332 = vrcp.f32 %v6193_v1  ;;  %6932 = vst [vmem:[%s13479_s1 + $0x40] sm:$0xff] %v6900_v19  ;;  %v5970_v37 = vadd.f32 1.0, %v8303_v50  ;;  %v6372_v44 = vsub.f32 1.0, %v13233_v25  ;;  %v6436_v39 = vmul.f32 %v8451_v13, %v13233_v25  ;;  %v13578_v60 = vpop.f32.mrf.mxu1  ;;  %v8311_v63 = vpop.eup %8310 }
 0x588   : > { %8334 = vtanh.f32 %v6311_v34  ;;  %v7408_v22 = vmul.f32 -1.442695, %v5846_v11  ;;  %v6314_v26 = vadd.f32 %v6282_v36, %v14895_v9  ;;  %v5636_v57 = vadd.f32 %v13511_v31, %v12633_v53  ;;  %v13583_v38 = vpop.eup %8312  ;;  %v14899_v11 = vld [vmem:[#allocation9_spill] sm:$0xff] }
 0x589   : > { %v6406_v3 = vmul.f32 %v8311_v63, %v6374_v8  ;;  %8336 = vpow2.f32 %v7438_v32  ;;  %v6377_v6 = vsub.f32 1.0, %v13392_v14  ;;  %v13586_v24 = vpop.f32.mrf.mxu1  ;;  %v6280_v25 = vmul.f32 %v13361_v7, %v5744_v52  ;;  %v13589_v56 = vpop.eup %8314  ;;  %v8452_v7 = vld [vmem:[%s12175_s20 + $0x70] sm:$0xff] }
 0x58a   : > { %v7439_v46 = vmul.f32 -1.442695, %v6069_v27  ;;  %8338 = vpow2.f32 %v7408_v22  ;;  %v6070_v47 = vadd.f32 %v5636_v57, %v14896_v20  ;;  %v5640_v31 = vadd.f32 %v13528_v42, %v12627_v15  ;;  %v8317_v1 = vpop.eup %8316  ;;  %v8453_v57 = vld [vmem:[%s12175_s20 + $0x60] sm:$0xff] }
 0x58b   : > { %v6470_v29 = vadd.f32 %v6438_v21, %v6406_v3  ;;  %8340 = vtanh.f32 %v6314_v26  ;;  %v6312_v40 = vadd.f32 %v6280_v25, %v14897_v59  ;;  %v5642_v50 = vadd.f32 %v5641_v23, %v12633_v53  ;;  %v13596_v8 = vpop.eup %8318  ;;  %v13603_v21 = vpop.f32.mrf.mxu1 }
 0x58c   : > { %8342 = vrcp.f32 %v5970_v37  ;;  %v6441_v52 = vmul.f32 %v8452_v7, %v13392_v14  ;;  %v5847_v54 = vadd.f32 %v5640_v31, %v14898_v28  ;;  %v5644_v19 = vadd.f32 %v5643_v62, %v12627_v15  ;;  %v8321_v32 = vpop.eup %8320  ;;  %v5649_v37 = vpop.f32.mrf.mxu0  ;;  %v14903_v7 = vld [vmem:[#allocation15_spill] sm:$0xff] }
 0x58d   : > { %6502 = vst [vmem:[%s13212_s4 + $0x58] sm:$0xff] %v6470_v29  ;;  %v6864_v42 = vadd.f32 %v7699_v35, %v6470_v29  ;;  %v6194_v10 = vadd.f32 1.0, %v8317_v1  ;;  %8344 = vtanh.f32 %v6312_v40  ;;  %v5646_v23 = vadd.f32 %v5645_v49, %v12633_v53  ;;  %v8323_v27 = vpop.eup %8322  ;;  %v14900_v35 = vld [vmem:[#allocation44_spill] sm:$0xff]  ;;  %v13613_v20 = vpop.f32.mrf.mxu1  ;;  %v14902_v29 = vld [vmem:[#allocation31_spill] sm:$0xff] }
 0x58e   : > { %v6404_v18 = vmul.f32 %v8321_v32, %v6372_v44  ;;  %v7440_v34 = vmul.f32 -1.442695, %v6070_v47  ;;  %v7409_v48 = vmul.f32 -1.442695, %v5847_v54  ;;  %v6071_v36 = vadd.f32 %v5642_v50, %v14899_v11  ;;  %v14901_v47 = vld [vmem:[#allocation33_spill] sm:$0xff] }
 0x58f   : > { %v8325_v13 = vpop.eup %8324  ;;  %v6903_v62 = vadd.f32 %v13450_v41, %v6864_v42  ;;  %v5971_v63 = vadd.f32 1.0, %v8323_v27  ;;  %8346 = vpow2.f32 %v7439_v46  ;;  %v5848_v22 = vadd.f32 %v5644_v19, %v14900_v35  ;;  %v13623_v54 = vpop.f32.mrf.mxu1  ;;  %v14905_v35 = vld [vmem:[#allocation93_spill] sm:$0xff] }
 0x590   : > { %v6468_v9 = vadd.f32 %v6436_v39, %v6404_v18  ;;  %v6375_v26 = vsub.f32 1.0, %v13352_v4  ;;  %v6439_v44 = vmul.f32 %v8453_v57, %v13352_v4  ;;  %8348 = vpow2.f32 %v7409_v48  ;;  %v8454_v18 = vld [vmem:[%s12175_s20 + $0x78] sm:$0xff] }
 0x591   : > { %v8327_v3 = vpop.eup %8326  ;;  %6935 = vst [vmem:[%s13479_s1 + $0x58] sm:$0xff] %v6903_v62  ;;  %8350 = vrcp.f32 %v6194_v10  ;;  %v6195_v25 = vadd.f32 1.0, %v8325_v13  ;;  %v6072_v31 = vadd.f32 %v5646_v23, %v14901_v47  ;;  %v5650_v49 = vadd.f32 %v5649_v37, %v12627_v15  ;;  %v14904_v10 = vld [vmem:[#allocation101_spill] sm:$0xff]  ;;  %v5651_v23 = vpop.f32.mrf.mxu0 }
 0x592   : > { %v8329_v46 = vpop.eup %8328  ;;  %6500 = vst [vmem:[%s13212_s4 + $0x48] sm:$0xff] %v6468_v9  ;;  %v6862_v39 = vadd.f32 %v13563_v12, %v6468_v9  ;;  %8352 = vpow2.f32 %v7440_v34  ;;  %v7441_v1 = vmul.f32 -1.442695, %v6071_v36  ;;  %v6285_v4 = vmul.f32 %v13515_v0, %v14902_v29 }
 0x593   : > { %v8331_v59 = vpop.eup %8330  ;;  %8354 = vrcp.f32 %v5971_v63  ;;  %v6378_v40 = vsub.f32 1.0, %v13407_v43  ;;  %v7410_v50 = vmul.f32 -1.442695, %v5848_v22  ;;  %v5849_v28 = vadd.f32 %v5650_v49, %v14903_v7  ;;  %v14906_v49 = vld [vmem:[#allocation64_spill] sm:$0xff] }
 0x594   : > { %v13625_v19 = vpop.eup %8332  ;;  %v6901_v12 = vadd.f32 %v13450_v41, %v6862_v39  ;;  %v5973_v32 = vadd.f32 1.0, %v8329_v46  ;;  %v6409_v42 = vmul.f32 %v8331_v59, %v6377_v6  ;;  %v6317_v0 = vadd.f32 %v6285_v4, %v14904_v10  ;;  %v5653_v46 = vpop.f32.mrf.mxu0  ;;  %v14907_v4 = vld [vmem:[#allocation92_spill] sm:$0xff]  ;;  %v14910_v10 = vld [vmem:[#allocation107_spill] sm:$0xff] }
 0x595   : > { %v8335_v27 = vpop.eup %8334  ;;  %8356 = vrcp.f32 %v6195_v25  ;;  %v6442_v34 = vmul.f32 %v8454_v18, %v13407_v43  ;;  %v6376_v48 = vsub.f32 1.0, %v13374_v55  ;;  %v7442_v11 = vmul.f32 -1.442695, %v6072_v31  ;;  %v13638_v43 = vpop.f32.mrf.mxu1 }
 0x596   : > { %v8337_v36 = vpop.eup %8336  ;;  %6933 = vst [vmem:[%s13479_s1 + $0x48] sm:$0xff] %v6901_v12  ;;  %v5972_v37 = vadd.f32 1.0, %v8327_v3  ;;  %v6473_v13 = vadd.f32 %v6441_v52, %v6409_v42  ;;  %v6407_v62 = vmul.f32 %v8335_v27, %v6375_v26  ;;  %8358 = vpow2.f32 %v7441_v1  ;;  %v8455_v52 = vld [vmem:[%s12175_s20 + $0x68] sm:$0xff]  ;;  %v14908_v12 = vld [vmem:[#allocation30_spill] sm:$0xff] }
 0x597   : > { %v8339_v14 = vpop.eup %8338  ;;  %8360 = vpow2.f32 %v7410_v50  ;;  %v7411_v6 = vmul.f32 -1.442695, %v5849_v28  ;;  %v5652_v63 = vadd.f32 %v5651_v23, %v12633_v53  ;;  %v6283_v22 = vmul.f32 %v13423_v51, %v14905_v35 }
 0x598   : > { %v8341_v9 = vpop.eup %8340  ;;  %8362 = vrcp.f32 %v5973_v32  ;;  %6505 = vst [vmem:[%s13212_s4 + $0x70] sm:$0xff] %v6473_v13  ;;  %v6867_v57 = vadd.f32 %v13578_v60, %v6473_v13  ;;  %v6471_v3 = vadd.f32 %v6439_v44, %v6407_v62  ;;  %v6440_v26 = vmul.f32 %v8455_v52, %v13374_v55 }
 0x599   : > { %v13644_v25 = vpop.eup %8342  ;;  %v5974_v47 = vadd.f32 1.0, %v8339_v14  ;;  %v6410_v31 = vmul.f32 %v8341_v9, %v6378_v40  ;;  %8364 = vpow2.f32 %v7442_v11  ;;  %v6315_v51 = vadd.f32 %v6283_v22, %v14906_v49  ;;  %v13651_v40 = vpop.f32.mrf.mxu1 }
 0x59a   : > { %v8345_v39 = vpop.eup %8344  ;;  %8366 = vrcp.f32 %v5972_v37  ;;  %v6196_v1 = vadd.f32 1.0, %v8337_v36  ;;  %v6906_v29 = vadd.f32 %v13450_v41, %v6867_v57  ;;  %6503 = vst [vmem:[%s13212_s4 + $0x60] sm:$0xff] %v6471_v3  ;;  %v6865_v60 = vadd.f32 %v13586_v24, %v6471_v3  ;;  %v14909_v24 = vld [vmem:[#allocation79_spill] sm:$0xff]  ;;  %v14913_v57 = vld [vmem:[#allocation58_spill] sm:$0xff] }
 0x59b   : > { %v6474_v44 = vadd.f32 %v6442_v34, %v6410_v31  ;;  %v6408_v55 = vmul.f32 %v8345_v39, %v6376_v48  ;;  %8368 = vpow2.f32 %v7411_v6  ;;  %v6073_v59 = vadd.f32 %v5652_v63, %v14907_v4  ;;  %v5655_v34 = vpop.f32.mrf.mxu0  ;;  %v13670_v14 = vpop.f32.mrf.mxu1  ;;  %v14914_v31 = vld [vmem:[#allocation18_spill] sm:$0xff] }
 0x59c   : > { %v8347_v50 = vpop.eup %8346  ;;  %6938 = vst [vmem:[%s13479_s1 + $0x70] sm:$0xff] %v6906_v29  ;;  %v6904_v7 = vadd.f32 %v13450_v41, %v6865_v60  ;;  %8370 = vtanh.f32 %v6317_v0  ;;  %v5654_v28 = vadd.f32 %v5653_v46, %v12627_v15  ;;  %v6286_v32 = vmul.f32 %v13542_v33, %v14908_v12  ;;  %v14911_v15 = vld [vmem:[#allocation22_spill] sm:$0xff]  ;;  %v14912_v33 = vld [vmem:[#allocation108_spill] sm:$0xff]  ;;  %v14917_v60 = vld [vmem:[#allocation97_spill] sm:$0xff] }
 0x59d   : > { %v8349_v42 = vpop.eup %8348  ;;  %v5270_v23 = vadd.f32 %v14910_v10, %v14909_v24  ;;  %8372 = vrcp.f32 %v5974_v47  ;;  %6506 = vst [vmem:[%s13212_s4 + $0x78] sm:$0xff] %v6474_v44  ;;  %v6868_v27 = vadd.f32 %v13603_v21, %v6474_v44  ;;  %v6472_v18 = vadd.f32 %v6440_v26, %v6408_v55  ;;  %v13677_v52 = vpop.f32.mrf.mxu1  ;;  %v14916_v39 = vld [vmem:[#allocation86_spill] sm:$0xff]  ;;  %v14919_v12 = vld [vmem:[#allocation8_spill] sm:$0xff] }
 0x59e   : > { %v13662_v48 = vpop.eup %8350  ;;  %6936 = vst [vmem:[%s13479_s1 + $0x60] sm:$0xff] %v6904_v7  ;;  %v5975_v0 = vadd.f32 1.0, %v8349_v42  ;;  %8374 = vtanh.f32 %v6315_v51  ;;  %v5850_v11 = vadd.f32 %v5654_v28, %v14911_v15  ;;  %v6318_v36 = vadd.f32 %v6286_v32, %v14912_v33 }
 0x59f   : > { %v8353_v37 = vpop.eup %8352  ;;  %8376 = vrcp.f32 %v6196_v1  ;;  %v6197_v13 = vadd.f32 1.0, %v8347_v50  ;;  %v6907_v62 = vadd.f32 %v13450_v41, %v6868_v27  ;;  %6504 = vst [vmem:[%s13212_s4 + $0x68] sm:$0xff] %v6472_v18  ;;  %v6866_v21 = vadd.f32 %v13613_v20, %v6472_v18  ;;  %v14918_v50 = vld [vmem:[#allocation78_spill] sm:$0xff]  ;;  %v13689_v7 = vpop.f32.mrf.mxu1 }
 0x5a0   : > { %v8355_v6 = vpop.eup %8354  ;;  %8378 = vrcp.f32 %v5975_v0  ;;  %v7443_v63 = vmul.f32 -1.442695, %v6073_v59  ;;  %v7412_v35 = vmul.f32 -1.442695, %v5850_v11  ;;  %v5656_v22 = vadd.f32 %v5655_v34, %v12633_v53  ;;  %v14915_v53 = vld [vmem:[#allocation99_spill] sm:$0xff]  ;;  %v14920_v18 = vld [vmem:[#allocation106_spill] sm:$0xff] }
 0x5a1   : > { %6939 = vst [vmem:[%s13479_s1 + $0x78] sm:$0xff] %v6907_v62  ;;  %v6905_v9 = vadd.f32 %v13450_v41, %v6866_v21  ;;  %8380 = vtanh.f32 %v6318_v36  ;;  %v6284_v3 = vmul.f32 %v13475_v30, %v14913_v57  ;;  %v6198_v20 = vadd.f32 1.0, %v8353_v37  ;;  %v14921_v0 = vld [vmem:[#allocation77_spill] sm:$0xff]  ;;  %v13700_v36 = vpop.f32.mrf.mxu1  ;;  %v14923_v21 = vld [vmem:[#allocation74_spill] sm:$0xff] }
 0x5a2   : > { %v13679_v26 = vpop.eup %8356  ;;  %8382 = vpow2.f32 %v7412_v35  ;;  %v6074_v47 = vadd.f32 %v5656_v22, %v5270_v23  ;;  %v6289_v49 = vmul.f32 %v13596_v8, %v14914_v31  ;;  %v6287_v1 = vmul.f32 %v13566_v58, %v14916_v39  ;;  %v8456_v23 = vld [vmem:[%s12175_s20 + $0x90] sm:$0xff]  ;;  %v14922_v37 = vld [vmem:[#allocation105_spill] sm:$0xff] }
 0x5a3   : > { %v8359_v51 = vpop.eup %8358  ;;  %8384 = vrcp.f32 %v6197_v13  ;;  %6937 = vst [vmem:[%s13479_s1 + $0x68] sm:$0xff] %v6905_v9  ;;  %v6316_v46 = vadd.f32 %v6284_v3, %v14915_v53  ;;  %v6290_v32 = vmul.f32 %v13644_v25, %v14919_v12  ;;  %v6381_v42 = vsub.f32 1.0, %v13533_v61  ;;  %v14924_v35 = vld [vmem:[#allocation65_spill] sm:$0xff]  ;;  %v14925_v53 = vld [vmem:[#allocation110_spill] sm:$0xff] }
 0x5a4   : > { %v8361_v29 = vpop.eup %8360  ;;  %v6199_v30 = vadd.f32 1.0, %v8359_v51  ;;  %8386 = vpow2.f32 %v7443_v63  ;;  %v6321_v44 = vadd.f32 %v6289_v49, %v14917_v60  ;;  %v7444_v59 = vmul.f32 -1.442695, %v6074_v47  ;;  %v13711_v51 = vpop.f32.mrf.mxu1  ;;  %v14926_v39 = vld [vmem:[#allocation21_spill] sm:$0xff]  ;;  %v8458_v60 = vld [vmem:[%s12175_s20 + $0x98] sm:$0xff] }
 0x5a5   : > { %v8363_v55 = vpop.eup %8362  ;;  %v5976_v4 = vadd.f32 1.0, %v8361_v29  ;;  %8388 = vtanh.f32 %v6316_v46  ;;  %v6319_v8 = vadd.f32 %v6287_v1, %v14918_v50  ;;  %v6288_v24 = vmul.f32 %v13583_v38, %v13327_v45 }
 0x5a6   : > { %v8365_v28 = vpop.eup %8364  ;;  %8390 = vrcp.f32 %v6198_v20  ;;  %v6445_v27 = vmul.f32 %v8456_v23, %v13533_v61  ;;  %v6322_v34 = vadd.f32 %v6290_v32, %v14920_v18  ;;  %v6293_v15 = vmul.f32 %v8363_v55, %v14921_v0  ;;  %v8457_v20 = vld [vmem:[%s12175_s20 + $0x80] sm:$0xff]  ;;  %v14929_v23 = vld [vmem:[#allocation83_spill] sm:$0xff] }
 0x5a7   : > { %v8367_v58 = vpop.eup %8366  ;;  %8392 = vrcp.f32 %v5976_v4  ;;  %v6200_v33 = vadd.f32 1.0, %v8365_v28  ;;  %v6320_v13 = vadd.f32 %v6288_v24, %v14922_v37  ;;  %v6379_v38 = vsub.f32 1.0, %v13436_v16  ;;  %v13719_v4 = vpop.f32.mrf.mxu1 }
 0x5a8   : > { %v8369_v10 = vpop.eup %8368  ;;  %8394 = vrcp.f32 %v6199_v30  ;;  %v6325_v61 = vadd.f32 %v6293_v15, %v14923_v21  ;;  %v6291_v22 = vmul.f32 %v8355_v6, %v14924_v35  ;;  %v6443_v47 = vmul.f32 %v8457_v20, %v13436_v16 }
 0x5a9   : > { %v8371_v11 = vpop.eup %8370  ;;  %v5977_v25 = vadd.f32 1.0, %v8369_v10  ;;  %8396 = vpow2.f32 %v7444_v59  ;;  %v6382_v49 = vsub.f32 1.0, %v13560_v2  ;;  %v6446_v16 = vmul.f32 %v8458_v60, %v13560_v2  ;;  %v14927_v59 = vld [vmem:[#allocation112_spill] sm:$0xff]  ;;  %v13739_v37 = vpop.f32.mrf.mxu1 }
 0x5aa   : > { %v8373_v62 = vpop.eup %8372  ;;  %v6413_v45 = vmul.f32 %v8371_v11, %v6381_v42  ;;  %8398 = vtanh.f32 %v6321_v44  ;;  %v6323_v46 = vadd.f32 %v6291_v22, %v14925_v53  ;;  %v6380_v10 = vsub.f32 1.0, %v13500_v5 }
 0x5ab   : > { %v8375_v63 = vpop.eup %8374  ;;  %8400 = vrcp.f32 %v5977_v25  ;;  %v6294_v1 = vmul.f32 %v8373_v62, %v14926_v39  ;;  %v14931_v62 = vld [vmem:[#allocation96_spill] sm:$0xff]  ;;  %v6385_v22 = vsub.f32 1.0, %v13625_v19  ;;  %v6383_v20 = vsub.f32 1.0, %v13572_v17  ;;  %v13757_v39 = vpop.f32.mrf.mxu1 }
 0x5ac   : > { %v13706_v9 = vpop.eup %8376  ;;  %v6477_v57 = vadd.f32 %v6445_v27, %v6413_v45  ;;  %v6411_v3 = vmul.f32 %v8375_v63, %v6379_v38  ;;  %8402 = vtanh.f32 %v6319_v8  ;;  %v14928_v8 = vld [vmem:[#allocation85_spill] sm:$0xff]  ;;  %v14932_v63 = vld [vmem:[#allocation27_spill] sm:$0xff] }
 0x5ad   : > { %v8379_v31 = vpop.eup %8378  ;;  %8404 = vrcp.f32 %v6200_v33  ;;  %v6326_v50 = vadd.f32 %v6294_v1, %v14927_v59  ;;  %v6292_v28 = vmul.f32 %v8367_v58, %v14928_v8  ;;  %v8459_v33 = vld [vmem:[%s12175_s20 + $0x88] sm:$0xff] }
 0x5ae   : > { %v8381_v6 = vpop.eup %8380  ;;  %6509 = vst [vmem:[%s13212_s4 + $0x90] sm:$0xff] %v6477_v57  ;;  %v6871_v29 = vadd.f32 %v13623_v54, %v6477_v57  ;;  %v6475_v30 = vadd.f32 %v6443_v47, %v6411_v3  ;;  %8406 = vtanh.f32 %v6322_v34  ;;  %v14930_v34 = vld [vmem:[#allocation57_spill] sm:$0xff]  ;;  %v6444_v25 = vmul.f32 %v8459_v33, %v13500_v5  ;;  %v8460_v57 = vld [vmem:[%s12175_s20 + $0xb0] sm:$0xff] }
 0x5af   : > { %v8383_v44 = vpop.eup %8382  ;;  %v6414_v55 = vmul.f32 %v8381_v6, %v6382_v49  ;;  %8408 = vtanh.f32 %v6320_v13  ;;  %v6324_v27 = vadd.f32 %v6292_v28, %v14929_v23  ;;  %v6295_v0 = vmul.f32 %v8379_v31, %v14930_v34  ;;  %v8461_v49 = vld [vmem:[%s12175_s20 + $0xa0] sm:$0xff]  ;;  %v14933_v1 = vld [vmem:[#allocation121_spill] sm:$0xff] }
 0x5b0   : > { %v13723_v12 = vpop.eup %8384  ;;  %v6910_v32 = vadd.f32 %v13450_v41, %v6871_v29  ;;  %6507 = vst [vmem:[%s13212_s4 + $0x80] sm:$0xff] %v6475_v30  ;;  %v6869_v54 = vadd.f32 %v13638_v43, %v6475_v30  ;;  %v5978_v2 = vadd.f32 1.0, %v8383_v44  ;;  %8410 = vtanh.f32 %v6325_v61  ;;  %v8462_v30 = vld [vmem:[%s12175_s20 + $0xb8] sm:$0xff]  ;;  %v8463_v44 = vld [vmem:[%s12175_s20 + $0xa8] sm:$0xff] }
 0x5b1   : > { %v8387_v42 = vpop.eup %8386  ;;  %v6478_v24 = vadd.f32 %v6446_v16, %v6414_v55  ;;  %8412 = vtanh.f32 %v6323_v46  ;;  %v6327_v45 = vadd.f32 %v6295_v0, %v14931_v62  ;;  %v6449_v3 = vmul.f32 %v8460_v57, %v13625_v19 }
 0x5b2   : > { %v8389_v58 = vpop.eup %8388  ;;  %6942 = vst [vmem:[%s13479_s1 + $0x90] sm:$0xff] %v6910_v32  ;;  %v6908_v18 = vadd.f32 %v13450_v41, %v6869_v54  ;;  %8414 = vrcp.f32 %v5978_v2  ;;  %v6201_v21 = vadd.f32 1.0, %v8387_v42  ;;  %v6447_v53 = vmul.f32 %v8461_v49, %v13572_v17  ;;  %v8464_v54 = vld [vmem:[%s12175_s20 + $0xd0] sm:$0xff] }
 0x5b3   : > { %v13733_v15 = vpop.eup %8390  ;;  %6510 = vst [vmem:[%s13212_s4 + $0x98] sm:$0xff] %v6478_v24  ;;  %v6872_v43 = vadd.f32 %v13651_v40, %v6478_v24  ;;  %v6412_v11 = vmul.f32 %v8389_v58, %v6380_v10  ;;  %8416 = vtanh.f32 %v6326_v50  ;;  %v6386_v46 = vsub.f32 1.0, %v13662_v48  ;;  %v14934_v50 = vld [vmem:[#allocation19_spill] sm:$0xff]  ;;  %v8465_v10 = vld [vmem:[%s12175_s20 + $0xc0] sm:$0xff]  ;;  %v14935_v58 = vld [vmem:[#allocation118_spill] sm:$0xff] }
 0x5b4   : > { %v8393_v13 = vpop.eup %8392  ;;  %6940 = vst [vmem:[%s13479_s1 + $0x80] sm:$0xff] %v6908_v18  ;;  %8418 = vtanh.f32 %v6324_v27  ;;  %v6450_v60 = vmul.f32 %v8462_v30, %v13662_v48  ;;  %v6384_v16 = vsub.f32 1.0, %v13589_v56  ;;  %v6389_v59 = vsub.f32 1.0, %v13723_v12  ;;  %v13776_v27 = vpop.f32.mrf.mxu1 }
 0x5b5   : > { %v13743_v38 = vpop.eup %8394  ;;  %v6911_v40 = vadd.f32 %v13450_v41, %v6872_v43  ;;  %v6476_v61 = vadd.f32 %v6444_v25, %v6412_v11  ;;  %v6296_v35 = vmul.f32 %v8393_v13, %v14932_v63  ;;  %8420 = vtanh.f32 %v6327_v45  ;;  %v8466_v13 = vld [vmem:[%s12175_s20 + $0xd8] sm:$0xff] }
 0x5b6   : > { %v8397_v5 = vpop.eup %8396  ;;  %8422 = vrcp.f32 %v6201_v21  ;;  %v6453_v2 = vmul.f32 %v8464_v54, %v13723_v12  ;;  %v6387_v24 = vsub.f32 1.0, %v13679_v26  ;;  %v6451_v23 = vmul.f32 %v8465_v10, %v13679_v26  ;;  %v13785_v45 = vpop.f32.mrf.mxu1 }
 0x5b7   : > { %v8399_v47 = vpop.eup %8398  ;;  %6943 = vst [vmem:[%s13479_s1 + $0x98] sm:$0xff] %v6911_v40  ;;  %6508 = vst [vmem:[%s13212_s4 + $0x88] sm:$0xff] %v6476_v61  ;;  %v6870_v31 = vadd.f32 %v13670_v14, %v6476_v61  ;;  %v6328_v6 = vadd.f32 %v6296_v35, %v14933_v1  ;;  %v6448_v14 = vmul.f32 %v8463_v44, %v13589_v56  ;;  %v6202_v56 = vadd.f32 1.0, %v8397_v5 }
 0x5b8   : > { %v8401_v19 = vpop.eup %8400  ;;  %v6417_v29 = vmul.f32 %v8399_v47, %v6385_v22  ;;  %v6390_v11 = vsub.f32 1.0, %v13733_v15  ;;  %v6454_v62 = vmul.f32 %v8466_v13, %v13733_v15  ;;  %v6388_v26 = vsub.f32 1.0, %v13706_v9  ;;  %v8467_v22 = vld [vmem:[%s12175_s20 + $0xc8] sm:$0xff] }
 0x5b9   : > { %v8403_v17 = vpop.eup %8402  ;;  %v6909_v55 = vadd.f32 %v13450_v41, %v6870_v31  ;;  %v6297_v8 = vmul.f32 %v8401_v19, %v14934_v50  ;;  %8424 = vtanh.f32 %v6328_v6  ;;  %v6452_v57 = vmul.f32 %v8467_v22, %v13706_v9  ;;  %v14936_v31 = vld [vmem:[#allocation62_spill] sm:$0xff]  ;;  %v6838_v19 = vpop.f32.mrf.mxu1 }
 0x5ba   : > { %v13768_v28 = vpop.eup %8404  ;;  %v6481_v32 = vadd.f32 %v6449_v3, %v6417_v29  ;;  %v6415_v48 = vmul.f32 %v8403_v17, %v6383_v20  ;;  %v6391_v9 = vsub.f32 1.0, %v13743_v38 }
 0x5bb   : > { %v8407_v42 = vpop.eup %8406  ;;  %6941 = vst [vmem:[%s13479_s1 + $0x88] sm:$0xff] %v6909_v55  ;;  %v6329_v18 = vadd.f32 %v6297_v8, %v14935_v58  ;;  %v8468_v55 = vld [vmem:[%s12175_s20 + $0xe0] sm:$0xff]  ;;  %v8469_v58 = vld [vmem:[%s12175_s20 + $0xe8] sm:$0xff] }
 0x5bc   : > { %v8409_v34 = vpop.eup %8408  ;;  %6513 = vst [vmem:[%s13212_s4 + $0xb0] sm:$0xff] %v6481_v32  ;;  %v6875_v0 = vadd.f32 %v13677_v52, %v6481_v32  ;;  %v6479_v12 = vadd.f32 %v6447_v53, %v6415_v48  ;;  %v6418_v43 = vmul.f32 %v8407_v42, %v6386_v46  ;;  %v7719_v48 = vpop.f32.mrf.mxu1  ;;  %v6392_v42 = vsub.f32 1.0, %v13768_v28 }
 0x5bd   : > { %v8411_v33 = vpop.eup %8410  ;;  %v6416_v25 = vmul.f32 %v8409_v34, %v6384_v16  ;;  %8426 = vtanh.f32 %v6329_v18  ;;  %v6456_v18 = vmul.f32 %v8469_v58, %v13768_v28 }
 0x5be   : > { %v8413_v21 = vpop.eup %8412  ;;  %v6914_v52 = vadd.f32 %v13450_v41, %v6875_v0  ;;  %6511 = vst [vmem:[%s13212_s4 + $0xa0] sm:$0xff] %v6479_v12  ;;  %v6873_v40 = vadd.f32 %v13689_v7, %v6479_v12  ;;  %v6482_v61 = vadd.f32 %v6450_v60, %v6418_v43  ;;  %v6421_v63 = vmul.f32 %v8411_v33, %v6389_v59  ;;  %v14937_v60 = vld [vmem:[#allocation119_spill] sm:$0xff]  ;;  %v6841_v34 = vpop.f32.mrf.mxu1  ;;  %v8470_v12 = vld [vmem:[%s13943_s12] ss:$0 sm:$0xff]  ;;  %v8471_v33 = vld [vmem:[%s12175_s20 + $0xf0] sm:$0xff] }
 0x5bf   : > { %v8415_v35 = vpop.eup %8414  ;;  %8428 = vrcp.f32 %v6202_v56  ;;  %v6480_v5 = vadd.f32 %v6448_v14, %v6416_v25  ;;  %v6419_v15 = vmul.f32 %v8413_v21, %v6387_v24  ;;  %v6455_v59 = vmul.f32 %v8468_v55, %v13743_v38 }
 0x5c0   : > { %v8417_v3 = vpop.eup %8416  ;;  %6946 = vst [vmem:[%s13479_s1 + $0xb0] sm:$0xff] %v6914_v52  ;;  %v6912_v20 = vadd.f32 %v13450_v41, %v6873_v40  ;;  %6514 = vst [vmem:[%s13212_s4 + $0xb8] sm:$0xff] %v6482_v61  ;;  %v6876_v47 = vadd.f32 %v13700_v36, %v6482_v61  ;;  %v6485_v7 = vadd.f32 %v6453_v2, %v6421_v63 }
 0x5c1   : > { %v6298_v49 = vmul.f32 %v8415_v35, %v14936_v31  ;;  %v8419_v53 = vpop.eup %8418  ;;  %6512 = vst [vmem:[%s13212_s4 + $0xa8] sm:$0xff] %v6480_v5  ;;  %v6874_v46 = vadd.f32 %v13711_v51, %v6480_v5  ;;  %v6483_v1 = vadd.f32 %v6451_v23, %v6419_v15  ;;  %v6422_v6 = vmul.f32 %v8417_v3, %v6390_v11  ;;  %v8472_v35 = vld [vmem:[%s12175_s20 + $0xf8] sm:$0xff]  ;;  %s8572_s20 = smov [#allocation2]  }
 0x5c2   : > { %6944 = vst [vmem:[%s13479_s1 + $0xa0] sm:$0xff] %v6912_v20  ;;  %v6915_v29 = vadd.f32 %v13450_v41, %v6876_v47  ;;  %6517 = vst [vmem:[%s13212_s4 + $0xd0] sm:$0xff] %v6485_v7  ;;  %v6879_v36 = vadd.f32 %v13719_v4, %v6485_v7  ;;  %v6420_v30 = vmul.f32 %v8419_v53, %v6388_v26  ;;  %v8421_v44 = vpop.eup %8420  ;;  %s8477_s5 = sshll.u32 %s8572_s20, 4  ;;  %s8478_s5 = int_to_ptr.vmem [resolvable:$false] %s8477_s5 }
 0x5c3   : > { %v6330_v16 = vadd.f32 %v6298_v49, %v14937_v60  ;;  %v6913_v51 = vadd.f32 %v13450_v41, %v6874_v46  ;;  %6515 = vst [vmem:[%s13212_s4 + $0xc0] sm:$0xff] %v6483_v1  ;;  %v6877_v14 = vadd.f32 %v13739_v37, %v6483_v1  ;;  %v6486_v17 = vadd.f32 %v6454_v62, %v6422_v6  ;;  %v8423_v54 = vpop.eup %8422  ;;  %s8479_s3 = scalar_lea.vmem %s8478_s5, 8192  ;;  %p8480_p0 = scmp.lt.s32.totalorder %s13848_s21, %s8478_s5 }
 0x5c4   : > { %6947 = vst [vmem:[%s13479_s1 + $0xb8] sm:$0xff] %v6915_v29  ;;  %v6918_v50 = vadd.f32 %v13450_v41, %v6879_v36  ;;  %v6484_v4 = vadd.f32 %v6452_v57, %v6420_v30  ;;  %v6423_v8 = vmul.f32 %v8421_v44, %v6391_v9  ;;  %v6457_v25 = vmul.f32 %v8471_v33, %v8423_v54  ;;  %p8481_p1 = scmp.lt.s32.totalorder %s8479_s3, %s8473_s2 }
 0x5c5   : > { %8430 = vtanh.f32 %v6330_v16  ;;  %6945 = vst [vmem:[%s13479_s1 + $0xa8] sm:$0xff] %v6913_v51  ;;  %v6916_v32 = vadd.f32 %v13450_v41, %v6877_v14  ;;  %6518 = vst [vmem:[%s13212_s4 + $0xd8] sm:$0xff] %v6486_v17  ;;  %v6880_v37 = vadd.f32 %v13757_v39, %v6486_v17 }
 0x5c6   : > { %6950 = vst [vmem:[%s13479_s1 + $0xd0] sm:$0xff] %v6918_v50  ;;  %6516 = vst [vmem:[%s13212_s4 + $0xc8] sm:$0xff] %v6484_v4  ;;  %v6878_v38 = vadd.f32 %v13776_v27, %v6484_v4  ;;  %v6487_v2 = vadd.f32 %v6455_v59, %v6423_v8  ;;  %v8425_v56 = vpop.eup %8424  ;;  %v6393_v27 = vsub.f32 1.0, %v8423_v54  ;;  %p8482_p2 = por %p8481_p1, %p8480_p0 }
 0x5c7   : > { %6948 = vst [vmem:[%s13479_s1 + $0xc0] sm:$0xff] %v6916_v32  ;;  %v6919_v24 = vadd.f32 %v13450_v41, %v6880_v37  ;;  %v6424_v23 = vmul.f32 %v8425_v56, %v6392_v42 }
 0x5c8   : > { %v6917_v10 = vadd.f32 %v13450_v41, %v6878_v38  ;;  %6519 = vst [vmem:[%s13212_s4 + $0xe0] sm:$0xff] %v6487_v2  ;;  %v6881_v39 = vadd.f32 %v6838_v19, %v6487_v2  ;;  %p8483_p3 = pnand %p8482_p2, %p8476_p13 }
 0x5c9   : > { %6951 = vst [vmem:[%s13479_s1 + $0xd8] sm:$0xff] %v6919_v24  ;;  %v6488_v43 = vadd.f32 %v6456_v18, %v6424_v23 }
 0x5ca   : > { %v8427_v0 = vpop.eup %8426  ;;  %6949 = vst [vmem:[%s13479_s1 + $0xc8] sm:$0xff] %v6917_v10  ;;  %v6920_v41 = vadd.f32 %v8470_v12, %v6881_v39 }
 0x5cb   : > { %v6425_v11 = vmul.f32 %v8427_v0, %v6393_v27  ;;  %6520 = vst [vmem:[%s13212_s4 + $0xe8] sm:$0xff] %v6488_v43  ;;  %v6882_v13 = vadd.f32 %v6841_v34, %v6488_v43 }
 0x5cc   : > { %v8429_v28 = vpop.eup %8428  ;;  %6952 = vst [vmem:[%s13479_s1 + $0xe0] sm:$0xff] %v6920_v41 }
 0x5cd   : > { %v6489_v62 = vadd.f32 %v6457_v25, %v6425_v11  ;;  %v6921_v26 = vadd.f32 %v8470_v12, %v6882_v13  ;;  %v6394_v52 = vsub.f32 1.0, %v8429_v28  ;;  %v6458_v5 = vmul.f32 %v8472_v35, %v8429_v28 }
 0x5cf   : > { %6521 = vst [vmem:[%s13212_s4 + $0xf0] sm:$0xff] %v6489_v62  ;;  %v6883_v21 = vadd.f32 %v13785_v45, %v6489_v62  ;;  %6953 = vst [vmem:[%s13479_s1 + $0xe8] sm:$0xff] %v6921_v26 }
 0x5d1   : > { %v6922_v61 = vadd.f32 %v8470_v12, %v6883_v21 }
 0x5d2   : > { %v8431_v40 = vpop.eup %8430 }
 0x5d3   : > { %v6426_v63 = vmul.f32 %v8431_v40, %v6394_v52  ;;  %6954 = vst [vmem:[%s13479_s1 + $0xf0] sm:$0xff] %v6922_v61 }
 0x5d5   : > { %v6490_v45 = vadd.f32 %v6458_v5, %v6426_v63 }
 0x5d7   : > { %6522 = vst [vmem:[%s13212_s4 + $0xf8] sm:$0xff] %v6490_v45  ;;  %v6884_v15 = vadd.f32 %v7719_v48, %v6490_v45 }
 0x5d8   : > { %8486 = shalt.err (!%p8483_p3)
}
 0x5d9   : > { %s8487_s4 = scalar_lea.hbm %s13846_s18, 4096  ;;  %s8491_s20 = scalar_lea.hbm %s13944_s13, 8192 }
 0x5da   : > { %p8488_p4 = scmp.ne.s32.totalorder %s13846_s18, %s8487_s4  ;;  %p8492_p9 = scmp.lt.s32.totalorder %s13846_s18, %s13944_s13 }
 0x5db   : > { %p8493_p10 = scmp.lt.s32.totalorder %s8491_s20, %s8487_s4 }
 0x5dc   : > { %p8489_p7 = pnand %p8488_p4, %p8689_p5 }
 0x5dd   : > { %p8494_p11 = por %p8493_p10, %p8492_p9 }
 0x5de   : > { %p8490_p8 = pneg %p8489_p7 }
 0x5e0   : > { %p8495_p12 = pnand %p8494_p11, %p8490_p8 }
 0x5e2   : > { %8498 = shalt.err (!%p8495_p12)
}
 0x5e3   : > { %s8573_s2 = smov 128   ;;  %s8574_s5 = smov 8   ;;  %v6923_v22 = vadd.f32 %v8470_v12, %v6884_v15 }
 0x5e4   : > { %s14938_s26 = scalar_lea.sflag [#allocation3], %s13151_s27  ;;  %s14939_s25 = sshll.u32 %s8672_s17, 12 }
 0x5e5   : > { %7848 = dma.vmem_to_hbm [thread:$0]  (%p8689_p5), %s13848_s21, 4096, %s13846_s18, %s14938_s26, %s8573_s2, %s8573_s2, %s8574_s5  }
 0x5e6   : > { %s13883_s4 = scalar_lea.hbm %s13945_s14, %s14939_s25  ;;  %s14940_s0 = sshll.u32 %s13479_s1, 4  ;;  %6955 = vst [vmem:[%s13479_s1 + $0xf8] sm:$0xff] %v6923_v22  ;;  %s13887_s0 = int_to_ptr.vmem [resolvable:$true] %s14940_s0 }
 0x5e7   : > { %s6962_s20 = scalar_lea.sflag [#allocation5], %s13151_s27  ;;  %s8499_s6 = scalar_lea.vmem %s13887_s0, 4096 }
 0x5e8   : > { %p8500_p13 = scmp.ne.s32.totalorder %s13887_s0, %s8499_s6  ;;  %s8575_s21 = smov [#allocation4]  }
 0x5e9   : > { %s8503_s17 = sshll.u32 %s8575_s21, 4  ;;  %s8504_s17 = int_to_ptr.vmem [resolvable:$false] %s8503_s17 }
 0x5ea   : > { %p8501_p0 = pnand %p8500_p13, %p8689_p5  ;;  %s8505_s18 = scalar_lea.vmem %s8504_s17, 8192 }
 0x5eb   : > { %p8506_p2 = scmp.lt.s32.totalorder %s13887_s0, %s8504_s17  ;;  %p8507_p3 = scmp.lt.s32.totalorder %s8505_s18, %s8499_s6 }
 0x5ec   : > { %p8502_p1 = pneg %p8501_p0 }
 0x5ed   : > { %p8508_p4 = por %p8507_p3, %p8506_p2 }
 0x5ef   : > { %p8509_p7 = pnand %p8508_p4, %p8502_p1 }
 0x5f1   : > { %8512 = shalt.err (!%p8509_p7)
}
 0x5f2   : > { %s8513_s1 = scalar_lea.hbm %s13883_s4, 4096  ;;  %s8517_s25 = scalar_lea.hbm %s13945_s14, 8192 }
 0x5f3   : > { %p8514_p8 = scmp.ne.s32.totalorder %s13883_s4, %s8513_s1  ;;  %p8518_p11 = scmp.lt.s32.totalorder %s13883_s4, %s13945_s14 }
 0x5f4   : > { %p8519_p12 = scmp.lt.s32.totalorder %s8517_s25, %s8513_s1 }
 0x5f5   : > { %p8515_p9 = pnand %p8514_p8, %p8689_p5 }
 0x5f6   : > { %p8520_p13 = por %p8519_p12, %p8518_p11 }
 0x5f7   : > { %p8516_p10 = pneg %p8515_p9 }
 0x5f9   : > { %p8521_p0 = pnand %p8520_p13, %p8516_p10 }
 0x5fb   : > { %8524 = shalt.err (!%p8521_p0)
}
 0x5fc   : > { %7849 = dma.vmem_to_hbm [thread:$0]  (%p8689_p5), %s13887_s0, 4096, %s13883_s4, %s6962_s20, %s8573_s2, %s8573_s2, %s8574_s5  }
 0x5fd PF: > { %p7859_p1 = scmp.ge.s32.totalorder %s8563_s16, 2  ;;  %s7006_s6 = sand.u32 1, %s8551_s29  }
 0x5fe   : > { %s7007_s21 = scalar_lea.sflag [#allocation3], %s7006_s6 }
 0x5ff   : > { %p7853_p2 = pnand %p7859_p1, %p8693_p6 }
 0x601   : > { %p7854_p3 = pneg %p7853_p2 }
 0x603   : > { %8542 = dma.done.wait (%p7854_p3), %s7007_s21, 4096  }
 0x604   : > { %8544 = vsyncadd (%p7854_p3), %s7007_s21, 4294963200  ;;  %s7016_s17 = scalar_lea.sflag [#allocation5], %s7006_s6 }
 0x605   : > { %8546 = dma.done.wait (%p7854_p3), %s7016_s17, 4096  }
 0x606   : > { %8548 = vsyncadd (%p7854_p3), %s7016_s17, 4294963200  ;;  %p28_p5 = scmp.ge.s32.totalorder %s8676_s19, 4   ;;  %s14941_s29 = smov %s8555_s30 }
 0x607   : > { %s14942_s30 = smov %s8559_s15  ;;  %s14943_s15 = smov %s8687_s22 }
 0x608   : > { %s14944_s16 = smov %s8676_s19  ;;  %30 = sbr.rel (!%p28_p5) target bundleno = 13 (0xd), region = 133 }
 0x60d   :  { %7021 = vsyncpa [#allocation3], 1 }
 0x60e   :  { %7023 = vsyncpa [#allocation3 + $0x1], 1 }
 0x60f   :  { %7024 = vsyncpa [#allocation5], 1 }
 0x610   :  { %7026 = vsyncpa [#allocation5 + $0x1], 1 }

</bundles_post_ra>
